<compile_context>
chip_gen: v6e
topology: v6e:2x2x1
jax: 0.10.0
libtpu: 0.0.40
codegen_flags: <defaults>
</compile_context>

<pallas_src>
import math

import jax
import jax.numpy as jnp
from jax.experimental import pallas as pl
from jax.experimental.pallas import tpu as pltpu

_WHOLE = pl.BlockSpec(memory_space=pltpu.MemorySpace.VMEM)
_VMEM_LIMIT = 32 * 1024 * 1024  # safe on v5e/v6e (128 MiB) and v7x (64 MiB)


def _round_up(x, m):
  return (x + m - 1) // m * m


def _pick_row_tile(n, cap):
  """Largest power-of-two row tile (<= cap) that divides n (n % 8 == 0)."""
  for t in (1024, 512, 256, 128, 64, 32, 16, 8):
    if t <= cap and n % t == 0:
      return t
  return 8


def _cparams(*sem):
  return pltpu.CompilerParams(dimension_semantics=sem,
                              vmem_limit_bytes=_VMEM_LIMIT)


# ----------------------------------------------------------------------------
# Fused, tiled matmul: out = post(pre(A) @ B), MXU in bf16, f32 accumulator
# ----------------------------------------------------------------------------
def _make_mm_kernel(nk, use_pre, pre_relu, use_post, post_relu):
  def kernel(*refs):
    it = iter(refs)
    a_ref, b_ref = next(it), next(it)
    ps_ref = pb_ref = qs_ref = qb_ref = None
    if use_pre:
      ps_ref, pb_ref = next(it), next(it)
    if use_post:
      qs_ref, qb_ref = next(it), next(it)
    o_ref, acc_ref = next(it), next(it)

    @pl.when(pl.program_id(2) == 0)
    def _():
      acc_ref[...] = jnp.zeros_like(acc_ref)

    a = a_ref[...]
    if use_pre:                       # fused BN(+ReLU) before the conv, in f32
      a = a.astype(jnp.float32) * ps_ref[...] + pb_ref[...]
      if pre_relu:
        a = jnp.maximum(a, 0.0)
    acc_ref[...] += jnp.dot(a.astype(jnp.bfloat16), b_ref[...],
                            preferred_element_type=jnp.float32)

    @pl.when(pl.program_id(2) == nk - 1)
    def _():
      y = acc_ref[...]
      if use_post:                    # fused BN(+ReLU)/bias after the conv, f32
        y = y * qs_ref[...] + qb_ref[...]
        if post_relu:
          y = jnp.maximum(y, 0.0)
      o_ref[...] = y.astype(o_ref.dtype)

  return kernel


def fused_matmul(a, b, *, pre=None, pre_relu=False, post=None,
                 post_relu=False, out_dtype=jnp.float32):
  """pre / post are (scale, bias) row vectors over K / N columns."""
  M, K = a.shape
  Kb, N = b.shape
  assert K == Kb, (a.shape, b.shape)

  # Row tile: largest tile that divides the row count -> no pad copy of the
  # (large) activation slab.
  Mp = _round_up(M, 8)
  tm = _pick_row_tile(Mp, 512)
  # K: single full-width block when it fits (no pad copy, single pass);
  # otherwise 512-wide blocks with accumulation over the K grid axis.
  if K <= 2048:
    tk, Kp = K, K
  else:
    tk, Kp = 512, _round_up(K, 512)
  # N: lane-dense tiles when N is a 128 multiple; otherwise keep the small
  # full width so we never write (and re-slice) a 4x padded output slab.
  if N % 128 == 0:
    tn, Np = (256 if N % 256 == 0 else 128), N
  elif N <= 256:
    tn, Np = N, N
  else:
    tn, Np = 128, _round_up(N, 128)

  if (Mp, Kp) != (M, K):
    a = jnp.pad(a, ((0, Mp - M), (0, Kp - K)))
  b = b.astype(jnp.bfloat16)
  if (Kp, Np) != (K, N):
    b = jnp.pad(b, ((0, Kp - K), (0, Np - N)))

  grid = (Mp // tm, Np // tn, Kp // tk)
  nk = grid[2]

  inputs = [a, b]
  in_specs = [pl.BlockSpec((tm, tk), lambda i, j, k: (i, k)),
              pl.BlockSpec((tk, tn), lambda i, j, k: (k, j))]

  def _vec(v, width):
    v = v.astype(jnp.float32).reshape(1, -1)
    if v.shape[1] != width:
      v = jnp.pad(v, ((0, 0), (0, width - v.shape[1])))
    return v

  if pre is not None:
    inputs += [_vec(pre[0], Kp), _vec(pre[1], Kp)]
    in_specs += [pl.BlockSpec((1, tk), lambda i, j, k: (0, k))] * 2
  if post is not None:
    inputs += [_vec(post[0], Np), _vec(post[1], Np)]
    in_specs += [pl.BlockSpec((1, tn), lambda i, j, k: (0, j))] * 2

  kernel = _make_mm_kernel(nk, pre is not None, pre_relu,
                           post is not None, post_relu)
  cost = pl.CostEstimate(
      flops=2 * M * K * N,
      transcendentals=0,
      bytes_accessed=int(a.size) * a.dtype.itemsize + int(b.size) * 2
      + M * N * jnp.dtype(out_dtype).itemsize)

  out = pl.pallas_call(
      kernel,
      out_shape=jax.ShapeDtypeStruct((Mp, Np), out_dtype),
      grid_spec=pltpu.PrefetchScalarGridSpec(
          num_scalar_prefetch=0,
          grid=grid,
          in_specs=in_specs,
          out_specs=pl.BlockSpec((tm, tn), lambda i, j, k: (i, j)),
          scratch_shapes=[pltpu.VMEM((tm, tn), jnp.float32)]),
      compiler_params=_cparams("parallel", "parallel", "arbitrary"),
      cost_estimate=cost,
  )(*inputs)
  if (Mp, Np) != (M, N):
    out = out[:M, :N]
  return out


# ----------------------------------------------------------------------------
# Conv = im2col + fused matmul
# ----------------------------------------------------------------------------
def _extract_patches(x, k, stride, pad):
  """im2col glue: (B,H,W,C) -> (B,Ho,Wo,k*k*C), (kh,kw,C)-ordered columns."""
  # TODO(synk): gather the k*k taps inside the matmul kernel (shifted
  # BlockSpecs / tap-accumulation grid) instead of materializing them in HBM.
  B, H, W, C = x.shape
  if pad:
    x = jnp.pad(x, ((0, 0), (pad, pad), (pad, pad), (0, 0)))
  Ho = (H + 2 * pad - k) // stride + 1
  Wo = (W + 2 * pad - k) // stride + 1
  cols = []
  for i in range(k):
    for j in range(k):
      cols.append(x[:, i:i + stride * (Ho - 1) + 1:stride,
                    j:j + stride * (Wo - 1) + 1:stride, :])
  return jnp.concatenate(cols, axis=-1), Ho, Wo


def conv2d(x, w, *, k, stride, pad, pre=None, pre_relu=False,
           post=None, post_relu=False, out_dtype=jnp.bfloat16):
  """Bias-free conv (+ fused pre-/post-norm) as im2col + tiled MXU matmul."""
  B = x.shape[0]
  if k == 1 and stride == 1 and pad == 0:
    patches, Ho, Wo = x, x.shape[1], x.shape[2]
  else:
    # Pre-norm fusion is only valid when the conv does not zero-pad (padding
    # must see post-activation zeros); all padded convs here pass pre=None.
    assert pre is None or pad == 0
    patches, Ho, Wo = _extract_patches(x, k, stride, pad)
    if pre is not None:
      pre = (jnp.tile(pre[0], (1, k * k)), jnp.tile(pre[1], (1, k * k)))
  a = patches.reshape(B * Ho * Wo, -1)
  out = fused_matmul(a, w, pre=pre, pre_relu=pre_relu,
                     post=post, post_relu=post_relu, out_dtype=out_dtype)
  return out.reshape(B, Ho, Wo, w.shape[1])


# ----------------------------------------------------------------------------
# Row-tiled elementwise / pooling kernels
# ----------------------------------------------------------------------------
def _ew_max_kernel(*refs):
  ins, o_ref = refs[:-1], refs[-1]
  acc = ins[0][...]
  for r in ins[1:]:
    acc = jnp.maximum(acc, r[...])
  o_ref[...] = acc.astype(o_ref.dtype)


def _ew_mean_kernel(*refs):
  ins, o_ref = refs[:-1], refs[-1]
  acc = ins[0][...].astype(jnp.float32)
  for r in ins[1:]:
    acc = acc + r[...].astype(jnp.float32)
  o_ref[...] = (acc * (1.0 / len(ins))).astype(o_ref.dtype)


def _tiled_elementwise(kernel, inputs, out_dtype):
  """Row-tiled (512-1024 rows x full-C) combine of same-shape (M, C) arrays."""
  M, C = inputs[0].shape
  Mp = _round_up(M, 8)
  if Mp != M:
    inputs = [jnp.pad(v, ((0, Mp - M), (0, 0))) for v in inputs]
  tm = _pick_row_tile(Mp, 1024)
  spec = pl.BlockSpec((tm, C), lambda i: (i, 0))
  out = pl.pallas_call(
      kernel,
      out_shape=jax.ShapeDtypeStruct((Mp, C), out_dtype),
      grid=(Mp // tm,),
      in_specs=[spec] * len(inputs),
      out_specs=spec,
      compiler_params=_cparams("parallel"),
  )(*inputs)
  return out[:M] if Mp != M else out


def max_pool_3x3_s2_p1(x):
  """MaxPool2d(3, stride=2, padding=1), separably: 3-tap row max via
  shifted-row BlockSpecs (no 9x window stack), then a tiled 3-tap column max.
  Padding with dtype-min is exact here (input is post-ReLU, every window has
  at least one valid element)."""
  B, H, W, C = x.shape
  Ho = (H + 2 - 3) // 2 + 1
  Wo = (W + 2 - 3) // 2 + 1
  neg = float(jnp.finfo(x.dtype).min)
  xp = jnp.pad(x, ((0, 0), (1, 1), (1, 1), (0, 0)), constant_values=neg)
  Wp = W + 2

  def row_spec(d):
    return pl.BlockSpec((1, 1, Wp, C), lambda b, r, d=d: (b, 2 * r + d, 0, 0))

  v = pl.pallas_call(
      _ew_max_kernel,
      out_shape=jax.ShapeDtypeStruct((B, Ho, Wp, C), x.dtype),
      grid=(B, Ho),
      in_specs=[row_spec(0), row_spec(1), row_spec(2)],
      out_specs=pl.BlockSpec((1, 1, Wp, C), lambda b, r: (b, r, 0, 0)),
      compiler_params=_cparams("parallel", "parallel"),
  )(xp, xp, xp)

  cols = [v[:, :, d:d + 2 * Wo:2, :].reshape(B * Ho * Wo, C) for d in range(3)]
  out = _tiled_elementwise(_ew_max_kernel, cols, x.dtype)
  return out.reshape(B, Ho, Wo, C)


def avg_pool_2x2_s2(x):
  """AvgPool2d(2, stride=2) as a row-tiled 4-tap mean over strided views."""
  B, H, W, C = x.shape
  Ho, Wo = H // 2, W // 2
  x = x[:, :2 * Ho, :2 * Wo, :]
  taps = [x[:, i::2, j::2, :].reshape(B * Ho * Wo, C)
          for i in range(2) for j in range(2)]
  out = _tiled_elementwise(_ew_mean_kernel, taps, x.dtype)
  return out.reshape(B, Ho, Wo, C)


def _norm_relu_gap_kernel(x_ref, s_ref, b_ref, o_ref):
  x = x_ref[...].astype(jnp.float32) * s_ref[...] + b_ref[...]
  x = jnp.maximum(x, 0.0)
  o_ref[...] = jnp.mean(x, axis=1)


def norm_relu_global_avg_pool(x, scale, bias):
  """Fused norm5 + forward()'s relu + adaptive_avg_pool2d((1,1)) + flatten.
  Shapes are tiny, so a single whole-array call is fine here."""
  B, H, W, C = x.shape
  x3 = x.reshape(B, H * W, C)
  return pl.pallas_call(
      _norm_relu_gap_kernel,
      out_shape=jax.ShapeDtypeStruct((B, C), jnp.float32),
      in_specs=[_WHOLE, _WHOLE, _WHOLE],
      out_specs=_WHOLE,
  )(x3, scale.reshape(1, 1, C), bias.reshape(1, 1, C))


# ----------------------------------------------------------------------------
# Deterministic synthetic parameters (DenseNet topology, folded eval-mode BN)
# ----------------------------------------------------------------------------
class _KeyGen:
  def __init__(self, key):
    self._key, self._i = key, 0

  def __call__(self):
    self._i += 1
    return jax.random.fold_in(self._key, self._i)


def _conv_w(key, cin, cout, k):
  fan_in = cin * k * k
  std = math.sqrt(2.0 / fan_in)                 # kaiming_normal, like torchvision
  w = std * jax.random.normal(key, (k * k * cin, cout), jnp.float32)
  return w.astype(jnp.bfloat16)                 # bf16 weights for the MXU


def _bn(key, c, eps):
  k1, k2, k3 = jax.random.split(key, 3)
  gamma = 1.0 + 0.05 * jax.random.normal(k1, (c,), jnp.float32)
  beta = 0.05 * jax.random.normal(k2, (c,), jnp.float32)
  mean = 0.05 * jax.random.normal(k3, (c,), jnp.float32)
  var = jnp.ones((c,), jnp.float32)
  scale = gamma / jnp.sqrt(var + eps)
  bias = beta - mean * scale
  return scale.reshape(1, c), bias.reshape(1, c)


def make_densenet_params(key, *, growth_rate, block_config, num_init_features,
                         bn_size, num_classes, bn_eps=1e-5):
  # TODO(synk): loading the torchvision densenet121 checkpoint has no Pallas
  # equivalent; real torch weights would need a (cout,cin,kh,kw) ->
  # ((kh,kw,cin),cout) permutation to match the im2col column ordering.
  kg = _KeyGen(key)
  params = {
      "conv0_w": _conv_w(kg(), 3, num_init_features, 7),
      "norm0": _bn(kg(), num_init_features, bn_eps),
      "blocks": [],
  }
  num_features = num_init_features
  for bi, num_layers in enumerate(block_config):
    layers = []
    for li in range(num_layers):
      cin = num_features + li * growth_rate
      layers.append(dict(
          norm1=_bn(kg(), cin, bn_eps),
          conv1_w=_conv_w(kg(), cin, bn_size * growth_rate, 1),
          norm2=_bn(kg(), bn_size * growth_rate, bn_eps),
          conv2_w=_conv_w(kg(), bn_size * growth_rate, growth_rate, 3),
      ))
    num_features += num_layers * growth_rate
    block = dict(layers=layers)
    if bi != len(block_config) - 1:
      block["trans"] = dict(
          norm=_bn(kg(), num_features, bn_eps),
          conv_w=_conv_w(kg(), num_features, num_features // 2, 1),
      )
      num_features //= 2
    params["blocks"].append(block)
  params["norm5"] = _bn(kg(), num_features, bn_eps)
  # replaced classifier (change_fc_layer): Linear(num_features, num_classes)
  bound = 1.0 / math.sqrt(num_features)
  params["fc_w"] = jax.random.uniform(
      kg(), (num_features, num_classes), jnp.float32, -bound, bound
  ).astype(jnp.bfloat16)
  params["fc_b"] = jax.random.uniform(kg(), (1, num_classes), jnp.float32,
                                      -bound, bound)
  return params


# ----------------------------------------------------------------------------
# Forward pass (mirrors torchvision DenseNet.forward)
# ----------------------------------------------------------------------------
def densenet_forward(params, x_nchw):
  x = jnp.transpose(x_nchw, (0, 2, 3, 1)).astype(jnp.bfloat16)  # NCHW -> NHWC
  # features: conv0 (norm0 + relu0 fused as the matmul epilogue) -> pool0
  x = conv2d(x, params["conv0_w"], k=7, stride=2, pad=3,
             post=params["norm0"], post_relu=True)
  x = max_pool_3x3_s2_p1(x)
  # dense blocks + transitions
  for block in params["blocks"]:
    for layer in block["layers"]:
      # norm1+relu fused as the prologue and norm2+relu as the epilogue of the
      # 1x1 bottleneck matmul: no standalone BN/ReLU passes over HBM.
      y = conv2d(x, layer["conv1_w"], k=1, stride=1, pad=0,
                 pre=layer["norm1"], pre_relu=True,
                 post=layer["norm2"], post_relu=True)
      y = conv2d(y, layer["conv2_w"], k=3, stride=1, pad=1)
      # TODO(synk): write y in place into a preallocated, 128-lane-aligned
      # block buffer (input_output_aliases) instead of re-concatenating.
      x = jnp.concatenate([x, y], axis=-1)
    if "trans" in block:
      x = conv2d(x, block["trans"]["conv_w"], k=1, stride=1, pad=0,
                 pre=block["trans"]["norm"], pre_relu=True)
      x = avg_pool_2x2_s2(x)
  # final norm5, then forward(): relu -> global avg pool -> classifier
  pooled = norm_relu_global_avg_pool(x, *params["norm5"])
  nc = params["fc_b"].shape[1]
  logits = fused_matmul(pooled, params["fc_w"],
                        post=(jnp.ones((1, nc), jnp.float32), params["fc_b"]),
                        out_dtype=jnp.float32)
  return logits


if __name__ == "__main__":
  key = jax.random.PRNGKey(0)
  # Scaled-down DenseNet config for a fast test run.
  # (Real densenet121: growth_rate=32, block_config=(6,12,24,16),
  #  num_init_features=64, bn_size=4 — same code path, just larger.)
  params = make_densenet_params(
      jax.random.fold_in(key, 1),
      growth_rate=8, block_config=(2, 2, 2, 2),
      num_init_features=16, bn_size=4, num_classes=2)
  x = jax.random.normal(jax.random.fold_in(key, 2), (2, 3, 32, 32), jnp.float32)

  logits = jax.jit(densenet_forward)(params, x)
  jax.block_until_ready(logits)

  assert logits.shape == (2, 2), logits.shape
  assert bool(jnp.all(jnp.isfinite(logits)))
  print("KERNEL_OK")
</pallas_src>

<mosaic_0001>
module attributes {stable_mosaic.version = 11 : i64} {
  func.func @kernel(%arg0: i32, %arg1: i32, %arg2: i32, %arg3: memref<512x147xbf16, #tpu.memory_space<vmem>>, %arg4: memref<147x16xbf16, #tpu.memory_space<vmem>>, %arg5: memref<1x16xf32, #tpu.memory_space<vmem>>, %arg6: memref<1x16xf32, #tpu.memory_space<vmem>>, %arg7: memref<512x16xbf16, #tpu.memory_space<vmem>>, %arg8: memref<512x16xf32, #tpu.memory_space<vmem>>) attributes {dimension_semantics = [#tpu.dimension_semantics<parallel>, #tpu.dimension_semantics<parallel>, #tpu.dimension_semantics<arbitrary>], iteration_bounds = array<i64: 1, 1, 1>, scalar_prefetch = 0 : i64, scratch_operands = 1 : i64, tpu.core_type = #tpu.core_type<tc>, window_params = [{transform_indices = @transform_0, window_bounds = array<i64: 512, 147>}, {transform_indices = @transform_1, window_bounds = array<i64: 147, 16>}, {transform_indices = @transform_2, window_bounds = array<i64: 1, 16>}, {transform_indices = @transform_3, window_bounds = array<i64: 1, 16>}, {transform_indices = @transform_4, window_bounds = array<i64: 512, 16>}]} {
    %c0_i32 = arith.constant 0 : i32
    %0 = arith.cmpi eq, %arg2, %c0_i32 : i32
    %1 = arith.extui %0 : i1 to i32
    %c0_i32_0 = arith.constant 0 : i32
    %2 = arith.cmpi ne, %1, %c0_i32_0 : i32
    scf.if %2 {
      %cst_10 = arith.constant 0.000000e+00 : f32
      %12 = vector.broadcast %cst_10 : f32 to vector<512x16xf32>
      %c0_11 = arith.constant 0 : index
      %c0_12 = arith.constant 0 : index
      %13 = vector.load %arg8[%c0_11, %c0_12] : memref<512x16xf32, #tpu.memory_space<vmem>>, vector<512x16xf32>
      tpu.vector_store %arg8[%c0_11, %c0_12], %12 {strides = array<i32>} : memref<512x16xf32, #tpu.memory_space<vmem>>, vector<512x16xf32>,
    } else {
    }
    %c0 = arith.constant 0 : index
    %c0_1 = arith.constant 0 : index
    %3 = vector.load %arg3[%c0, %c0_1] : memref<512x147xbf16, #tpu.memory_space<vmem>>, vector<512x147xbf16>
    %c0_2 = arith.constant 0 : index
    %c0_3 = arith.constant 0 : index
    %4 = vector.load %arg8[%c0_2, %c0_3] : memref<512x16xf32, #tpu.memory_space<vmem>>, vector<512x16xf32>
    %c0_4 = arith.constant 0 : index
    %c0_5 = arith.constant 0 : index
    %5 = vector.load %arg4[%c0_4, %c0_5] : memref<147x16xbf16, #tpu.memory_space<vmem>>, vector<147x16xbf16>
    %cst = arith.constant dense<0.000000e+00> : vector<512x16xf32>
    %6 = tpu.matmul %3, %5, %cst {dimension_numbers = #tpu.dot_dimension_numbers<[1], [0], [0], [1], [0, 0, 1, 1], [], []>} : vector<512x147xbf16>, vector<147x16xbf16>, vector<512x16xf32> -> vector<512x16xf32>
    %7 = arith.addf %4, %6 : vector<512x16xf32>
    %c0_6 = arith.constant 0 : index
    %c0_7 = arith.constant 0 : index
    %8 = vector.load %arg8[%c0_6, %c0_7] : memref<512x16xf32, #tpu.memory_space<vmem>>, vector<512x16xf32>
    tpu.vector_store %arg8[%c0_6, %c0_7], %7 {strides = array<i32>} : memref<512x16xf32, #tpu.memory_space<vmem>>, vector<512x16xf32>,
    %c0_i32_8 = arith.constant 0 : i32
    %9 = arith.cmpi eq, %arg2, %c0_i32_8 : i32
    %10 = arith.extui %9 : i1 to i32
    %c0_i32_9 = arith.constant 0 : i32
    %11 = arith.cmpi ne, %10, %c0_i32_9 : i32
    scf.if %11 {
      %c0_10 = arith.constant 0 : index
      %c0_11 = arith.constant 0 : index
      %12 = vector.load %arg8[%c0_10, %c0_11] : memref<512x16xf32, #tpu.memory_space<vmem>>, vector<512x16xf32>
      %c0_12 = arith.constant 0 : index
      %c0_13 = arith.constant 0 : index
      %13 = vector.load %arg5[%c0_12, %c0_13] : memref<1x16xf32, #tpu.memory_space<vmem>>, vector<1x16xf32>
      %14 = vector.broadcast %13 : vector<1x16xf32> to vector<512x16xf32>
      %15 = arith.mulf %12, %14 : vector<512x16xf32>
      %c0_14 = arith.constant 0 : index
      %c0_15 = arith.constant 0 : index
      %16 = vector.load %arg6[%c0_14, %c0_15] : memref<1x16xf32, #tpu.memory_space<vmem>>, vector<1x16xf32>
      %17 = vector.broadcast %16 : vector<1x16xf32> to vector<512x16xf32>
      %18 = arith.addf %15, %17 : vector<512x16xf32>
      %cst_16 = arith.constant 0.000000e+00 : f32
      %19 = vector.broadcast %cst_16 : f32 to vector<512x16xf32>
      %20 = arith.maximumf %18, %19 : vector<512x16xf32>
      %21 = arith.truncf %20 : vector<512x16xf32> to vector<512x16xbf16>
      %c0_17 = arith.constant 0 : index
      %c0_18 = arith.constant 0 : index
      %22 = vector.load %arg7[%c0_17, %c0_18] : memref<512x16xbf16, #tpu.memory_space<vmem>>, vector<512x16xbf16>
      tpu.vector_store %arg7[%c0_17, %c0_18], %21 {strides = array<i32>} : memref<512x16xbf16, #tpu.memory_space<vmem>>, vector<512x16xbf16>,
    } else {
    }
    return
  }
  func.func @transform_0(%arg0: i32, %arg1: i32, %arg2: i32) -> (i32, i32) {
    %c0_i32 = arith.constant 0 : i32
    return %arg0, %arg2 : i32, i32
  }
  func.func @transform_1(%arg0: i32, %arg1: i32, %arg2: i32) -> (i32, i32) {
    %c0_i32 = arith.constant 0 : i32
    return %arg2, %arg1 : i32, i32
  }
  func.func @transform_2(%arg0: i32, %arg1: i32, %arg2: i32) -> (i32, i32) {
    %c0_i32 = arith.constant 0 : i32
    %c0_i32_0 = arith.constant 0 : i32
    return %c0_i32, %arg1 : i32, i32
  }
  func.func @transform_3(%arg0: i32, %arg1: i32, %arg2: i32) -> (i32, i32) {
    %c0_i32 = arith.constant 0 : i32
    %c0_i32_0 = arith.constant 0 : i32
    return %c0_i32, %arg1 : i32, i32
  }
  func.func @transform_4(%arg0: i32, %arg1: i32, %arg2: i32) -> (i32, i32) {
    %c0_i32 = arith.constant 0 : i32
    return %arg0, %arg1 : i32, i32
  }
}

module attributes {stable_mosaic.version = 11 : i64} {
  func.func @_ew_max_kernel(%arg0: i32, %arg1: i32, %arg2: memref<1x1x18x16xbf16, #tpu.memory_space<vmem>>, %arg3: memref<1x1x18x16xbf16, #tpu.memory_space<vmem>>, %arg4: memref<1x1x18x16xbf16, #tpu.memory_space<vmem>>, %arg5: memref<1x1x18x16xbf16, #tpu.memory_space<vmem>>) attributes {dimension_semantics = [#tpu.dimension_semantics<parallel>, #tpu.dimension_semantics<parallel>], iteration_bounds = array<i64: 2, 8>, scalar_prefetch = 0 : i64, scratch_operands = 0 : i64, tpu.core_type = #tpu.core_type<tc>, window_params = [{transform_indices = @transform_0, window_bounds = array<i64: 1, 1, 18, 16>}, {transform_indices = @transform_1, window_bounds = array<i64: 1, 1, 18, 16>}, {transform_indices = @transform_2, window_bounds = array<i64: 1, 1, 18, 16>}, {transform_indices = @transform_3, window_bounds = array<i64: 1, 1, 18, 16>}]} {
    %c0 = arith.constant 0 : index
    %c0_0 = arith.constant 0 : index
    %c0_1 = arith.constant 0 : index
    %c0_2 = arith.constant 0 : index
    %0 = vector.load %arg2[%c0, %c0_0, %c0_1, %c0_2] : memref<1x1x18x16xbf16, #tpu.memory_space<vmem>>, vector<1x1x18x16xbf16>
    %c0_3 = arith.constant 0 : index
    %c0_4 = arith.constant 0 : index
    %c0_5 = arith.constant 0 : index
    %c0_6 = arith.constant 0 : index
    %1 = vector.load %arg3[%c0_3, %c0_4, %c0_5, %c0_6] : memref<1x1x18x16xbf16, #tpu.memory_space<vmem>>, vector<1x1x18x16xbf16>
    %2 = arith.maximumf %0, %1 : vector<1x1x18x16xbf16>
    %c0_7 = arith.constant 0 : index
    %c0_8 = arith.constant 0 : index
    %c0_9 = arith.constant 0 : index
    %c0_10 = arith.constant 0 : index
    %3 = vector.load %arg4[%c0_7, %c0_8, %c0_9, %c0_10] : memref<1x1x18x16xbf16, #tpu.memory_space<vmem>>, vector<1x1x18x16xbf16>
    %4 = arith.maximumf %2, %3 : vector<1x1x18x16xbf16>
    %c0_11 = arith.constant 0 : index
    %c0_12 = arith.constant 0 : index
    %c0_13 = arith.constant 0 : index
    %c0_14 = arith.constant 0 : index
    %5 = vector.load %arg5[%c0_11, %c0_12, %c0_13, %c0_14] : memref<1x1x18x16xbf16, #tpu.memory_space<vmem>>, vector<1x1x18x16xbf16>
    tpu.vector_store %arg5[%c0_11, %c0_12, %c0_13, %c0_14], %4 {strides = array<i32>} : memref<1x1x18x16xbf16, #tpu.memory_space<vmem>>, vector<1x1x18x16xbf16>,
    return
  }
  func.func @transform_0(%arg0: i32, %arg1: i32) -> (i32, i32, i32, i32) {
    %c2_i32 = arith.constant 2 : i32
    %0 = arith.muli %c2_i32, %arg1 : i32
    %c0_i32 = arith.constant 0 : i32
    %1 = arith.addi %0, %c0_i32 : i32
    %c0_i32_0 = arith.constant 0 : i32
    %c0_i32_1 = arith.constant 0 : i32
    %c0_i32_2 = arith.constant 0 : i32
    return %arg0, %1, %c0_i32_0, %c0_i32_1 : i32, i32, i32, i32
  }
  func.func @transform_1(%arg0: i32, %arg1: i32) -> (i32, i32, i32, i32) {
    %c2_i32 = arith.constant 2 : i32
    %0 = arith.muli %c2_i32, %arg1 : i32
    %c1_i32 = arith.constant 1 : i32
    %1 = arith.addi %0, %c1_i32 : i32
    %c0_i32 = arith.constant 0 : i32
    %c0_i32_0 = arith.constant 0 : i32
    %c0_i32_1 = arith.constant 0 : i32
    return %arg0, %1, %c0_i32, %c0_i32_0 : i32, i32, i32, i32
  }
  func.func @transform_2(%arg0: i32, %arg1: i32) -> (i32, i32, i32, i32) {
    %c2_i32 = arith.constant 2 : i32
    %0 = arith.muli %c2_i32, %arg1 : i32
    %c2_i32_0 = arith.constant 2 : i32
    %1 = arith.addi %0, %c2_i32_0 : i32
    %c0_i32 = arith.constant 0 : i32
    %c0_i32_1 = arith.constant 0 : i32
    %c0_i32_2 = arith.constant 0 : i32
    return %arg0, %1, %c0_i32, %c0_i32_1 : i32, i32, i32, i32
  }
  func.func @transform_3(%arg0: i32, %arg1: i32) -> (i32, i32, i32, i32) {
    %c0_i32 = arith.constant 0 : i32
    %c0_i32_0 = arith.constant 0 : i32
    %c0_i32_1 = arith.constant 0 : i32
    return %arg0, %arg1, %c0_i32, %c0_i32_0 : i32, i32, i32, i32
  }
}

module attributes {stable_mosaic.version = 11 : i64} {
  func.func @kernel(%arg0: i32, %arg1: i32, %arg2: i32, %arg3: memref<128x16xbf16, #tpu.memory_space<vmem>>, %arg4: memref<16x32xbf16, #tpu.memory_space<vmem>>, %arg5: memref<1x16xf32, #tpu.memory_space<vmem>>, %arg6: memref<1x16xf32, #tpu.memory_space<vmem>>, %arg7: memref<1x32xf32, #tpu.memory_space<vmem>>, %arg8: memref<1x32xf32, #tpu.memory_space<vmem>>, %arg9: memref<128x32xbf16, #tpu.memory_space<vmem>>, %arg10: memref<128x32xf32, #tpu.memory_space<vmem>>) attributes {dimension_semantics = [#tpu.dimension_semantics<parallel>, #tpu.dimension_semantics<parallel>, #tpu.dimension_semantics<arbitrary>], iteration_bounds = array<i64: 1, 1, 1>, scalar_prefetch = 0 : i64, scratch_operands = 1 : i64, tpu.core_type = #tpu.core_type<tc>, window_params = [{transform_indices = @transform_0, window_bounds = array<i64: 128, 16>}, {transform_indices = @transform_1, window_bounds = array<i64: 16, 32>}, {transform_indices = @transform_2, window_bounds = array<i64: 1, 16>}, {transform_indices = @transform_3, window_bounds = array<i64: 1, 16>}, {transform_indices = @transform_4, window_bounds = array<i64: 1, 32>}, {transform_indices = @transform_5, window_bounds = array<i64: 1, 32>}, {transform_indices = @transform_6, window_bounds = array<i64: 128, 32>}]} {
    %c0_i32 = arith.constant 0 : i32
    %0 = arith.cmpi eq, %arg2, %c0_i32 : i32
    %1 = arith.extui %0 : i1 to i32
    %c0_i32_0 = arith.constant 0 : i32
    %2 = arith.cmpi ne, %1, %c0_i32_0 : i32
    scf.if %2 {
      %cst_15 = arith.constant 0.000000e+00 : f32
      %22 = vector.broadcast %cst_15 : f32 to vector<128x32xf32>
      %c0_16 = arith.constant 0 : index
      %c0_17 = arith.constant 0 : index
      %23 = vector.load %arg10[%c0_16, %c0_17] : memref<128x32xf32, #tpu.memory_space<vmem>>, vector<128x32xf32>
      tpu.vector_store %arg10[%c0_16, %c0_17], %22 {strides = array<i32>} : memref<128x32xf32, #tpu.memory_space<vmem>>, vector<128x32xf32>,
    } else {
    }
    %c0 = arith.constant 0 : index
    %c0_1 = arith.constant 0 : index
    %3 = vector.load %arg3[%c0, %c0_1] : memref<128x16xbf16, #tpu.memory_space<vmem>>, vector<128x16xbf16>
    %4 = arith.extf %3 : vector<128x16xbf16> to vector<128x16xf32>
    %c0_2 = arith.constant 0 : index
    %c0_3 = arith.constant 0 : index
    %5 = vector.load %arg5[%c0_2, %c0_3] : memref<1x16xf32, #tpu.memory_space<vmem>>, vector<1x16xf32>
    %6 = vector.broadcast %5 : vector<1x16xf32> to vector<128x16xf32>
    %7 = arith.mulf %4, %6 : vector<128x16xf32>
    %c0_4 = arith.constant 0 : index
    %c0_5 = arith.constant 0 : index
    %8 = vector.load %arg6[%c0_4, %c0_5] : memref<1x16xf32, #tpu.memory_space<vmem>>, vector<1x16xf32>
    %9 = vector.broadcast %8 : vector<1x16xf32> to vector<128x16xf32>
    %10 = arith.addf %7, %9 : vector<128x16xf32>
    %cst = arith.constant 0.000000e+00 : f32
    %11 = vector.broadcast %cst : f32 to vector<128x16xf32>
    %12 = arith.maximumf %10, %11 : vector<128x16xf32>
    %c0_6 = arith.constant 0 : index
    %c0_7 = arith.constant 0 : index
    %13 = vector.load %arg10[%c0_6, %c0_7] : memref<128x32xf32, #tpu.memory_space<vmem>>, vector<128x32xf32>
    %14 = arith.truncf %12 : vector<128x16xf32> to vector<128x16xbf16>
    %c0_8 = arith.constant 0 : index
    %c0_9 = arith.constant 0 : index
    %15 = vector.load %arg4[%c0_8, %c0_9] : memref<16x32xbf16, #tpu.memory_space<vmem>>, vector<16x32xbf16>
    %cst_10 = arith.constant dense<0.000000e+00> : vector<128x32xf32>
    %16 = tpu.matmul %14, %15, %cst_10 {dimension_numbers = #tpu.dot_dimension_numbers<[1], [0], [0], [1], [0, 0, 1, 1], [], []>} : vector<128x16xbf16>, vector<16x32xbf16>, vector<128x32xf32> -> vector<128x32xf32>
    %17 = arith.addf %13, %16 : vector<128x32xf32>
    %c0_11 = arith.constant 0 : index
    %c0_12 = arith.constant 0 : index
    %18 = vector.load %arg10[%c0_11, %c0_12] : memref<128x32xf32, #tpu.memory_space<vmem>>, vector<128x32xf32>
    tpu.vector_store %arg10[%c0_11, %c0_12], %17 {strides = array<i32>} : memref<128x32xf32, #tpu.memory_space<vmem>>, vector<128x32xf32>,
    %c0_i32_13 = arith.constant 0 : i32
    %19 = arith.cmpi eq, %arg2, %c0_i32_13 : i32
    %20 = arith.extui %19 : i1 to i32
    %c0_i32_14 = arith.constant 0 : i32
    %21 = arith.cmpi ne, %20, %c0_i32_14 : i32
    scf.if %21 {
      %c0_15 = arith.constant 0 : index
      %c0_16 = arith.constant 0 : index
      %22 = vector.load %arg10[%c0_15, %c0_16] : memref<128x32xf32, #tpu.memory_space<vmem>>, vector<128x32xf32>
      %c0_17 = arith.constant 0 : index
      %c0_18 = arith.constant 0 : index
      %23 = vector.load %arg7[%c0_17, %c0_18] : memref<1x32xf32, #tpu.memory_space<vmem>>, vector<1x32xf32>
      %24 = vector.broadcast %23 : vector<1x32xf32> to vector<128x32xf32>
      %25 = arith.mulf %22, %24 : vector<128x32xf32>
      %c0_19 = arith.constant 0 : index
      %c0_20 = arith.constant 0 : index
      %26 = vector.load %arg8[%c0_19, %c0_20] : memref<1x32xf32, #tpu.memory_space<vmem>>, vector<1x32xf32>
      %27 = vector.broadcast %26 : vector<1x32xf32> to vector<128x32xf32>
      %28 = arith.addf %25, %27 : vector<128x32xf32>
      %cst_21 = arith.constant 0.000000e+00 : f32
      %29 = vector.broadcast %cst_21 : f32 to vector<128x32xf32>
      %30 = arith.maximumf %28, %29 : vector<128x32xf32>
      %31 = arith.truncf %30 : vector<128x32xf32> to vector<128x32xbf16>
      %c0_22 = arith.constant 0 : index
      %c0_23 = arith.constant 0 : index
      %32 = vector.load %arg9[%c0_22, %c0_23] : memref<128x32xbf16, #tpu.memory_space<vmem>>, vector<128x32xbf16>
      tpu.vector_store %arg9[%c0_22, %c0_23], %31 {strides = array<i32>} : memref<128x32xbf16, #tpu.memory_space<vmem>>, vector<128x32xbf16>,
    } else {
    }
    return
  }
  func.func @transform_0(%arg0: i32, %arg1: i32, %arg2: i32) -> (i32, i32) {
    %c0_i32 = arith.constant 0 : i32
    return %arg0, %arg2 : i32, i32
  }
  func.func @transform_1(%arg0: i32, %arg1: i32, %arg2: i32) -> (i32, i32) {
    %c0_i32 = arith.constant 0 : i32
    return %arg2, %arg1 : i32, i32
  }
  func.func @transform_2(%arg0: i32, %arg1: i32, %arg2: i32) -> (i32, i32) {
    %c0_i32 = arith.constant 0 : i32
    %c0_i32_0 = arith.constant 0 : i32
    return %c0_i32, %arg2 : i32, i32
  }
  func.func @transform_3(%arg0: i32, %arg1: i32, %arg2: i32) -> (i32, i32) {
    %c0_i32 = arith.constant 0 : i32
    %c0_i32_0 = arith.constant 0 : i32
    return %c0_i32, %arg2 : i32, i32
  }
  func.func @transform_4(%arg0: i32, %arg1: i32, %arg2: i32) -> (i32, i32) {
    %c0_i32 = arith.constant 0 : i32
    %c0_i32_0 = arith.constant 0 : i32
    return %c0_i32, %arg1 : i32, i32
  }
  func.func @transform_5(%arg0: i32, %arg1: i32, %arg2: i32) -> (i32, i32) {
    %c0_i32 = arith.constant 0 : i32
    %c0_i32_0 = arith.constant 0 : i32
    return %c0_i32, %arg1 : i32, i32
  }
  func.func @transform_6(%arg0: i32, %arg1: i32, %arg2: i32) -> (i32, i32) {
    %c0_i32 = arith.constant 0 : i32
    return %arg0, %arg1 : i32, i32
  }
}

module attributes {stable_mosaic.version = 11 : i64} {
  func.func @_ew_max_kernel(%arg0: i32, %arg1: memref<128x16xbf16, #tpu.memory_space<vmem>>, %arg2: memref<128x16xbf16, #tpu.memory_space<vmem>>, %arg3: memref<128x16xbf16, #tpu.memory_space<vmem>>, %arg4: memref<128x16xbf16, #tpu.memory_space<vmem>>) attributes {dimension_semantics = [#tpu.dimension_semantics<parallel>], iteration_bounds = array<i64: 1>, scalar_prefetch = 0 : i64, scratch_operands = 0 : i64, tpu.core_type = #tpu.core_type<tc>, window_params = [{transform_indices = @transform_0, window_bounds = array<i64: 128, 16>}, {transform_indices = @transform_1, window_bounds = array<i64: 128, 16>}, {transform_indices = @transform_2, window_bounds = array<i64: 128, 16>}, {transform_indices = @transform_3, window_bounds = array<i64: 128, 16>}]} {
    %c0 = arith.constant 0 : index
    %c0_0 = arith.constant 0 : index
    %0 = vector.load %arg1[%c0, %c0_0] : memref<128x16xbf16, #tpu.memory_space<vmem>>, vector<128x16xbf16>
    %c0_1 = arith.constant 0 : index
    %c0_2 = arith.constant 0 : index
    %1 = vector.load %arg2[%c0_1, %c0_2] : memref<128x16xbf16, #tpu.memory_space<vmem>>, vector<128x16xbf16>
    %2 = arith.maximumf %0, %1 : vector<128x16xbf16>
    %c0_3 = arith.constant 0 : index
    %c0_4 = arith.constant 0 : index
    %3 = vector.load %arg3[%c0_3, %c0_4] : memref<128x16xbf16, #tpu.memory_space<vmem>>, vector<128x16xbf16>
    %4 = arith.maximumf %2, %3 : vector<128x16xbf16>
    %c0_5 = arith.constant 0 : index
    %c0_6 = arith.constant 0 : index
    %5 = vector.load %arg4[%c0_5, %c0_6] : memref<128x16xbf16, #tpu.memory_space<vmem>>, vector<128x16xbf16>
    tpu.vector_store %arg4[%c0_5, %c0_6], %4 {strides = array<i32>} : memref<128x16xbf16, #tpu.memory_space<vmem>>, vector<128x16xbf16>,
    return
  }
  func.func @transform_0(%arg0: i32) -> (i32, i32) {
    %c0_i32 = arith.constant 0 : i32
    %c0_i32_0 = arith.constant 0 : i32
    return %arg0, %c0_i32 : i32, i32
  }
  func.func @transform_1(%arg0: i32) -> (i32, i32) {
    %c0_i32 = arith.constant 0 : i32
    %c0_i32_0 = arith.constant 0 : i32
    return %arg0, %c0_i32 : i32, i32
  }
  func.func @transform_2(%arg0: i32) -> (i32, i32) {
    %c0_i32 = arith.constant 0 : i32
    %c0_i32_0 = arith.constant 0 : i32
    return %arg0, %c0_i32 : i32, i32
  }
  func.func @transform_3(%arg0: i32) -> (i32, i32) {
    %c0_i32 = arith.constant 0 : i32
    %c0_i32_0 = arith.constant 0 : i32
    return %arg0, %c0_i32 : i32, i32
  }
}

module attributes {stable_mosaic.version = 11 : i64} {
  func.func @kernel(%arg0: i32, %arg1: i32, %arg2: i32, %arg3: memref<128x288xbf16, #tpu.memory_space<vmem>>, %arg4: memref<288x8xbf16, #tpu.memory_space<vmem>>, %arg5: memref<128x8xbf16, #tpu.memory_space<vmem>>, %arg6: memref<128x8xf32, #tpu.memory_space<vmem>>) attributes {dimension_semantics = [#tpu.dimension_semantics<parallel>, #tpu.dimension_semantics<parallel>, #tpu.dimension_semantics<arbitrary>], iteration_bounds = array<i64: 1, 1, 1>, scalar_prefetch = 0 : i64, scratch_operands = 1 : i64, tpu.core_type = #tpu.core_type<tc>, window_params = [{transform_indices = @transform_0, window_bounds = array<i64: 128, 288>}, {transform_indices = @transform_1, window_bounds = array<i64: 288, 8>}, {transform_indices = @transform_2, window_bounds = array<i64: 128, 8>}]} {
    %c0_i32 = arith.constant 0 : i32
    %0 = arith.cmpi eq, %arg2, %c0_i32 : i32
    %1 = arith.extui %0 : i1 to i32
    %c0_i32_0 = arith.constant 0 : i32
    %2 = arith.cmpi ne, %1, %c0_i32_0 : i32
    scf.if %2 {
      %cst_10 = arith.constant 0.000000e+00 : f32
      %12 = vector.broadcast %cst_10 : f32 to vector<128x8xf32>
      %c0_11 = arith.constant 0 : index
      %c0_12 = arith.constant 0 : index
      %13 = vector.load %arg6[%c0_11, %c0_12] : memref<128x8xf32, #tpu.memory_space<vmem>>, vector<128x8xf32>
      tpu.vector_store %arg6[%c0_11, %c0_12], %12 {strides = array<i32>} : memref<128x8xf32, #tpu.memory_space<vmem>>, vector<128x8xf32>,
    } else {
    }
    %c0 = arith.constant 0 : index
    %c0_1 = arith.constant 0 : index
    %3 = vector.load %arg3[%c0, %c0_1] : memref<128x288xbf16, #tpu.memory_space<vmem>>, vector<128x288xbf16>
    %c0_2 = arith.constant 0 : index
    %c0_3 = arith.constant 0 : index
    %4 = vector.load %arg6[%c0_2, %c0_3] : memref<128x8xf32, #tpu.memory_space<vmem>>, vector<128x8xf32>
    %c0_4 = arith.constant 0 : index
    %c0_5 = arith.constant 0 : index
    %5 = vector.load %arg4[%c0_4, %c0_5] : memref<288x8xbf16, #tpu.memory_space<vmem>>, vector<288x8xbf16>
    %cst = arith.constant dense<0.000000e+00> : vector<128x8xf32>
    %6 = tpu.matmul %3, %5, %cst {dimension_numbers = #tpu.dot_dimension_numbers<[1], [0], [0], [1], [0, 0, 1, 1], [], []>} : vector<128x288xbf16>, vector<288x8xbf16>, vector<128x8xf32> -> vector<128x8xf32>
    %7 = arith.addf %4, %6 : vector<128x8xf32>
    %c0_6 = arith.constant 0 : index
    %c0_7 = arith.constant 0 : index
    %8 = vector.load %arg6[%c0_6, %c0_7] : memref<128x8xf32, #tpu.memory_space<vmem>>, vector<128x8xf32>
    tpu.vector_store %arg6[%c0_6, %c0_7], %7 {strides = array<i32>} : memref<128x8xf32, #tpu.memory_space<vmem>>, vector<128x8xf32>,
    %c0_i32_8 = arith.constant 0 : i32
    %9 = arith.cmpi eq, %arg2, %c0_i32_8 : i32
    %10 = arith.extui %9 : i1 to i32
    %c0_i32_9 = arith.constant 0 : i32
    %11 = arith.cmpi ne, %10, %c0_i32_9 : i32
    scf.if %11 {
      %c0_10 = arith.constant 0 : index
      %c0_11 = arith.constant 0 : index
      %12 = vector.load %arg6[%c0_10, %c0_11] : memref<128x8xf32, #tpu.memory_space<vmem>>, vector<128x8xf32>
      %13 = arith.truncf %12 : vector<128x8xf32> to vector<128x8xbf16>
      %c0_12 = arith.constant 0 : index
      %c0_13 = arith.constant 0 : index
      %14 = vector.load %arg5[%c0_12, %c0_13] : memref<128x8xbf16, #tpu.memory_space<vmem>>, vector<128x8xbf16>
      tpu.vector_store %arg5[%c0_12, %c0_13], %13 {strides = array<i32>} : memref<128x8xbf16, #tpu.memory_space<vmem>>, vector<128x8xbf16>,
    } else {
    }
    return
  }
  func.func @transform_0(%arg0: i32, %arg1: i32, %arg2: i32) -> (i32, i32) {
    %c0_i32 = arith.constant 0 : i32
    return %arg0, %arg2 : i32, i32
  }
  func.func @transform_1(%arg0: i32, %arg1: i32, %arg2: i32) -> (i32, i32) {
    %c0_i32 = arith.constant 0 : i32
    return %arg2, %arg1 : i32, i32
  }
  func.func @transform_2(%arg0: i32, %arg1: i32, %arg2: i32) -> (i32, i32) {
    %c0_i32 = arith.constant 0 : i32
    return %arg0, %arg1 : i32, i32
  }
}

module attributes {stable_mosaic.version = 11 : i64} {
  func.func @kernel(%arg0: i32, %arg1: i32, %arg2: i32, %arg3: memref<128x24xbf16, #tpu.memory_space<vmem>>, %arg4: memref<24x32xbf16, #tpu.memory_space<vmem>>, %arg5: memref<1x24xf32, #tpu.memory_space<vmem>>, %arg6: memref<1x24xf32, #tpu.memory_space<vmem>>, %arg7: memref<1x32xf32, #tpu.memory_space<vmem>>, %arg8: memref<1x32xf32, #tpu.memory_space<vmem>>, %arg9: memref<128x32xbf16, #tpu.memory_space<vmem>>, %arg10: memref<128x32xf32, #tpu.memory_space<vmem>>) attributes {dimension_semantics = [#tpu.dimension_semantics<parallel>, #tpu.dimension_semantics<parallel>, #tpu.dimension_semantics<arbitrary>], iteration_bounds = array<i64: 1, 1, 1>, scalar_prefetch = 0 : i64, scratch_operands = 1 : i64, tpu.core_type = #tpu.core_type<tc>, window_params = [{transform_indices = @transform_0, window_bounds = array<i64: 128, 24>}, {transform_indices = @transform_1, window_bounds = array<i64: 24, 32>}, {transform_indices = @transform_2, window_bounds = array<i64: 1, 24>}, {transform_indices = @transform_3, window_bounds = array<i64: 1, 24>}, {transform_indices = @transform_4, window_bounds = array<i64: 1, 32>}, {transform_indices = @transform_5, window_bounds = array<i64: 1, 32>}, {transform_indices = @transform_6, window_bounds = array<i64: 128, 32>}]} {
    %c0_i32 = arith.constant 0 : i32
    %0 = arith.cmpi eq, %arg2, %c0_i32 : i32
    %1 = arith.extui %0 : i1 to i32
    %c0_i32_0 = arith.constant 0 : i32
    %2 = arith.cmpi ne, %1, %c0_i32_0 : i32
    scf.if %2 {
      %cst_15 = arith.constant 0.000000e+00 : f32
      %22 = vector.broadcast %cst_15 : f32 to vector<128x32xf32>
      %c0_16 = arith.constant 0 : index
      %c0_17 = arith.constant 0 : index
      %23 = vector.load %arg10[%c0_16, %c0_17] : memref<128x32xf32, #tpu.memory_space<vmem>>, vector<128x32xf32>
      tpu.vector_store %arg10[%c0_16, %c0_17], %22 {strides = array<i32>} : memref<128x32xf32, #tpu.memory_space<vmem>>, vector<128x32xf32>,
    } else {
    }
    %c0 = arith.constant 0 : index
    %c0_1 = arith.constant 0 : index
    %3 = vector.load %arg3[%c0, %c0_1] : memref<128x24xbf16, #tpu.memory_space<vmem>>, vector<128x24xbf16>
    %4 = arith.extf %3 : vector<128x24xbf16> to vector<128x24xf32>
    %c0_2 = arith.constant 0 : index
    %c0_3 = arith.constant 0 : index
    %5 = vector.load %arg5[%c0_2, %c0_3] : memref<1x24xf32, #tpu.memory_space<vmem>>, vector<1x24xf32>
    %6 = vector.broadcast %5 : vector<1x24xf32> to vector<128x24xf32>
    %7 = arith.mulf %4, %6 : vector<128x24xf32>
    %c0_4 = arith.constant 0 : index
    %c0_5 = arith.constant 0 : index
    %8 = vector.load %arg6[%c0_4, %c0_5] : memref<1x24xf32, #tpu.memory_space<vmem>>, vector<1x24xf32>
    %9 = vector.broadcast %8 : vector<1x24xf32> to vector<128x24xf32>
    %10 = arith.addf %7, %9 : vector<128x24xf32>
    %cst = arith.constant 0.000000e+00 : f32
    %11 = vector.broadcast %cst : f32 to vector<128x24xf32>
    %12 = arith.maximumf %10, %11 : vector<128x24xf32>
    %c0_6 = arith.constant 0 : index
    %c0_7 = arith.constant 0 : index
    %13 = vector.load %arg10[%c0_6, %c0_7] : memref<128x32xf32, #tpu.memory_space<vmem>>, vector<128x32xf32>
    %14 = arith.truncf %12 : vector<128x24xf32> to vector<128x24xbf16>
    %c0_8 = arith.constant 0 : index
    %c0_9 = arith.constant 0 : index
    %15 = vector.load %arg4[%c0_8, %c0_9] : memref<24x32xbf16, #tpu.memory_space<vmem>>, vector<24x32xbf16>
    %cst_10 = arith.constant dense<0.000000e+00> : vector<128x32xf32>
    %16 = tpu.matmul %14, %15, %cst_10 {dimension_numbers = #tpu.dot_dimension_numbers<[1], [0], [0], [1], [0, 0, 1, 1], [], []>} : vector<128x24xbf16>, vector<24x32xbf16>, vector<128x32xf32> -> vector<128x32xf32>
    %17 = arith.addf %13, %16 : vector<128x32xf32>
    %c0_11 = arith.constant 0 : index
    %c0_12 = arith.constant 0 : index
    %18 = vector.load %arg10[%c0_11, %c0_12] : memref<128x32xf32, #tpu.memory_space<vmem>>, vector<128x32xf32>
    tpu.vector_store %arg10[%c0_11, %c0_12], %17 {strides = array<i32>} : memref<128x32xf32, #tpu.memory_space<vmem>>, vector<128x32xf32>,
    %c0_i32_13 = arith.constant 0 : i32
    %19 = arith.cmpi eq, %arg2, %c0_i32_13 : i32
    %20 = arith.extui %19 : i1 to i32
    %c0_i32_14 = arith.constant 0 : i32
    %21 = arith.cmpi ne, %20, %c0_i32_14 : i32
    scf.if %21 {
      %c0_15 = arith.constant 0 : index
      %c0_16 = arith.constant 0 : index
      %22 = vector.load %arg10[%c0_15, %c0_16] : memref<128x32xf32, #tpu.memory_space<vmem>>, vector<128x32xf32>
      %c0_17 = arith.constant 0 : index
      %c0_18 = arith.constant 0 : index
      %23 = vector.load %arg7[%c0_17, %c0_18] : memref<1x32xf32, #tpu.memory_space<vmem>>, vector<1x32xf32>
      %24 = vector.broadcast %23 : vector<1x32xf32> to vector<128x32xf32>
      %25 = arith.mulf %22, %24 : vector<128x32xf32>
      %c0_19 = arith.constant 0 : index
      %c0_20 = arith.constant 0 : index
      %26 = vector.load %arg8[%c0_19, %c0_20] : memref<1x32xf32, #tpu.memory_space<vmem>>, vector<1x32xf32>
      %27 = vector.broadcast %26 : vector<1x32xf32> to vector<128x32xf32>
      %28 = arith.addf %25, %27 : vector<128x32xf32>
      %cst_21 = arith.constant 0.000000e+00 : f32
      %29 = vector.broadcast %cst_21 : f32 to vector<128x32xf32>
      %30 = arith.maximumf %28, %29 : vector<128x32xf32>
      %31 = arith.truncf %30 : vector<128x32xf32> to vector<128x32xbf16>
      %c0_22 = arith.constant 0 : index
      %c0_23 = arith.constant 0 : index
      %32 = vector.load %arg9[%c0_22, %c0_23] : memref<128x32xbf16, #tpu.memory_space<vmem>>, vector<128x32xbf16>
      tpu.vector_store %arg9[%c0_22, %c0_23], %31 {strides = array<i32>} : memref<128x32xbf16, #tpu.memory_space<vmem>>, vector<128x32xbf16>,
    } else {
    }
    return
  }
  func.func @transform_0(%arg0: i32, %arg1: i32, %arg2: i32) -> (i32, i32) {
    %c0_i32 = arith.constant 0 : i32
    return %arg0, %arg2 : i32, i32
  }
  func.func @transform_1(%arg0: i32, %arg1: i32, %arg2: i32) -> (i32, i32) {
    %c0_i32 = arith.constant 0 : i32
    return %arg2, %arg1 : i32, i32
  }
  func.func @transform_2(%arg0: i32, %arg1: i32, %arg2: i32) -> (i32, i32) {
    %c0_i32 = arith.constant 0 : i32
    %c0_i32_0 = arith.constant 0 : i32
    return %c0_i32, %arg2 : i32, i32
  }
  func.func @transform_3(%arg0: i32, %arg1: i32, %arg2: i32) -> (i32, i32) {
    %c0_i32 = arith.constant 0 : i32
    %c0_i32_0 = arith.constant 0 : i32
    return %c0_i32, %arg2 : i32, i32
  }
  func.func @transform_4(%arg0: i32, %arg1: i32, %arg2: i32) -> (i32, i32) {
    %c0_i32 = arith.constant 0 : i32
    %c0_i32_0 = arith.constant 0 : i32
    return %c0_i32, %arg1 : i32, i32
  }
  func.func @transform_5(%arg0: i32, %arg1: i32, %arg2: i32) -> (i32, i32) {
    %c0_i32 = arith.constant 0 : i32
    %c0_i32_0 = arith.constant 0 : i32
    return %c0_i32, %arg1 : i32, i32
  }
  func.func @transform_6(%arg0: i32, %arg1: i32, %arg2: i32) -> (i32, i32) {
    %c0_i32 = arith.constant 0 : i32
    return %arg0, %arg1 : i32, i32
  }
}

module attributes {stable_mosaic.version = 11 : i64} {
  func.func @kernel(%arg0: i32, %arg1: i32, %arg2: i32, %arg3: memref<128x32xbf16, #tpu.memory_space<vmem>>, %arg4: memref<32x16xbf16, #tpu.memory_space<vmem>>, %arg5: memref<1x32xf32, #tpu.memory_space<vmem>>, %arg6: memref<1x32xf32, #tpu.memory_space<vmem>>, %arg7: memref<128x16xbf16, #tpu.memory_space<vmem>>, %arg8: memref<128x16xf32, #tpu.memory_space<vmem>>) attributes {dimension_semantics = [#tpu.dimension_semantics<parallel>, #tpu.dimension_semantics<parallel>, #tpu.dimension_semantics<arbitrary>], iteration_bounds = array<i64: 1, 1, 1>, scalar_prefetch = 0 : i64, scratch_operands = 1 : i64, tpu.core_type = #tpu.core_type<tc>, window_params = [{transform_indices = @transform_0, window_bounds = array<i64: 128, 32>}, {transform_indices = @transform_1, window_bounds = array<i64: 32, 16>}, {transform_indices = @transform_2, window_bounds = array<i64: 1, 32>}, {transform_indices = @transform_3, window_bounds = array<i64: 1, 32>}, {transform_indices = @transform_4, window_bounds = array<i64: 128, 16>}]} {
    %c0_i32 = arith.constant 0 : i32
    %0 = arith.cmpi eq, %arg2, %c0_i32 : i32
    %1 = arith.extui %0 : i1 to i32
    %c0_i32_0 = arith.constant 0 : i32
    %2 = arith.cmpi ne, %1, %c0_i32_0 : i32
    scf.if %2 {
      %cst_15 = arith.constant 0.000000e+00 : f32
      %22 = vector.broadcast %cst_15 : f32 to vector<128x16xf32>
      %c0_16 = arith.constant 0 : index
      %c0_17 = arith.constant 0 : index
      %23 = vector.load %arg8[%c0_16, %c0_17] : memref<128x16xf32, #tpu.memory_space<vmem>>, vector<128x16xf32>
      tpu.vector_store %arg8[%c0_16, %c0_17], %22 {strides = array<i32>} : memref<128x16xf32, #tpu.memory_space<vmem>>, vector<128x16xf32>,
    } else {
    }
    %c0 = arith.constant 0 : index
    %c0_1 = arith.constant 0 : index
    %3 = vector.load %arg3[%c0, %c0_1] : memref<128x32xbf16, #tpu.memory_space<vmem>>, vector<128x32xbf16>
    %4 = arith.extf %3 : vector<128x32xbf16> to vector<128x32xf32>
    %c0_2 = arith.constant 0 : index
    %c0_3 = arith.constant 0 : index
    %5 = vector.load %arg5[%c0_2, %c0_3] : memref<1x32xf32, #tpu.memory_space<vmem>>, vector<1x32xf32>
    %6 = vector.broadcast %5 : vector<1x32xf32> to vector<128x32xf32>
    %7 = arith.mulf %4, %6 : vector<128x32xf32>
    %c0_4 = arith.constant 0 : index
    %c0_5 = arith.constant 0 : index
    %8 = vector.load %arg6[%c0_4, %c0_5] : memref<1x32xf32, #tpu.memory_space<vmem>>, vector<1x32xf32>
    %9 = vector.broadcast %8 : vector<1x32xf32> to vector<128x32xf32>
    %10 = arith.addf %7, %9 : vector<128x32xf32>
    %cst = arith.constant 0.000000e+00 : f32
    %11 = vector.broadcast %cst : f32 to vector<128x32xf32>
    %12 = arith.maximumf %10, %11 : vector<128x32xf32>
    %c0_6 = arith.constant 0 : index
    %c0_7 = arith.constant 0 : index
    %13 = vector.load %arg8[%c0_6, %c0_7] : memref<128x16xf32, #tpu.memory_space<vmem>>, vector<128x16xf32>
    %14 = arith.truncf %12 : vector<128x32xf32> to vector<128x32xbf16>
    %c0_8 = arith.constant 0 : index
    %c0_9 = arith.constant 0 : index
    %15 = vector.load %arg4[%c0_8, %c0_9] : memref<32x16xbf16, #tpu.memory_space<vmem>>, vector<32x16xbf16>
    %cst_10 = arith.constant dense<0.000000e+00> : vector<128x16xf32>
    %16 = tpu.matmul %14, %15, %cst_10 {dimension_numbers = #tpu.dot_dimension_numbers<[1], [0], [0], [1], [0, 0, 1, 1], [], []>} : vector<128x32xbf16>, vector<32x16xbf16>, vector<128x16xf32> -> vector<128x16xf32>
    %17 = arith.addf %13, %16 : vector<128x16xf32>
    %c0_11 = arith.constant 0 : index
    %c0_12 = arith.constant 0 : index
    %18 = vector.load %arg8[%c0_11, %c0_12] : memref<128x16xf32, #tpu.memory_space<vmem>>, vector<128x16xf32>
    tpu.vector_store %arg8[%c0_11, %c0_12], %17 {strides = array<i32>} : memref<128x16xf32, #tpu.memory_space<vmem>>, vector<128x16xf32>,
    %c0_i32_13 = arith.constant 0 : i32
    %19 = arith.cmpi eq, %arg2, %c0_i32_13 : i32
    %20 = arith.extui %19 : i1 to i32
    %c0_i32_14 = arith.constant 0 : i32
    %21 = arith.cmpi ne, %20, %c0_i32_14 : i32
    scf.if %21 {
      %c0_15 = arith.constant 0 : index
      %c0_16 = arith.constant 0 : index
      %22 = vector.load %arg8[%c0_15, %c0_16] : memref<128x16xf32, #tpu.memory_space<vmem>>, vector<128x16xf32>
      %23 = arith.truncf %22 : vector<128x16xf32> to vector<128x16xbf16>
      %c0_17 = arith.constant 0 : index
      %c0_18 = arith.constant 0 : index
      %24 = vector.load %arg7[%c0_17, %c0_18] : memref<128x16xbf16, #tpu.memory_space<vmem>>, vector<128x16xbf16>
      tpu.vector_store %arg7[%c0_17, %c0_18], %23 {strides = array<i32>} : memref<128x16xbf16, #tpu.memory_space<vmem>>, vector<128x16xbf16>,
    } else {
    }
    return
  }
  func.func @transform_0(%arg0: i32, %arg1: i32, %arg2: i32) -> (i32, i32) {
    %c0_i32 = arith.constant 0 : i32
    return %arg0, %arg2 : i32, i32
  }
  func.func @transform_1(%arg0: i32, %arg1: i32, %arg2: i32) -> (i32, i32) {
    %c0_i32 = arith.constant 0 : i32
    return %arg2, %arg1 : i32, i32
  }
  func.func @transform_2(%arg0: i32, %arg1: i32, %arg2: i32) -> (i32, i32) {
    %c0_i32 = arith.constant 0 : i32
    %c0_i32_0 = arith.constant 0 : i32
    return %c0_i32, %arg2 : i32, i32
  }
  func.func @transform_3(%arg0: i32, %arg1: i32, %arg2: i32) -> (i32, i32) {
    %c0_i32 = arith.constant 0 : i32
    %c0_i32_0 = arith.constant 0 : i32
    return %c0_i32, %arg2 : i32, i32
  }
  func.func @transform_4(%arg0: i32, %arg1: i32, %arg2: i32) -> (i32, i32) {
    %c0_i32 = arith.constant 0 : i32
    return %arg0, %arg1 : i32, i32
  }
}

module attributes {stable_mosaic.version = 11 : i64} {
  func.func @_ew_mean_kernel(%arg0: i32, %arg1: memref<32x16xbf16, #tpu.memory_space<vmem>>, %arg2: memref<32x16xbf16, #tpu.memory_space<vmem>>, %arg3: memref<32x16xbf16, #tpu.memory_space<vmem>>, %arg4: memref<32x16xbf16, #tpu.memory_space<vmem>>, %arg5: memref<32x16xbf16, #tpu.memory_space<vmem>>) attributes {dimension_semantics = [#tpu.dimension_semantics<parallel>], iteration_bounds = array<i64: 1>, scalar_prefetch = 0 : i64, scratch_operands = 0 : i64, tpu.core_type = #tpu.core_type<tc>, window_params = [{transform_indices = @transform_0, window_bounds = array<i64: 32, 16>}, {transform_indices = @transform_1, window_bounds = array<i64: 32, 16>}, {transform_indices = @transform_2, window_bounds = array<i64: 32, 16>}, {transform_indices = @transform_3, window_bounds = array<i64: 32, 16>}, {transform_indices = @transform_4, window_bounds = array<i64: 32, 16>}]} {
    %c0 = arith.constant 0 : index
    %c0_0 = arith.constant 0 : index
    %0 = vector.load %arg1[%c0, %c0_0] : memref<32x16xbf16, #tpu.memory_space<vmem>>, vector<32x16xbf16>
    %1 = arith.extf %0 : vector<32x16xbf16> to vector<32x16xf32>
    %c0_1 = arith.constant 0 : index
    %c0_2 = arith.constant 0 : index
    %2 = vector.load %arg2[%c0_1, %c0_2] : memref<32x16xbf16, #tpu.memory_space<vmem>>, vector<32x16xbf16>
    %3 = arith.extf %2 : vector<32x16xbf16> to vector<32x16xf32>
    %4 = arith.addf %1, %3 : vector<32x16xf32>
    %c0_3 = arith.constant 0 : index
    %c0_4 = arith.constant 0 : index
    %5 = vector.load %arg3[%c0_3, %c0_4] : memref<32x16xbf16, #tpu.memory_space<vmem>>, vector<32x16xbf16>
    %6 = arith.extf %5 : vector<32x16xbf16> to vector<32x16xf32>
    %7 = arith.addf %4, %6 : vector<32x16xf32>
    %c0_5 = arith.constant 0 : index
    %c0_6 = arith.constant 0 : index
    %8 = vector.load %arg4[%c0_5, %c0_6] : memref<32x16xbf16, #tpu.memory_space<vmem>>, vector<32x16xbf16>
    %9 = arith.extf %8 : vector<32x16xbf16> to vector<32x16xf32>
    %10 = arith.addf %7, %9 : vector<32x16xf32>
    %cst = arith.constant 2.500000e-01 : f32
    %11 = vector.broadcast %cst : f32 to vector<32x16xf32>
    %12 = arith.mulf %10, %11 : vector<32x16xf32>
    %13 = arith.truncf %12 : vector<32x16xf32> to vector<32x16xbf16>
    %c0_7 = arith.constant 0 : index
    %c0_8 = arith.constant 0 : index
    %14 = vector.load %arg5[%c0_7, %c0_8] : memref<32x16xbf16, #tpu.memory_space<vmem>>, vector<32x16xbf16>
    tpu.vector_store %arg5[%c0_7, %c0_8], %13 {strides = array<i32>} : memref<32x16xbf16, #tpu.memory_space<vmem>>, vector<32x16xbf16>,
    return
  }
  func.func @transform_0(%arg0: i32) -> (i32, i32) {
    %c0_i32 = arith.constant 0 : i32
    %c0_i32_0 = arith.constant 0 : i32
    return %arg0, %c0_i32 : i32, i32
  }
  func.func @transform_1(%arg0: i32) -> (i32, i32) {
    %c0_i32 = arith.constant 0 : i32
    %c0_i32_0 = arith.constant 0 : i32
    return %arg0, %c0_i32 : i32, i32
  }
  func.func @transform_2(%arg0: i32) -> (i32, i32) {
    %c0_i32 = arith.constant 0 : i32
    %c0_i32_0 = arith.constant 0 : i32
    return %arg0, %c0_i32 : i32, i32
  }
  func.func @transform_3(%arg0: i32) -> (i32, i32) {
    %c0_i32 = arith.constant 0 : i32
    %c0_i32_0 = arith.constant 0 : i32
    return %arg0, %c0_i32 : i32, i32
  }
  func.func @transform_4(%arg0: i32) -> (i32, i32) {
    %c0_i32 = arith.constant 0 : i32
    %c0_i32_0 = arith.constant 0 : i32
    return %arg0, %c0_i32 : i32, i32
  }
}

module attributes {stable_mosaic.version = 11 : i64} {
  func.func @kernel(%arg0: i32, %arg1: i32, %arg2: i32, %arg3: memref<32x16xbf16, #tpu.memory_space<vmem>>, %arg4: memref<16x32xbf16, #tpu.memory_space<vmem>>, %arg5: memref<1x16xf32, #tpu.memory_space<vmem>>, %arg6: memref<1x16xf32, #tpu.memory_space<vmem>>, %arg7: memref<1x32xf32, #tpu.memory_space<vmem>>, %arg8: memref<1x32xf32, #tpu.memory_space<vmem>>, %arg9: memref<32x32xbf16, #tpu.memory_space<vmem>>, %arg10: memref<32x32xf32, #tpu.memory_space<vmem>>) attributes {dimension_semantics = [#tpu.dimension_semantics<parallel>, #tpu.dimension_semantics<parallel>, #tpu.dimension_semantics<arbitrary>], iteration_bounds = array<i64: 1, 1, 1>, scalar_prefetch = 0 : i64, scratch_operands = 1 : i64, tpu.core_type = #tpu.core_type<tc>, window_params = [{transform_indices = @transform_0, window_bounds = array<i64: 32, 16>}, {transform_indices = @transform_1, window_bounds = array<i64: 16, 32>}, {transform_indices = @transform_2, window_bounds = array<i64: 1, 16>}, {transform_indices = @transform_3, window_bounds = array<i64: 1, 16>}, {transform_indices = @transform_4, window_bounds = array<i64: 1, 32>}, {transform_indices = @transform_5, window_bounds = array<i64: 1, 32>}, {transform_indices = @transform_6, window_bounds = array<i64: 32, 32>}]} {
    %c0_i32 = arith.constant 0 : i32
    %0 = arith.cmpi eq, %arg2, %c0_i32 : i32
    %1 = arith.extui %0 : i1 to i32
    %c0_i32_0 = arith.constant 0 : i32
    %2 = arith.cmpi ne, %1, %c0_i32_0 : i32
    scf.if %2 {
      %cst_15 = arith.constant 0.000000e+00 : f32
      %22 = vector.broadcast %cst_15 : f32 to vector<32x32xf32>
      %c0_16 = arith.constant 0 : index
      %c0_17 = arith.constant 0 : index
      %23 = vector.load %arg10[%c0_16, %c0_17] : memref<32x32xf32, #tpu.memory_space<vmem>>, vector<32x32xf32>
      tpu.vector_store %arg10[%c0_16, %c0_17], %22 {strides = array<i32>} : memref<32x32xf32, #tpu.memory_space<vmem>>, vector<32x32xf32>,
    } else {
    }
    %c0 = arith.constant 0 : index
    %c0_1 = arith.constant 0 : index
    %3 = vector.load %arg3[%c0, %c0_1] : memref<32x16xbf16, #tpu.memory_space<vmem>>, vector<32x16xbf16>
    %4 = arith.extf %3 : vector<32x16xbf16> to vector<32x16xf32>
    %c0_2 = arith.constant 0 : index
    %c0_3 = arith.constant 0 : index
    %5 = vector.load %arg5[%c0_2, %c0_3] : memref<1x16xf32, #tpu.memory_space<vmem>>, vector<1x16xf32>
    %6 = vector.broadcast %5 : vector<1x16xf32> to vector<32x16xf32>
    %7 = arith.mulf %4, %6 : vector<32x16xf32>
    %c0_4 = arith.constant 0 : index
    %c0_5 = arith.constant 0 : index
    %8 = vector.load %arg6[%c0_4, %c0_5] : memref<1x16xf32, #tpu.memory_space<vmem>>, vector<1x16xf32>
    %9 = vector.broadcast %8 : vector<1x16xf32> to vector<32x16xf32>
    %10 = arith.addf %7, %9 : vector<32x16xf32>
    %cst = arith.constant 0.000000e+00 : f32
    %11 = vector.broadcast %cst : f32 to vector<32x16xf32>
    %12 = arith.maximumf %10, %11 : vector<32x16xf32>
    %c0_6 = arith.constant 0 : index
    %c0_7 = arith.constant 0 : index
    %13 = vector.load %arg10[%c0_6, %c0_7] : memref<32x32xf32, #tpu.memory_space<vmem>>, vector<32x32xf32>
    %14 = arith.truncf %12 : vector<32x16xf32> to vector<32x16xbf16>
    %c0_8 = arith.constant 0 : index
    %c0_9 = arith.constant 0 : index
    %15 = vector.load %arg4[%c0_8, %c0_9] : memref<16x32xbf16, #tpu.memory_space<vmem>>, vector<16x32xbf16>
    %cst_10 = arith.constant dense<0.000000e+00> : vector<32x32xf32>
    %16 = tpu.matmul %14, %15, %cst_10 {dimension_numbers = #tpu.dot_dimension_numbers<[1], [0], [0], [1], [0, 0, 1, 1], [], []>} : vector<32x16xbf16>, vector<16x32xbf16>, vector<32x32xf32> -> vector<32x32xf32>
    %17 = arith.addf %13, %16 : vector<32x32xf32>
    %c0_11 = arith.constant 0 : index
    %c0_12 = arith.constant 0 : index
    %18 = vector.load %arg10[%c0_11, %c0_12] : memref<32x32xf32, #tpu.memory_space<vmem>>, vector<32x32xf32>
    tpu.vector_store %arg10[%c0_11, %c0_12], %17 {strides = array<i32>} : memref<32x32xf32, #tpu.memory_space<vmem>>, vector<32x32xf32>,
    %c0_i32_13 = arith.constant 0 : i32
    %19 = arith.cmpi eq, %arg2, %c0_i32_13 : i32
    %20 = arith.extui %19 : i1 to i32
    %c0_i32_14 = arith.constant 0 : i32
    %21 = arith.cmpi ne, %20, %c0_i32_14 : i32
    scf.if %21 {
      %c0_15 = arith.constant 0 : index
      %c0_16 = arith.constant 0 : index
      %22 = vector.load %arg10[%c0_15, %c0_16] : memref<32x32xf32, #tpu.memory_space<vmem>>, vector<32x32xf32>
      %c0_17 = arith.constant 0 : index
      %c0_18 = arith.constant 0 : index
      %23 = vector.load %arg7[%c0_17, %c0_18] : memref<1x32xf32, #tpu.memory_space<vmem>>, vector<1x32xf32>
      %24 = vector.broadcast %23 : vector<1x32xf32> to vector<32x32xf32>
      %25 = arith.mulf %22, %24 : vector<32x32xf32>
      %c0_19 = arith.constant 0 : index
      %c0_20 = arith.constant 0 : index
      %26 = vector.load %arg8[%c0_19, %c0_20] : memref<1x32xf32, #tpu.memory_space<vmem>>, vector<1x32xf32>
      %27 = vector.broadcast %26 : vector<1x32xf32> to vector<32x32xf32>
      %28 = arith.addf %25, %27 : vector<32x32xf32>
      %cst_21 = arith.constant 0.000000e+00 : f32
      %29 = vector.broadcast %cst_21 : f32 to vector<32x32xf32>
      %30 = arith.maximumf %28, %29 : vector<32x32xf32>
      %31 = arith.truncf %30 : vector<32x32xf32> to vector<32x32xbf16>
      %c0_22 = arith.constant 0 : index
      %c0_23 = arith.constant 0 : index
      %32 = vector.load %arg9[%c0_22, %c0_23] : memref<32x32xbf16, #tpu.memory_space<vmem>>, vector<32x32xbf16>
      tpu.vector_store %arg9[%c0_22, %c0_23], %31 {strides = array<i32>} : memref<32x32xbf16, #tpu.memory_space<vmem>>, vector<32x32xbf16>,
    } else {
    }
    return
  }
  func.func @transform_0(%arg0: i32, %arg1: i32, %arg2: i32) -> (i32, i32) {
    %c0_i32 = arith.constant 0 : i32
    return %arg0, %arg2 : i32, i32
  }
  func.func @transform_1(%arg0: i32, %arg1: i32, %arg2: i32) -> (i32, i32) {
    %c0_i32 = arith.constant 0 : i32
    return %arg2, %arg1 : i32, i32
  }
  func.func @transform_2(%arg0: i32, %arg1: i32, %arg2: i32) -> (i32, i32) {
    %c0_i32 = arith.constant 0 : i32
    %c0_i32_0 = arith.constant 0 : i32
    return %c0_i32, %arg2 : i32, i32
  }
  func.func @transform_3(%arg0: i32, %arg1: i32, %arg2: i32) -> (i32, i32) {
    %c0_i32 = arith.constant 0 : i32
    %c0_i32_0 = arith.constant 0 : i32
    return %c0_i32, %arg2 : i32, i32
  }
  func.func @transform_4(%arg0: i32, %arg1: i32, %arg2: i32) -> (i32, i32) {
    %c0_i32 = arith.constant 0 : i32
    %c0_i32_0 = arith.constant 0 : i32
    return %c0_i32, %arg1 : i32, i32
  }
  func.func @transform_5(%arg0: i32, %arg1: i32, %arg2: i32) -> (i32, i32) {
    %c0_i32 = arith.constant 0 : i32
    %c0_i32_0 = arith.constant 0 : i32
    return %c0_i32, %arg1 : i32, i32
  }
  func.func @transform_6(%arg0: i32, %arg1: i32, %arg2: i32) -> (i32, i32) {
    %c0_i32 = arith.constant 0 : i32
    return %arg0, %arg1 : i32, i32
  }
}

module attributes {stable_mosaic.version = 11 : i64} {
  func.func @kernel(%arg0: i32, %arg1: i32, %arg2: i32, %arg3: memref<32x24xbf16, #tpu.memory_space<vmem>>, %arg4: memref<24x32xbf16, #tpu.memory_space<vmem>>, %arg5: memref<1x24xf32, #tpu.memory_space<vmem>>, %arg6: memref<1x24xf32, #tpu.memory_space<vmem>>, %arg7: memref<1x32xf32, #tpu.memory_space<vmem>>, %arg8: memref<1x32xf32, #tpu.memory_space<vmem>>, %arg9: memref<32x32xbf16, #tpu.memory_space<vmem>>, %arg10: memref<32x32xf32, #tpu.memory_space<vmem>>) attributes {dimension_semantics = [#tpu.dimension_semantics<parallel>, #tpu.dimension_semantics<parallel>, #tpu.dimension_semantics<arbitrary>], iteration_bounds = array<i64: 1, 1, 1>, scalar_prefetch = 0 : i64, scratch_operands = 1 : i64, tpu.core_type = #tpu.core_type<tc>, window_params = [{transform_indices = @transform_0, window_bounds = array<i64: 32, 24>}, {transform_indices = @transform_1, window_bounds = array<i64: 24, 32>}, {transform_indices = @transform_2, window_bounds = array<i64: 1, 24>}, {transform_indices = @transform_3, window_bounds = array<i64: 1, 24>}, {transform_indices = @transform_4, window_bounds = array<i64: 1, 32>}, {transform_indices = @transform_5, window_bounds = array<i64: 1, 32>}, {transform_indices = @transform_6, window_bounds = array<i64: 32, 32>}]} {
    %c0_i32 = arith.constant 0 : i32
    %0 = arith.cmpi eq, %arg2, %c0_i32 : i32
    %1 = arith.extui %0 : i1 to i32
    %c0_i32_0 = arith.constant 0 : i32
    %2 = arith.cmpi ne, %1, %c0_i32_0 : i32
    scf.if %2 {
      %cst_15 = arith.constant 0.000000e+00 : f32
      %22 = vector.broadcast %cst_15 : f32 to vector<32x32xf32>
      %c0_16 = arith.constant 0 : index
      %c0_17 = arith.constant 0 : index
      %23 = vector.load %arg10[%c0_16, %c0_17] : memref<32x32xf32, #tpu.memory_space<vmem>>, vector<32x32xf32>
      tpu.vector_store %arg10[%c0_16, %c0_17], %22 {strides = array<i32>} : memref<32x32xf32, #tpu.memory_space<vmem>>, vector<32x32xf32>,
    } else {
    }
    %c0 = arith.constant 0 : index
    %c0_1 = arith.constant 0 : index
    %3 = vector.load %arg3[%c0, %c0_1] : memref<32x24xbf16, #tpu.memory_space<vmem>>, vector<32x24xbf16>
    %4 = arith.extf %3 : vector<32x24xbf16> to vector<32x24xf32>
    %c0_2 = arith.constant 0 : index
    %c0_3 = arith.constant 0 : index
    %5 = vector.load %arg5[%c0_2, %c0_3] : memref<1x24xf32, #tpu.memory_space<vmem>>, vector<1x24xf32>
    %6 = vector.broadcast %5 : vector<1x24xf32> to vector<32x24xf32>
    %7 = arith.mulf %4, %6 : vector<32x24xf32>
    %c0_4 = arith.constant 0 : index
    %c0_5 = arith.constant 0 : index
    %8 = vector.load %arg6[%c0_4, %c0_5] : memref<1x24xf32, #tpu.memory_space<vmem>>, vector<1x24xf32>
    %9 = vector.broadcast %8 : vector<1x24xf32> to vector<32x24xf32>
    %10 = arith.addf %7, %9 : vector<32x24xf32>
    %cst = arith.constant 0.000000e+00 : f32
    %11 = vector.broadcast %cst : f32 to vector<32x24xf32>
    %12 = arith.maximumf %10, %11 : vector<32x24xf32>
    %c0_6 = arith.constant 0 : index
    %c0_7 = arith.constant 0 : index
    %13 = vector.load %arg10[%c0_6, %c0_7] : memref<32x32xf32, #tpu.memory_space<vmem>>, vector<32x32xf32>
    %14 = arith.truncf %12 : vector<32x24xf32> to vector<32x24xbf16>
    %c0_8 = arith.constant 0 : index
    %c0_9 = arith.constant 0 : index
    %15 = vector.load %arg4[%c0_8, %c0_9] : memref<24x32xbf16, #tpu.memory_space<vmem>>, vector<24x32xbf16>
    %cst_10 = arith.constant dense<0.000000e+00> : vector<32x32xf32>
    %16 = tpu.matmul %14, %15, %cst_10 {dimension_numbers = #tpu.dot_dimension_numbers<[1], [0], [0], [1], [0, 0, 1, 1], [], []>} : vector<32x24xbf16>, vector<24x32xbf16>, vector<32x32xf32> -> vector<32x32xf32>
    %17 = arith.addf %13, %16 : vector<32x32xf32>
    %c0_11 = arith.constant 0 : index
    %c0_12 = arith.constant 0 : index
    %18 = vector.load %arg10[%c0_11, %c0_12] : memref<32x32xf32, #tpu.memory_space<vmem>>, vector<32x32xf32>
    tpu.vector_store %arg10[%c0_11, %c0_12], %17 {strides = array<i32>} : memref<32x32xf32, #tpu.memory_space<vmem>>, vector<32x32xf32>,
    %c0_i32_13 = arith.constant 0 : i32
    %19 = arith.cmpi eq, %arg2, %c0_i32_13 : i32
    %20 = arith.extui %19 : i1 to i32
    %c0_i32_14 = arith.constant 0 : i32
    %21 = arith.cmpi ne, %20, %c0_i32_14 : i32
    scf.if %21 {
      %c0_15 = arith.constant 0 : index
      %c0_16 = arith.constant 0 : index
      %22 = vector.load %arg10[%c0_15, %c0_16] : memref<32x32xf32, #tpu.memory_space<vmem>>, vector<32x32xf32>
      %c0_17 = arith.constant 0 : index
      %c0_18 = arith.constant 0 : index
      %23 = vector.load %arg7[%c0_17, %c0_18] : memref<1x32xf32, #tpu.memory_space<vmem>>, vector<1x32xf32>
      %24 = vector.broadcast %23 : vector<1x32xf32> to vector<32x32xf32>
      %25 = arith.mulf %22, %24 : vector<32x32xf32>
      %c0_19 = arith.constant 0 : index
      %c0_20 = arith.constant 0 : index
      %26 = vector.load %arg8[%c0_19, %c0_20] : memref<1x32xf32, #tpu.memory_space<vmem>>, vector<1x32xf32>
      %27 = vector.broadcast %26 : vector<1x32xf32> to vector<32x32xf32>
      %28 = arith.addf %25, %27 : vector<32x32xf32>
      %cst_21 = arith.constant 0.000000e+00 : f32
      %29 = vector.broadcast %cst_21 : f32 to vector<32x32xf32>
      %30 = arith.maximumf %28, %29 : vector<32x32xf32>
      %31 = arith.truncf %30 : vector<32x32xf32> to vector<32x32xbf16>
      %c0_22 = arith.constant 0 : index
      %c0_23 = arith.constant 0 : index
      %32 = vector.load %arg9[%c0_22, %c0_23] : memref<32x32xbf16, #tpu.memory_space<vmem>>, vector<32x32xbf16>
      tpu.vector_store %arg9[%c0_22, %c0_23], %31 {strides = array<i32>} : memref<32x32xbf16, #tpu.memory_space<vmem>>, vector<32x32xbf16>,
    } else {
    }
    return
  }
  func.func @transform_0(%arg0: i32, %arg1: i32, %arg2: i32) -> (i32, i32) {
    %c0_i32 = arith.constant 0 : i32
    return %arg0, %arg2 : i32, i32
  }
  func.func @transform_1(%arg0: i32, %arg1: i32, %arg2: i32) -> (i32, i32) {
    %c0_i32 = arith.constant 0 : i32
    return %arg2, %arg1 : i32, i32
  }
  func.func @transform_2(%arg0: i32, %arg1: i32, %arg2: i32) -> (i32, i32) {
    %c0_i32 = arith.constant 0 : i32
    %c0_i32_0 = arith.constant 0 : i32
    return %c0_i32, %arg2 : i32, i32
  }
  func.func @transform_3(%arg0: i32, %arg1: i32, %arg2: i32) -> (i32, i32) {
    %c0_i32 = arith.constant 0 : i32
    %c0_i32_0 = arith.constant 0 : i32
    return %c0_i32, %arg2 : i32, i32
  }
  func.func @transform_4(%arg0: i32, %arg1: i32, %arg2: i32) -> (i32, i32) {
    %c0_i32 = arith.constant 0 : i32
    %c0_i32_0 = arith.constant 0 : i32
    return %c0_i32, %arg1 : i32, i32
  }
  func.func @transform_5(%arg0: i32, %arg1: i32, %arg2: i32) -> (i32, i32) {
    %c0_i32 = arith.constant 0 : i32
    %c0_i32_0 = arith.constant 0 : i32
    return %c0_i32, %arg1 : i32, i32
  }
  func.func @transform_6(%arg0: i32, %arg1: i32, %arg2: i32) -> (i32, i32) {
    %c0_i32 = arith.constant 0 : i32
    return %arg0, %arg1 : i32, i32
  }
}

module attributes {stable_mosaic.version = 11 : i64} {
  func.func @kernel(%arg0: i32, %arg1: i32, %arg2: i32, %arg3: memref<32x288xbf16, #tpu.memory_space<vmem>>, %arg4: memref<288x8xbf16, #tpu.memory_space<vmem>>, %arg5: memref<32x8xbf16, #tpu.memory_space<vmem>>, %arg6: memref<32x8xf32, #tpu.memory_space<vmem>>) attributes {dimension_semantics = [#tpu.dimension_semantics<parallel>, #tpu.dimension_semantics<parallel>, #tpu.dimension_semantics<arbitrary>], iteration_bounds = array<i64: 1, 1, 1>, scalar_prefetch = 0 : i64, scratch_operands = 1 : i64, tpu.core_type = #tpu.core_type<tc>, window_params = [{transform_indices = @transform_0, window_bounds = array<i64: 32, 288>}, {transform_indices = @transform_1, window_bounds = array<i64: 288, 8>}, {transform_indices = @transform_2, window_bounds = array<i64: 32, 8>}]} {
    %c0_i32 = arith.constant 0 : i32
    %0 = arith.cmpi eq, %arg2, %c0_i32 : i32
    %1 = arith.extui %0 : i1 to i32
    %c0_i32_0 = arith.constant 0 : i32
    %2 = arith.cmpi ne, %1, %c0_i32_0 : i32
    scf.if %2 {
      %cst_10 = arith.constant 0.000000e+00 : f32
      %12 = vector.broadcast %cst_10 : f32 to vector<32x8xf32>
      %c0_11 = arith.constant 0 : index
      %c0_12 = arith.constant 0 : index
      %13 = vector.load %arg6[%c0_11, %c0_12] : memref<32x8xf32, #tpu.memory_space<vmem>>, vector<32x8xf32>
      tpu.vector_store %arg6[%c0_11, %c0_12], %12 {strides = array<i32>} : memref<32x8xf32, #tpu.memory_space<vmem>>, vector<32x8xf32>,
    } else {
    }
    %c0 = arith.constant 0 : index
    %c0_1 = arith.constant 0 : index
    %3 = vector.load %arg3[%c0, %c0_1] : memref<32x288xbf16, #tpu.memory_space<vmem>>, vector<32x288xbf16>
    %c0_2 = arith.constant 0 : index
    %c0_3 = arith.constant 0 : index
    %4 = vector.load %arg6[%c0_2, %c0_3] : memref<32x8xf32, #tpu.memory_space<vmem>>, vector<32x8xf32>
    %c0_4 = arith.constant 0 : index
    %c0_5 = arith.constant 0 : index
    %5 = vector.load %arg4[%c0_4, %c0_5] : memref<288x8xbf16, #tpu.memory_space<vmem>>, vector<288x8xbf16>
    %cst = arith.constant dense<0.000000e+00> : vector<32x8xf32>
    %6 = tpu.matmul %3, %5, %cst {dimension_numbers = #tpu.dot_dimension_numbers<[1], [0], [0], [1], [0, 0, 1, 1], [], []>} : vector<32x288xbf16>, vector<288x8xbf16>, vector<32x8xf32> -> vector<32x8xf32>
    %7 = arith.addf %4, %6 : vector<32x8xf32>
    %c0_6 = arith.constant 0 : index
    %c0_7 = arith.constant 0 : index
    %8 = vector.load %arg6[%c0_6, %c0_7] : memref<32x8xf32, #tpu.memory_space<vmem>>, vector<32x8xf32>
    tpu.vector_store %arg6[%c0_6, %c0_7], %7 {strides = array<i32>} : memref<32x8xf32, #tpu.memory_space<vmem>>, vector<32x8xf32>,
    %c0_i32_8 = arith.constant 0 : i32
    %9 = arith.cmpi eq, %arg2, %c0_i32_8 : i32
    %10 = arith.extui %9 : i1 to i32
    %c0_i32_9 = arith.constant 0 : i32
    %11 = arith.cmpi ne, %10, %c0_i32_9 : i32
    scf.if %11 {
      %c0_10 = arith.constant 0 : index
      %c0_11 = arith.constant 0 : index
      %12 = vector.load %arg6[%c0_10, %c0_11] : memref<32x8xf32, #tpu.memory_space<vmem>>, vector<32x8xf32>
      %13 = arith.truncf %12 : vector<32x8xf32> to vector<32x8xbf16>
      %c0_12 = arith.constant 0 : index
      %c0_13 = arith.constant 0 : index
      %14 = vector.load %arg5[%c0_12, %c0_13] : memref<32x8xbf16, #tpu.memory_space<vmem>>, vector<32x8xbf16>
      tpu.vector_store %arg5[%c0_12, %c0_13], %13 {strides = array<i32>} : memref<32x8xbf16, #tpu.memory_space<vmem>>, vector<32x8xbf16>,
    } else {
    }
    return
  }
  func.func @transform_0(%arg0: i32, %arg1: i32, %arg2: i32) -> (i32, i32) {
    %c0_i32 = arith.constant 0 : i32
    return %arg0, %arg2 : i32, i32
  }
  func.func @transform_1(%arg0: i32, %arg1: i32, %arg2: i32) -> (i32, i32) {
    %c0_i32 = arith.constant 0 : i32
    return %arg2, %arg1 : i32, i32
  }
  func.func @transform_2(%arg0: i32, %arg1: i32, %arg2: i32) -> (i32, i32) {
    %c0_i32 = arith.constant 0 : i32
    return %arg0, %arg1 : i32, i32
  }
}

module attributes {stable_mosaic.version = 11 : i64} {
  func.func @kernel(%arg0: i32, %arg1: i32, %arg2: i32, %arg3: memref<32x32xbf16, #tpu.memory_space<vmem>>, %arg4: memref<32x16xbf16, #tpu.memory_space<vmem>>, %arg5: memref<1x32xf32, #tpu.memory_space<vmem>>, %arg6: memref<1x32xf32, #tpu.memory_space<vmem>>, %arg7: memref<32x16xbf16, #tpu.memory_space<vmem>>, %arg8: memref<32x16xf32, #tpu.memory_space<vmem>>) attributes {dimension_semantics = [#tpu.dimension_semantics<parallel>, #tpu.dimension_semantics<parallel>, #tpu.dimension_semantics<arbitrary>], iteration_bounds = array<i64: 1, 1, 1>, scalar_prefetch = 0 : i64, scratch_operands = 1 : i64, tpu.core_type = #tpu.core_type<tc>, window_params = [{transform_indices = @transform_0, window_bounds = array<i64: 32, 32>}, {transform_indices = @transform_1, window_bounds = array<i64: 32, 16>}, {transform_indices = @transform_2, window_bounds = array<i64: 1, 32>}, {transform_indices = @transform_3, window_bounds = array<i64: 1, 32>}, {transform_indices = @transform_4, window_bounds = array<i64: 32, 16>}]} {
    %c0_i32 = arith.constant 0 : i32
    %0 = arith.cmpi eq, %arg2, %c0_i32 : i32
    %1 = arith.extui %0 : i1 to i32
    %c0_i32_0 = arith.constant 0 : i32
    %2 = arith.cmpi ne, %1, %c0_i32_0 : i32
    scf.if %2 {
      %cst_15 = arith.constant 0.000000e+00 : f32
      %22 = vector.broadcast %cst_15 : f32 to vector<32x16xf32>
      %c0_16 = arith.constant 0 : index
      %c0_17 = arith.constant 0 : index
      %23 = vector.load %arg8[%c0_16, %c0_17] : memref<32x16xf32, #tpu.memory_space<vmem>>, vector<32x16xf32>
      tpu.vector_store %arg8[%c0_16, %c0_17], %22 {strides = array<i32>} : memref<32x16xf32, #tpu.memory_space<vmem>>, vector<32x16xf32>,
    } else {
    }
    %c0 = arith.constant 0 : index
    %c0_1 = arith.constant 0 : index
    %3 = vector.load %arg3[%c0, %c0_1] : memref<32x32xbf16, #tpu.memory_space<vmem>>, vector<32x32xbf16>
    %4 = arith.extf %3 : vector<32x32xbf16> to vector<32x32xf32>
    %c0_2 = arith.constant 0 : index
    %c0_3 = arith.constant 0 : index
    %5 = vector.load %arg5[%c0_2, %c0_3] : memref<1x32xf32, #tpu.memory_space<vmem>>, vector<1x32xf32>
    %6 = vector.broadcast %5 : vector<1x32xf32> to vector<32x32xf32>
    %7 = arith.mulf %4, %6 : vector<32x32xf32>
    %c0_4 = arith.constant 0 : index
    %c0_5 = arith.constant 0 : index
    %8 = vector.load %arg6[%c0_4, %c0_5] : memref<1x32xf32, #tpu.memory_space<vmem>>, vector<1x32xf32>
    %9 = vector.broadcast %8 : vector<1x32xf32> to vector<32x32xf32>
    %10 = arith.addf %7, %9 : vector<32x32xf32>
    %cst = arith.constant 0.000000e+00 : f32
    %11 = vector.broadcast %cst : f32 to vector<32x32xf32>
    %12 = arith.maximumf %10, %11 : vector<32x32xf32>
    %c0_6 = arith.constant 0 : index
    %c0_7 = arith.constant 0 : index
    %13 = vector.load %arg8[%c0_6, %c0_7] : memref<32x16xf32, #tpu.memory_space<vmem>>, vector<32x16xf32>
    %14 = arith.truncf %12 : vector<32x32xf32> to vector<32x32xbf16>
    %c0_8 = arith.constant 0 : index
    %c0_9 = arith.constant 0 : index
    %15 = vector.load %arg4[%c0_8, %c0_9] : memref<32x16xbf16, #tpu.memory_space<vmem>>, vector<32x16xbf16>
    %cst_10 = arith.constant dense<0.000000e+00> : vector<32x16xf32>
    %16 = tpu.matmul %14, %15, %cst_10 {dimension_numbers = #tpu.dot_dimension_numbers<[1], [0], [0], [1], [0, 0, 1, 1], [], []>} : vector<32x32xbf16>, vector<32x16xbf16>, vector<32x16xf32> -> vector<32x16xf32>
    %17 = arith.addf %13, %16 : vector<32x16xf32>
    %c0_11 = arith.constant 0 : index
    %c0_12 = arith.constant 0 : index
    %18 = vector.load %arg8[%c0_11, %c0_12] : memref<32x16xf32, #tpu.memory_space<vmem>>, vector<32x16xf32>
    tpu.vector_store %arg8[%c0_11, %c0_12], %17 {strides = array<i32>} : memref<32x16xf32, #tpu.memory_space<vmem>>, vector<32x16xf32>,
    %c0_i32_13 = arith.constant 0 : i32
    %19 = arith.cmpi eq, %arg2, %c0_i32_13 : i32
    %20 = arith.extui %19 : i1 to i32
    %c0_i32_14 = arith.constant 0 : i32
    %21 = arith.cmpi ne, %20, %c0_i32_14 : i32
    scf.if %21 {
      %c0_15 = arith.constant 0 : index
      %c0_16 = arith.constant 0 : index
      %22 = vector.load %arg8[%c0_15, %c0_16] : memref<32x16xf32, #tpu.memory_space<vmem>>, vector<32x16xf32>
      %23 = arith.truncf %22 : vector<32x16xf32> to vector<32x16xbf16>
      %c0_17 = arith.constant 0 : index
      %c0_18 = arith.constant 0 : index
      %24 = vector.load %arg7[%c0_17, %c0_18] : memref<32x16xbf16, #tpu.memory_space<vmem>>, vector<32x16xbf16>
      tpu.vector_store %arg7[%c0_17, %c0_18], %23 {strides = array<i32>} : memref<32x16xbf16, #tpu.memory_space<vmem>>, vector<32x16xbf16>,
    } else {
    }
    return
  }
  func.func @transform_0(%arg0: i32, %arg1: i32, %arg2: i32) -> (i32, i32) {
    %c0_i32 = arith.constant 0 : i32
    return %arg0, %arg2 : i32, i32
  }
  func.func @transform_1(%arg0: i32, %arg1: i32, %arg2: i32) -> (i32, i32) {
    %c0_i32 = arith.constant 0 : i32
    return %arg2, %arg1 : i32, i32
  }
  func.func @transform_2(%arg0: i32, %arg1: i32, %arg2: i32) -> (i32, i32) {
    %c0_i32 = arith.constant 0 : i32
    %c0_i32_0 = arith.constant 0 : i32
    return %c0_i32, %arg2 : i32, i32
  }
  func.func @transform_3(%arg0: i32, %arg1: i32, %arg2: i32) -> (i32, i32) {
    %c0_i32 = arith.constant 0 : i32
    %c0_i32_0 = arith.constant 0 : i32
    return %c0_i32, %arg2 : i32, i32
  }
  func.func @transform_4(%arg0: i32, %arg1: i32, %arg2: i32) -> (i32, i32) {
    %c0_i32 = arith.constant 0 : i32
    return %arg0, %arg1 : i32, i32
  }
}

module attributes {stable_mosaic.version = 11 : i64} {
  func.func @_ew_mean_kernel(%arg0: i32, %arg1: memref<8x16xbf16, #tpu.memory_space<vmem>>, %arg2: memref<8x16xbf16, #tpu.memory_space<vmem>>, %arg3: memref<8x16xbf16, #tpu.memory_space<vmem>>, %arg4: memref<8x16xbf16, #tpu.memory_space<vmem>>, %arg5: memref<8x16xbf16, #tpu.memory_space<vmem>>) attributes {dimension_semantics = [#tpu.dimension_semantics<parallel>], iteration_bounds = array<i64: 1>, scalar_prefetch = 0 : i64, scratch_operands = 0 : i64, tpu.core_type = #tpu.core_type<tc>, window_params = [{transform_indices = @transform_0, window_bounds = array<i64: 8, 16>}, {transform_indices = @transform_1, window_bounds = array<i64: 8, 16>}, {transform_indices = @transform_2, window_bounds = array<i64: 8, 16>}, {transform_indices = @transform_3, window_bounds = array<i64: 8, 16>}, {transform_indices = @transform_4, window_bounds = array<i64: 8, 16>}]} {
    %c0 = arith.constant 0 : index
    %c0_0 = arith.constant 0 : index
    %0 = vector.load %arg1[%c0, %c0_0] : memref<8x16xbf16, #tpu.memory_space<vmem>>, vector<8x16xbf16>
    %1 = arith.extf %0 : vector<8x16xbf16> to vector<8x16xf32>
    %c0_1 = arith.constant 0 : index
    %c0_2 = arith.constant 0 : index
    %2 = vector.load %arg2[%c0_1, %c0_2] : memref<8x16xbf16, #tpu.memory_space<vmem>>, vector<8x16xbf16>
    %3 = arith.extf %2 : vector<8x16xbf16> to vector<8x16xf32>
    %4 = arith.addf %1, %3 : vector<8x16xf32>
    %c0_3 = arith.constant 0 : index
    %c0_4 = arith.constant 0 : index
    %5 = vector.load %arg3[%c0_3, %c0_4] : memref<8x16xbf16, #tpu.memory_space<vmem>>, vector<8x16xbf16>
    %6 = arith.extf %5 : vector<8x16xbf16> to vector<8x16xf32>
    %7 = arith.addf %4, %6 : vector<8x16xf32>
    %c0_5 = arith.constant 0 : index
    %c0_6 = arith.constant 0 : index
    %8 = vector.load %arg4[%c0_5, %c0_6] : memref<8x16xbf16, #tpu.memory_space<vmem>>, vector<8x16xbf16>
    %9 = arith.extf %8 : vector<8x16xbf16> to vector<8x16xf32>
    %10 = arith.addf %7, %9 : vector<8x16xf32>
    %cst = arith.constant 2.500000e-01 : f32
    %11 = vector.broadcast %cst : f32 to vector<8x16xf32>
    %12 = arith.mulf %10, %11 : vector<8x16xf32>
    %13 = arith.truncf %12 : vector<8x16xf32> to vector<8x16xbf16>
    %c0_7 = arith.constant 0 : index
    %c0_8 = arith.constant 0 : index
    %14 = vector.load %arg5[%c0_7, %c0_8] : memref<8x16xbf16, #tpu.memory_space<vmem>>, vector<8x16xbf16>
    tpu.vector_store %arg5[%c0_7, %c0_8], %13 {strides = array<i32>} : memref<8x16xbf16, #tpu.memory_space<vmem>>, vector<8x16xbf16>,
    return
  }
  func.func @transform_0(%arg0: i32) -> (i32, i32) {
    %c0_i32 = arith.constant 0 : i32
    %c0_i32_0 = arith.constant 0 : i32
    return %arg0, %c0_i32 : i32, i32
  }
  func.func @transform_1(%arg0: i32) -> (i32, i32) {
    %c0_i32 = arith.constant 0 : i32
    %c0_i32_0 = arith.constant 0 : i32
    return %arg0, %c0_i32 : i32, i32
  }
  func.func @transform_2(%arg0: i32) -> (i32, i32) {
    %c0_i32 = arith.constant 0 : i32
    %c0_i32_0 = arith.constant 0 : i32
    return %arg0, %c0_i32 : i32, i32
  }
  func.func @transform_3(%arg0: i32) -> (i32, i32) {
    %c0_i32 = arith.constant 0 : i32
    %c0_i32_0 = arith.constant 0 : i32
    return %arg0, %c0_i32 : i32, i32
  }
  func.func @transform_4(%arg0: i32) -> (i32, i32) {
    %c0_i32 = arith.constant 0 : i32
    %c0_i32_0 = arith.constant 0 : i32
    return %arg0, %c0_i32 : i32, i32
  }
}

module attributes {stable_mosaic.version = 11 : i64} {
  func.func @kernel(%arg0: i32, %arg1: i32, %arg2: i32, %arg3: memref<8x16xbf16, #tpu.memory_space<vmem>>, %arg4: memref<16x32xbf16, #tpu.memory_space<vmem>>, %arg5: memref<1x16xf32, #tpu.memory_space<vmem>>, %arg6: memref<1x16xf32, #tpu.memory_space<vmem>>, %arg7: memref<1x32xf32, #tpu.memory_space<vmem>>, %arg8: memref<1x32xf32, #tpu.memory_space<vmem>>, %arg9: memref<8x32xbf16, #tpu.memory_space<vmem>>, %arg10: memref<8x32xf32, #tpu.memory_space<vmem>>) attributes {dimension_semantics = [#tpu.dimension_semantics<parallel>, #tpu.dimension_semantics<parallel>, #tpu.dimension_semantics<arbitrary>], iteration_bounds = array<i64: 1, 1, 1>, scalar_prefetch = 0 : i64, scratch_operands = 1 : i64, tpu.core_type = #tpu.core_type<tc>, window_params = [{transform_indices = @transform_0, window_bounds = array<i64: 8, 16>}, {transform_indices = @transform_1, window_bounds = array<i64: 16, 32>}, {transform_indices = @transform_2, window_bounds = array<i64: 1, 16>}, {transform_indices = @transform_3, window_bounds = array<i64: 1, 16>}, {transform_indices = @transform_4, window_bounds = array<i64: 1, 32>}, {transform_indices = @transform_5, window_bounds = array<i64: 1, 32>}, {transform_indices = @transform_6, window_bounds = array<i64: 8, 32>}]} {
    %c0_i32 = arith.constant 0 : i32
    %0 = arith.cmpi eq, %arg2, %c0_i32 : i32
    %1 = arith.extui %0 : i1 to i32
    %c0_i32_0 = arith.constant 0 : i32
    %2 = arith.cmpi ne, %1, %c0_i32_0 : i32
    scf.if %2 {
      %cst_15 = arith.constant 0.000000e+00 : f32
      %22 = vector.broadcast %cst_15 : f32 to vector<8x32xf32>
      %c0_16 = arith.constant 0 : index
      %c0_17 = arith.constant 0 : index
      %23 = vector.load %arg10[%c0_16, %c0_17] : memref<8x32xf32, #tpu.memory_space<vmem>>, vector<8x32xf32>
      tpu.vector_store %arg10[%c0_16, %c0_17], %22 {strides = array<i32>} : memref<8x32xf32, #tpu.memory_space<vmem>>, vector<8x32xf32>,
    } else {
    }
    %c0 = arith.constant 0 : index
    %c0_1 = arith.constant 0 : index
    %3 = vector.load %arg3[%c0, %c0_1] : memref<8x16xbf16, #tpu.memory_space<vmem>>, vector<8x16xbf16>
    %4 = arith.extf %3 : vector<8x16xbf16> to vector<8x16xf32>
    %c0_2 = arith.constant 0 : index
    %c0_3 = arith.constant 0 : index
    %5 = vector.load %arg5[%c0_2, %c0_3] : memref<1x16xf32, #tpu.memory_space<vmem>>, vector<1x16xf32>
    %6 = vector.broadcast %5 : vector<1x16xf32> to vector<8x16xf32>
    %7 = arith.mulf %4, %6 : vector<8x16xf32>
    %c0_4 = arith.constant 0 : index
    %c0_5 = arith.constant 0 : index
    %8 = vector.load %arg6[%c0_4, %c0_5] : memref<1x16xf32, #tpu.memory_space<vmem>>, vector<1x16xf32>
    %9 = vector.broadcast %8 : vector<1x16xf32> to vector<8x16xf32>
    %10 = arith.addf %7, %9 : vector<8x16xf32>
    %cst = arith.constant 0.000000e+00 : f32
    %11 = vector.broadcast %cst : f32 to vector<8x16xf32>
    %12 = arith.maximumf %10, %11 : vector<8x16xf32>
    %c0_6 = arith.constant 0 : index
    %c0_7 = arith.constant 0 : index
    %13 = vector.load %arg10[%c0_6, %c0_7] : memref<8x32xf32, #tpu.memory_space<vmem>>, vector<8x32xf32>
    %14 = arith.truncf %12 : vector<8x16xf32> to vector<8x16xbf16>
    %c0_8 = arith.constant 0 : index
    %c0_9 = arith.constant 0 : index
    %15 = vector.load %arg4[%c0_8, %c0_9] : memref<16x32xbf16, #tpu.memory_space<vmem>>, vector<16x32xbf16>
    %cst_10 = arith.constant dense<0.000000e+00> : vector<8x32xf32>
    %16 = tpu.matmul %14, %15, %cst_10 {dimension_numbers = #tpu.dot_dimension_numbers<[1], [0], [0], [1], [0, 0, 1, 1], [], []>} : vector<8x16xbf16>, vector<16x32xbf16>, vector<8x32xf32> -> vector<8x32xf32>
    %17 = arith.addf %13, %16 : vector<8x32xf32>
    %c0_11 = arith.constant 0 : index
    %c0_12 = arith.constant 0 : index
    %18 = vector.load %arg10[%c0_11, %c0_12] : memref<8x32xf32, #tpu.memory_space<vmem>>, vector<8x32xf32>
    tpu.vector_store %arg10[%c0_11, %c0_12], %17 {strides = array<i32>} : memref<8x32xf32, #tpu.memory_space<vmem>>, vector<8x32xf32>,
    %c0_i32_13 = arith.constant 0 : i32
    %19 = arith.cmpi eq, %arg2, %c0_i32_13 : i32
    %20 = arith.extui %19 : i1 to i32
    %c0_i32_14 = arith.constant 0 : i32
    %21 = arith.cmpi ne, %20, %c0_i32_14 : i32
    scf.if %21 {
      %c0_15 = arith.constant 0 : index
      %c0_16 = arith.constant 0 : index
      %22 = vector.load %arg10[%c0_15, %c0_16] : memref<8x32xf32, #tpu.memory_space<vmem>>, vector<8x32xf32>
      %c0_17 = arith.constant 0 : index
      %c0_18 = arith.constant 0 : index
      %23 = vector.load %arg7[%c0_17, %c0_18] : memref<1x32xf32, #tpu.memory_space<vmem>>, vector<1x32xf32>
      %24 = vector.broadcast %23 : vector<1x32xf32> to vector<8x32xf32>
      %25 = arith.mulf %22, %24 : vector<8x32xf32>
      %c0_19 = arith.constant 0 : index
      %c0_20 = arith.constant 0 : index
      %26 = vector.load %arg8[%c0_19, %c0_20] : memref<1x32xf32, #tpu.memory_space<vmem>>, vector<1x32xf32>
      %27 = vector.broadcast %26 : vector<1x32xf32> to vector<8x32xf32>
      %28 = arith.addf %25, %27 : vector<8x32xf32>
      %cst_21 = arith.constant 0.000000e+00 : f32
      %29 = vector.broadcast %cst_21 : f32 to vector<8x32xf32>
      %30 = arith.maximumf %28, %29 : vector<8x32xf32>
      %31 = arith.truncf %30 : vector<8x32xf32> to vector<8x32xbf16>
      %c0_22 = arith.constant 0 : index
      %c0_23 = arith.constant 0 : index
      %32 = vector.load %arg9[%c0_22, %c0_23] : memref<8x32xbf16, #tpu.memory_space<vmem>>, vector<8x32xbf16>
      tpu.vector_store %arg9[%c0_22, %c0_23], %31 {strides = array<i32>} : memref<8x32xbf16, #tpu.memory_space<vmem>>, vector<8x32xbf16>,
    } else {
    }
    return
  }
  func.func @transform_0(%arg0: i32, %arg1: i32, %arg2: i32) -> (i32, i32) {
    %c0_i32 = arith.constant 0 : i32
    return %arg0, %arg2 : i32, i32
  }
  func.func @transform_1(%arg0: i32, %arg1: i32, %arg2: i32) -> (i32, i32) {
    %c0_i32 = arith.constant 0 : i32
    return %arg2, %arg1 : i32, i32
  }
  func.func @transform_2(%arg0: i32, %arg1: i32, %arg2: i32) -> (i32, i32) {
    %c0_i32 = arith.constant 0 : i32
    %c0_i32_0 = arith.constant 0 : i32
    return %c0_i32, %arg2 : i32, i32
  }
  func.func @transform_3(%arg0: i32, %arg1: i32, %arg2: i32) -> (i32, i32) {
    %c0_i32 = arith.constant 0 : i32
    %c0_i32_0 = arith.constant 0 : i32
    return %c0_i32, %arg2 : i32, i32
  }
  func.func @transform_4(%arg0: i32, %arg1: i32, %arg2: i32) -> (i32, i32) {
    %c0_i32 = arith.constant 0 : i32
    %c0_i32_0 = arith.constant 0 : i32
    return %c0_i32, %arg1 : i32, i32
  }
  func.func @transform_5(%arg0: i32, %arg1: i32, %arg2: i32) -> (i32, i32) {
    %c0_i32 = arith.constant 0 : i32
    %c0_i32_0 = arith.constant 0 : i32
    return %c0_i32, %arg1 : i32, i32
  }
  func.func @transform_6(%arg0: i32, %arg1: i32, %arg2: i32) -> (i32, i32) {
    %c0_i32 = arith.constant 0 : i32
    return %arg0, %arg1 : i32, i32
  }
}

module attributes {stable_mosaic.version = 11 : i64} {
  func.func @kernel(%arg0: i32, %arg1: i32, %arg2: i32, %arg3: memref<8x288xbf16, #tpu.memory_space<vmem>>, %arg4: memref<288x8xbf16, #tpu.memory_space<vmem>>, %arg5: memref<8x8xbf16, #tpu.memory_space<vmem>>, %arg6: memref<8x8xf32, #tpu.memory_space<vmem>>) attributes {dimension_semantics = [#tpu.dimension_semantics<parallel>, #tpu.dimension_semantics<parallel>, #tpu.dimension_semantics<arbitrary>], iteration_bounds = array<i64: 1, 1, 1>, scalar_prefetch = 0 : i64, scratch_operands = 1 : i64, tpu.core_type = #tpu.core_type<tc>, window_params = [{transform_indices = @transform_0, window_bounds = array<i64: 8, 288>}, {transform_indices = @transform_1, window_bounds = array<i64: 288, 8>}, {transform_indices = @transform_2, window_bounds = array<i64: 8, 8>}]} {
    %c0_i32 = arith.constant 0 : i32
    %0 = arith.cmpi eq, %arg2, %c0_i32 : i32
    %1 = arith.extui %0 : i1 to i32
    %c0_i32_0 = arith.constant 0 : i32
    %2 = arith.cmpi ne, %1, %c0_i32_0 : i32
    scf.if %2 {
      %cst_10 = arith.constant 0.000000e+00 : f32
      %12 = vector.broadcast %cst_10 : f32 to vector<8x8xf32>
      %c0_11 = arith.constant 0 : index
      %c0_12 = arith.constant 0 : index
      %13 = vector.load %arg6[%c0_11, %c0_12] : memref<8x8xf32, #tpu.memory_space<vmem>>, vector<8x8xf32>
      tpu.vector_store %arg6[%c0_11, %c0_12], %12 {strides = array<i32>} : memref<8x8xf32, #tpu.memory_space<vmem>>, vector<8x8xf32>,
    } else {
    }
    %c0 = arith.constant 0 : index
    %c0_1 = arith.constant 0 : index
    %3 = vector.load %arg3[%c0, %c0_1] : memref<8x288xbf16, #tpu.memory_space<vmem>>, vector<8x288xbf16>
    %c0_2 = arith.constant 0 : index
    %c0_3 = arith.constant 0 : index
    %4 = vector.load %arg6[%c0_2, %c0_3] : memref<8x8xf32, #tpu.memory_space<vmem>>, vector<8x8xf32>
    %c0_4 = arith.constant 0 : index
    %c0_5 = arith.constant 0 : index
    %5 = vector.load %arg4[%c0_4, %c0_5] : memref<288x8xbf16, #tpu.memory_space<vmem>>, vector<288x8xbf16>
    %cst = arith.constant dense<0.000000e+00> : vector<8x8xf32>
    %6 = tpu.matmul %3, %5, %cst {dimension_numbers = #tpu.dot_dimension_numbers<[1], [0], [0], [1], [0, 0, 1, 1], [], []>} : vector<8x288xbf16>, vector<288x8xbf16>, vector<8x8xf32> -> vector<8x8xf32>
    %7 = arith.addf %4, %6 : vector<8x8xf32>
    %c0_6 = arith.constant 0 : index
    %c0_7 = arith.constant 0 : index
    %8 = vector.load %arg6[%c0_6, %c0_7] : memref<8x8xf32, #tpu.memory_space<vmem>>, vector<8x8xf32>
    tpu.vector_store %arg6[%c0_6, %c0_7], %7 {strides = array<i32>} : memref<8x8xf32, #tpu.memory_space<vmem>>, vector<8x8xf32>,
    %c0_i32_8 = arith.constant 0 : i32
    %9 = arith.cmpi eq, %arg2, %c0_i32_8 : i32
    %10 = arith.extui %9 : i1 to i32
    %c0_i32_9 = arith.constant 0 : i32
    %11 = arith.cmpi ne, %10, %c0_i32_9 : i32
    scf.if %11 {
      %c0_10 = arith.constant 0 : index
      %c0_11 = arith.constant 0 : index
      %12 = vector.load %arg6[%c0_10, %c0_11] : memref<8x8xf32, #tpu.memory_space<vmem>>, vector<8x8xf32>
      %13 = arith.truncf %12 : vector<8x8xf32> to vector<8x8xbf16>
      %c0_12 = arith.constant 0 : index
      %c0_13 = arith.constant 0 : index
      %14 = vector.load %arg5[%c0_12, %c0_13] : memref<8x8xbf16, #tpu.memory_space<vmem>>, vector<8x8xbf16>
      tpu.vector_store %arg5[%c0_12, %c0_13], %13 {strides = array<i32>} : memref<8x8xbf16, #tpu.memory_space<vmem>>, vector<8x8xbf16>,
    } else {
    }
    return
  }
  func.func @transform_0(%arg0: i32, %arg1: i32, %arg2: i32) -> (i32, i32) {
    %c0_i32 = arith.constant 0 : i32
    return %arg0, %arg2 : i32, i32
  }
  func.func @transform_1(%arg0: i32, %arg1: i32, %arg2: i32) -> (i32, i32) {
    %c0_i32 = arith.constant 0 : i32
    return %arg2, %arg1 : i32, i32
  }
  func.func @transform_2(%arg0: i32, %arg1: i32, %arg2: i32) -> (i32, i32) {
    %c0_i32 = arith.constant 0 : i32
    return %arg0, %arg1 : i32, i32
  }
}

module attributes {stable_mosaic.version = 11 : i64} {
  func.func @kernel(%arg0: i32, %arg1: i32, %arg2: i32, %arg3: memref<8x24xbf16, #tpu.memory_space<vmem>>, %arg4: memref<24x32xbf16, #tpu.memory_space<vmem>>, %arg5: memref<1x24xf32, #tpu.memory_space<vmem>>, %arg6: memref<1x24xf32, #tpu.memory_space<vmem>>, %arg7: memref<1x32xf32, #tpu.memory_space<vmem>>, %arg8: memref<1x32xf32, #tpu.memory_space<vmem>>, %arg9: memref<8x32xbf16, #tpu.memory_space<vmem>>, %arg10: memref<8x32xf32, #tpu.memory_space<vmem>>) attributes {dimension_semantics = [#tpu.dimension_semantics<parallel>, #tpu.dimension_semantics<parallel>, #tpu.dimension_semantics<arbitrary>], iteration_bounds = array<i64: 1, 1, 1>, scalar_prefetch = 0 : i64, scratch_operands = 1 : i64, tpu.core_type = #tpu.core_type<tc>, window_params = [{transform_indices = @transform_0, window_bounds = array<i64: 8, 24>}, {transform_indices = @transform_1, window_bounds = array<i64: 24, 32>}, {transform_indices = @transform_2, window_bounds = array<i64: 1, 24>}, {transform_indices = @transform_3, window_bounds = array<i64: 1, 24>}, {transform_indices = @transform_4, window_bounds = array<i64: 1, 32>}, {transform_indices = @transform_5, window_bounds = array<i64: 1, 32>}, {transform_indices = @transform_6, window_bounds = array<i64: 8, 32>}]} {
    %c0_i32 = arith.constant 0 : i32
    %0 = arith.cmpi eq, %arg2, %c0_i32 : i32
    %1 = arith.extui %0 : i1 to i32
    %c0_i32_0 = arith.constant 0 : i32
    %2 = arith.cmpi ne, %1, %c0_i32_0 : i32
    scf.if %2 {
      %cst_15 = arith.constant 0.000000e+00 : f32
      %22 = vector.broadcast %cst_15 : f32 to vector<8x32xf32>
      %c0_16 = arith.constant 0 : index
      %c0_17 = arith.constant 0 : index
      %23 = vector.load %arg10[%c0_16, %c0_17] : memref<8x32xf32, #tpu.memory_space<vmem>>, vector<8x32xf32>
      tpu.vector_store %arg10[%c0_16, %c0_17], %22 {strides = array<i32>} : memref<8x32xf32, #tpu.memory_space<vmem>>, vector<8x32xf32>,
    } else {
    }
    %c0 = arith.constant 0 : index
    %c0_1 = arith.constant 0 : index
    %3 = vector.load %arg3[%c0, %c0_1] : memref<8x24xbf16, #tpu.memory_space<vmem>>, vector<8x24xbf16>
    %4 = arith.extf %3 : vector<8x24xbf16> to vector<8x24xf32>
    %c0_2 = arith.constant 0 : index
    %c0_3 = arith.constant 0 : index
    %5 = vector.load %arg5[%c0_2, %c0_3] : memref<1x24xf32, #tpu.memory_space<vmem>>, vector<1x24xf32>
    %6 = vector.broadcast %5 : vector<1x24xf32> to vector<8x24xf32>
    %7 = arith.mulf %4, %6 : vector<8x24xf32>
    %c0_4 = arith.constant 0 : index
    %c0_5 = arith.constant 0 : index
    %8 = vector.load %arg6[%c0_4, %c0_5] : memref<1x24xf32, #tpu.memory_space<vmem>>, vector<1x24xf32>
    %9 = vector.broadcast %8 : vector<1x24xf32> to vector<8x24xf32>
    %10 = arith.addf %7, %9 : vector<8x24xf32>
    %cst = arith.constant 0.000000e+00 : f32
    %11 = vector.broadcast %cst : f32 to vector<8x24xf32>
    %12 = arith.maximumf %10, %11 : vector<8x24xf32>
    %c0_6 = arith.constant 0 : index
    %c0_7 = arith.constant 0 : index
    %13 = vector.load %arg10[%c0_6, %c0_7] : memref<8x32xf32, #tpu.memory_space<vmem>>, vector<8x32xf32>
    %14 = arith.truncf %12 : vector<8x24xf32> to vector<8x24xbf16>
    %c0_8 = arith.constant 0 : index
    %c0_9 = arith.constant 0 : index
    %15 = vector.load %arg4[%c0_8, %c0_9] : memref<24x32xbf16, #tpu.memory_space<vmem>>, vector<24x32xbf16>
    %cst_10 = arith.constant dense<0.000000e+00> : vector<8x32xf32>
    %16 = tpu.matmul %14, %15, %cst_10 {dimension_numbers = #tpu.dot_dimension_numbers<[1], [0], [0], [1], [0, 0, 1, 1], [], []>} : vector<8x24xbf16>, vector<24x32xbf16>, vector<8x32xf32> -> vector<8x32xf32>
    %17 = arith.addf %13, %16 : vector<8x32xf32>
    %c0_11 = arith.constant 0 : index
    %c0_12 = arith.constant 0 : index
    %18 = vector.load %arg10[%c0_11, %c0_12] : memref<8x32xf32, #tpu.memory_space<vmem>>, vector<8x32xf32>
    tpu.vector_store %arg10[%c0_11, %c0_12], %17 {strides = array<i32>} : memref<8x32xf32, #tpu.memory_space<vmem>>, vector<8x32xf32>,
    %c0_i32_13 = arith.constant 0 : i32
    %19 = arith.cmpi eq, %arg2, %c0_i32_13 : i32
    %20 = arith.extui %19 : i1 to i32
    %c0_i32_14 = arith.constant 0 : i32
    %21 = arith.cmpi ne, %20, %c0_i32_14 : i32
    scf.if %21 {
      %c0_15 = arith.constant 0 : index
      %c0_16 = arith.constant 0 : index
      %22 = vector.load %arg10[%c0_15, %c0_16] : memref<8x32xf32, #tpu.memory_space<vmem>>, vector<8x32xf32>
      %c0_17 = arith.constant 0 : index
      %c0_18 = arith.constant 0 : index
      %23 = vector.load %arg7[%c0_17, %c0_18] : memref<1x32xf32, #tpu.memory_space<vmem>>, vector<1x32xf32>
      %24 = vector.broadcast %23 : vector<1x32xf32> to vector<8x32xf32>
      %25 = arith.mulf %22, %24 : vector<8x32xf32>
      %c0_19 = arith.constant 0 : index
      %c0_20 = arith.constant 0 : index
      %26 = vector.load %arg8[%c0_19, %c0_20] : memref<1x32xf32, #tpu.memory_space<vmem>>, vector<1x32xf32>
      %27 = vector.broadcast %26 : vector<1x32xf32> to vector<8x32xf32>
      %28 = arith.addf %25, %27 : vector<8x32xf32>
      %cst_21 = arith.constant 0.000000e+00 : f32
      %29 = vector.broadcast %cst_21 : f32 to vector<8x32xf32>
      %30 = arith.maximumf %28, %29 : vector<8x32xf32>
      %31 = arith.truncf %30 : vector<8x32xf32> to vector<8x32xbf16>
      %c0_22 = arith.constant 0 : index
      %c0_23 = arith.constant 0 : index
      %32 = vector.load %arg9[%c0_22, %c0_23] : memref<8x32xbf16, #tpu.memory_space<vmem>>, vector<8x32xbf16>
      tpu.vector_store %arg9[%c0_22, %c0_23], %31 {strides = array<i32>} : memref<8x32xbf16, #tpu.memory_space<vmem>>, vector<8x32xbf16>,
    } else {
    }
    return
  }
  func.func @transform_0(%arg0: i32, %arg1: i32, %arg2: i32) -> (i32, i32) {
    %c0_i32 = arith.constant 0 : i32
    return %arg0, %arg2 : i32, i32
  }
  func.func @transform_1(%arg0: i32, %arg1: i32, %arg2: i32) -> (i32, i32) {
    %c0_i32 = arith.constant 0 : i32
    return %arg2, %arg1 : i32, i32
  }
  func.func @transform_2(%arg0: i32, %arg1: i32, %arg2: i32) -> (i32, i32) {
    %c0_i32 = arith.constant 0 : i32
    %c0_i32_0 = arith.constant 0 : i32
    return %c0_i32, %arg2 : i32, i32
  }
  func.func @transform_3(%arg0: i32, %arg1: i32, %arg2: i32) -> (i32, i32) {
    %c0_i32 = arith.constant 0 : i32
    %c0_i32_0 = arith.constant 0 : i32
    return %c0_i32, %arg2 : i32, i32
  }
  func.func @transform_4(%arg0: i32, %arg1: i32, %arg2: i32) -> (i32, i32) {
    %c0_i32 = arith.constant 0 : i32
    %c0_i32_0 = arith.constant 0 : i32
    return %c0_i32, %arg1 : i32, i32
  }
  func.func @transform_5(%arg0: i32, %arg1: i32, %arg2: i32) -> (i32, i32) {
    %c0_i32 = arith.constant 0 : i32
    %c0_i32_0 = arith.constant 0 : i32
    return %c0_i32, %arg1 : i32, i32
  }
  func.func @transform_6(%arg0: i32, %arg1: i32, %arg2: i32) -> (i32, i32) {
    %c0_i32 = arith.constant 0 : i32
    return %arg0, %arg1 : i32, i32
  }
}

module attributes {stable_mosaic.version = 11 : i64} {
  func.func @kernel(%arg0: i32, %arg1: i32, %arg2: i32, %arg3: memref<8x32xbf16, #tpu.memory_space<vmem>>, %arg4: memref<32x16xbf16, #tpu.memory_space<vmem>>, %arg5: memref<1x32xf32, #tpu.memory_space<vmem>>, %arg6: memref<1x32xf32, #tpu.memory_space<vmem>>, %arg7: memref<8x16xbf16, #tpu.memory_space<vmem>>, %arg8: memref<8x16xf32, #tpu.memory_space<vmem>>) attributes {dimension_semantics = [#tpu.dimension_semantics<parallel>, #tpu.dimension_semantics<parallel>, #tpu.dimension_semantics<arbitrary>], iteration_bounds = array<i64: 1, 1, 1>, scalar_prefetch = 0 : i64, scratch_operands = 1 : i64, tpu.core_type = #tpu.core_type<tc>, window_params = [{transform_indices = @transform_0, window_bounds = array<i64: 8, 32>}, {transform_indices = @transform_1, window_bounds = array<i64: 32, 16>}, {transform_indices = @transform_2, window_bounds = array<i64: 1, 32>}, {transform_indices = @transform_3, window_bounds = array<i64: 1, 32>}, {transform_indices = @transform_4, window_bounds = array<i64: 8, 16>}]} {
    %c0_i32 = arith.constant 0 : i32
    %0 = arith.cmpi eq, %arg2, %c0_i32 : i32
    %1 = arith.extui %0 : i1 to i32
    %c0_i32_0 = arith.constant 0 : i32
    %2 = arith.cmpi ne, %1, %c0_i32_0 : i32
    scf.if %2 {
      %cst_15 = arith.constant 0.000000e+00 : f32
      %22 = vector.broadcast %cst_15 : f32 to vector<8x16xf32>
      %c0_16 = arith.constant 0 : index
      %c0_17 = arith.constant 0 : index
      %23 = vector.load %arg8[%c0_16, %c0_17] : memref<8x16xf32, #tpu.memory_space<vmem>>, vector<8x16xf32>
      tpu.vector_store %arg8[%c0_16, %c0_17], %22 {strides = array<i32>} : memref<8x16xf32, #tpu.memory_space<vmem>>, vector<8x16xf32>,
    } else {
    }
    %c0 = arith.constant 0 : index
    %c0_1 = arith.constant 0 : index
    %3 = vector.load %arg3[%c0, %c0_1] : memref<8x32xbf16, #tpu.memory_space<vmem>>, vector<8x32xbf16>
    %4 = arith.extf %3 : vector<8x32xbf16> to vector<8x32xf32>
    %c0_2 = arith.constant 0 : index
    %c0_3 = arith.constant 0 : index
    %5 = vector.load %arg5[%c0_2, %c0_3] : memref<1x32xf32, #tpu.memory_space<vmem>>, vector<1x32xf32>
    %6 = vector.broadcast %5 : vector<1x32xf32> to vector<8x32xf32>
    %7 = arith.mulf %4, %6 : vector<8x32xf32>
    %c0_4 = arith.constant 0 : index
    %c0_5 = arith.constant 0 : index
    %8 = vector.load %arg6[%c0_4, %c0_5] : memref<1x32xf32, #tpu.memory_space<vmem>>, vector<1x32xf32>
    %9 = vector.broadcast %8 : vector<1x32xf32> to vector<8x32xf32>
    %10 = arith.addf %7, %9 : vector<8x32xf32>
    %cst = arith.constant 0.000000e+00 : f32
    %11 = vector.broadcast %cst : f32 to vector<8x32xf32>
    %12 = arith.maximumf %10, %11 : vector<8x32xf32>
    %c0_6 = arith.constant 0 : index
    %c0_7 = arith.constant 0 : index
    %13 = vector.load %arg8[%c0_6, %c0_7] : memref<8x16xf32, #tpu.memory_space<vmem>>, vector<8x16xf32>
    %14 = arith.truncf %12 : vector<8x32xf32> to vector<8x32xbf16>
    %c0_8 = arith.constant 0 : index
    %c0_9 = arith.constant 0 : index
    %15 = vector.load %arg4[%c0_8, %c0_9] : memref<32x16xbf16, #tpu.memory_space<vmem>>, vector<32x16xbf16>
    %cst_10 = arith.constant dense<0.000000e+00> : vector<8x16xf32>
    %16 = tpu.matmul %14, %15, %cst_10 {dimension_numbers = #tpu.dot_dimension_numbers<[1], [0], [0], [1], [0, 0, 1, 1], [], []>} : vector<8x32xbf16>, vector<32x16xbf16>, vector<8x16xf32> -> vector<8x16xf32>
    %17 = arith.addf %13, %16 : vector<8x16xf32>
    %c0_11 = arith.constant 0 : index
    %c0_12 = arith.constant 0 : index
    %18 = vector.load %arg8[%c0_11, %c0_12] : memref<8x16xf32, #tpu.memory_space<vmem>>, vector<8x16xf32>
    tpu.vector_store %arg8[%c0_11, %c0_12], %17 {strides = array<i32>} : memref<8x16xf32, #tpu.memory_space<vmem>>, vector<8x16xf32>,
    %c0_i32_13 = arith.constant 0 : i32
    %19 = arith.cmpi eq, %arg2, %c0_i32_13 : i32
    %20 = arith.extui %19 : i1 to i32
    %c0_i32_14 = arith.constant 0 : i32
    %21 = arith.cmpi ne, %20, %c0_i32_14 : i32
    scf.if %21 {
      %c0_15 = arith.constant 0 : index
      %c0_16 = arith.constant 0 : index
      %22 = vector.load %arg8[%c0_15, %c0_16] : memref<8x16xf32, #tpu.memory_space<vmem>>, vector<8x16xf32>
      %23 = arith.truncf %22 : vector<8x16xf32> to vector<8x16xbf16>
      %c0_17 = arith.constant 0 : index
      %c0_18 = arith.constant 0 : index
      %24 = vector.load %arg7[%c0_17, %c0_18] : memref<8x16xbf16, #tpu.memory_space<vmem>>, vector<8x16xbf16>
      tpu.vector_store %arg7[%c0_17, %c0_18], %23 {strides = array<i32>} : memref<8x16xbf16, #tpu.memory_space<vmem>>, vector<8x16xbf16>,
    } else {
    }
    return
  }
  func.func @transform_0(%arg0: i32, %arg1: i32, %arg2: i32) -> (i32, i32) {
    %c0_i32 = arith.constant 0 : i32
    return %arg0, %arg2 : i32, i32
  }
  func.func @transform_1(%arg0: i32, %arg1: i32, %arg2: i32) -> (i32, i32) {
    %c0_i32 = arith.constant 0 : i32
    return %arg2, %arg1 : i32, i32
  }
  func.func @transform_2(%arg0: i32, %arg1: i32, %arg2: i32) -> (i32, i32) {
    %c0_i32 = arith.constant 0 : i32
    %c0_i32_0 = arith.constant 0 : i32
    return %c0_i32, %arg2 : i32, i32
  }
  func.func @transform_3(%arg0: i32, %arg1: i32, %arg2: i32) -> (i32, i32) {
    %c0_i32 = arith.constant 0 : i32
    %c0_i32_0 = arith.constant 0 : i32
    return %c0_i32, %arg2 : i32, i32
  }
  func.func @transform_4(%arg0: i32, %arg1: i32, %arg2: i32) -> (i32, i32) {
    %c0_i32 = arith.constant 0 : i32
    return %arg0, %arg1 : i32, i32
  }
}

module attributes {stable_mosaic.version = 11 : i64} {
  func.func @kernel(%arg0: i32, %arg1: i32, %arg2: i32, %arg3: memref<8x16xbf16, #tpu.memory_space<vmem>>, %arg4: memref<16x32xbf16, #tpu.memory_space<vmem>>, %arg5: memref<1x16xf32, #tpu.memory_space<vmem>>, %arg6: memref<1x16xf32, #tpu.memory_space<vmem>>, %arg7: memref<1x32xf32, #tpu.memory_space<vmem>>, %arg8: memref<1x32xf32, #tpu.memory_space<vmem>>, %arg9: memref<8x32xbf16, #tpu.memory_space<vmem>>, %arg10: memref<8x32xf32, #tpu.memory_space<vmem>>) attributes {dimension_semantics = [#tpu.dimension_semantics<parallel>, #tpu.dimension_semantics<parallel>, #tpu.dimension_semantics<arbitrary>], iteration_bounds = array<i64: 1, 1, 1>, scalar_prefetch = 0 : i64, scratch_operands = 1 : i64, tpu.core_type = #tpu.core_type<tc>, window_params = [{transform_indices = @transform_0, window_bounds = array<i64: 8, 16>}, {transform_indices = @transform_1, window_bounds = array<i64: 16, 32>}, {transform_indices = @transform_2, window_bounds = array<i64: 1, 16>}, {transform_indices = @transform_3, window_bounds = array<i64: 1, 16>}, {transform_indices = @transform_4, window_bounds = array<i64: 1, 32>}, {transform_indices = @transform_5, window_bounds = array<i64: 1, 32>}, {transform_indices = @transform_6, window_bounds = array<i64: 8, 32>}]} {
    %c0_i32 = arith.constant 0 : i32
    %0 = arith.cmpi eq, %arg2, %c0_i32 : i32
    %1 = arith.extui %0 : i1 to i32
    %c0_i32_0 = arith.constant 0 : i32
    %2 = arith.cmpi ne, %1, %c0_i32_0 : i32
    scf.if %2 {
      %cst_15 = arith.constant 0.000000e+00 : f32
      %22 = vector.broadcast %cst_15 : f32 to vector<8x32xf32>
      %c0_16 = arith.constant 0 : index
      %c0_17 = arith.constant 0 : index
      %23 = vector.load %arg10[%c0_16, %c0_17] : memref<8x32xf32, #tpu.memory_space<vmem>>, vector<8x32xf32>
      tpu.vector_store %arg10[%c0_16, %c0_17], %22 {strides = array<i32>} : memref<8x32xf32, #tpu.memory_space<vmem>>, vector<8x32xf32>,
    } else {
    }
    %c0 = arith.constant 0 : index
    %c0_1 = arith.constant 0 : index
    %3 = vector.load %arg3[%c0, %c0_1] : memref<8x16xbf16, #tpu.memory_space<vmem>>, vector<8x16xbf16>
    %4 = arith.extf %3 : vector<8x16xbf16> to vector<8x16xf32>
    %c0_2 = arith.constant 0 : index
    %c0_3 = arith.constant 0 : index
    %5 = vector.load %arg5[%c0_2, %c0_3] : memref<1x16xf32, #tpu.memory_space<vmem>>, vector<1x16xf32>
    %6 = vector.broadcast %5 : vector<1x16xf32> to vector<8x16xf32>
    %7 = arith.mulf %4, %6 : vector<8x16xf32>
    %c0_4 = arith.constant 0 : index
    %c0_5 = arith.constant 0 : index
    %8 = vector.load %arg6[%c0_4, %c0_5] : memref<1x16xf32, #tpu.memory_space<vmem>>, vector<1x16xf32>
    %9 = vector.broadcast %8 : vector<1x16xf32> to vector<8x16xf32>
    %10 = arith.addf %7, %9 : vector<8x16xf32>
    %cst = arith.constant 0.000000e+00 : f32
    %11 = vector.broadcast %cst : f32 to vector<8x16xf32>
    %12 = arith.maximumf %10, %11 : vector<8x16xf32>
    %c0_6 = arith.constant 0 : index
    %c0_7 = arith.constant 0 : index
    %13 = vector.load %arg10[%c0_6, %c0_7] : memref<8x32xf32, #tpu.memory_space<vmem>>, vector<8x32xf32>
    %14 = arith.truncf %12 : vector<8x16xf32> to vector<8x16xbf16>
    %c0_8 = arith.constant 0 : index
    %c0_9 = arith.constant 0 : index
    %15 = vector.load %arg4[%c0_8, %c0_9] : memref<16x32xbf16, #tpu.memory_space<vmem>>, vector<16x32xbf16>
    %cst_10 = arith.constant dense<0.000000e+00> : vector<8x32xf32>
    %16 = tpu.matmul %14, %15, %cst_10 {dimension_numbers = #tpu.dot_dimension_numbers<[1], [0], [0], [1], [0, 0, 1, 1], [], []>} : vector<8x16xbf16>, vector<16x32xbf16>, vector<8x32xf32> -> vector<8x32xf32>
    %17 = arith.addf %13, %16 : vector<8x32xf32>
    %c0_11 = arith.constant 0 : index
    %c0_12 = arith.constant 0 : index
    %18 = vector.load %arg10[%c0_11, %c0_12] : memref<8x32xf32, #tpu.memory_space<vmem>>, vector<8x32xf32>
    tpu.vector_store %arg10[%c0_11, %c0_12], %17 {strides = array<i32>} : memref<8x32xf32, #tpu.memory_space<vmem>>, vector<8x32xf32>,
    %c0_i32_13 = arith.constant 0 : i32
    %19 = arith.cmpi eq, %arg2, %c0_i32_13 : i32
    %20 = arith.extui %19 : i1 to i32
    %c0_i32_14 = arith.constant 0 : i32
    %21 = arith.cmpi ne, %20, %c0_i32_14 : i32
    scf.if %21 {
      %c0_15 = arith.constant 0 : index
      %c0_16 = arith.constant 0 : index
      %22 = vector.load %arg10[%c0_15, %c0_16] : memref<8x32xf32, #tpu.memory_space<vmem>>, vector<8x32xf32>
      %c0_17 = arith.constant 0 : index
      %c0_18 = arith.constant 0 : index
      %23 = vector.load %arg7[%c0_17, %c0_18] : memref<1x32xf32, #tpu.memory_space<vmem>>, vector<1x32xf32>
      %24 = vector.broadcast %23 : vector<1x32xf32> to vector<8x32xf32>
      %25 = arith.mulf %22, %24 : vector<8x32xf32>
      %c0_19 = arith.constant 0 : index
      %c0_20 = arith.constant 0 : index
      %26 = vector.load %arg8[%c0_19, %c0_20] : memref<1x32xf32, #tpu.memory_space<vmem>>, vector<1x32xf32>
      %27 = vector.broadcast %26 : vector<1x32xf32> to vector<8x32xf32>
      %28 = arith.addf %25, %27 : vector<8x32xf32>
      %cst_21 = arith.constant 0.000000e+00 : f32
      %29 = vector.broadcast %cst_21 : f32 to vector<8x32xf32>
      %30 = arith.maximumf %28, %29 : vector<8x32xf32>
      %31 = arith.truncf %30 : vector<8x32xf32> to vector<8x32xbf16>
      %c0_22 = arith.constant 0 : index
      %c0_23 = arith.constant 0 : index
      %32 = vector.load %arg9[%c0_22, %c0_23] : memref<8x32xbf16, #tpu.memory_space<vmem>>, vector<8x32xbf16>
      tpu.vector_store %arg9[%c0_22, %c0_23], %31 {strides = array<i32>} : memref<8x32xbf16, #tpu.memory_space<vmem>>, vector<8x32xbf16>,
    } else {
    }
    return
  }
  func.func @transform_0(%arg0: i32, %arg1: i32, %arg2: i32) -> (i32, i32) {
    %c0_i32 = arith.constant 0 : i32
    return %arg0, %arg2 : i32, i32
  }
  func.func @transform_1(%arg0: i32, %arg1: i32, %arg2: i32) -> (i32, i32) {
    %c0_i32 = arith.constant 0 : i32
    return %arg2, %arg1 : i32, i32
  }
  func.func @transform_2(%arg0: i32, %arg1: i32, %arg2: i32) -> (i32, i32) {
    %c0_i32 = arith.constant 0 : i32
    %c0_i32_0 = arith.constant 0 : i32
    return %c0_i32, %arg2 : i32, i32
  }
  func.func @transform_3(%arg0: i32, %arg1: i32, %arg2: i32) -> (i32, i32) {
    %c0_i32 = arith.constant 0 : i32
    %c0_i32_0 = arith.constant 0 : i32
    return %c0_i32, %arg2 : i32, i32
  }
  func.func @transform_4(%arg0: i32, %arg1: i32, %arg2: i32) -> (i32, i32) {
    %c0_i32 = arith.constant 0 : i32
    %c0_i32_0 = arith.constant 0 : i32
    return %c0_i32, %arg1 : i32, i32
  }
  func.func @transform_5(%arg0: i32, %arg1: i32, %arg2: i32) -> (i32, i32) {
    %c0_i32 = arith.constant 0 : i32
    %c0_i32_0 = arith.constant 0 : i32
    return %c0_i32, %arg1 : i32, i32
  }
  func.func @transform_6(%arg0: i32, %arg1: i32, %arg2: i32) -> (i32, i32) {
    %c0_i32 = arith.constant 0 : i32
    return %arg0, %arg1 : i32, i32
  }
}

module attributes {stable_mosaic.version = 11 : i64} {
  func.func @kernel(%arg0: i32, %arg1: i32, %arg2: i32, %arg3: memref<8x288xbf16, #tpu.memory_space<vmem>>, %arg4: memref<288x8xbf16, #tpu.memory_space<vmem>>, %arg5: memref<8x8xbf16, #tpu.memory_space<vmem>>, %arg6: memref<8x8xf32, #tpu.memory_space<vmem>>) attributes {dimension_semantics = [#tpu.dimension_semantics<parallel>, #tpu.dimension_semantics<parallel>, #tpu.dimension_semantics<arbitrary>], iteration_bounds = array<i64: 1, 1, 1>, scalar_prefetch = 0 : i64, scratch_operands = 1 : i64, tpu.core_type = #tpu.core_type<tc>, window_params = [{transform_indices = @transform_0, window_bounds = array<i64: 8, 288>}, {transform_indices = @transform_1, window_bounds = array<i64: 288, 8>}, {transform_indices = @transform_2, window_bounds = array<i64: 8, 8>}]} {
    %c0_i32 = arith.constant 0 : i32
    %0 = arith.cmpi eq, %arg2, %c0_i32 : i32
    %1 = arith.extui %0 : i1 to i32
    %c0_i32_0 = arith.constant 0 : i32
    %2 = arith.cmpi ne, %1, %c0_i32_0 : i32
    scf.if %2 {
      %cst_10 = arith.constant 0.000000e+00 : f32
      %12 = vector.broadcast %cst_10 : f32 to vector<8x8xf32>
      %c0_11 = arith.constant 0 : index
      %c0_12 = arith.constant 0 : index
      %13 = vector.load %arg6[%c0_11, %c0_12] : memref<8x8xf32, #tpu.memory_space<vmem>>, vector<8x8xf32>
      tpu.vector_store %arg6[%c0_11, %c0_12], %12 {strides = array<i32>} : memref<8x8xf32, #tpu.memory_space<vmem>>, vector<8x8xf32>,
    } else {
    }
    %c0 = arith.constant 0 : index
    %c0_1 = arith.constant 0 : index
    %3 = vector.load %arg3[%c0, %c0_1] : memref<8x288xbf16, #tpu.memory_space<vmem>>, vector<8x288xbf16>
    %c0_2 = arith.constant 0 : index
    %c0_3 = arith.constant 0 : index
    %4 = vector.load %arg6[%c0_2, %c0_3] : memref<8x8xf32, #tpu.memory_space<vmem>>, vector<8x8xf32>
    %c0_4 = arith.constant 0 : index
    %c0_5 = arith.constant 0 : index
    %5 = vector.load %arg4[%c0_4, %c0_5] : memref<288x8xbf16, #tpu.memory_space<vmem>>, vector<288x8xbf16>
    %cst = arith.constant dense<0.000000e+00> : vector<8x8xf32>
    %6 = tpu.matmul %3, %5, %cst {dimension_numbers = #tpu.dot_dimension_numbers<[1], [0], [0], [1], [0, 0, 1, 1], [], []>} : vector<8x288xbf16>, vector<288x8xbf16>, vector<8x8xf32> -> vector<8x8xf32>
    %7 = arith.addf %4, %6 : vector<8x8xf32>
    %c0_6 = arith.constant 0 : index
    %c0_7 = arith.constant 0 : index
    %8 = vector.load %arg6[%c0_6, %c0_7] : memref<8x8xf32, #tpu.memory_space<vmem>>, vector<8x8xf32>
    tpu.vector_store %arg6[%c0_6, %c0_7], %7 {strides = array<i32>} : memref<8x8xf32, #tpu.memory_space<vmem>>, vector<8x8xf32>,
    %c0_i32_8 = arith.constant 0 : i32
    %9 = arith.cmpi eq, %arg2, %c0_i32_8 : i32
    %10 = arith.extui %9 : i1 to i32
    %c0_i32_9 = arith.constant 0 : i32
    %11 = arith.cmpi ne, %10, %c0_i32_9 : i32
    scf.if %11 {
      %c0_10 = arith.constant 0 : index
      %c0_11 = arith.constant 0 : index
      %12 = vector.load %arg6[%c0_10, %c0_11] : memref<8x8xf32, #tpu.memory_space<vmem>>, vector<8x8xf32>
      %13 = arith.truncf %12 : vector<8x8xf32> to vector<8x8xbf16>
      %c0_12 = arith.constant 0 : index
      %c0_13 = arith.constant 0 : index
      %14 = vector.load %arg5[%c0_12, %c0_13] : memref<8x8xbf16, #tpu.memory_space<vmem>>, vector<8x8xbf16>
      tpu.vector_store %arg5[%c0_12, %c0_13], %13 {strides = array<i32>} : memref<8x8xbf16, #tpu.memory_space<vmem>>, vector<8x8xbf16>,
    } else {
    }
    return
  }
  func.func @transform_0(%arg0: i32, %arg1: i32, %arg2: i32) -> (i32, i32) {
    %c0_i32 = arith.constant 0 : i32
    return %arg0, %arg2 : i32, i32
  }
  func.func @transform_1(%arg0: i32, %arg1: i32, %arg2: i32) -> (i32, i32) {
    %c0_i32 = arith.constant 0 : i32
    return %arg2, %arg1 : i32, i32
  }
  func.func @transform_2(%arg0: i32, %arg1: i32, %arg2: i32) -> (i32, i32) {
    %c0_i32 = arith.constant 0 : i32
    return %arg0, %arg1 : i32, i32
  }
}

module attributes {stable_mosaic.version = 11 : i64} {
  func.func @_norm_relu_gap_kernel(%arg0: memref<2x1x32xbf16, #tpu.memory_space<vmem>>, %arg1: memref<1x1x32xf32, #tpu.memory_space<vmem>>, %arg2: memref<1x1x32xf32, #tpu.memory_space<vmem>>, %arg3: memref<2x32xf32, #tpu.memory_space<vmem>>) attributes {dimension_semantics = [], scalar_prefetch = 0 : i64, scratch_operands = 0 : i64, tpu.core_type = #tpu.core_type<tc>} {
    %c0 = arith.constant 0 : index
    %c0_0 = arith.constant 0 : index
    %c0_1 = arith.constant 0 : index
    %0 = vector.load %arg0[%c0, %c0_0, %c0_1] : memref<2x1x32xbf16, #tpu.memory_space<vmem>>, vector<2x1x32xbf16>
    %1 = arith.extf %0 : vector<2x1x32xbf16> to vector<2x1x32xf32>
    %c0_2 = arith.constant 0 : index
    %c0_3 = arith.constant 0 : index
    %c0_4 = arith.constant 0 : index
    %2 = vector.load %arg1[%c0_2, %c0_3, %c0_4] : memref<1x1x32xf32, #tpu.memory_space<vmem>>, vector<1x1x32xf32>
    %3 = vector.broadcast %2 : vector<1x1x32xf32> to vector<2x1x32xf32>
    %4 = arith.mulf %1, %3 : vector<2x1x32xf32>
    %c0_5 = arith.constant 0 : index
    %c0_6 = arith.constant 0 : index
    %c0_7 = arith.constant 0 : index
    %5 = vector.load %arg2[%c0_5, %c0_6, %c0_7] : memref<1x1x32xf32, #tpu.memory_space<vmem>>, vector<1x1x32xf32>
    %6 = vector.broadcast %5 : vector<1x1x32xf32> to vector<2x1x32xf32>
    %7 = arith.addf %4, %6 : vector<2x1x32xf32>
    %cst = arith.constant 0.000000e+00 : f32
    %8 = vector.broadcast %cst : f32 to vector<2x1x32xf32>
    %9 = arith.maximumf %7, %8 : vector<2x1x32xf32>
    %cst_8 = arith.constant dense<0.000000e+00> : vector<2x32xf32>
    %10 = vector.multi_reduction <add>, %9, %cst_8 [1] : vector<2x1x32xf32> to vector<2x32xf32>
    %cst_9 = arith.constant 1.000000e+00 : f32
    %11 = vector.broadcast %cst_9 : f32 to vector<2x32xf32>
    %12 = arith.divf %10, %11 : vector<2x32xf32>
    %c0_10 = arith.constant 0 : index
    %c0_11 = arith.constant 0 : index
    %13 = vector.load %arg3[%c0_10, %c0_11] : memref<2x32xf32, #tpu.memory_space<vmem>>, vector<2x32xf32>
    tpu.vector_store %arg3[%c0_10, %c0_11], %12 {strides = array<i32>} : memref<2x32xf32, #tpu.memory_space<vmem>>, vector<2x32xf32>,
    return
  }
}

module attributes {stable_mosaic.version = 11 : i64} {
  func.func @kernel(%arg0: i32, %arg1: i32, %arg2: i32, %arg3: memref<8x24xbf16, #tpu.memory_space<vmem>>, %arg4: memref<24x32xbf16, #tpu.memory_space<vmem>>, %arg5: memref<1x24xf32, #tpu.memory_space<vmem>>, %arg6: memref<1x24xf32, #tpu.memory_space<vmem>>, %arg7: memref<1x32xf32, #tpu.memory_space<vmem>>, %arg8: memref<1x32xf32, #tpu.memory_space<vmem>>, %arg9: memref<8x32xbf16, #tpu.memory_space<vmem>>, %arg10: memref<8x32xf32, #tpu.memory_space<vmem>>) attributes {dimension_semantics = [#tpu.dimension_semantics<parallel>, #tpu.dimension_semantics<parallel>, #tpu.dimension_semantics<arbitrary>], iteration_bounds = array<i64: 1, 1, 1>, scalar_prefetch = 0 : i64, scratch_operands = 1 : i64, tpu.core_type = #tpu.core_type<tc>, window_params = [{transform_indices = @transform_0, window_bounds = array<i64: 8, 24>}, {transform_indices = @transform_1, window_bounds = array<i64: 24, 32>}, {transform_indices = @transform_2, window_bounds = array<i64: 1, 24>}, {transform_indices = @transform_3, window_bounds = array<i64: 1, 24>}, {transform_indices = @transform_4, window_bounds = array<i64: 1, 32>}, {transform_indices = @transform_5, window_bounds = array<i64: 1, 32>}, {transform_indices = @transform_6, window_bounds = array<i64: 8, 32>}]} {
    %c0_i32 = arith.constant 0 : i32
    %0 = arith.cmpi eq, %arg2, %c0_i32 : i32
    %1 = arith.extui %0 : i1 to i32
    %c0_i32_0 = arith.constant 0 : i32
    %2 = arith.cmpi ne, %1, %c0_i32_0 : i32
    scf.if %2 {
      %cst_15 = arith.constant 0.000000e+00 : f32
      %22 = vector.broadcast %cst_15 : f32 to vector<8x32xf32>
      %c0_16 = arith.constant 0 : index
      %c0_17 = arith.constant 0 : index
      %23 = vector.load %arg10[%c0_16, %c0_17] : memref<8x32xf32, #tpu.memory_space<vmem>>, vector<8x32xf32>
      tpu.vector_store %arg10[%c0_16, %c0_17], %22 {strides = array<i32>} : memref<8x32xf32, #tpu.memory_space<vmem>>, vector<8x32xf32>,
    } else {
    }
    %c0 = arith.constant 0 : index
    %c0_1 = arith.constant 0 : index
    %3 = vector.load %arg3[%c0, %c0_1] : memref<8x24xbf16, #tpu.memory_space<vmem>>, vector<8x24xbf16>
    %4 = arith.extf %3 : vector<8x24xbf16> to vector<8x24xf32>
    %c0_2 = arith.constant 0 : index
    %c0_3 = arith.constant 0 : index
    %5 = vector.load %arg5[%c0_2, %c0_3] : memref<1x24xf32, #tpu.memory_space<vmem>>, vector<1x24xf32>
    %6 = vector.broadcast %5 : vector<1x24xf32> to vector<8x24xf32>
    %7 = arith.mulf %4, %6 : vector<8x24xf32>
    %c0_4 = arith.constant 0 : index
    %c0_5 = arith.constant 0 : index
    %8 = vector.load %arg6[%c0_4, %c0_5] : memref<1x24xf32, #tpu.memory_space<vmem>>, vector<1x24xf32>
    %9 = vector.broadcast %8 : vector<1x24xf32> to vector<8x24xf32>
    %10 = arith.addf %7, %9 : vector<8x24xf32>
    %cst = arith.constant 0.000000e+00 : f32
    %11 = vector.broadcast %cst : f32 to vector<8x24xf32>
    %12 = arith.maximumf %10, %11 : vector<8x24xf32>
    %c0_6 = arith.constant 0 : index
    %c0_7 = arith.constant 0 : index
    %13 = vector.load %arg10[%c0_6, %c0_7] : memref<8x32xf32, #tpu.memory_space<vmem>>, vector<8x32xf32>
    %14 = arith.truncf %12 : vector<8x24xf32> to vector<8x24xbf16>
    %c0_8 = arith.constant 0 : index
    %c0_9 = arith.constant 0 : index
    %15 = vector.load %arg4[%c0_8, %c0_9] : memref<24x32xbf16, #tpu.memory_space<vmem>>, vector<24x32xbf16>
    %cst_10 = arith.constant dense<0.000000e+00> : vector<8x32xf32>
    %16 = tpu.matmul %14, %15, %cst_10 {dimension_numbers = #tpu.dot_dimension_numbers<[1], [0], [0], [1], [0, 0, 1, 1], [], []>} : vector<8x24xbf16>, vector<24x32xbf16>, vector<8x32xf32> -> vector<8x32xf32>
    %17 = arith.addf %13, %16 : vector<8x32xf32>
    %c0_11 = arith.constant 0 : index
    %c0_12 = arith.constant 0 : index
    %18 = vector.load %arg10[%c0_11, %c0_12] : memref<8x32xf32, #tpu.memory_space<vmem>>, vector<8x32xf32>
    tpu.vector_store %arg10[%c0_11, %c0_12], %17 {strides = array<i32>} : memref<8x32xf32, #tpu.memory_space<vmem>>, vector<8x32xf32>,
    %c0_i32_13 = arith.constant 0 : i32
    %19 = arith.cmpi eq, %arg2, %c0_i32_13 : i32
    %20 = arith.extui %19 : i1 to i32
    %c0_i32_14 = arith.constant 0 : i32
    %21 = arith.cmpi ne, %20, %c0_i32_14 : i32
    scf.if %21 {
      %c0_15 = arith.constant 0 : index
      %c0_16 = arith.constant 0 : index
      %22 = vector.load %arg10[%c0_15, %c0_16] : memref<8x32xf32, #tpu.memory_space<vmem>>, vector<8x32xf32>
      %c0_17 = arith.constant 0 : index
      %c0_18 = arith.constant 0 : index
      %23 = vector.load %arg7[%c0_17, %c0_18] : memref<1x32xf32, #tpu.memory_space<vmem>>, vector<1x32xf32>
      %24 = vector.broadcast %23 : vector<1x32xf32> to vector<8x32xf32>
      %25 = arith.mulf %22, %24 : vector<8x32xf32>
      %c0_19 = arith.constant 0 : index
      %c0_20 = arith.constant 0 : index
      %26 = vector.load %arg8[%c0_19, %c0_20] : memref<1x32xf32, #tpu.memory_space<vmem>>, vector<1x32xf32>
      %27 = vector.broadcast %26 : vector<1x32xf32> to vector<8x32xf32>
      %28 = arith.addf %25, %27 : vector<8x32xf32>
      %cst_21 = arith.constant 0.000000e+00 : f32
      %29 = vector.broadcast %cst_21 : f32 to vector<8x32xf32>
      %30 = arith.maximumf %28, %29 : vector<8x32xf32>
      %31 = arith.truncf %30 : vector<8x32xf32> to vector<8x32xbf16>
      %c0_22 = arith.constant 0 : index
      %c0_23 = arith.constant 0 : index
      %32 = vector.load %arg9[%c0_22, %c0_23] : memref<8x32xbf16, #tpu.memory_space<vmem>>, vector<8x32xbf16>
      tpu.vector_store %arg9[%c0_22, %c0_23], %31 {strides = array<i32>} : memref<8x32xbf16, #tpu.memory_space<vmem>>, vector<8x32xbf16>,
    } else {
    }
    return
  }
  func.func @transform_0(%arg0: i32, %arg1: i32, %arg2: i32) -> (i32, i32) {
    %c0_i32 = arith.constant 0 : i32
    return %arg0, %arg2 : i32, i32
  }
  func.func @transform_1(%arg0: i32, %arg1: i32, %arg2: i32) -> (i32, i32) {
    %c0_i32 = arith.constant 0 : i32
    return %arg2, %arg1 : i32, i32
  }
  func.func @transform_2(%arg0: i32, %arg1: i32, %arg2: i32) -> (i32, i32) {
    %c0_i32 = arith.constant 0 : i32
    %c0_i32_0 = arith.constant 0 : i32
    return %c0_i32, %arg2 : i32, i32
  }
  func.func @transform_3(%arg0: i32, %arg1: i32, %arg2: i32) -> (i32, i32) {
    %c0_i32 = arith.constant 0 : i32
    %c0_i32_0 = arith.constant 0 : i32
    return %c0_i32, %arg2 : i32, i32
  }
  func.func @transform_4(%arg0: i32, %arg1: i32, %arg2: i32) -> (i32, i32) {
    %c0_i32 = arith.constant 0 : i32
    %c0_i32_0 = arith.constant 0 : i32
    return %c0_i32, %arg1 : i32, i32
  }
  func.func @transform_5(%arg0: i32, %arg1: i32, %arg2: i32) -> (i32, i32) {
    %c0_i32 = arith.constant 0 : i32
    %c0_i32_0 = arith.constant 0 : i32
    return %c0_i32, %arg1 : i32, i32
  }
  func.func @transform_6(%arg0: i32, %arg1: i32, %arg2: i32) -> (i32, i32) {
    %c0_i32 = arith.constant 0 : i32
    return %arg0, %arg1 : i32, i32
  }
}

module attributes {stable_mosaic.version = 11 : i64} {
  func.func @kernel(%arg0: i32, %arg1: i32, %arg2: i32, %arg3: memref<8x32xf32, #tpu.memory_space<vmem>>, %arg4: memref<32x2xbf16, #tpu.memory_space<vmem>>, %arg5: memref<1x2xf32, #tpu.memory_space<vmem>>, %arg6: memref<1x2xf32, #tpu.memory_space<vmem>>, %arg7: memref<8x2xf32, #tpu.memory_space<vmem>>, %arg8: memref<8x2xf32, #tpu.memory_space<vmem>>) attributes {dimension_semantics = [#tpu.dimension_semantics<parallel>, #tpu.dimension_semantics<parallel>, #tpu.dimension_semantics<arbitrary>], iteration_bounds = array<i64: 1, 1, 1>, scalar_prefetch = 0 : i64, scratch_operands = 1 : i64, tpu.core_type = #tpu.core_type<tc>, window_params = [{transform_indices = @transform_0, window_bounds = array<i64: 8, 32>}, {transform_indices = @transform_1, window_bounds = array<i64: 32, 2>}, {transform_indices = @transform_2, window_bounds = array<i64: 1, 2>}, {transform_indices = @transform_3, window_bounds = array<i64: 1, 2>}, {transform_indices = @transform_4, window_bounds = array<i64: 8, 2>}]} {
    %c0_i32 = arith.constant 0 : i32
    %0 = arith.cmpi eq, %arg2, %c0_i32 : i32
    %1 = arith.extui %0 : i1 to i32
    %c0_i32_0 = arith.constant 0 : i32
    %2 = arith.cmpi ne, %1, %c0_i32_0 : i32
    scf.if %2 {
      %cst_10 = arith.constant 0.000000e+00 : f32
      %13 = vector.broadcast %cst_10 : f32 to vector<8x2xf32>
      %c0_11 = arith.constant 0 : index
      %c0_12 = arith.constant 0 : index
      %14 = vector.load %arg8[%c0_11, %c0_12] : memref<8x2xf32, #tpu.memory_space<vmem>>, vector<8x2xf32>
      tpu.vector_store %arg8[%c0_11, %c0_12], %13 {strides = array<i32>} : memref<8x2xf32, #tpu.memory_space<vmem>>, vector<8x2xf32>,
    } else {
    }
    %c0 = arith.constant 0 : index
    %c0_1 = arith.constant 0 : index
    %3 = vector.load %arg3[%c0, %c0_1] : memref<8x32xf32, #tpu.memory_space<vmem>>, vector<8x32xf32>
    %c0_2 = arith.constant 0 : index
    %c0_3 = arith.constant 0 : index
    %4 = vector.load %arg8[%c0_2, %c0_3] : memref<8x2xf32, #tpu.memory_space<vmem>>, vector<8x2xf32>
    %5 = arith.truncf %3 : vector<8x32xf32> to vector<8x32xbf16>
    %c0_4 = arith.constant 0 : index
    %c0_5 = arith.constant 0 : index
    %6 = vector.load %arg4[%c0_4, %c0_5] : memref<32x2xbf16, #tpu.memory_space<vmem>>, vector<32x2xbf16>
    %cst = arith.constant dense<0.000000e+00> : vector<8x2xf32>
    %7 = tpu.matmul %5, %6, %cst {dimension_numbers = #tpu.dot_dimension_numbers<[1], [0], [0], [1], [0, 0, 1, 1], [], []>} : vector<8x32xbf16>, vector<32x2xbf16>, vector<8x2xf32> -> vector<8x2xf32>
    %8 = arith.addf %4, %7 : vector<8x2xf32>
    %c0_6 = arith.constant 0 : index
    %c0_7 = arith.constant 0 : index
    %9 = vector.load %arg8[%c0_6, %c0_7] : memref<8x2xf32, #tpu.memory_space<vmem>>, vector<8x2xf32>
    tpu.vector_store %arg8[%c0_6, %c0_7], %8 {strides = array<i32>} : memref<8x2xf32, #tpu.memory_space<vmem>>, vector<8x2xf32>,
    %c0_i32_8 = arith.constant 0 : i32
    %10 = arith.cmpi eq, %arg2, %c0_i32_8 : i32
    %11 = arith.extui %10 : i1 to i32
    %c0_i32_9 = arith.constant 0 : i32
    %12 = arith.cmpi ne, %11, %c0_i32_9 : i32
    scf.if %12 {
      %c0_10 = arith.constant 0 : index
      %c0_11 = arith.constant 0 : index
      %13 = vector.load %arg8[%c0_10, %c0_11] : memref<8x2xf32, #tpu.memory_space<vmem>>, vector<8x2xf32>
      %c0_12 = arith.constant 0 : index
      %c0_13 = arith.constant 0 : index
      %14 = vector.load %arg5[%c0_12, %c0_13] : memref<1x2xf32, #tpu.memory_space<vmem>>, vector<1x2xf32>
      %15 = vector.broadcast %14 : vector<1x2xf32> to vector<8x2xf32>
      %16 = arith.mulf %13, %15 : vector<8x2xf32>
      %c0_14 = arith.constant 0 : index
      %c0_15 = arith.constant 0 : index
      %17 = vector.load %arg6[%c0_14, %c0_15] : memref<1x2xf32, #tpu.memory_space<vmem>>, vector<1x2xf32>
      %18 = vector.broadcast %17 : vector<1x2xf32> to vector<8x2xf32>
      %19 = arith.addf %16, %18 : vector<8x2xf32>
      %c0_16 = arith.constant 0 : index
      %c0_17 = arith.constant 0 : index
      %20 = vector.load %arg7[%c0_16, %c0_17] : memref<8x2xf32, #tpu.memory_space<vmem>>, vector<8x2xf32>
      tpu.vector_store %arg7[%c0_16, %c0_17], %19 {strides = array<i32>} : memref<8x2xf32, #tpu.memory_space<vmem>>, vector<8x2xf32>,
    } else {
    }
    return
  }
  func.func @transform_0(%arg0: i32, %arg1: i32, %arg2: i32) -> (i32, i32) {
    %c0_i32 = arith.constant 0 : i32
    return %arg0, %arg2 : i32, i32
  }
  func.func @transform_1(%arg0: i32, %arg1: i32, %arg2: i32) -> (i32, i32) {
    %c0_i32 = arith.constant 0 : i32
    return %arg2, %arg1 : i32, i32
  }
  func.func @transform_2(%arg0: i32, %arg1: i32, %arg2: i32) -> (i32, i32) {
    %c0_i32 = arith.constant 0 : i32
    %c0_i32_0 = arith.constant 0 : i32
    return %c0_i32, %arg1 : i32, i32
  }
  func.func @transform_3(%arg0: i32, %arg1: i32, %arg2: i32) -> (i32, i32) {
    %c0_i32 = arith.constant 0 : i32
    %c0_i32_0 = arith.constant 0 : i32
    return %c0_i32, %arg1 : i32, i32
  }
  func.func @transform_4(%arg0: i32, %arg1: i32, %arg2: i32) -> (i32, i32) {
    %c0_i32 = arith.constant 0 : i32
    return %arg0, %arg1 : i32, i32
  }
}

</mosaic_0001>

<bundles_post_ra>
// kernel: densenet_forward.28
= control target key start
LH: loop header
LB: loop body
LE: loop exit
PB: predicated region body
PF: predicated region fallthrough
CT: control target
= control target key end

     0   :  { %s593_s12 = smov 0   ;;  %s595_s13 = smov 0   ;;  %s659_s0 = inlined_call_operand.vmem [shape: bf16[2,18,18,16], index: 0, kind: input, shape index: {}, may-alias: {0,1,2}]   ;;  %s660_s1 = inlined_call_operand.vmem [shape: bf16[2,18,18,16], index: 1, kind: input, shape index: {}, may-alias: {0,1,2}]   ;;  %s661_s2 = inlined_call_operand.vmem [shape: bf16[2,18,18,16], index: 2, kind: input, shape index: {}, may-alias: {0,1,2}]   ;;  %s662_s3 = inlined_call_operand.vmem [shape: bf16[2,8,18,16], index: 3, kind: output, shape index: {}]  }
   0x1   :  { %s597_s14 = smov 0   ;;  %s599_s15 = smov 0  }
   0x2   :  { %s601_s16 = smov 0  }
   0x3 LB: > { %s22_s17 = sadd.s32 1, %s563_s14  ;;  %s25_s18 = sadd.s32 1, %s567_s15  ;;  %s571_s16 = sphi %s601_s16, %s13_s16   ;;  %s567_s15 = sphi %s599_s15, %s666_s15   ;;  %s563_s14 = sphi %s597_s14, %s665_s14   ;;  %s559_s13 = sphi %s595_s13, %s664_s13   ;;  %s555_s12 = sphi %s593_s12, %s663_s12  }
   0x4   : > { %p23_p0 = scmp.ge.s32.totalorder %s22_s17, 8  ;;  %p477_p1 = scmp.ge.s32.totalorder %s571_s16, 1 }
   0x5   : > { %p209_p2 = scmp.lt.s32.totalorder %s571_s16, 17 }
   0x6   : > { %s668_s17 = smov (%p23_p0, %s22_s17), 0  ;;  %s670_s18 = smov (!%p23_p0, %s25_s18), %s567_s15 }
   0x7   : > { %p210_p3 = pnand %p477_p1, %p209_p2  ;;  %p27_p4 = scmp.ge.s32.totalorder %s670_s18, 2 }
   0x8   : > { %s478_s19 = sshll.u32 (!%p210_p3), %s555_s12, 1  ;;  %p265_p5 = scmp.lt.s32.totalorder (!%p210_p3), %s559_s13, 1 }
   0x9   : > { %s672_s18 = smov (%p27_p4, %s670_s18), 0  ;;  %213 = sbr.rel (%p210_p3) target bundleno = 34 (0x22), region = 32 }
   0xa   : > { %p267_p6 = scmp.lt.s32.totalorder (!%p210_p3), %s478_s19, 17  ;;  %s276_s20 = sadd.s32 (!%p210_p3), 1, %s478_s19 }
   0xb   : > { %p279_p7 = scmp.lt.s32.totalorder (!%p210_p3), %s276_s20, 17  ;;  %s289_s24 = sadd.s32 (!%p210_p3), 2, %s478_s19 }
   0xc   : > { %p292_p8 = scmp.lt.s32.totalorder (!%p210_p3), %s289_s24, 17  ;;  %p303_p9 = scmp.lt.s32.totalorder (!%p210_p3), %s555_s12, 7 }
   0xe   : > { %s674_s13 = smov (!%p265_p5, %s559_s13), 1  ;;  %s676_s20 = smov (!%p279_p7, %s276_s20), 17  ;;  %vm325_vm0 = vcmask 125952   ;;  %vm328_vm1 = vcmask 122880  }
   0xf   : > { %s268_s21 = scalar_select %p267_p6, %s478_s19, 17 }
  0x10   : > { %s488_s22 = smul.u32 54, %s674_s13  ;;  %s678_s24 = smov (!%p292_p8, %s289_s24), 17 }
  0x11   : > { %s487_s23 = smul.u32 3, %s268_s21  ;;  %s680_s12 = smov (!%p303_p9, %s555_s12), 7 }
  0x12   : > { %s489_s27 = smul.u32 3, %s676_s20 }
  0x13   : > { %s271_s25 = sadd.s32 %s488_s22, %s487_s23  ;;  %s492_s9 = smul.u32 24, %s674_s13 }
  0x14   : > { %s479_s26 = sshll.u32 %s271_s25, 2  ;;  %s283_s4 = sadd.s32 %s489_s27, %s488_s22 }
  0x15   : > { %s273_s30 = scalar_lea.vmem %s659_s0, %s479_s26  ;;  %s481_s5 = sshll.u32 %s283_s4, 2 }
  0x16   : > { %s285_s8 = scalar_lea.vmem %s660_s1, %s481_s5  ;;  %v310_v0 = vld [vmem:[%s273_s30] sm:$0xf]  ;;  %v311_v1 = vld [vmem:[%s273_s30 + $0x4] sm:$0xf]  ;;  %v312_v3 = vld [vmem:[%s273_s30 + $0x8] sm:$0x1] }
  0x17   : > { %v313_v2 = vld [vmem:[%s285_s8] sm:$0xf]  ;;  %v314_v4 = vld [vmem:[%s285_s8 + $0x4] sm:$0xf]  ;;  %v315_v5 = vld [vmem:[%s285_s8 + $0x8] sm:$0x1] }
  0x18   : > { %s490_s10 = smul.u32 3, %s678_s24  ;;  %v316_v6 = vmax.bf16 %v313_v2, %v310_v0  ;;  %v317_v7 = vmax.bf16 %v314_v4, %v311_v1  ;;  %v318_v8 = vmax.bf16 %v315_v5, %v312_v3 }
  0x19   : > { %s491_s11 = smul.u32 3, %s680_s12 }
  0x1a   : > { %s296_s19 = sadd.s32 %s490_s10, %s488_s22 }
  0x1b   : > { %s483_s20 = sshll.u32 %s296_s19, 2  ;;  %s307_s21 = sadd.s32 %s492_s9, %s491_s11 }
  0x1c   : > { %s298_s13 = scalar_lea.vmem %s661_s2, %s483_s20  ;;  %s484_s26 = sshll.u32 %s307_s21, 2 }
  0x1d   : > { %s309_s29 = scalar_lea.vmem %s662_s3, %s484_s26  ;;  %v319_v9 = vld [vmem:[%s298_s13] sm:$0xf]  ;;  %v320_v10 = vld [vmem:[%s298_s13 + $0x4] sm:$0xf]  ;;  %v321_v11 = vld [vmem:[%s298_s13 + $0x8] sm:$0x1] }
  0x1e   : > { %v322_v12 = vmax.bf16 %v319_v9, %v316_v6  ;;  %v323_v13 = vmax.bf16 %v320_v10, %v317_v7  ;;  %v324_v14 = vmax.bf16 %v321_v11, %v318_v8 }
  0x20   : > { %326 = vst.msk [vmem:[%s309_s29] sm:$0xf] %vm325_vm0, %v322_v12  ;;  %327 = vst.msk [vmem:[%s309_s29 + $0x4] sm:$0xf] %vm325_vm0, %v323_v13 }
  0x21   : > { %329 = vst.msk [vmem:[%s309_s29 + $0x8] sm:$0x1] %vm328_vm1, %v324_v14 }
  0x22 PF: > { %s13_s16 = sadd.s32 1, %s571_s16   ;;  %s663_s12 = smov %s563_s14 }
  0x23   : > { %p10_p10 = scmp.ge.s32.totalorder %s13_s16, 18   ;;  %s664_s13 = smov %s567_s15 }
  0x24   : > { %s665_s14 = smov %s668_s17  ;;  %s666_s15 = smov %s672_s18 }
  0x25   :  { %12 = sbr.rel (!%p10_p10) target bundleno = 3 (0x3), region = 68 }

// kernel: densenet_forward.29
= control target key start
LH: loop header
LB: loop body
LE: loop exit
PB: predicated region body
PF: predicated region fallthrough
CT: control target
= control target key end

     0   :  { %vm94_vm0 = vcmask 125952   ;;  %s343_s0 = inlined_call_operand.vmem [shape: bf16[128,16], index: 0, kind: input, shape index: {}]   ;;  %s344_s1 = inlined_call_operand.vmem [shape: bf16[128,16], index: 1, kind: input, shape index: {}]   ;;  %s345_s2 = inlined_call_operand.vmem [shape: bf16[128,16], index: 2, kind: input, shape index: {}]   ;;  %s346_s3 = inlined_call_operand.vmem [shape: bf16[128,16], index: 3, kind: output, shape index: {}]  }
   0x1   :  { %v14_v0 = vld [vmem:[%s343_s0] sm:$0xf]  ;;  %v15_v4 = vld [vmem:[%s343_s0 + $0x4] sm:$0xf]  ;;  %v16_v8 = vld [vmem:[%s343_s0 + $0x8] sm:$0xf] }
   0x2   :  { %v30_v1 = vld [vmem:[%s344_s1] sm:$0xf]  ;;  %v31_v5 = vld [vmem:[%s344_s1 + $0x4] sm:$0xf]  ;;  %v32_v9 = vld [vmem:[%s344_s1 + $0x8] sm:$0xf] }
   0x3   :  { %v62_v2 = vld [vmem:[%s345_s2] sm:$0xf]  ;;  %v46_v3 = vmax.bf16 %v30_v1, %v14_v0  ;;  %v63_v6 = vld [vmem:[%s345_s2 + $0x4] sm:$0xf]  ;;  %v47_v7 = vmax.bf16 %v31_v5, %v15_v4  ;;  %v64_v10 = vld [vmem:[%s345_s2 + $0x8] sm:$0xf]  ;;  %v48_v12 = vmax.bf16 %v32_v9, %v16_v8 }
   0x4   :  { %v17_v13 = vld [vmem:[%s343_s0 + $0xc] sm:$0xf]  ;;  %v18_v18 = vld [vmem:[%s343_s0 + $0x10] sm:$0xf]  ;;  %v19_v23 = vld [vmem:[%s343_s0 + $0x14] sm:$0xf] }
   0x5   :  { %v78_v11 = vmax.bf16 %v62_v2, %v46_v3  ;;  %v33_v14 = vld [vmem:[%s344_s1 + $0xc] sm:$0xf]  ;;  %v79_v16 = vmax.bf16 %v63_v6, %v47_v7  ;;  %v34_v19 = vld [vmem:[%s344_s1 + $0x10] sm:$0xf]  ;;  %v80_v21 = vmax.bf16 %v64_v10, %v48_v12  ;;  %v35_v24 = vld [vmem:[%s344_s1 + $0x14] sm:$0xf] }
   0x6   :  { %v65_v15 = vld [vmem:[%s345_s2 + $0xc] sm:$0xf]  ;;  %v49_v17 = vmax.bf16 %v33_v14, %v17_v13  ;;  %v66_v20 = vld [vmem:[%s345_s2 + $0x10] sm:$0xf]  ;;  %v50_v22 = vmax.bf16 %v34_v19, %v18_v18  ;;  %v67_v25 = vld [vmem:[%s345_s2 + $0x14] sm:$0xf]  ;;  %v51_v27 = vmax.bf16 %v35_v24, %v19_v23 }
   0x7   :  { %95 = vst.msk [vmem:[%s346_s3] sm:$0xf] %vm94_vm0, %v78_v11  ;;  %96 = vst.msk [vmem:[%s346_s3 + $0x4] sm:$0xf] %vm94_vm0, %v79_v16  ;;  %v20_v28 = vld [vmem:[%s343_s0 + $0x18] sm:$0xf] }
   0x8   :  { %v81_v26 = vmax.bf16 %v65_v15, %v49_v17  ;;  %v36_v29 = vld [vmem:[%s344_s1 + $0x18] sm:$0xf]  ;;  %97 = vst.msk [vmem:[%s346_s3 + $0x8] sm:$0xf] %vm94_vm0, %v80_v21  ;;  %v82_v31 = vmax.bf16 %v66_v20, %v50_v22  ;;  %v21_v33 = vld [vmem:[%s343_s0 + $0x1c] sm:$0xf]  ;;  %v83_v36 = vmax.bf16 %v67_v25, %v51_v27 }
   0x9   :  { %v68_v30 = vld [vmem:[%s345_s2 + $0x18] sm:$0xf]  ;;  %v52_v32 = vmax.bf16 %v36_v29, %v20_v28  ;;  %v37_v34 = vld [vmem:[%s344_s1 + $0x1c] sm:$0xf]  ;;  %v22_v38 = vld [vmem:[%s343_s0 + $0x20] sm:$0xf] }
   0xa   :  { %v69_v35 = vld [vmem:[%s345_s2 + $0x1c] sm:$0xf]  ;;  %98 = vst.msk [vmem:[%s346_s3 + $0xc] sm:$0xf] %vm94_vm0, %v81_v26  ;;  %v53_v37 = vmax.bf16 %v37_v34, %v21_v33  ;;  %v38_v39 = vld [vmem:[%s344_s1 + $0x20] sm:$0xf] }
   0xb   :  { %v70_v40 = vld [vmem:[%s345_s2 + $0x20] sm:$0xf]  ;;  %99 = vst.msk [vmem:[%s346_s3 + $0x10] sm:$0xf] %vm94_vm0, %v82_v31  ;;  %v84_v41 = vmax.bf16 %v68_v30, %v52_v32  ;;  %v54_v42 = vmax.bf16 %v38_v39, %v22_v38  ;;  %v23_v43 = vld [vmem:[%s343_s0 + $0x24] sm:$0xf] }
   0xc   :  { %v39_v44 = vld [vmem:[%s344_s1 + $0x24] sm:$0xf]  ;;  %100 = vst.msk [vmem:[%s346_s3 + $0x14] sm:$0xf] %vm94_vm0, %v83_v36  ;;  %v85_v46 = vmax.bf16 %v69_v35, %v53_v37  ;;  %v24_v48 = vld [vmem:[%s343_s0 + $0x28] sm:$0xf] }
   0xd   :  { %v71_v45 = vld [vmem:[%s345_s2 + $0x24] sm:$0xf]  ;;  %v55_v47 = vmax.bf16 %v39_v44, %v23_v43  ;;  %v40_v49 = vld [vmem:[%s344_s1 + $0x28] sm:$0xf]  ;;  %101 = vst.msk [vmem:[%s346_s3 + $0x18] sm:$0xf] %vm94_vm0, %v84_v41  ;;  %v86_v51 = vmax.bf16 %v70_v40, %v54_v42 }
   0xe   :  { %v72_v50 = vld [vmem:[%s345_s2 + $0x28] sm:$0xf]  ;;  %v56_v52 = vmax.bf16 %v40_v49, %v24_v48  ;;  %v25_v53 = vld [vmem:[%s343_s0 + $0x2c] sm:$0xf]  ;;  %102 = vst.msk [vmem:[%s346_s3 + $0x1c] sm:$0xf] %vm94_vm0, %v85_v46 }
   0xf   :  { %v41_v54 = vld [vmem:[%s344_s1 + $0x2c] sm:$0xf]  ;;  %v87_v56 = vmax.bf16 %v71_v45, %v55_v47  ;;  %v26_v58 = vld [vmem:[%s343_s0 + $0x30] sm:$0xf]  ;;  %103 = vst.msk [vmem:[%s346_s3 + $0x20] sm:$0xf] %vm94_vm0, %v86_v51 }
  0x10   :  { %v73_v55 = vld [vmem:[%s345_s2 + $0x2c] sm:$0xf]  ;;  %v57_v57 = vmax.bf16 %v41_v54, %v25_v53  ;;  %v42_v59 = vld [vmem:[%s344_s1 + $0x30] sm:$0xf]  ;;  %v88_v61 = vmax.bf16 %v72_v50, %v56_v52  ;;  %v27_v63 = vld [vmem:[%s343_s0 + $0x34] sm:$0xf] }
  0x11   :  { %v74_v60 = vld [vmem:[%s345_s2 + $0x30] sm:$0xf]  ;;  %v58_v62 = vmax.bf16 %v42_v59, %v26_v58  ;;  %v43_v0 = vld [vmem:[%s344_s1 + $0x34] sm:$0xf]  ;;  %104 = vst.msk [vmem:[%s346_s3 + $0x24] sm:$0xf] %vm94_vm0, %v87_v56 }
  0x12   :  { %v75_v1 = vld [vmem:[%s345_s2 + $0x34] sm:$0xf]  ;;  %v89_v2 = vmax.bf16 %v73_v55, %v57_v57  ;;  %v59_v3 = vmax.bf16 %v43_v0, %v27_v63  ;;  %v28_v4 = vld [vmem:[%s343_s0 + $0x38] sm:$0xf]  ;;  %105 = vst.msk [vmem:[%s346_s3 + $0x28] sm:$0xf] %vm94_vm0, %v88_v61 }
  0x13   :  { %v44_v5 = vld [vmem:[%s344_s1 + $0x38] sm:$0xf]  ;;  %v90_v7 = vmax.bf16 %v74_v60, %v58_v62  ;;  %v29_v9 = vld [vmem:[%s343_s0 + $0x3c] sm:$0xf] }
  0x14   :  { %v76_v6 = vld [vmem:[%s345_s2 + $0x38] sm:$0xf]  ;;  %v60_v8 = vmax.bf16 %v44_v5, %v28_v4  ;;  %v45_v10 = vld [vmem:[%s344_s1 + $0x3c] sm:$0xf]  ;;  %106 = vst.msk [vmem:[%s346_s3 + $0x2c] sm:$0xf] %vm94_vm0, %v89_v2  ;;  %v91_v12 = vmax.bf16 %v75_v1, %v59_v3 }
  0x15   :  { %v77_v11 = vld [vmem:[%s345_s2 + $0x3c] sm:$0xf]  ;;  %v61_v13 = vmax.bf16 %v45_v10, %v29_v9  ;;  %107 = vst.msk [vmem:[%s346_s3 + $0x30] sm:$0xf] %vm94_vm0, %v90_v7 }
  0x16   :  { %v92_v14 = vmax.bf16 %v76_v6, %v60_v8  ;;  %108 = vst.msk [vmem:[%s346_s3 + $0x34] sm:$0xf] %vm94_vm0, %v91_v12 }
  0x17   :  { %v93_v15 = vmax.bf16 %v77_v11, %v61_v13 }
  0x18   :  { %109 = vst.msk [vmem:[%s346_s3 + $0x38] sm:$0xf] %vm94_vm0, %v92_v14 }
  0x19   :  { %110 = vst.msk [vmem:[%s346_s3 + $0x3c] sm:$0xf] %vm94_vm0, %v93_v15 }

// kernel: densenet_forward.30
= control target key start
LH: loop header
LB: loop body
LE: loop exit
PB: predicated region body
PF: predicated region fallthrough
CT: control target
= control target key end

     0   :  { %vm28_vm0 = vcmask 261120   ;;  %v607_v1 = vmov 0.0   ;;  %vm171_vm1 = vcmask 130048   ;;  %vm471_vm2 = vcmask 257024   ;;  %s858_s1 = inlined_call_operand.vmem [shape: bf16[16,32], index: 1, kind: input, shape index: {}]   ;;  %s859_s0 = inlined_call_operand.vmem [shape: bf16[128,16], index: 0, kind: input, shape index: {}]   ;;  %s860_s2 = inlined_call_operand.vmem [shape: f32[1,16], index: 2, kind: input, shape index: {}]   ;;  %s861_s3 = inlined_call_operand.vmem [shape: f32[1,16], index: 3, kind: input, shape index: {}]   ;;  %s862_s4 = inlined_call_operand.vmem [shape: f32[1,32], index: 4, kind: input, shape index: {}]   ;;  %s863_s5 = inlined_call_operand.vmem [shape: f32[1,32], index: 5, kind: input, shape index: {}]   ;;  %s864_s6 = inlined_call_operand.vmem [shape: bf16[128,32], index: 6, kind: output, shape index: {}]  }
   0x1   :  { %v606_v0 = vld [vmem:[%s858_s1] sm:$0xff]   ;;  %31 = vst.msk [vmem:[#allocation2 + $0x10] sm:$0xff] %vm28_vm0, %v607_v1  ;;  %29 = vst.msk [vmem:[#allocation2] sm:$0xff] %vm28_vm0, %v607_v1  ;;  %v569_v7 = vld [vmem:[%s859_s0 + $0x8] sm:$0xff]  }
   0x2   :  { %30 = vst.msk [vmem:[#allocation2 + $0x8] sm:$0xff] %vm28_vm0, %v607_v1  ;;  %32 = vst.msk [vmem:[#allocation2 + $0x18] sm:$0xff] %vm28_vm0, %v607_v1  ;;  %v538_v2 = vld [vmem:[%s859_s0] sm:$0xff]   ;;  %585 = vmatprep.subr.bf16.mxu0 %v606_v0  ;;  %603 = vmatprep.subr.bf16.mxu1 %v606_v0  ;;  %v573_v8 = vld [vmem:[%s859_s0 + $0x28] sm:$0xff]   ;;  %v543_v12 = vunpack.c.l.bf16 %v569_v7  ;;  %v544_v13 = vunpack.c.h.bf16 %v569_v7 }
   0x3   :  { %33 = vst.msk [vmem:[#allocation2 + $0x20] sm:$0xff] %vm28_vm0, %v607_v1  ;;  %34 = vst.msk [vmem:[#allocation2 + $0x28] sm:$0xff] %vm28_vm0, %v607_v1  ;;  %v668_v3 = vld [vmem:[%s860_s2] ss:$0 sm:$0xff]  ;;  %v539_v4 = vunpack.c.l.bf16 %v538_v2  ;;  %v540_v5 = vunpack.c.h.bf16 %v538_v2  ;;  %586 = vmatpush3.bf16.msra.mxu0 %v606_v0  ;;  %604 = vmatpush3.bf16.msra.mxu1 %v606_v0  ;;  %v559_v16 = vunpack.c.l.bf16 %v573_v8  ;;  %v560_v17 = vunpack.c.h.bf16 %v573_v8  ;;  %v570_v30 = vld [vmem:[%s859_s0 + $0x10] sm:$0xff]  }
   0x4   :  { %35 = vst.msk [vmem:[#allocation2 + $0x30] sm:$0xff] %vm28_vm0, %v607_v1  ;;  %36 = vst.msk [vmem:[#allocation2 + $0x38] sm:$0xff] %vm28_vm0, %v607_v1  ;;  %v572_v6 = vld [vmem:[%s859_s0 + $0x20] sm:$0xff]   ;;  %v86_v20 = vmul.f32 %v543_v12, %v668_v3  ;;  %v87_v21 = vmul.f32 %v544_v13, %v668_v3  ;;  %v574_v35 = vld [vmem:[%s859_s0 + $0x30] sm:$0xff]   ;;  %v547_v44 = vunpack.c.l.bf16 %v570_v30  ;;  %v548_v48 = vunpack.c.h.bf16 %v570_v30 }
   0x5   :  { %37 = vst.msk [vmem:[#allocation2 + $0x40] sm:$0xff] %vm28_vm0, %v607_v1  ;;  %38 = vst.msk [vmem:[#allocation2 + $0x48] sm:$0xff] %vm28_vm0, %v607_v1  ;;  %v682_v9 = vld [vmem:[%s861_s3] ss:$0 sm:$0xff]  ;;  %v555_v10 = vunpack.c.l.bf16 %v572_v6  ;;  %v556_v11 = vunpack.c.h.bf16 %v572_v6  ;;  %v84_v14 = vmul.f32 %v539_v4, %v668_v3  ;;  %v85_v15 = vmul.f32 %v540_v5, %v668_v3  ;;  %v571_v40 = vld [vmem:[%s859_s0 + $0x18] sm:$0xff]  }
   0x6   :  { %39 = vst.msk [vmem:[#allocation2 + $0x50] sm:$0xff] %vm28_vm0, %v607_v1  ;;  %40 = vst.msk [vmem:[#allocation2 + $0x58] sm:$0xff] %vm28_vm0, %v607_v1  ;;  %v94_v24 = vmul.f32 %v559_v16, %v668_v3  ;;  %v95_v25 = vmul.f32 %v560_v17, %v668_v3  ;;  %v109_v28 = vadd.f32 %v682_v9, %v86_v20  ;;  %v575_v45 = vld [vmem:[%s859_s0 + $0x38] sm:$0xff]   ;;  %v563_v49 = vunpack.c.l.bf16 %v574_v35 }
   0x7   :  { %41 = vst.msk [vmem:[#allocation2 + $0x60] sm:$0xff] %vm28_vm0, %v607_v1  ;;  %42 = vst.msk [vmem:[#allocation2 + $0x68] sm:$0xff] %vm28_vm0, %v607_v1  ;;  %v92_v18 = vmul.f32 %v555_v10, %v668_v3  ;;  %v93_v19 = vmul.f32 %v556_v11, %v668_v3  ;;  %v107_v22 = vadd.f32 %v682_v9, %v84_v14  ;;  %v564_v52 = vunpack.c.h.bf16 %v574_v35 }
   0x8   :  { %43 = vst.msk [vmem:[#allocation2 + $0x70] sm:$0xff] %vm28_vm0, %v607_v1  ;;  %44 = vst.msk [vmem:[#allocation2 + $0x78] sm:$0xff] %vm28_vm0, %v607_v1  ;;  %v108_v23 = vadd.f32 %v682_v9, %v85_v15  ;;  %v110_v29 = vadd.f32 %v682_v9, %v87_v21  ;;  %v117_v33 = vadd.f32 %v682_v9, %v94_v24  ;;  %v125_v38 = vmax.f32 %v109_v28, 0.0  ;;  %v141_v21 = vld [vmem:[#allocation2 + $0x10] sm:$0xff]  ;;  %v139_v24 = vld [vmem:[#allocation2] sm:$0xff] }
   0x9   :  { %v115_v26 = vadd.f32 %v682_v9, %v92_v18  ;;  %v116_v27 = vadd.f32 %v682_v9, %v93_v19  ;;  %v123_v31 = vmax.f32 %v107_v22, 0.0  ;;  %v118_v34 = vadd.f32 %v682_v9, %v95_v25  ;;  %v140_v35 = vld [vmem:[#allocation2 + $0x8] sm:$0xff] }
   0xa   :  { %v124_v32 = vmax.f32 %v108_v23, 0.0  ;;  %v126_v39 = vmax.f32 %v110_v29, 0.0  ;;  %v133_v42 = vmax.f32 %v117_v33, 0.0  ;;  %v88_v51 = vmul.f32 %v547_v44, %v668_v3  ;;  %v142_v29 = vld [vmem:[#allocation2 + $0x18] sm:$0xff] }
   0xb   :  { %v131_v36 = vmax.f32 %v115_v26, 0.0  ;;  %v132_v37 = vmax.f32 %v116_v27, 0.0  ;;  %v134_v43 = vmax.f32 %v118_v34, 0.0  ;;  %v551_v53 = vunpack.c.l.bf16 %v571_v40 }
   0xc   :  { %v155_v41 = vpack.c.bf16 %v124_v32, %v123_v31  ;;  %v156_v47 = vpack.c.bf16 %v126_v39, %v125_v38  ;;  %v89_v54 = vmul.f32 %v548_v48, %v668_v3  ;;  %v96_v55 = vmul.f32 %v563_v49, %v668_v3  ;;  %v147_v26 = vld [vmem:[#allocation2 + $0x40] sm:$0xff]  ;;  %v148_v38 = vld [vmem:[#allocation2 + $0x48] sm:$0xff] }
   0xd   :  { %v159_v46 = vpack.c.bf16 %v132_v37, %v131_v36  ;;  %v160_v50 = vpack.c.bf16 %v134_v43, %v133_v42  ;;  %v552_v56 = vunpack.c.h.bf16 %v571_v40  ;;  %v567_v57 = vunpack.c.l.bf16 %v575_v45  ;;  %v149_v22 = vld [vmem:[#allocation2 + $0x50] sm:$0xff]  ;;  %v150_v32 = vld [vmem:[#allocation2 + $0x58] sm:$0xff]  ;;  %v744_v43 = vld [vmem:[%s862_s4] ss:$0 sm:$0xff] }
   0xe   :  { %587 = vmatprep.mubr.msk.bf16.mxu0 %vm171_vm1, %v155_v41  ;;  %v111_v58 = vadd.f32 %v682_v9, %v88_v51  ;;  %v97_v59 = vmul.f32 %v564_v52, %v668_v3  ;;  %v90_v60 = vmul.f32 %v551_v53, %v668_v3  ;;  %v568_v61 = vunpack.c.h.bf16 %v575_v45  ;;  %v145_v45 = vld [vmem:[#allocation2 + $0x30] sm:$0xff]  ;;  %v751_v48 = vld [vmem:[%s863_s5] ss:$0 sm:$0xff] }
   0xf   :  { %595 = vmatprep.mubr.msk.bf16.mxu1 %vm171_vm1, %v159_v46  ;;  %588 = vmatmul.mubr.msk.bf16.vlgmr.msra.gmra.mxu0 %vm171_vm1, %v156_v47  ;;  %v112_v62 = vadd.f32 %v682_v9, %v89_v54  ;;  %v119_v63 = vadd.f32 %v682_v9, %v96_v55  ;;  %v91_v0 = vmul.f32 %v552_v56, %v668_v3  ;;  %v153_v46 = vld [vmem:[#allocation2 + $0x70] sm:$0xff]  ;;  %v151_v55 = vld [vmem:[#allocation2 + $0x60] sm:$0xff] }
  0x10   :  { %596 = vmatmul.mubr.msk.bf16.vlgmr.msra.gmra.mxu1 %vm171_vm1, %v160_v50  ;;  %v98_v1 = vmul.f32 %v567_v57, %v668_v3  ;;  %v127_v2 = vmax.f32 %v111_v58, 0.0  ;;  %v120_v4 = vadd.f32 %v682_v9, %v97_v59  ;;  %v113_v5 = vadd.f32 %v682_v9, %v90_v60  ;;  %v143_v50 = vld [vmem:[#allocation2 + $0x20] sm:$0xff]  ;;  %v146_v60 = vld [vmem:[#allocation2 + $0x38] sm:$0xff] }
  0x11   :  { %v99_v6 = vmul.f32 %v568_v61, %v668_v3  ;;  %v128_v7 = vmax.f32 %v112_v62, 0.0  ;;  %v135_v8 = vmax.f32 %v119_v63, 0.0  ;;  %v114_v10 = vadd.f32 %v682_v9, %v91_v0 }
  0x12   :  { %v121_v11 = vadd.f32 %v682_v9, %v98_v1  ;;  %v136_v12 = vmax.f32 %v120_v4, 0.0  ;;  %v129_v13 = vmax.f32 %v113_v5, 0.0 }
  0x13   :  { %v122_v14 = vadd.f32 %v682_v9, %v99_v6  ;;  %v157_v15 = vpack.c.bf16 %v128_v7, %v127_v2  ;;  %v130_v16 = vmax.f32 %v114_v10, 0.0  ;;  %v154_v2 = vld [vmem:[#allocation2 + $0x78] sm:$0xff] }
  0x14   :  { %v137_v17 = vmax.f32 %v121_v11, 0.0  ;;  %v161_v18 = vpack.c.bf16 %v136_v12, %v135_v8 }
  0x15   :  { %v138_v19 = vmax.f32 %v122_v14, 0.0  ;;  %591 = vmatprep.mubr.msk.bf16.mxu0 %vm171_vm1, %v157_v15  ;;  %v158_v20 = vpack.c.bf16 %v130_v16, %v129_v13 }
  0x16   :  { %599 = vmatprep.mubr.msk.bf16.mxu1 %vm171_vm1, %v161_v18 }
  0x17   :  { %v162_v3 = vpack.c.bf16 %v138_v19, %v137_v17  ;;  %592 = vmatmul.mubr.msk.bf16.gmra.mxu0 %vm171_vm1, %v158_v20 }
  0x19   :  { %600 = vmatmul.mubr.msk.bf16.gmra.mxu1 %vm171_vm1, %v162_v3  ;;  %v144_v3 = vld [vmem:[#allocation2 + $0x28] sm:$0xff] }
  0xcf   :  { %v589_v23 = vpop.f32.mrf.mxu0 }
  0xd0   :  { %v295_v9 = vadd.f32 %v589_v23, %v141_v21  ;;  %v597_v25 = vpop.f32.mrf.mxu1 }
  0xd1   :  { %v303_v27 = vadd.f32 %v597_v25, %v149_v22  ;;  %v230_v28 = vpop.f32.mrf.mxu0 }
  0xd2   :  { %312 = vst.msk [vmem:[#allocation2 + $0x10] sm:$0xff] %vm28_vm0, %v295_v9  ;;  %v293_v30 = vadd.f32 %v230_v28, %v139_v24  ;;  %v262_v31 = vpop.f32.mrf.mxu1 }
  0xd3   :  { %320 = vst.msk [vmem:[#allocation2 + $0x50] sm:$0xff] %vm28_vm0, %v303_v27  ;;  %v301_v33 = vadd.f32 %v262_v31, %v147_v26  ;;  %v590_v34 = vpop.f32.mrf.mxu0  ;;  %v152_v26 = vld [vmem:[#allocation2 + $0x68] sm:$0xff] }
  0xd4   :  { %310 = vst.msk [vmem:[#allocation2] sm:$0xff] %vm28_vm0, %v293_v30  ;;  %v296_v36 = vadd.f32 %v590_v34, %v142_v29  ;;  %v598_v37 = vpop.f32.mrf.mxu1 }
  0xd5   :  { %318 = vst.msk [vmem:[#allocation2 + $0x40] sm:$0xff] %vm28_vm0, %v301_v33  ;;  %v304_v39 = vadd.f32 %v598_v37, %v150_v32  ;;  %v233_v40 = vpop.f32.mrf.mxu0 }
  0xd6   :  { %313 = vst.msk [vmem:[#allocation2 + $0x18] sm:$0xff] %vm28_vm0, %v296_v36  ;;  %v294_v41 = vadd.f32 %v233_v40, %v140_v35  ;;  %v265_v42 = vpop.f32.mrf.mxu1 }
  0xd7   :  { %321 = vst.msk [vmem:[#allocation2 + $0x58] sm:$0xff] %vm28_vm0, %v304_v39  ;;  %v302_v44 = vadd.f32 %v265_v42, %v148_v38  ;;  %v593_v49 = vpop.f32.mrf.mxu0 }
  0xd8   :  { %311 = vst.msk [vmem:[#allocation2 + $0x8] sm:$0xff] %vm28_vm0, %v294_v41  ;;  %v299_v53 = vadd.f32 %v593_v49, %v145_v45 }
  0xd9   :  { %v331_v47 = vld [vmem:[#allocation2 + $0x10] sm:$0xff]  ;;  %319 = vst.msk [vmem:[#allocation2 + $0x48] sm:$0xff] %vm28_vm0, %v302_v44  ;;  %v601_v54 = vpop.f32.mrf.mxu1  ;;  %v246_v59 = vpop.f32.mrf.mxu0 }
  0xda   :  { %v354_v51 = vmul.f32 %v744_v43, %v331_v47  ;;  %v339_v52 = vld [vmem:[#allocation2 + $0x50] sm:$0xff]  ;;  %v307_v58 = vadd.f32 %v601_v54, %v153_v46  ;;  %316 = vst.msk [vmem:[#allocation2 + $0x30] sm:$0xff] %vm28_vm0, %v299_v53  ;;  %v297_v0 = vadd.f32 %v246_v59, %v143_v50 }
  0xdb   :  { %v362_v56 = vmul.f32 %v744_v43, %v339_v52  ;;  %v329_v57 = vld [vmem:[#allocation2] sm:$0xff]  ;;  %v278_v1 = vpop.f32.mrf.mxu1  ;;  %v594_v8 = vpop.f32.mrf.mxu0 }
  0xdc   :  { %v377_v61 = vadd.f32 %v751_v48, %v354_v51  ;;  %v352_v62 = vmul.f32 %v744_v43, %v329_v57  ;;  %v337_v63 = vld [vmem:[#allocation2 + $0x40] sm:$0xff]  ;;  %324 = vst.msk [vmem:[#allocation2 + $0x70] sm:$0xff] %vm28_vm0, %v307_v58  ;;  %v305_v7 = vadd.f32 %v278_v1, %v151_v55  ;;  %314 = vst.msk [vmem:[#allocation2 + $0x20] sm:$0xff] %vm28_vm0, %v297_v0 }
  0xdd   :  { %v385_v4 = vadd.f32 %v751_v48, %v362_v56  ;;  %v360_v5 = vmul.f32 %v744_v43, %v337_v63  ;;  %v332_v6 = vld [vmem:[#allocation2 + $0x18] sm:$0xff]  ;;  %v300_v14 = vadd.f32 %v594_v8, %v146_v60  ;;  %v602_v15 = vpop.f32.mrf.mxu1  ;;  %v249_v21 = vpop.f32.mrf.mxu0 }
  0xde   :  { %v393_v10 = vmax.f32 %v377_v61, 0.0  ;;  %v375_v11 = vadd.f32 %v751_v48, %v352_v62  ;;  %v355_v12 = vmul.f32 %v744_v43, %v332_v6  ;;  %v340_v13 = vld [vmem:[#allocation2 + $0x58] sm:$0xff]  ;;  %322 = vst.msk [vmem:[#allocation2 + $0x60] sm:$0xff] %vm28_vm0, %v305_v7  ;;  %v308_v20 = vadd.f32 %v602_v15, %v154_v2 }
  0xdf   :  { %v401_v16 = vmax.f32 %v385_v4, 0.0  ;;  %v383_v17 = vadd.f32 %v751_v48, %v360_v5  ;;  %v363_v18 = vmul.f32 %v744_v43, %v340_v13  ;;  %v330_v19 = vld [vmem:[#allocation2 + $0x8] sm:$0xff]  ;;  %317 = vst.msk [vmem:[#allocation2 + $0x38] sm:$0xff] %vm28_vm0, %v300_v14  ;;  %v281_v27 = vpop.f32.mrf.mxu1  ;;  %v298_v35 = vadd.f32 %v249_v21, %v144_v3 }
  0xe0   :  { %v523_v22 = vpack.c.bf16 %v393_v10, %v393_v10  ;;  %v391_v23 = vmax.f32 %v375_v11, 0.0  ;;  %v378_v24 = vadd.f32 %v751_v48, %v355_v12  ;;  %v353_v9 = vmul.f32 %v744_v43, %v330_v19  ;;  %v338_v25 = vld [vmem:[#allocation2 + $0x48] sm:$0xff]  ;;  %325 = vst.msk [vmem:[#allocation2 + $0x78] sm:$0xff] %vm28_vm0, %v308_v20 }
  0xe1   :  { %v531_v28 = vpack.c.bf16 %v401_v16, %v401_v16  ;;  %v399_v29 = vmax.f32 %v383_v17, 0.0  ;;  %v386_v30 = vadd.f32 %v751_v48, %v363_v18  ;;  %v361_v31 = vmul.f32 %v744_v43, %v338_v25  ;;  %v335_v39 = vld [vmem:[#allocation2 + $0x30] sm:$0xff]  ;;  %315 = vst.msk [vmem:[#allocation2 + $0x28] sm:$0xff] %vm28_vm0, %v298_v35 }
  0xe2   :  { %474 = vst.msk [vmem:[%s864_s6 + $0x8] sm:$0xf] %vm471_vm2, %v523_v22  ;;  %v521_v32 = vpack.c.bf16 %v391_v23, %v391_v23  ;;  %v394_v33 = vmax.f32 %v378_v24, 0.0  ;;  %v376_v34 = vadd.f32 %v751_v48, %v353_v9  ;;  %v306_v40 = vadd.f32 %v281_v27, %v152_v26 }
  0xe3   :  { %482 = vst.msk [vmem:[%s864_s6 + $0x28] sm:$0xf] %vm471_vm2, %v531_v28  ;;  %v529_v36 = vpack.c.bf16 %v399_v29, %v399_v29  ;;  %v402_v37 = vmax.f32 %v386_v30, 0.0  ;;  %v384_v38 = vadd.f32 %v751_v48, %v361_v31  ;;  %v358_v44 = vmul.f32 %v744_v43, %v335_v39  ;;  %v343_v45 = vld [vmem:[#allocation2 + $0x70] sm:$0xff]  ;;  %v333_v50 = vld [vmem:[#allocation2 + $0x20] sm:$0xff] }
  0xe4   :  { %472 = vst.msk [vmem:[%s864_s6] sm:$0xf] %vm471_vm2, %v521_v32  ;;  %v524_v41 = vpack.c.bf16 %v394_v33, %v394_v33  ;;  %v392_v42 = vmax.f32 %v376_v34, 0.0  ;;  %v366_v49 = vmul.f32 %v744_v43, %v343_v45  ;;  %v356_v53 = vmul.f32 %v744_v43, %v333_v50 }
  0xe5   :  { %480 = vst.msk [vmem:[%s864_s6 + $0x20] sm:$0xf] %vm471_vm2, %v529_v36  ;;  %v532_v46 = vpack.c.bf16 %v402_v37, %v402_v37  ;;  %v400_v47 = vmax.f32 %v384_v38, 0.0  ;;  %v381_v52 = vadd.f32 %v751_v48, %v358_v44  ;;  %v341_v54 = vld [vmem:[#allocation2 + $0x60] sm:$0xff] }
  0xe6   :  { %323 = vst.msk [vmem:[#allocation2 + $0x68] sm:$0xff] %vm28_vm0, %v306_v40  ;;  %v522_v51 = vpack.c.bf16 %v392_v42, %v392_v42  ;;  %v389_v56 = vadd.f32 %v751_v48, %v366_v49  ;;  %v364_v57 = vmul.f32 %v744_v43, %v341_v54  ;;  %v336_v58 = vld [vmem:[#allocation2 + $0x38] sm:$0xff]  ;;  %v379_v60 = vadd.f32 %v751_v48, %v356_v53 }
  0xe7   :  { %475 = vst.msk [vmem:[%s864_s6 + $0xc] sm:$0xf] %vm471_vm2, %v524_v41  ;;  %483 = vst.msk [vmem:[%s864_s6 + $0x2c] sm:$0xf] %vm471_vm2, %v532_v46  ;;  %v530_v55 = vpack.c.bf16 %v400_v47, %v400_v47  ;;  %v397_v59 = vmax.f32 %v381_v52, 0.0  ;;  %v359_v61 = vmul.f32 %v744_v43, %v336_v58  ;;  %v344_v62 = vld [vmem:[#allocation2 + $0x78] sm:$0xff] }
  0xe8   :  { %473 = vst.msk [vmem:[%s864_s6 + $0x4] sm:$0xf] %vm471_vm2, %v522_v51  ;;  %v405_v63 = vmax.f32 %v389_v56, 0.0  ;;  %v387_v0 = vadd.f32 %v751_v48, %v364_v57  ;;  %v367_v1 = vmul.f32 %v744_v43, %v344_v62  ;;  %v395_v4 = vmax.f32 %v379_v60, 0.0  ;;  %v334_v10 = vld [vmem:[#allocation2 + $0x28] sm:$0xff] }
  0xe9   :  { %481 = vst.msk [vmem:[%s864_s6 + $0x24] sm:$0xf] %vm471_vm2, %v530_v55  ;;  %v527_v2 = vpack.c.bf16 %v397_v59, %v397_v59  ;;  %v382_v5 = vadd.f32 %v751_v48, %v359_v61  ;;  %v357_v13 = vmul.f32 %v744_v43, %v334_v10 }
  0xea   :  { %v535_v6 = vpack.c.bf16 %v405_v63, %v405_v63  ;;  %v403_v7 = vmax.f32 %v387_v0, 0.0  ;;  %v390_v8 = vadd.f32 %v751_v48, %v367_v1  ;;  %v525_v11 = vpack.c.bf16 %v395_v4, %v395_v4 }
  0xeb   :  { %478 = vst.msk [vmem:[%s864_s6 + $0x18] sm:$0xf] %vm471_vm2, %v527_v2  ;;  %v398_v12 = vmax.f32 %v382_v5, 0.0  ;;  %v380_v19 = vadd.f32 %v751_v48, %v357_v13 }
  0xec   :  { %486 = vst.msk [vmem:[%s864_s6 + $0x38] sm:$0xf] %vm471_vm2, %v535_v6  ;;  %v533_v15 = vpack.c.bf16 %v403_v7, %v403_v7  ;;  %v406_v16 = vmax.f32 %v390_v8, 0.0  ;;  %476 = vst.msk [vmem:[%s864_s6 + $0x10] sm:$0xf] %vm471_vm2, %v525_v11 }
  0xed   :  { %v342_v14 = vld [vmem:[#allocation2 + $0x68] sm:$0xff]  ;;  %v528_v18 = vpack.c.bf16 %v398_v12, %v398_v12 }
  0xee   :  { %v365_v17 = vmul.f32 %v744_v43, %v342_v14  ;;  %484 = vst.msk [vmem:[%s864_s6 + $0x30] sm:$0xf] %vm471_vm2, %v533_v15  ;;  %v536_v20 = vpack.c.bf16 %v406_v16, %v406_v16  ;;  %v396_v43 = vmax.f32 %v380_v19, 0.0 }
  0xef   :  { %479 = vst.msk [vmem:[%s864_s6 + $0x1c] sm:$0xf] %vm471_vm2, %v528_v18 }
  0xf0   :  { %v388_v3 = vadd.f32 %v751_v48, %v365_v17  ;;  %487 = vst.msk [vmem:[%s864_s6 + $0x3c] sm:$0xf] %vm471_vm2, %v536_v20  ;;  %v526_v22 = vpack.c.bf16 %v396_v43, %v396_v43 }
  0xf2   :  { %v404_v21 = vmax.f32 %v388_v3, 0.0  ;;  %477 = vst.msk [vmem:[%s864_s6 + $0x14] sm:$0xf] %vm471_vm2, %v526_v22 }
  0xf4   :  { %v534_v23 = vpack.c.bf16 %v404_v21, %v404_v21 }
  0xf6   :  { %485 = vst.msk [vmem:[%s864_s6 + $0x34] sm:$0xf] %vm471_vm2, %v534_v23 }

// kernel: densenet_forward.27
= control target key start
LH: loop header
LB: loop body
LE: loop exit
PB: predicated region body
PF: predicated region fallthrough
CT: control target
= control target key end

     0   :  { %v2066_v0 = vmov 0   ;;  %vm579_vm0 = vcmask 154624   ;;  %vm676_vm1 = vcmask 1040384   ;;  %vm677_vm2 = vcmask 1041408   ;;  %s2948_s1 = inlined_call_operand.vmem [shape: bf16[147,16], index: 1, kind: input, shape index: {}]   ;;  %s2949_s0 = inlined_call_operand.vmem [shape: bf16[512,147], index: 0, kind: input, shape index: {}]   ;;  %s2950_s2 = inlined_call_operand.vmem [shape: f32[1,16], index: 2, kind: input, shape index: {}]   ;;  %s2951_s3 = inlined_call_operand.vmem [shape: f32[1,16], index: 3, kind: input, shape index: {}]   ;;  %s2952_s4 = inlined_call_operand.vmem [shape: bf16[512,16], index: 4, kind: output, shape index: {}]  }
   0x1   :  { %683 = vmatprep.subr.bf16.mxu0 %v2066_v0  ;;  %1935 = vmatprep.subr.bf16.mxu1 %v2066_v0  ;;  %v1958_v1 = vld [vmem:[%s2948_s1 + $0x38] sm:$0xff]   ;;  %v1959_v2 = vld [vmem:[%s2948_s1 + $0x30] sm:$0xff]   ;;  %v1960_v3 = vld [vmem:[%s2948_s1 + $0x28] sm:$0xff]   ;;  %v2067_v10 = vmov 65535   ;;  %vm22_vm3 = vcmask 130048   ;;  %v2068_v17 = vmov 0.0  }
   0x2   :  { %684 = vmatpush1.bf16.msra.mxu0 %v1958_v1  ;;  %1945 = vmatpush1.bf16.msra.mxu1 %v1958_v1  ;;  %v1961_v4 = vld [vmem:[%s2948_s1 + $0x20] sm:$0xff]   ;;  %v1962_v7 = vld [vmem:[%s2948_s1 + $0x18] sm:$0xff]   ;;  %v1963_v8 = vld [vmem:[%s2948_s1 + $0x10] sm:$0xff]   ;;  %v678_v11 = vsel %vm676_vm1, 4294967295, %v2067_v10  ;;  %23 = vst.msk [vmem:[#allocation2] sm:$0xff] %vm22_vm3, %v2068_v17  ;;  %vm1630_vm4 = vcmask 125952  }
   0x3   :  { %685 = vmatprep.subr.bf16.mxu0 %v2066_v0  ;;  %1936 = vmatprep.subr.bf16.mxu1 %v2066_v0  ;;  %v1970_v5 = vld [vmem:[%s2949_s0 + $0x4] ss:$8 sps:$4 sm:$0xff]   ;;  %v1966_v13 = vld [vmem:[%s2948_s1 + $0x48] ss:$0 sps:$4 sm:$0x33]   ;;  %v679_v14 = vsel %vm677_vm2, %v678_v11, 0 }
   0x4   :  { %1773 = vmatprep.mubr.msk.bf16.mxu0 %vm579_vm0, %v1970_v5  ;;  %v1973_v6 = vld [vmem:[%s2949_s0 + $0x104] ss:$8 sps:$4 sm:$0xff]   ;;  %v681_v15 = vand.u32 %v1966_v13, %v679_v14  ;;  %24 = vst.msk [vmem:[#allocation2 + $0x8] sm:$0xff] %vm22_vm3, %v2068_v17  ;;  %25 = vst.msk [vmem:[#allocation2 + $0x10] sm:$0xff] %vm22_vm3, %v2068_v17  ;;  %v1968_v18 = vld [vmem:[%s2949_s0] ss:$8 sps:$4 sm:$0xff]  }
   0x5   :  { %1789 = vmatprep.mubr.msk.bf16.mxu1 %vm579_vm0, %v1973_v6  ;;  %v1964_v9 = vld [vmem:[%s2948_s1 + $0x8] sm:$0xff]   ;;  %v1965_v12 = vld [vmem:[%s2948_s1] sm:$0xff]   ;;  %26 = vst.msk [vmem:[#allocation2 + $0x18] sm:$0xff] %vm22_vm3, %v2068_v17  ;;  %27 = vst.msk [vmem:[#allocation2 + $0x20] sm:$0xff] %vm22_vm3, %v2068_v17 }
   0x6   :  { %686 = vmatpush1.bf16.msra.mxu0 %v1959_v2  ;;  %1946 = vmatpush1.bf16.msra.mxu1 %v1959_v2  ;;  %v2132_v16 = vld [vmem:[%s2948_s1 + $0x40] sm:$0xff]   ;;  %28 = vst.msk [vmem:[#allocation2 + $0x28] sm:$0xff] %vm22_vm3, %v2068_v17  ;;  %29 = vst.msk [vmem:[#allocation2 + $0x30] sm:$0xff] %vm22_vm3, %v2068_v17  ;;  %v1974_v20 = vld [vmem:[%s2949_s0 + $0x14] ss:$8 sps:$4 sm:$0xff]  }
   0x7   :  { %687 = vmatprep.subr.bf16.mxu0 %v2066_v0  ;;  %1937 = vmatprep.subr.bf16.mxu1 %v2066_v0  ;;  %30 = vst.msk [vmem:[#allocation2 + $0x38] sm:$0xff] %vm22_vm3, %v2068_v17  ;;  %31 = vst.msk [vmem:[#allocation2 + $0x40] sm:$0xff] %vm22_vm3, %v2068_v17  ;;  %v1971_v19 = vld [vmem:[%s2949_s0 + $0x100] ss:$8 sps:$4 sm:$0xff]   ;;  %v1976_v21 = vld [vmem:[%s2949_s0 + $0x114] ss:$8 sps:$4 sm:$0xff]  }
   0x8   :  { %32 = vst.msk [vmem:[#allocation2 + $0x48] sm:$0xff] %vm22_vm3, %v2068_v17  ;;  %33 = vst.msk [vmem:[#allocation2 + $0x50] sm:$0xff] %vm22_vm3, %v2068_v17  ;;  %v1978_v22 = vld [vmem:[%s2949_s0 + $0x10] ss:$8 sps:$4 sm:$0xff]   ;;  %v1980_v24 = vld [vmem:[%s2949_s0 + $0x24] ss:$8 sps:$4 sm:$0xff]  }
   0x9   :  { %34 = vst.msk [vmem:[#allocation2 + $0x58] sm:$0xff] %vm22_vm3, %v2068_v17  ;;  %35 = vst.msk [vmem:[#allocation2 + $0x60] sm:$0xff] %vm22_vm3, %v2068_v17  ;;  %v1979_v23 = vld [vmem:[%s2949_s0 + $0x110] ss:$8 sps:$4 sm:$0xff]   ;;  %v1982_v25 = vld [vmem:[%s2949_s0 + $0x124] ss:$8 sps:$4 sm:$0xff]  }
   0xa   :  { %688 = vmatpush1.bf16.msra.mxu0 %v1960_v3  ;;  %1947 = vmatpush1.bf16.msra.mxu1 %v1960_v3  ;;  %36 = vst.msk [vmem:[#allocation2 + $0x68] sm:$0xff] %vm22_vm3, %v2068_v17  ;;  %37 = vst.msk [vmem:[#allocation2 + $0x70] sm:$0xff] %vm22_vm3, %v2068_v17  ;;  %v1984_v26 = vld [vmem:[%s2949_s0 + $0x20] ss:$8 sps:$4 sm:$0xff]   ;;  %v1986_v28 = vld [vmem:[%s2949_s0 + $0x34] ss:$8 sps:$4 sm:$0xff]  }
   0xb   :  { %689 = vmatprep.subr.bf16.mxu0 %v2066_v0  ;;  %1938 = vmatprep.subr.bf16.mxu1 %v2066_v0  ;;  %38 = vst.msk [vmem:[#allocation2 + $0x78] sm:$0xff] %vm22_vm3, %v2068_v17  ;;  %39 = vst.msk [vmem:[#allocation2 + $0x80] sm:$0xff] %vm22_vm3, %v2068_v17  ;;  %v1985_v27 = vld [vmem:[%s2949_s0 + $0x120] ss:$8 sps:$4 sm:$0xff]   ;;  %v1988_v29 = vld [vmem:[%s2949_s0 + $0x134] ss:$8 sps:$4 sm:$0xff]  }
   0xc   :  { %40 = vst.msk [vmem:[#allocation2 + $0x88] sm:$0xff] %vm22_vm3, %v2068_v17  ;;  %41 = vst.msk [vmem:[#allocation2 + $0x90] sm:$0xff] %vm22_vm3, %v2068_v17  ;;  %v1990_v30 = vld [vmem:[%s2949_s0 + $0x30] ss:$8 sps:$4 sm:$0xff]   ;;  %v1992_v32 = vld [vmem:[%s2949_s0 + $0x44] ss:$8 sps:$4 sm:$0xff]  }
   0xd   :  { %42 = vst.msk [vmem:[#allocation2 + $0x98] sm:$0xff] %vm22_vm3, %v2068_v17  ;;  %43 = vst.msk [vmem:[#allocation2 + $0xa0] sm:$0xff] %vm22_vm3, %v2068_v17  ;;  %v1991_v31 = vld [vmem:[%s2949_s0 + $0x130] ss:$8 sps:$4 sm:$0xff]   ;;  %v1994_v33 = vld [vmem:[%s2949_s0 + $0x144] ss:$8 sps:$4 sm:$0xff]  }
   0xe   :  { %690 = vmatpush1.bf16.msra.mxu0 %v1961_v4  ;;  %1948 = vmatpush1.bf16.msra.mxu1 %v1961_v4  ;;  %44 = vst.msk [vmem:[#allocation2 + $0xa8] sm:$0xff] %vm22_vm3, %v2068_v17  ;;  %45 = vst.msk [vmem:[#allocation2 + $0xb0] sm:$0xff] %vm22_vm3, %v2068_v17  ;;  %v1996_v34 = vld [vmem:[%s2949_s0 + $0x40] ss:$8 sps:$4 sm:$0xff]   ;;  %v1998_v36 = vld [vmem:[%s2949_s0 + $0x54] ss:$8 sps:$4 sm:$0xff]  }
   0xf   :  { %691 = vmatprep.subr.bf16.mxu0 %v2066_v0  ;;  %1939 = vmatprep.subr.bf16.mxu1 %v2066_v0  ;;  %46 = vst.msk [vmem:[#allocation2 + $0xb8] sm:$0xff] %vm22_vm3, %v2068_v17  ;;  %47 = vst.msk [vmem:[#allocation2 + $0xc0] sm:$0xff] %vm22_vm3, %v2068_v17  ;;  %v1997_v35 = vld [vmem:[%s2949_s0 + $0x140] ss:$8 sps:$4 sm:$0xff]   ;;  %v2000_v37 = vld [vmem:[%s2949_s0 + $0x154] ss:$8 sps:$4 sm:$0xff]  }
  0x10   :  { %48 = vst.msk [vmem:[#allocation2 + $0xc8] sm:$0xff] %vm22_vm3, %v2068_v17  ;;  %49 = vst.msk [vmem:[#allocation2 + $0xd0] sm:$0xff] %vm22_vm3, %v2068_v17  ;;  %v2002_v38 = vld [vmem:[%s2949_s0 + $0x50] ss:$8 sps:$4 sm:$0xff]   ;;  %v2004_v40 = vld [vmem:[%s2949_s0 + $0x64] ss:$8 sps:$4 sm:$0xff]  }
  0x11   :  { %50 = vst.msk [vmem:[#allocation2 + $0xd8] sm:$0xff] %vm22_vm3, %v2068_v17  ;;  %51 = vst.msk [vmem:[#allocation2 + $0xe0] sm:$0xff] %vm22_vm3, %v2068_v17  ;;  %v2003_v39 = vld [vmem:[%s2949_s0 + $0x150] ss:$8 sps:$4 sm:$0xff]   ;;  %v2006_v41 = vld [vmem:[%s2949_s0 + $0x164] ss:$8 sps:$4 sm:$0xff]  }
  0x12   :  { %692 = vmatpush1.bf16.msra.mxu0 %v1962_v7  ;;  %1949 = vmatpush1.bf16.msra.mxu1 %v1962_v7  ;;  %52 = vst.msk [vmem:[#allocation2 + $0xe8] sm:$0xff] %vm22_vm3, %v2068_v17  ;;  %53 = vst.msk [vmem:[#allocation2 + $0xf0] sm:$0xff] %vm22_vm3, %v2068_v17  ;;  %v2008_v42 = vld [vmem:[%s2949_s0 + $0x60] ss:$8 sps:$4 sm:$0xff]   ;;  %v2010_v44 = vld [vmem:[%s2949_s0 + $0x74] ss:$8 sps:$4 sm:$0xff]  }
  0x13   :  { %693 = vmatprep.subr.bf16.mxu0 %v2066_v0  ;;  %1940 = vmatprep.subr.bf16.mxu1 %v2066_v0  ;;  %54 = vst.msk [vmem:[#allocation2 + $0xf8] sm:$0xff] %vm22_vm3, %v2068_v17  ;;  %55 = vst.msk [vmem:[#allocation2 + $0x100] sm:$0xff] %vm22_vm3, %v2068_v17  ;;  %v2009_v43 = vld [vmem:[%s2949_s0 + $0x160] ss:$8 sps:$4 sm:$0xff]   ;;  %v2012_v45 = vld [vmem:[%s2949_s0 + $0x174] ss:$8 sps:$4 sm:$0xff]  }
  0x14   :  { %56 = vst.msk [vmem:[#allocation2 + $0x108] sm:$0xff] %vm22_vm3, %v2068_v17  ;;  %57 = vst.msk [vmem:[#allocation2 + $0x110] sm:$0xff] %vm22_vm3, %v2068_v17  ;;  %v2014_v46 = vld [vmem:[%s2949_s0 + $0x70] ss:$8 sps:$4 sm:$0xff]   ;;  %v2016_v48 = vld [vmem:[%s2949_s0 + $0x84] ss:$8 sps:$4 sm:$0xff]  }
  0x15   :  { %58 = vst.msk [vmem:[#allocation2 + $0x118] sm:$0xff] %vm22_vm3, %v2068_v17  ;;  %59 = vst.msk [vmem:[#allocation2 + $0x120] sm:$0xff] %vm22_vm3, %v2068_v17  ;;  %v2015_v47 = vld [vmem:[%s2949_s0 + $0x170] ss:$8 sps:$4 sm:$0xff]   ;;  %v2018_v49 = vld [vmem:[%s2949_s0 + $0x184] ss:$8 sps:$4 sm:$0xff]  }
  0x16   :  { %694 = vmatpush1.bf16.msra.mxu0 %v1963_v8  ;;  %1950 = vmatpush1.bf16.msra.mxu1 %v1963_v8  ;;  %60 = vst.msk [vmem:[#allocation2 + $0x128] sm:$0xff] %vm22_vm3, %v2068_v17  ;;  %61 = vst.msk [vmem:[#allocation2 + $0x130] sm:$0xff] %vm22_vm3, %v2068_v17  ;;  %v2020_v50 = vld [vmem:[%s2949_s0 + $0x80] ss:$8 sps:$4 sm:$0xff]   ;;  %v2022_v52 = vld [vmem:[%s2949_s0 + $0x94] ss:$8 sps:$4 sm:$0xff]  }
  0x17   :  { %695 = vmatprep.subr.bf16.mxu0 %v2066_v0  ;;  %1941 = vmatprep.subr.bf16.mxu1 %v2066_v0  ;;  %62 = vst.msk [vmem:[#allocation2 + $0x138] sm:$0xff] %vm22_vm3, %v2068_v17  ;;  %63 = vst.msk [vmem:[#allocation2 + $0x140] sm:$0xff] %vm22_vm3, %v2068_v17  ;;  %v2021_v51 = vld [vmem:[%s2949_s0 + $0x180] ss:$8 sps:$4 sm:$0xff]   ;;  %v2024_v53 = vld [vmem:[%s2949_s0 + $0x194] ss:$8 sps:$4 sm:$0xff]  }
  0x18   :  { %64 = vst.msk [vmem:[#allocation2 + $0x148] sm:$0xff] %vm22_vm3, %v2068_v17  ;;  %65 = vst.msk [vmem:[#allocation2 + $0x150] sm:$0xff] %vm22_vm3, %v2068_v17  ;;  %v2026_v54 = vld [vmem:[%s2949_s0 + $0x90] ss:$8 sps:$4 sm:$0xff]   ;;  %v2028_v56 = vld [vmem:[%s2949_s0 + $0xa4] ss:$8 sps:$4 sm:$0xff]  }
  0x19   :  { %66 = vst.msk [vmem:[#allocation2 + $0x158] sm:$0xff] %vm22_vm3, %v2068_v17  ;;  %67 = vst.msk [vmem:[#allocation2 + $0x160] sm:$0xff] %vm22_vm3, %v2068_v17  ;;  %v2027_v55 = vld [vmem:[%s2949_s0 + $0x190] ss:$8 sps:$4 sm:$0xff]   ;;  %v2030_v57 = vld [vmem:[%s2949_s0 + $0x1a4] ss:$8 sps:$4 sm:$0xff]  }
  0x1a   :  { %696 = vmatpush1.bf16.msra.mxu0 %v1964_v9  ;;  %1951 = vmatpush1.bf16.msra.mxu1 %v1964_v9  ;;  %68 = vst.msk [vmem:[#allocation2 + $0x168] sm:$0xff] %vm22_vm3, %v2068_v17  ;;  %69 = vst.msk [vmem:[#allocation2 + $0x170] sm:$0xff] %vm22_vm3, %v2068_v17  ;;  %v2032_v58 = vld [vmem:[%s2949_s0 + $0xa0] ss:$8 sps:$4 sm:$0xff]   ;;  %v2034_v60 = vld [vmem:[%s2949_s0 + $0xb4] ss:$8 sps:$4 sm:$0xff]  }
  0x1b   :  { %697 = vmatprep.subr.bf16.mxu0 %v2066_v0  ;;  %1942 = vmatprep.subr.bf16.mxu1 %v2066_v0  ;;  %70 = vst.msk [vmem:[#allocation2 + $0x178] sm:$0xff] %vm22_vm3, %v2068_v17  ;;  %71 = vst.msk [vmem:[#allocation2 + $0x180] sm:$0xff] %vm22_vm3, %v2068_v17  ;;  %v2033_v59 = vld [vmem:[%s2949_s0 + $0x1a0] ss:$8 sps:$4 sm:$0xff]   ;;  %v2036_v61 = vld [vmem:[%s2949_s0 + $0x1b4] ss:$8 sps:$4 sm:$0xff]  }
  0x1c   :  { %72 = vst.msk [vmem:[#allocation2 + $0x188] sm:$0xff] %vm22_vm3, %v2068_v17  ;;  %73 = vst.msk [vmem:[#allocation2 + $0x190] sm:$0xff] %vm22_vm3, %v2068_v17  ;;  %v2038_v62 = vld [vmem:[%s2949_s0 + $0xb0] ss:$8 sps:$4 sm:$0xff]   ;;  %v2042_v1 = vld [vmem:[%s2949_s0 + $0x1c4] ss:$8 sps:$4 sm:$0xff]  }
  0x1d   :  { %74 = vst.msk [vmem:[#allocation2 + $0x198] sm:$0xff] %vm22_vm3, %v2068_v17  ;;  %75 = vst.msk [vmem:[#allocation2 + $0x1a0] sm:$0xff] %vm22_vm3, %v2068_v17  ;;  %v2039_v63 = vld [vmem:[%s2949_s0 + $0x1b0] ss:$8 sps:$4 sm:$0xff]   ;;  %v2044_v2 = vld [vmem:[%s2949_s0 + $0xc0] ss:$8 sps:$4 sm:$0xff]  }
  0x1e   :  { %698 = vmatpush1.bf16.msra.mxu0 %v1965_v12  ;;  %1952 = vmatpush1.bf16.msra.mxu1 %v1965_v12  ;;  %76 = vst.msk [vmem:[#allocation2 + $0x1a8] sm:$0xff] %vm22_vm3, %v2068_v17  ;;  %77 = vst.msk [vmem:[#allocation2 + $0x1b0] sm:$0xff] %vm22_vm3, %v2068_v17  ;;  %v2045_v3 = vld [vmem:[%s2949_s0 + $0x1c0] ss:$8 sps:$4 sm:$0xff]   ;;  %v2046_v4 = vld [vmem:[%s2949_s0 + $0xd4] ss:$8 sps:$4 sm:$0xff]  }
  0x1f   :  { %711 = vmatprep.subr.bf16.mxu0 %v2066_v0  ;;  %1943 = vmatprep.subr.bf16.mxu1 %v2066_v0  ;;  %78 = vst.msk [vmem:[#allocation2 + $0x1b8] sm:$0xff] %vm22_vm3, %v2068_v17  ;;  %79 = vst.msk [vmem:[#allocation2 + $0x1c0] sm:$0xff] %vm22_vm3, %v2068_v17  ;;  %v2048_v5 = vld [vmem:[%s2949_s0 + $0x1d4] ss:$8 sps:$4 sm:$0xff]   ;;  %v2050_v6 = vld [vmem:[%s2949_s0 + $0xd0] ss:$8 sps:$4 sm:$0xff]  }
  0x20   :  { %80 = vst.msk [vmem:[#allocation2 + $0x1c8] sm:$0xff] %vm22_vm3, %v2068_v17  ;;  %81 = vst.msk [vmem:[#allocation2 + $0x1d0] sm:$0xff] %vm22_vm3, %v2068_v17  ;;  %v2051_v7 = vld [vmem:[%s2949_s0 + $0x1d0] ss:$8 sps:$4 sm:$0xff]   ;;  %v2052_v8 = vld [vmem:[%s2949_s0 + $0xe4] ss:$8 sps:$4 sm:$0xff]  }
  0x21   :  { %82 = vst.msk [vmem:[#allocation2 + $0x1d8] sm:$0xff] %vm22_vm3, %v2068_v17  ;;  %83 = vst.msk [vmem:[#allocation2 + $0x1e0] sm:$0xff] %vm22_vm3, %v2068_v17  ;;  %v2054_v9 = vld [vmem:[%s2949_s0 + $0x1e4] ss:$8 sps:$4 sm:$0xff]   ;;  %v2056_v10 = vld [vmem:[%s2949_s0 + $0xe0] ss:$8 sps:$4 sm:$0xff]  }
  0x22   :  { %712 = vmatpush2.bf16.msra.mxu0 %v681_v15  ;;  %1953 = vmatpush2.bf16.msra.mxu1 %v681_v15  ;;  %84 = vst.msk [vmem:[#allocation2 + $0x1e8] sm:$0xff] %vm22_vm3, %v2068_v17  ;;  %85 = vst.msk [vmem:[#allocation2 + $0x1f0] sm:$0xff] %vm22_vm3, %v2068_v17  ;;  %v2057_v11 = vld [vmem:[%s2949_s0 + $0x1e0] ss:$8 sps:$4 sm:$0xff]   ;;  %v2058_v12 = vld [vmem:[%s2949_s0 + $0xf4] ss:$8 sps:$4 sm:$0xff]  }
  0x23   :  { %713 = vmatprep.subr.bf16.mxu0 %v2066_v0  ;;  %1944 = vmatprep.subr.bf16.mxu1 %v2066_v0  ;;  %86 = vst.msk [vmem:[#allocation2 + $0x1f8] sm:$0xff] %vm22_vm3, %v2068_v17  ;;  %v2040_v0 = vld [vmem:[%s2949_s0 + $0xc4] ss:$8 sps:$4 sm:$0xff]   ;;  %v2060_v13 = vld [vmem:[%s2949_s0 + $0x1f4] ss:$8 sps:$4 sm:$0xff]  }
  0x24   :  { %v2062_v14 = vld [vmem:[%s2949_s0 + $0xf0] ss:$8 sps:$4 sm:$0xff]   ;;  %v183_v17 = vld [vmem:[#allocation2 + $0x100] sm:$0xff] }
  0x25   :  { %v2063_v15 = vld [vmem:[%s2949_s0 + $0x1f0] ss:$8 sps:$4 sm:$0xff]  }
  0x26   :  { %714 = vmatpush2.bf16.msra.mxu0 %v2132_v16  ;;  %1954 = vmatpush2.bf16.msra.mxu1 %v2132_v16  ;;  %v151_v16 = vld [vmem:[#allocation2] sm:$0xff] }
  0x29   :  { %716 = vmatmul.mubr.bf16.vlgmr.msra.gmra.mxu0 %v1968_v18  ;;  %844 = vmatmul.mubr.bf16.vlgmr.msra.gmra.mxu1 %v1971_v19 }
  0x2a   :  { %1774 = vmatprep.mubr.msk.bf16.mxu0 %vm579_vm0, %v1974_v20  ;;  %1790 = vmatprep.mubr.msk.bf16.mxu1 %vm579_vm0, %v1976_v21 }
  0x31   :  { %724 = vmatmul.mubr.bf16.gmra.mxu0 %v1978_v22  ;;  %852 = vmatmul.mubr.bf16.gmra.mxu1 %v1979_v23 }
  0x32   :  { %1775 = vmatprep.mubr.msk.bf16.mxu0 %vm579_vm0, %v1980_v24  ;;  %1791 = vmatprep.mubr.msk.bf16.mxu1 %vm579_vm0, %v1982_v25  ;;  %v152_v24 = vld [vmem:[#allocation2 + $0x8] sm:$0xff] }
  0x33   :  { %v184_v25 = vld [vmem:[#allocation2 + $0x108] sm:$0xff] }
  0x39   :  { %732 = vmatmul.mubr.bf16.gmra.mxu0 %v1984_v26  ;;  %860 = vmatmul.mubr.bf16.gmra.mxu1 %v1985_v27 }
  0x3a   :  { %1776 = vmatprep.mubr.msk.bf16.mxu0 %vm579_vm0, %v1986_v28  ;;  %1792 = vmatprep.mubr.msk.bf16.mxu1 %vm579_vm0, %v1988_v29 }
  0x41   :  { %740 = vmatmul.mubr.bf16.gmra.mxu0 %v1990_v30  ;;  %868 = vmatmul.mubr.bf16.gmra.mxu1 %v1991_v31 }
  0x42   :  { %1777 = vmatprep.mubr.msk.bf16.mxu0 %vm579_vm0, %v1992_v32  ;;  %1793 = vmatprep.mubr.msk.bf16.mxu1 %vm579_vm0, %v1994_v33  ;;  %v153_v32 = vld [vmem:[#allocation2 + $0x10] sm:$0xff] }
  0x43   :  { %v185_v33 = vld [vmem:[#allocation2 + $0x110] sm:$0xff] }
  0x49   :  { %748 = vmatmul.mubr.bf16.gmra.mxu0 %v1996_v34  ;;  %876 = vmatmul.mubr.bf16.gmra.mxu1 %v1997_v35  ;;  %v2487_v34 = vld [vmem:[%s2950_s2] ss:$0 sm:$0xff] }
  0x4a   :  { %1778 = vmatprep.mubr.msk.bf16.mxu0 %vm579_vm0, %v1998_v36  ;;  %1794 = vmatprep.mubr.msk.bf16.mxu1 %vm579_vm0, %v2000_v37  ;;  %v2492_v37 = vld [vmem:[%s2951_s3] ss:$0 sm:$0xff] }
  0x51   :  { %756 = vmatmul.mubr.bf16.gmra.mxu0 %v2002_v38  ;;  %884 = vmatmul.mubr.bf16.gmra.mxu1 %v2003_v39 }
  0x52   :  { %1779 = vmatprep.mubr.msk.bf16.mxu0 %vm579_vm0, %v2004_v40  ;;  %1795 = vmatprep.mubr.msk.bf16.mxu1 %vm579_vm0, %v2006_v41  ;;  %v154_v40 = vld [vmem:[#allocation2 + $0x18] sm:$0xff] }
  0x59   :  { %764 = vmatmul.mubr.bf16.gmra.mxu0 %v2008_v42  ;;  %892 = vmatmul.mubr.bf16.gmra.mxu1 %v2009_v43 }
  0x5a   :  { %1780 = vmatprep.mubr.msk.bf16.mxu0 %vm579_vm0, %v2010_v44  ;;  %1796 = vmatprep.mubr.msk.bf16.mxu1 %vm579_vm0, %v2012_v45  ;;  %v186_v45 = vld [vmem:[#allocation2 + $0x118] sm:$0xff] }
  0x61   :  { %772 = vmatmul.mubr.bf16.gmra.mxu0 %v2014_v46  ;;  %900 = vmatmul.mubr.bf16.gmra.mxu1 %v2015_v47 }
  0x62   :  { %1781 = vmatprep.mubr.msk.bf16.mxu0 %vm579_vm0, %v2016_v48  ;;  %1797 = vmatprep.mubr.msk.bf16.mxu1 %vm579_vm0, %v2018_v49 }
  0x69   :  { %780 = vmatmul.mubr.bf16.gmra.mxu0 %v2020_v50  ;;  %908 = vmatmul.mubr.bf16.gmra.mxu1 %v2021_v51 }
  0x6a   :  { %1782 = vmatprep.mubr.msk.bf16.mxu0 %vm579_vm0, %v2022_v52  ;;  %1798 = vmatprep.mubr.msk.bf16.mxu1 %vm579_vm0, %v2024_v53 }
  0x71   :  { %788 = vmatmul.mubr.bf16.gmra.mxu0 %v2026_v54  ;;  %916 = vmatmul.mubr.bf16.gmra.mxu1 %v2027_v55 }
  0x72   :  { %1783 = vmatprep.mubr.msk.bf16.mxu0 %vm579_vm0, %v2028_v56  ;;  %1799 = vmatprep.mubr.msk.bf16.mxu1 %vm579_vm0, %v2030_v57 }
  0x79   :  { %796 = vmatmul.mubr.bf16.gmra.mxu0 %v2032_v58  ;;  %924 = vmatmul.mubr.bf16.gmra.mxu1 %v2033_v59 }
  0x7a   :  { %1784 = vmatprep.mubr.msk.bf16.mxu0 %vm579_vm0, %v2034_v60  ;;  %1800 = vmatprep.mubr.msk.bf16.mxu1 %vm579_vm0, %v2036_v61 }
  0x81   :  { %804 = vmatmul.mubr.bf16.gmra.mxu0 %v2038_v62  ;;  %932 = vmatmul.mubr.bf16.gmra.mxu1 %v2039_v63  ;;  %v155_v62 = vld [vmem:[#allocation2 + $0x20] sm:$0xff] }
  0x82   :  { %1785 = vmatprep.mubr.msk.bf16.mxu0 %vm579_vm0, %v2040_v0  ;;  %1801 = vmatprep.mubr.msk.bf16.mxu1 %vm579_vm0, %v2042_v1  ;;  %v187_v63 = vld [vmem:[#allocation2 + $0x120] sm:$0xff] }
  0x89   :  { %812 = vmatmul.mubr.bf16.gmra.mxu0 %v2044_v2  ;;  %940 = vmatmul.mubr.bf16.gmra.mxu1 %v2045_v3 }
  0x8a   :  { %1786 = vmatprep.mubr.msk.bf16.mxu0 %vm579_vm0, %v2046_v4  ;;  %1802 = vmatprep.mubr.msk.bf16.mxu1 %vm579_vm0, %v2048_v5 }
  0x91   :  { %820 = vmatmul.mubr.bf16.gmra.mxu0 %v2050_v6  ;;  %948 = vmatmul.mubr.bf16.gmra.mxu1 %v2051_v7 }
  0x92   :  { %1787 = vmatprep.mubr.msk.bf16.mxu0 %vm579_vm0, %v2052_v8  ;;  %1803 = vmatprep.mubr.msk.bf16.mxu1 %vm579_vm0, %v2054_v9 }
  0x99   :  { %828 = vmatmul.mubr.bf16.gmra.mxu0 %v2056_v10  ;;  %956 = vmatmul.mubr.bf16.gmra.mxu1 %v2057_v11 }
  0x9a   :  { %1788 = vmatprep.mubr.msk.bf16.mxu0 %vm579_vm0, %v2058_v12  ;;  %1804 = vmatprep.mubr.msk.bf16.mxu1 %vm579_vm0, %v2060_v13 }
  0xa1   :  { %836 = vmatmul.mubr.bf16.gmra.mxu0 %v2062_v14  ;;  %964 = vmatmul.mubr.bf16.gmra.mxu1 %v2063_v15 }
  0xe9   :  { %v717_v18 = vpop.f32.mrf.mxu0  ;;  %v845_v19 = vpop.f32.mrf.mxu1 }
  0xea   :  { %v972_v20 = vadd.f32 %v717_v18, %v151_v16  ;;  %v1004_v21 = vadd.f32 %v845_v19, %v183_v17  ;;  %v156_v16 = vld [vmem:[#allocation2 + $0x28] sm:$0xff] }
  0xeb   :  { %v719_v22 = vpop.f32.mrf.mxu0  ;;  %v847_v23 = vpop.f32.mrf.mxu1  ;;  %v188_v17 = vld [vmem:[#allocation2 + $0x128] sm:$0xff] }
  0xec   :  { %1037 = vst.msk [vmem:[#allocation2] sm:$0xff] %vm22_vm3, %v972_v20  ;;  %1069 = vst.msk [vmem:[#allocation2 + $0x100] sm:$0xff] %vm22_vm3, %v1004_v21 }
  0xed   :  { %v720_v26 = vpop.f32.mrf.mxu0  ;;  %v848_v27 = vpop.f32.mrf.mxu1 }
  0xee   :  { %v973_v28 = vadd.f32 %v720_v26, %v152_v24  ;;  %v1005_v29 = vadd.f32 %v848_v27, %v184_v25 }
  0xef   :  { %v722_v30 = vpop.f32.mrf.mxu0  ;;  %v850_v31 = vpop.f32.mrf.mxu1 }
  0xf0   :  { %1038 = vst.msk [vmem:[#allocation2 + $0x8] sm:$0xff] %vm22_vm3, %v973_v28  ;;  %1070 = vst.msk [vmem:[#allocation2 + $0x108] sm:$0xff] %vm22_vm3, %v1005_v29 }
  0xf1   :  { %v725_v35 = vpop.f32.mrf.mxu0  ;;  %v853_v36 = vpop.f32.mrf.mxu1 }
  0xf2   :  { %v974_v38 = vadd.f32 %v725_v35, %v153_v32  ;;  %v1006_v39 = vadd.f32 %v853_v36, %v185_v33  ;;  %v157_v35 = vld [vmem:[#allocation2 + $0x30] sm:$0xff] }
  0xf3   :  { %v1104_v41 = vld [vmem:[#allocation2] sm:$0xff]  ;;  %v727_v43 = vpop.f32.mrf.mxu0  ;;  %v855_v44 = vpop.f32.mrf.mxu1  ;;  %v189_v36 = vld [vmem:[#allocation2 + $0x130] sm:$0xff] }
  0xf4   :  { %v1136_v42 = vld [vmem:[#allocation2 + $0x100] sm:$0xff]  ;;  %v1175_v46 = vmul.f32 %v2487_v34, %v1104_v41  ;;  %1039 = vst.msk [vmem:[#allocation2 + $0x10] sm:$0xff] %vm22_vm3, %v974_v38  ;;  %1071 = vst.msk [vmem:[#allocation2 + $0x110] sm:$0xff] %vm22_vm3, %v1006_v39 }
  0xf5   :  { %v1207_v47 = vmul.f32 %v2487_v34, %v1136_v42  ;;  %v728_v48 = vpop.f32.mrf.mxu0  ;;  %v856_v49 = vpop.f32.mrf.mxu1 }
  0xf6   :  { %v1246_v50 = vadd.f32 %v2492_v37, %v1175_v46  ;;  %v975_v52 = vadd.f32 %v728_v48, %v154_v40  ;;  %v1007_v53 = vadd.f32 %v856_v49, %v186_v45  ;;  %v158_v48 = vld [vmem:[#allocation2 + $0x38] sm:$0xff] }
  0xf7   :  { %v1278_v51 = vadd.f32 %v2492_v37, %v1207_v47  ;;  %v1105_v54 = vld [vmem:[#allocation2 + $0x8] sm:$0xff]  ;;  %v730_v56 = vpop.f32.mrf.mxu0  ;;  %v858_v57 = vpop.f32.mrf.mxu1  ;;  %v190_v49 = vld [vmem:[#allocation2 + $0x138] sm:$0xff] }
  0xf8   :  { %v1137_v55 = vld [vmem:[#allocation2 + $0x108] sm:$0xff]  ;;  %v1310_v58 = vmax.f32 %v1246_v50, 0.0  ;;  %v1176_v60 = vmul.f32 %v2487_v34, %v1105_v54  ;;  %1040 = vst.msk [vmem:[#allocation2 + $0x18] sm:$0xff] %vm22_vm3, %v975_v52  ;;  %1072 = vst.msk [vmem:[#allocation2 + $0x118] sm:$0xff] %vm22_vm3, %v1007_v53 }
  0xf9   :  { %v1342_v59 = vmax.f32 %v1278_v51, 0.0  ;;  %v1208_v61 = vmul.f32 %v2487_v34, %v1137_v55  ;;  %v733_v0 = vpop.f32.mrf.mxu0  ;;  %v861_v1 = vpop.f32.mrf.mxu1 }
  0xfa   :  { %v1871_v2 = vpack.c.bf16 %v1310_v58, %v1310_v58  ;;  %v1247_v4 = vadd.f32 %v2492_v37, %v1176_v60  ;;  %v976_v8 = vadd.f32 %v733_v0, %v155_v62  ;;  %v1008_v9 = vadd.f32 %v861_v1, %v187_v63 }
  0xfb   :  { %v1903_v3 = vpack.c.bf16 %v1342_v59, %v1342_v59  ;;  %v1279_v5 = vadd.f32 %v2492_v37, %v1208_v61  ;;  %v1106_v6 = vld [vmem:[#allocation2 + $0x10] sm:$0xff]  ;;  %v735_v10 = vpop.f32.mrf.mxu0  ;;  %v863_v11 = vpop.f32.mrf.mxu1 }
  0xfc   :  { %v1138_v7 = vld [vmem:[#allocation2 + $0x110] sm:$0xff]  ;;  %1631 = vst.msk [vmem:[%s2952_s4] sm:$0xf] %vm1630_vm4, %v1871_v2  ;;  %v1311_v12 = vmax.f32 %v1247_v4, 0.0  ;;  %v1177_v14 = vmul.f32 %v2487_v34, %v1106_v6  ;;  %v159_v2 = vld [vmem:[#allocation2 + $0x40] sm:$0xff] }
  0xfd   :  { %1663 = vst.msk [vmem:[%s2952_s4 + $0x80] sm:$0xf] %vm1630_vm4, %v1903_v3  ;;  %v1343_v13 = vmax.f32 %v1279_v5, 0.0  ;;  %v1209_v15 = vmul.f32 %v2487_v34, %v1138_v7  ;;  %v736_v18 = vpop.f32.mrf.mxu0  ;;  %v864_v19 = vpop.f32.mrf.mxu1  ;;  %v191_v3 = vld [vmem:[#allocation2 + $0x140] sm:$0xff] }
  0xfe   :  { %1041 = vst.msk [vmem:[#allocation2 + $0x20] sm:$0xff] %vm22_vm3, %v976_v8  ;;  %1073 = vst.msk [vmem:[#allocation2 + $0x120] sm:$0xff] %vm22_vm3, %v1008_v9  ;;  %v1872_v20 = vpack.c.bf16 %v1311_v12, %v1311_v12  ;;  %v1248_v22 = vadd.f32 %v2492_v37, %v1177_v14  ;;  %v977_v26 = vadd.f32 %v736_v18, %v156_v16 }
  0xff   :  { %v1904_v21 = vpack.c.bf16 %v1343_v13, %v1343_v13  ;;  %v1280_v23 = vadd.f32 %v2492_v37, %v1209_v15  ;;  %v1107_v24 = vld [vmem:[#allocation2 + $0x18] sm:$0xff]  ;;  %v1009_v27 = vadd.f32 %v864_v19, %v188_v17  ;;  %v738_v28 = vpop.f32.mrf.mxu0  ;;  %v866_v29 = vpop.f32.mrf.mxu1 }
 0x100   :  { %v1139_v25 = vld [vmem:[#allocation2 + $0x118] sm:$0xff]  ;;  %1632 = vst.msk [vmem:[%s2952_s4 + $0x4] sm:$0xf] %vm1630_vm4, %v1872_v20  ;;  %v1312_v30 = vmax.f32 %v1248_v22, 0.0  ;;  %v1178_v32 = vmul.f32 %v2487_v34, %v1107_v24  ;;  %v160_v20 = vld [vmem:[#allocation2 + $0x48] sm:$0xff] }
 0x101   :  { %1664 = vst.msk [vmem:[%s2952_s4 + $0x84] sm:$0xf] %vm1630_vm4, %v1904_v21  ;;  %v1344_v31 = vmax.f32 %v1280_v23, 0.0  ;;  %v1210_v33 = vmul.f32 %v2487_v34, %v1139_v25  ;;  %v741_v38 = vpop.f32.mrf.mxu0  ;;  %v869_v39 = vpop.f32.mrf.mxu1  ;;  %v192_v21 = vld [vmem:[#allocation2 + $0x148] sm:$0xff] }
 0x102   :  { %1042 = vst.msk [vmem:[#allocation2 + $0x28] sm:$0xff] %vm22_vm3, %v977_v26  ;;  %1074 = vst.msk [vmem:[#allocation2 + $0x128] sm:$0xff] %vm22_vm3, %v1009_v27  ;;  %v1873_v40 = vpack.c.bf16 %v1312_v30, %v1312_v30  ;;  %v1249_v42 = vadd.f32 %v2492_v37, %v1178_v32  ;;  %v978_v44 = vadd.f32 %v741_v38, %v157_v35  ;;  %v161_v32 = vld [vmem:[#allocation2 + $0x50] sm:$0xff] }
 0x103   :  { %v1905_v41 = vpack.c.bf16 %v1344_v31, %v1344_v31  ;;  %v1281_v43 = vadd.f32 %v2492_v37, %v1210_v33  ;;  %v1010_v45 = vadd.f32 %v869_v39, %v189_v36  ;;  %v743_v46 = vpop.f32.mrf.mxu0  ;;  %v871_v47 = vpop.f32.mrf.mxu1 }
 0x104   :  { %1633 = vst.msk [vmem:[%s2952_s4 + $0x8] sm:$0xf] %vm1630_vm4, %v1873_v40  ;;  %v1313_v50 = vmax.f32 %v1249_v42, 0.0 }
 0x105   :  { %1665 = vst.msk [vmem:[%s2952_s4 + $0x88] sm:$0xf] %vm1630_vm4, %v1905_v41  ;;  %v1345_v51 = vmax.f32 %v1281_v43, 0.0  ;;  %v1108_v52 = vld [vmem:[#allocation2 + $0x20] sm:$0xff]  ;;  %v744_v56 = vpop.f32.mrf.mxu0  ;;  %v872_v57 = vpop.f32.mrf.mxu1  ;;  %v193_v43 = vld [vmem:[#allocation2 + $0x150] sm:$0xff] }
 0x106   :  { %v1140_v53 = vld [vmem:[#allocation2 + $0x120] sm:$0xff]  ;;  %v1179_v54 = vmul.f32 %v2487_v34, %v1108_v52  ;;  %1043 = vst.msk [vmem:[#allocation2 + $0x30] sm:$0xff] %vm22_vm3, %v978_v44  ;;  %1075 = vst.msk [vmem:[#allocation2 + $0x130] sm:$0xff] %vm22_vm3, %v1010_v45  ;;  %v1874_v58 = vpack.c.bf16 %v1313_v50, %v1313_v50  ;;  %v979_v60 = vadd.f32 %v744_v56, %v158_v48 }
 0x107   :  { %v1211_v55 = vmul.f32 %v2487_v34, %v1140_v53  ;;  %v1906_v59 = vpack.c.bf16 %v1345_v51, %v1345_v51  ;;  %v1011_v61 = vadd.f32 %v872_v57, %v190_v49  ;;  %v746_v0 = vpop.f32.mrf.mxu0  ;;  %v874_v1 = vpop.f32.mrf.mxu1 }
 0x108   :  { %v1250_v62 = vadd.f32 %v2492_v37, %v1179_v54  ;;  %1634 = vst.msk [vmem:[%s2952_s4 + $0xc] sm:$0xf] %vm1630_vm4, %v1874_v58  ;;  %v162_v0 = vld [vmem:[#allocation2 + $0x58] sm:$0xff] }
 0x109   :  { %v1282_v63 = vadd.f32 %v2492_v37, %v1211_v55  ;;  %1666 = vst.msk [vmem:[%s2952_s4 + $0x8c] sm:$0xf] %vm1630_vm4, %v1906_v59  ;;  %v1109_v4 = vld [vmem:[#allocation2 + $0x28] sm:$0xff]  ;;  %v749_v10 = vpop.f32.mrf.mxu0  ;;  %v877_v11 = vpop.f32.mrf.mxu1  ;;  %v194_v1 = vld [vmem:[#allocation2 + $0x158] sm:$0xff] }
 0x10a   :  { %v1141_v5 = vld [vmem:[#allocation2 + $0x128] sm:$0xff]  ;;  %1044 = vst.msk [vmem:[#allocation2 + $0x38] sm:$0xff] %vm22_vm3, %v979_v60  ;;  %1076 = vst.msk [vmem:[#allocation2 + $0x138] sm:$0xff] %vm22_vm3, %v1011_v61  ;;  %v1314_v6 = vmax.f32 %v1250_v62, 0.0  ;;  %v1180_v8 = vmul.f32 %v2487_v34, %v1109_v4  ;;  %v980_v12 = vadd.f32 %v749_v10, %v159_v2  ;;  %v1012_v13 = vadd.f32 %v877_v11, %v191_v3 }
 0x10b   :  { %v1346_v7 = vmax.f32 %v1282_v63, 0.0  ;;  %v1212_v9 = vmul.f32 %v2487_v34, %v1141_v5  ;;  %v751_v18 = vpop.f32.mrf.mxu0  ;;  %v879_v19 = vpop.f32.mrf.mxu1 }
 0x10c   :  { %v1875_v14 = vpack.c.bf16 %v1314_v6, %v1314_v6  ;;  %v1251_v16 = vadd.f32 %v2492_v37, %v1180_v8  ;;  %1045 = vst.msk [vmem:[#allocation2 + $0x40] sm:$0xff] %vm22_vm3, %v980_v12  ;;  %1077 = vst.msk [vmem:[#allocation2 + $0x140] sm:$0xff] %vm22_vm3, %v1012_v13  ;;  %v163_v18 = vld [vmem:[#allocation2 + $0x60] sm:$0xff] }
 0x10d   :  { %v1907_v15 = vpack.c.bf16 %v1346_v7, %v1346_v7  ;;  %v1283_v17 = vadd.f32 %v2492_v37, %v1212_v9  ;;  %v1110_v22 = vld [vmem:[#allocation2 + $0x30] sm:$0xff]  ;;  %v752_v28 = vpop.f32.mrf.mxu0  ;;  %v880_v29 = vpop.f32.mrf.mxu1  ;;  %v195_v19 = vld [vmem:[#allocation2 + $0x160] sm:$0xff] }
 0x10e   :  { %v1142_v23 = vld [vmem:[#allocation2 + $0x130] sm:$0xff]  ;;  %1635 = vst.msk [vmem:[%s2952_s4 + $0x10] sm:$0xf] %vm1630_vm4, %v1875_v14  ;;  %v1315_v24 = vmax.f32 %v1251_v16, 0.0  ;;  %v1181_v26 = vmul.f32 %v2487_v34, %v1110_v22  ;;  %v981_v30 = vadd.f32 %v752_v28, %v160_v20  ;;  %v1013_v31 = vadd.f32 %v880_v29, %v192_v21 }
 0x10f   :  { %1667 = vst.msk [vmem:[%s2952_s4 + $0x90] sm:$0xf] %vm1630_vm4, %v1907_v15  ;;  %v1347_v25 = vmax.f32 %v1283_v17, 0.0  ;;  %v1213_v27 = vmul.f32 %v2487_v34, %v1142_v23  ;;  %v754_v41 = vpop.f32.mrf.mxu0  ;;  %v882_v42 = vpop.f32.mrf.mxu1 }
 0x110   :  { %v1876_v33 = vpack.c.bf16 %v1315_v24, %v1315_v24  ;;  %v1252_v36 = vadd.f32 %v2492_v37, %v1181_v26  ;;  %1046 = vst.msk [vmem:[#allocation2 + $0x48] sm:$0xff] %vm22_vm3, %v981_v30  ;;  %1078 = vst.msk [vmem:[#allocation2 + $0x148] sm:$0xff] %vm22_vm3, %v1013_v31 }
 0x111   :  { %v1908_v35 = vpack.c.bf16 %v1347_v25, %v1347_v25  ;;  %v1284_v38 = vadd.f32 %v2492_v37, %v1213_v27  ;;  %v1111_v39 = vld [vmem:[#allocation2 + $0x38] sm:$0xff]  ;;  %v757_v48 = vpop.f32.mrf.mxu0  ;;  %v885_v49 = vpop.f32.mrf.mxu1 }
 0x112   :  { %v1143_v40 = vld [vmem:[#allocation2 + $0x138] sm:$0xff]  ;;  %v1182_v44 = vmul.f32 %v2487_v34, %v1111_v39  ;;  %1636 = vst.msk [vmem:[%s2952_s4 + $0x14] sm:$0xf] %vm1630_vm4, %v1876_v33  ;;  %v1316_v46 = vmax.f32 %v1252_v36, 0.0  ;;  %v982_v52 = vadd.f32 %v757_v48, %v161_v32  ;;  %v1014_v53 = vadd.f32 %v885_v49, %v193_v43  ;;  %v196_v39 = vld [vmem:[#allocation2 + $0x168] sm:$0xff] }
 0x113   :  { %v1214_v45 = vmul.f32 %v2487_v34, %v1143_v40  ;;  %1668 = vst.msk [vmem:[%s2952_s4 + $0x94] sm:$0xf] %vm1630_vm4, %v1908_v35  ;;  %v1348_v47 = vmax.f32 %v1284_v38, 0.0  ;;  %v1112_v56 = vld [vmem:[#allocation2 + $0x40] sm:$0xff]  ;;  %v759_v58 = vpop.f32.mrf.mxu0  ;;  %v887_v59 = vpop.f32.mrf.mxu1  ;;  %v164_v38 = vld [vmem:[#allocation2 + $0x68] sm:$0xff] }
 0x114   :  { %v1253_v50 = vadd.f32 %v2492_v37, %v1182_v44  ;;  %v1877_v54 = vpack.c.bf16 %v1316_v46, %v1316_v46  ;;  %v1144_v57 = vld [vmem:[#allocation2 + $0x140] sm:$0xff]  ;;  %v1183_v62 = vmul.f32 %v2487_v34, %v1112_v56  ;;  %1047 = vst.msk [vmem:[#allocation2 + $0x50] sm:$0xff] %vm22_vm3, %v982_v52  ;;  %1079 = vst.msk [vmem:[#allocation2 + $0x150] sm:$0xff] %vm22_vm3, %v1014_v53 }
 0x115   :  { %v1285_v51 = vadd.f32 %v2492_v37, %v1214_v45  ;;  %v1909_v55 = vpack.c.bf16 %v1348_v47, %v1348_v47  ;;  %v1215_v63 = vmul.f32 %v2487_v34, %v1144_v57  ;;  %v760_v2 = vpop.f32.mrf.mxu0  ;;  %v888_v3 = vpop.f32.mrf.mxu1 }
 0x116   :  { %v1317_v60 = vmax.f32 %v1253_v50, 0.0  ;;  %1637 = vst.msk [vmem:[%s2952_s4 + $0x18] sm:$0xf] %vm1630_vm4, %v1877_v54  ;;  %v1254_v6 = vadd.f32 %v2492_v37, %v1183_v62  ;;  %v983_v10 = vadd.f32 %v760_v2, %v162_v0  ;;  %v1015_v11 = vadd.f32 %v888_v3, %v194_v1  ;;  %v165_v50 = vld [vmem:[#allocation2 + $0x70] sm:$0xff] }
 0x117   :  { %v1349_v61 = vmax.f32 %v1285_v51, 0.0  ;;  %1669 = vst.msk [vmem:[%s2952_s4 + $0x98] sm:$0xf] %vm1630_vm4, %v1909_v55  ;;  %v1286_v7 = vadd.f32 %v2492_v37, %v1215_v63  ;;  %v1113_v8 = vld [vmem:[#allocation2 + $0x48] sm:$0xff]  ;;  %v762_v12 = vpop.f32.mrf.mxu0  ;;  %v890_v13 = vpop.f32.mrf.mxu1  ;;  %v197_v51 = vld [vmem:[#allocation2 + $0x170] sm:$0xff] }
 0x118   :  { %v1878_v4 = vpack.c.bf16 %v1317_v60, %v1317_v60  ;;  %v1145_v9 = vld [vmem:[#allocation2 + $0x148] sm:$0xff]  ;;  %v1318_v14 = vmax.f32 %v1254_v6, 0.0  ;;  %v1184_v16 = vmul.f32 %v2487_v34, %v1113_v8  ;;  %1048 = vst.msk [vmem:[#allocation2 + $0x58] sm:$0xff] %vm22_vm3, %v983_v10  ;;  %1080 = vst.msk [vmem:[#allocation2 + $0x158] sm:$0xff] %vm22_vm3, %v1015_v11 }
 0x119   :  { %v1910_v5 = vpack.c.bf16 %v1349_v61, %v1349_v61  ;;  %v1350_v15 = vmax.f32 %v1286_v7, 0.0  ;;  %v1216_v17 = vmul.f32 %v2487_v34, %v1145_v9  ;;  %v765_v20 = vpop.f32.mrf.mxu0  ;;  %v893_v21 = vpop.f32.mrf.mxu1 }
 0x11a   :  { %1638 = vst.msk [vmem:[%s2952_s4 + $0x1c] sm:$0xf] %vm1630_vm4, %v1878_v4  ;;  %v1879_v22 = vpack.c.bf16 %v1318_v14, %v1318_v14  ;;  %v1255_v24 = vadd.f32 %v2492_v37, %v1184_v16  ;;  %v984_v28 = vadd.f32 %v765_v20, %v163_v18  ;;  %v1016_v29 = vadd.f32 %v893_v21, %v195_v19  ;;  %v166_v4 = vld [vmem:[#allocation2 + $0x78] sm:$0xff] }
 0x11b   :  { %1670 = vst.msk [vmem:[%s2952_s4 + $0x9c] sm:$0xf] %vm1630_vm4, %v1910_v5  ;;  %v1911_v23 = vpack.c.bf16 %v1350_v15, %v1350_v15  ;;  %v1287_v25 = vadd.f32 %v2492_v37, %v1216_v17  ;;  %v1114_v26 = vld [vmem:[#allocation2 + $0x50] sm:$0xff]  ;;  %v767_v30 = vpop.f32.mrf.mxu0  ;;  %v895_v31 = vpop.f32.mrf.mxu1  ;;  %v198_v5 = vld [vmem:[#allocation2 + $0x178] sm:$0xff] }
 0x11c   :  { %v1146_v27 = vld [vmem:[#allocation2 + $0x150] sm:$0xff]  ;;  %1639 = vst.msk [vmem:[%s2952_s4 + $0x20] sm:$0xf] %vm1630_vm4, %v1879_v22  ;;  %v1319_v32 = vmax.f32 %v1255_v24, 0.0  ;;  %v1185_v35 = vmul.f32 %v2487_v34, %v1114_v26  ;;  %v167_v22 = vld [vmem:[#allocation2 + $0x80] sm:$0xff] }
 0x11d   :  { %1671 = vst.msk [vmem:[%s2952_s4 + $0xa0] sm:$0xf] %vm1630_vm4, %v1911_v23  ;;  %v1351_v33 = vmax.f32 %v1287_v25, 0.0  ;;  %v1217_v36 = vmul.f32 %v2487_v34, %v1146_v27  ;;  %v768_v40 = vpop.f32.mrf.mxu0  ;;  %v896_v41 = vpop.f32.mrf.mxu1  ;;  %v199_v23 = vld [vmem:[#allocation2 + $0x180] sm:$0xff] }
 0x11e   :  { %1049 = vst.msk [vmem:[#allocation2 + $0x60] sm:$0xff] %vm22_vm3, %v984_v28  ;;  %1081 = vst.msk [vmem:[#allocation2 + $0x160] sm:$0xff] %vm22_vm3, %v1016_v29  ;;  %v1880_v42 = vpack.c.bf16 %v1319_v32, %v1319_v32  ;;  %v1256_v44 = vadd.f32 %v2492_v37, %v1185_v35  ;;  %v985_v46 = vadd.f32 %v768_v40, %v164_v38  ;;  %v168_v35 = vld [vmem:[#allocation2 + $0x88] sm:$0xff] }
 0x11f   :  { %v1912_v43 = vpack.c.bf16 %v1351_v33, %v1351_v33  ;;  %v1288_v45 = vadd.f32 %v2492_v37, %v1217_v36  ;;  %v1017_v47 = vadd.f32 %v896_v41, %v196_v39  ;;  %v770_v48 = vpop.f32.mrf.mxu0  ;;  %v898_v49 = vpop.f32.mrf.mxu1  ;;  %v1115_v54 = vld [vmem:[#allocation2 + $0x58] sm:$0xff] }
 0x120   :  { %1640 = vst.msk [vmem:[%s2952_s4 + $0x24] sm:$0xf] %vm1630_vm4, %v1880_v42  ;;  %v1320_v52 = vmax.f32 %v1256_v44, 0.0  ;;  %v1147_v55 = vld [vmem:[#allocation2 + $0x158] sm:$0xff]  ;;  %v1186_v56 = vmul.f32 %v2487_v34, %v1115_v54 }
 0x121   :  { %1672 = vst.msk [vmem:[%s2952_s4 + $0xa4] sm:$0xf] %vm1630_vm4, %v1912_v43  ;;  %v1352_v53 = vmax.f32 %v1288_v45, 0.0  ;;  %v1218_v57 = vmul.f32 %v2487_v34, %v1147_v55  ;;  %v773_v58 = vpop.f32.mrf.mxu0  ;;  %v901_v59 = vpop.f32.mrf.mxu1  ;;  %v200_v45 = vld [vmem:[#allocation2 + $0x188] sm:$0xff] }
 0x122   :  { %1050 = vst.msk [vmem:[#allocation2 + $0x68] sm:$0xff] %vm22_vm3, %v985_v46  ;;  %1082 = vst.msk [vmem:[#allocation2 + $0x168] sm:$0xff] %vm22_vm3, %v1017_v47  ;;  %v1881_v60 = vpack.c.bf16 %v1320_v52, %v1320_v52  ;;  %v986_v62 = vadd.f32 %v773_v58, %v165_v50  ;;  %v1018_v63 = vadd.f32 %v901_v59, %v197_v51 }
 0x123   :  { %v1913_v61 = vpack.c.bf16 %v1352_v53, %v1352_v53  ;;  %v1257_v0 = vadd.f32 %v2492_v37, %v1186_v56  ;;  %v1289_v1 = vadd.f32 %v2492_v37, %v1218_v57  ;;  %v775_v2 = vpop.f32.mrf.mxu0  ;;  %v903_v3 = vpop.f32.mrf.mxu1 }
 0x124   :  { %1641 = vst.msk [vmem:[%s2952_s4 + $0x28] sm:$0xf] %vm1630_vm4, %v1881_v60  ;;  %v169_v2 = vld [vmem:[#allocation2 + $0x90] sm:$0xff] }
 0x125   :  { %1673 = vst.msk [vmem:[%s2952_s4 + $0xa8] sm:$0xf] %vm1630_vm4, %v1913_v61  ;;  %v1116_v6 = vld [vmem:[#allocation2 + $0x60] sm:$0xff]  ;;  %v1321_v8 = vmax.f32 %v1257_v0, 0.0  ;;  %v1353_v9 = vmax.f32 %v1289_v1, 0.0  ;;  %v776_v12 = vpop.f32.mrf.mxu0  ;;  %v904_v13 = vpop.f32.mrf.mxu1  ;;  %v201_v3 = vld [vmem:[#allocation2 + $0x190] sm:$0xff] }
 0x126   :  { %v1148_v7 = vld [vmem:[#allocation2 + $0x160] sm:$0xff]  ;;  %1051 = vst.msk [vmem:[#allocation2 + $0x70] sm:$0xff] %vm22_vm3, %v986_v62  ;;  %1083 = vst.msk [vmem:[#allocation2 + $0x170] sm:$0xff] %vm22_vm3, %v1018_v63  ;;  %v1187_v10 = vmul.f32 %v2487_v34, %v1116_v6  ;;  %v987_v14 = vadd.f32 %v776_v12, %v166_v4  ;;  %v1019_v15 = vadd.f32 %v904_v13, %v198_v5 }
 0x127   :  { %v1219_v11 = vmul.f32 %v2487_v34, %v1148_v7  ;;  %v1882_v16 = vpack.c.bf16 %v1321_v8, %v1321_v8  ;;  %v1914_v17 = vpack.c.bf16 %v1353_v9, %v1353_v9  ;;  %v778_v20 = vpop.f32.mrf.mxu0  ;;  %v906_v21 = vpop.f32.mrf.mxu1 }
 0x128   :  { %v1258_v18 = vadd.f32 %v2492_v37, %v1187_v10  ;;  %1052 = vst.msk [vmem:[#allocation2 + $0x78] sm:$0xff] %vm22_vm3, %v987_v14  ;;  %1084 = vst.msk [vmem:[#allocation2 + $0x178] sm:$0xff] %vm22_vm3, %v1019_v15  ;;  %v170_v20 = vld [vmem:[#allocation2 + $0x98] sm:$0xff] }
 0x129   :  { %v1290_v19 = vadd.f32 %v2492_v37, %v1219_v11  ;;  %v1117_v24 = vld [vmem:[#allocation2 + $0x68] sm:$0xff]  ;;  %1642 = vst.msk [vmem:[%s2952_s4 + $0x2c] sm:$0xf] %vm1630_vm4, %v1882_v16  ;;  %1674 = vst.msk [vmem:[%s2952_s4 + $0xac] sm:$0xf] %vm1630_vm4, %v1914_v17  ;;  %v781_v30 = vpop.f32.mrf.mxu0  ;;  %v909_v31 = vpop.f32.mrf.mxu1  ;;  %v202_v21 = vld [vmem:[#allocation2 + $0x198] sm:$0xff] }
 0x12a   :  { %v1149_v25 = vld [vmem:[#allocation2 + $0x168] sm:$0xff]  ;;  %v1322_v26 = vmax.f32 %v1258_v18, 0.0  ;;  %v1188_v28 = vmul.f32 %v2487_v34, %v1117_v24  ;;  %v988_v32 = vadd.f32 %v781_v30, %v167_v22  ;;  %v1020_v33 = vadd.f32 %v909_v31, %v199_v23 }
 0x12b   :  { %v1354_v27 = vmax.f32 %v1290_v19, 0.0  ;;  %v1220_v29 = vmul.f32 %v2487_v34, %v1149_v25  ;;  %v783_v43 = vpop.f32.mrf.mxu0  ;;  %v911_v44 = vpop.f32.mrf.mxu1 }
 0x12c   :  { %v1883_v36 = vpack.c.bf16 %v1322_v26, %v1322_v26  ;;  %v1259_v39 = vadd.f32 %v2492_v37, %v1188_v28  ;;  %1053 = vst.msk [vmem:[#allocation2 + $0x80] sm:$0xff] %vm22_vm3, %v988_v32  ;;  %1085 = vst.msk [vmem:[#allocation2 + $0x180] sm:$0xff] %vm22_vm3, %v1020_v33 }
 0x12d   :  { %v1915_v38 = vpack.c.bf16 %v1354_v27, %v1354_v27  ;;  %v1291_v40 = vadd.f32 %v2492_v37, %v1220_v29  ;;  %v1118_v41 = vld [vmem:[#allocation2 + $0x70] sm:$0xff]  ;;  %v784_v50 = vpop.f32.mrf.mxu0  ;;  %v912_v51 = vpop.f32.mrf.mxu1 }
 0x12e   :  { %v1150_v42 = vld [vmem:[#allocation2 + $0x170] sm:$0xff]  ;;  %v1189_v46 = vmul.f32 %v2487_v34, %v1118_v41  ;;  %1643 = vst.msk [vmem:[%s2952_s4 + $0x30] sm:$0xf] %vm1630_vm4, %v1883_v36  ;;  %v1323_v48 = vmax.f32 %v1259_v39, 0.0  ;;  %v989_v54 = vadd.f32 %v784_v50, %v168_v35  ;;  %v1021_v55 = vadd.f32 %v912_v51, %v200_v45  ;;  %v203_v41 = vld [vmem:[#allocation2 + $0x1a0] sm:$0xff] }
 0x12f   :  { %v1221_v47 = vmul.f32 %v2487_v34, %v1150_v42  ;;  %1675 = vst.msk [vmem:[%s2952_s4 + $0xb0] sm:$0xf] %vm1630_vm4, %v1915_v38  ;;  %v1355_v49 = vmax.f32 %v1291_v40, 0.0  ;;  %v1119_v58 = vld [vmem:[#allocation2 + $0x78] sm:$0xff]  ;;  %v786_v60 = vpop.f32.mrf.mxu0  ;;  %v914_v61 = vpop.f32.mrf.mxu1  ;;  %v171_v40 = vld [vmem:[#allocation2 + $0xa0] sm:$0xff] }
 0x130   :  { %v1260_v52 = vadd.f32 %v2492_v37, %v1189_v46  ;;  %v1884_v56 = vpack.c.bf16 %v1323_v48, %v1323_v48  ;;  %v1151_v59 = vld [vmem:[#allocation2 + $0x178] sm:$0xff]  ;;  %v1190_v0 = vmul.f32 %v2487_v34, %v1119_v58  ;;  %1054 = vst.msk [vmem:[#allocation2 + $0x88] sm:$0xff] %vm22_vm3, %v989_v54  ;;  %1086 = vst.msk [vmem:[#allocation2 + $0x188] sm:$0xff] %vm22_vm3, %v1021_v55 }
 0x131   :  { %v1292_v53 = vadd.f32 %v2492_v37, %v1221_v47  ;;  %v1916_v57 = vpack.c.bf16 %v1355_v49, %v1355_v49  ;;  %v1222_v1 = vmul.f32 %v2487_v34, %v1151_v59  ;;  %v789_v4 = vpop.f32.mrf.mxu0  ;;  %v917_v5 = vpop.f32.mrf.mxu1 }
 0x132   :  { %v1324_v62 = vmax.f32 %v1260_v52, 0.0  ;;  %1644 = vst.msk [vmem:[%s2952_s4 + $0x34] sm:$0xf] %vm1630_vm4, %v1884_v56  ;;  %v1261_v8 = vadd.f32 %v2492_v37, %v1190_v0  ;;  %v990_v12 = vadd.f32 %v789_v4, %v169_v2  ;;  %v1022_v13 = vadd.f32 %v917_v5, %v201_v3  ;;  %v172_v52 = vld [vmem:[#allocation2 + $0xa8] sm:$0xff] }
 0x133   :  { %v1356_v63 = vmax.f32 %v1292_v53, 0.0  ;;  %1676 = vst.msk [vmem:[%s2952_s4 + $0xb4] sm:$0xf] %vm1630_vm4, %v1916_v57  ;;  %v1293_v9 = vadd.f32 %v2492_v37, %v1222_v1  ;;  %v1120_v10 = vld [vmem:[#allocation2 + $0x80] sm:$0xff]  ;;  %v791_v14 = vpop.f32.mrf.mxu0  ;;  %v919_v15 = vpop.f32.mrf.mxu1  ;;  %v204_v53 = vld [vmem:[#allocation2 + $0x1a8] sm:$0xff] }
 0x134   :  { %v1885_v6 = vpack.c.bf16 %v1324_v62, %v1324_v62  ;;  %v1152_v11 = vld [vmem:[#allocation2 + $0x180] sm:$0xff]  ;;  %v1325_v16 = vmax.f32 %v1261_v8, 0.0  ;;  %v1191_v18 = vmul.f32 %v2487_v34, %v1120_v10  ;;  %1055 = vst.msk [vmem:[#allocation2 + $0x90] sm:$0xff] %vm22_vm3, %v990_v12  ;;  %1087 = vst.msk [vmem:[#allocation2 + $0x190] sm:$0xff] %vm22_vm3, %v1022_v13 }
 0x135   :  { %v1917_v7 = vpack.c.bf16 %v1356_v63, %v1356_v63  ;;  %v1357_v17 = vmax.f32 %v1293_v9, 0.0  ;;  %v1223_v19 = vmul.f32 %v2487_v34, %v1152_v11  ;;  %v792_v22 = vpop.f32.mrf.mxu0  ;;  %v920_v23 = vpop.f32.mrf.mxu1 }
 0x136   :  { %1645 = vst.msk [vmem:[%s2952_s4 + $0x38] sm:$0xf] %vm1630_vm4, %v1885_v6  ;;  %v1886_v24 = vpack.c.bf16 %v1325_v16, %v1325_v16  ;;  %v1262_v26 = vadd.f32 %v2492_v37, %v1191_v18  ;;  %v991_v30 = vadd.f32 %v792_v22, %v170_v20  ;;  %v1023_v31 = vadd.f32 %v920_v23, %v202_v21  ;;  %v173_v6 = vld [vmem:[#allocation2 + $0xb0] sm:$0xff] }
 0x137   :  { %1677 = vst.msk [vmem:[%s2952_s4 + $0xb8] sm:$0xf] %vm1630_vm4, %v1917_v7  ;;  %v1918_v25 = vpack.c.bf16 %v1357_v17, %v1357_v17  ;;  %v1294_v27 = vadd.f32 %v2492_v37, %v1223_v19  ;;  %v1121_v28 = vld [vmem:[#allocation2 + $0x88] sm:$0xff]  ;;  %v794_v32 = vpop.f32.mrf.mxu0  ;;  %v922_v33 = vpop.f32.mrf.mxu1  ;;  %v205_v7 = vld [vmem:[#allocation2 + $0x1b0] sm:$0xff] }
 0x138   :  { %v1153_v29 = vld [vmem:[#allocation2 + $0x188] sm:$0xff]  ;;  %1646 = vst.msk [vmem:[%s2952_s4 + $0x3c] sm:$0xf] %vm1630_vm4, %v1886_v24  ;;  %v1326_v35 = vmax.f32 %v1262_v26, 0.0  ;;  %v1192_v38 = vmul.f32 %v2487_v34, %v1121_v28  ;;  %v174_v24 = vld [vmem:[#allocation2 + $0xb8] sm:$0xff] }
 0x139   :  { %1678 = vst.msk [vmem:[%s2952_s4 + $0xbc] sm:$0xf] %vm1630_vm4, %v1918_v25  ;;  %v1358_v36 = vmax.f32 %v1294_v27, 0.0  ;;  %v1224_v39 = vmul.f32 %v2487_v34, %v1153_v29  ;;  %v797_v42 = vpop.f32.mrf.mxu0  ;;  %v925_v43 = vpop.f32.mrf.mxu1  ;;  %v206_v25 = vld [vmem:[#allocation2 + $0x1b8] sm:$0xff] }
 0x13a   :  { %1056 = vst.msk [vmem:[#allocation2 + $0x98] sm:$0xff] %vm22_vm3, %v991_v30  ;;  %1088 = vst.msk [vmem:[#allocation2 + $0x198] sm:$0xff] %vm22_vm3, %v1023_v31  ;;  %v1887_v44 = vpack.c.bf16 %v1326_v35, %v1326_v35  ;;  %v1263_v46 = vadd.f32 %v2492_v37, %v1192_v38  ;;  %v992_v48 = vadd.f32 %v797_v42, %v171_v40  ;;  %v175_v38 = vld [vmem:[#allocation2 + $0xc0] sm:$0xff] }
 0x13b   :  { %v1919_v45 = vpack.c.bf16 %v1358_v36, %v1358_v36  ;;  %v1295_v47 = vadd.f32 %v2492_v37, %v1224_v39  ;;  %v1024_v49 = vadd.f32 %v925_v43, %v203_v41  ;;  %v799_v50 = vpop.f32.mrf.mxu0  ;;  %v927_v51 = vpop.f32.mrf.mxu1  ;;  %v1122_v56 = vld [vmem:[#allocation2 + $0x90] sm:$0xff] }
 0x13c   :  { %1647 = vst.msk [vmem:[%s2952_s4 + $0x40] sm:$0xf] %vm1630_vm4, %v1887_v44  ;;  %v1327_v54 = vmax.f32 %v1263_v46, 0.0  ;;  %v1154_v57 = vld [vmem:[#allocation2 + $0x190] sm:$0xff]  ;;  %v1193_v58 = vmul.f32 %v2487_v34, %v1122_v56 }
 0x13d   :  { %1679 = vst.msk [vmem:[%s2952_s4 + $0xc0] sm:$0xf] %vm1630_vm4, %v1919_v45  ;;  %v1359_v55 = vmax.f32 %v1295_v47, 0.0  ;;  %v1225_v59 = vmul.f32 %v2487_v34, %v1154_v57  ;;  %v800_v60 = vpop.f32.mrf.mxu0  ;;  %v928_v61 = vpop.f32.mrf.mxu1  ;;  %v207_v47 = vld [vmem:[#allocation2 + $0x1c0] sm:$0xff] }
 0x13e   :  { %1057 = vst.msk [vmem:[#allocation2 + $0xa0] sm:$0xff] %vm22_vm3, %v992_v48  ;;  %1089 = vst.msk [vmem:[#allocation2 + $0x1a0] sm:$0xff] %vm22_vm3, %v1024_v49  ;;  %v1888_v62 = vpack.c.bf16 %v1327_v54, %v1327_v54  ;;  %v993_v0 = vadd.f32 %v800_v60, %v172_v52  ;;  %v1025_v1 = vadd.f32 %v928_v61, %v204_v53 }
 0x13f   :  { %v1920_v63 = vpack.c.bf16 %v1359_v55, %v1359_v55  ;;  %v1264_v2 = vadd.f32 %v2492_v37, %v1193_v58  ;;  %v1296_v3 = vadd.f32 %v2492_v37, %v1225_v59  ;;  %v802_v4 = vpop.f32.mrf.mxu0  ;;  %v930_v5 = vpop.f32.mrf.mxu1 }
 0x140   :  { %1648 = vst.msk [vmem:[%s2952_s4 + $0x44] sm:$0xf] %vm1630_vm4, %v1888_v62  ;;  %v176_v4 = vld [vmem:[#allocation2 + $0xc8] sm:$0xff] }
 0x141   :  { %1680 = vst.msk [vmem:[%s2952_s4 + $0xc4] sm:$0xf] %vm1630_vm4, %v1920_v63  ;;  %v1123_v8 = vld [vmem:[#allocation2 + $0x98] sm:$0xff]  ;;  %v1328_v10 = vmax.f32 %v1264_v2, 0.0  ;;  %v1360_v11 = vmax.f32 %v1296_v3, 0.0  ;;  %v805_v14 = vpop.f32.mrf.mxu0  ;;  %v933_v15 = vpop.f32.mrf.mxu1  ;;  %v208_v5 = vld [vmem:[#allocation2 + $0x1c8] sm:$0xff] }
 0x142   :  { %v1155_v9 = vld [vmem:[#allocation2 + $0x198] sm:$0xff]  ;;  %1058 = vst.msk [vmem:[#allocation2 + $0xa8] sm:$0xff] %vm22_vm3, %v993_v0  ;;  %1090 = vst.msk [vmem:[#allocation2 + $0x1a8] sm:$0xff] %vm22_vm3, %v1025_v1  ;;  %v1194_v12 = vmul.f32 %v2487_v34, %v1123_v8  ;;  %v994_v16 = vadd.f32 %v805_v14, %v173_v6  ;;  %v1026_v17 = vadd.f32 %v933_v15, %v205_v7 }
 0x143   :  { %v1226_v13 = vmul.f32 %v2487_v34, %v1155_v9  ;;  %v1889_v18 = vpack.c.bf16 %v1328_v10, %v1328_v10  ;;  %v1921_v19 = vpack.c.bf16 %v1360_v11, %v1360_v11  ;;  %v807_v22 = vpop.f32.mrf.mxu0  ;;  %v935_v23 = vpop.f32.mrf.mxu1 }
 0x144   :  { %v1265_v20 = vadd.f32 %v2492_v37, %v1194_v12  ;;  %1059 = vst.msk [vmem:[#allocation2 + $0xb0] sm:$0xff] %vm22_vm3, %v994_v16  ;;  %1091 = vst.msk [vmem:[#allocation2 + $0x1b0] sm:$0xff] %vm22_vm3, %v1026_v17  ;;  %v209_v22 = vld [vmem:[#allocation2 + $0x1d0] sm:$0xff] }
 0x145   :  { %v1297_v21 = vadd.f32 %v2492_v37, %v1226_v13  ;;  %v1124_v26 = vld [vmem:[#allocation2 + $0xa0] sm:$0xff]  ;;  %1649 = vst.msk [vmem:[%s2952_s4 + $0x48] sm:$0xf] %vm1630_vm4, %v1889_v18  ;;  %1681 = vst.msk [vmem:[%s2952_s4 + $0xc8] sm:$0xf] %vm1630_vm4, %v1921_v19  ;;  %v808_v32 = vpop.f32.mrf.mxu0  ;;  %v936_v33 = vpop.f32.mrf.mxu1 }
 0x146   :  { %v1156_v27 = vld [vmem:[#allocation2 + $0x1a0] sm:$0xff]  ;;  %v1329_v28 = vmax.f32 %v1265_v20, 0.0  ;;  %v1195_v30 = vmul.f32 %v2487_v34, %v1124_v26  ;;  %v995_v35 = vadd.f32 %v808_v32, %v174_v24  ;;  %v1027_v36 = vadd.f32 %v936_v33, %v206_v25 }
 0x147   :  { %v1361_v29 = vmax.f32 %v1297_v21, 0.0  ;;  %v1227_v31 = vmul.f32 %v2487_v34, %v1156_v27  ;;  %v810_v45 = vpop.f32.mrf.mxu0  ;;  %v938_v46 = vpop.f32.mrf.mxu1  ;;  %v177_v21 = vld [vmem:[#allocation2 + $0xd0] sm:$0xff]  ;;  %v2820_v27 = vld [vmem:[%s2951_s3] ss:$0 sm:$0xff] }
 0x148   :  { %v1890_v39 = vpack.c.bf16 %v1329_v28, %v1329_v28  ;;  %v1266_v41 = vadd.f32 %v2492_v37, %v1195_v30  ;;  %1060 = vst.msk [vmem:[#allocation2 + $0xb8] sm:$0xff] %vm22_vm3, %v995_v35  ;;  %1092 = vst.msk [vmem:[#allocation2 + $0x1b8] sm:$0xff] %vm22_vm3, %v1027_v36 }
 0x149   :  { %v1922_v40 = vpack.c.bf16 %v1361_v29, %v1361_v29  ;;  %v1298_v42 = vadd.f32 %v2492_v37, %v1227_v31  ;;  %v1125_v43 = vld [vmem:[#allocation2 + $0xa8] sm:$0xff]  ;;  %v813_v52 = vpop.f32.mrf.mxu0  ;;  %v941_v53 = vpop.f32.mrf.mxu1 }
 0x14a   :  { %v1157_v44 = vld [vmem:[#allocation2 + $0x1a8] sm:$0xff]  ;;  %v1196_v48 = vmul.f32 %v2487_v34, %v1125_v43  ;;  %1650 = vst.msk [vmem:[%s2952_s4 + $0x4c] sm:$0xf] %vm1630_vm4, %v1890_v39  ;;  %v1330_v50 = vmax.f32 %v1266_v41, 0.0  ;;  %v996_v56 = vadd.f32 %v813_v52, %v175_v38  ;;  %v1028_v57 = vadd.f32 %v941_v53, %v207_v47  ;;  %v210_v43 = vld [vmem:[#allocation2 + $0x1d8] sm:$0xff] }
 0x14b   :  { %v1228_v49 = vmul.f32 %v2487_v34, %v1157_v44  ;;  %1682 = vst.msk [vmem:[%s2952_s4 + $0xcc] sm:$0xf] %vm1630_vm4, %v1922_v40  ;;  %v1362_v51 = vmax.f32 %v1298_v42, 0.0  ;;  %v1126_v60 = vld [vmem:[#allocation2 + $0xb0] sm:$0xff]  ;;  %v815_v62 = vpop.f32.mrf.mxu0  ;;  %v943_v63 = vpop.f32.mrf.mxu1  ;;  %v178_v42 = vld [vmem:[#allocation2 + $0xd8] sm:$0xff] }
 0x14c   :  { %v1267_v54 = vadd.f32 %v2492_v37, %v1196_v48  ;;  %v1891_v58 = vpack.c.bf16 %v1330_v50, %v1330_v50  ;;  %v1158_v61 = vld [vmem:[#allocation2 + $0x1b0] sm:$0xff]  ;;  %v1197_v2 = vmul.f32 %v2487_v34, %v1126_v60  ;;  %1061 = vst.msk [vmem:[#allocation2 + $0xc0] sm:$0xff] %vm22_vm3, %v996_v56  ;;  %1093 = vst.msk [vmem:[#allocation2 + $0x1c0] sm:$0xff] %vm22_vm3, %v1028_v57 }
 0x14d   :  { %v1299_v55 = vadd.f32 %v2492_v37, %v1228_v49  ;;  %v1923_v59 = vpack.c.bf16 %v1362_v51, %v1362_v51  ;;  %v1229_v3 = vmul.f32 %v2487_v34, %v1158_v61  ;;  %v816_v6 = vpop.f32.mrf.mxu0  ;;  %v944_v7 = vpop.f32.mrf.mxu1 }
 0x14e   :  { %v1331_v0 = vmax.f32 %v1267_v54, 0.0  ;;  %1651 = vst.msk [vmem:[%s2952_s4 + $0x50] sm:$0xf] %vm1630_vm4, %v1891_v58  ;;  %v1268_v9 = vadd.f32 %v2492_v37, %v1197_v2  ;;  %v997_v13 = vadd.f32 %v816_v6, %v176_v4  ;;  %v1029_v14 = vadd.f32 %v944_v7, %v208_v5  ;;  %v179_v54 = vld [vmem:[#allocation2 + $0xe0] sm:$0xff] }
 0x14f   :  { %v1363_v1 = vmax.f32 %v1299_v55, 0.0  ;;  %1683 = vst.msk [vmem:[%s2952_s4 + $0xd0] sm:$0xf] %vm1630_vm4, %v1923_v59  ;;  %v1300_v10 = vadd.f32 %v2492_v37, %v1229_v3  ;;  %v1127_v11 = vld [vmem:[#allocation2 + $0xb8] sm:$0xff]  ;;  %v818_v15 = vpop.f32.mrf.mxu0  ;;  %v946_v16 = vpop.f32.mrf.mxu1  ;;  %v2811_v37 = vld [vmem:[%s2950_s2] ss:$0 sm:$0xff] }
 0x150   :  { %v1892_v8 = vpack.c.bf16 %v1331_v0, %v1331_v0  ;;  %v1159_v12 = vld [vmem:[#allocation2 + $0x1b8] sm:$0xff]  ;;  %v1332_v17 = vmax.f32 %v1268_v9, 0.0  ;;  %v1198_v19 = vmul.f32 %v2811_v37, %v1127_v11  ;;  %1062 = vst.msk [vmem:[#allocation2 + $0xc8] sm:$0xff] %vm22_vm3, %v997_v13  ;;  %1094 = vst.msk [vmem:[#allocation2 + $0x1c8] sm:$0xff] %vm22_vm3, %v1029_v14  ;;  %v211_v55 = vld [vmem:[#allocation2 + $0x1e0] sm:$0xff] }
 0x151   :  { %v1924_v34 = vpack.c.bf16 %v1363_v1, %v1363_v1  ;;  %v1364_v18 = vmax.f32 %v1300_v10, 0.0  ;;  %v1230_v20 = vmul.f32 %v2811_v37, %v1159_v12  ;;  %v821_v23 = vpop.f32.mrf.mxu0  ;;  %v949_v24 = vpop.f32.mrf.mxu1 }
 0x152   :  { %1652 = vst.msk [vmem:[%s2952_s4 + $0x54] sm:$0xf] %vm1630_vm4, %v1892_v8  ;;  %v1893_v25 = vpack.c.bf16 %v1332_v17, %v1332_v17  ;;  %v1269_v28 = vadd.f32 %v2820_v27, %v1198_v19  ;;  %v998_v32 = vadd.f32 %v821_v23, %v177_v21  ;;  %v1030_v33 = vadd.f32 %v949_v24, %v209_v22  ;;  %v180_v8 = vld [vmem:[#allocation2 + $0xe8] sm:$0xff] }
 0x153   :  { %1684 = vst.msk [vmem:[%s2952_s4 + $0xd4] sm:$0xf] %vm1630_vm4, %v1924_v34  ;;  %v1925_v26 = vpack.c.bf16 %v1364_v18, %v1364_v18  ;;  %v1301_v29 = vadd.f32 %v2820_v27, %v1230_v20  ;;  %v1128_v30 = vld [vmem:[#allocation2 + $0xc0] sm:$0xff]  ;;  %v823_v35 = vpop.f32.mrf.mxu0  ;;  %v951_v36 = vpop.f32.mrf.mxu1  ;;  %v212_v34 = vld [vmem:[#allocation2 + $0x1e8] sm:$0xff] }
 0x154   :  { %v1160_v31 = vld [vmem:[#allocation2 + $0x1c0] sm:$0xff]  ;;  %1653 = vst.msk [vmem:[%s2952_s4 + $0x58] sm:$0xf] %vm1630_vm4, %v1893_v25  ;;  %v1333_v38 = vmax.f32 %v1269_v28, 0.0  ;;  %v1199_v40 = vmul.f32 %v2811_v37, %v1128_v30  ;;  %v181_v25 = vld [vmem:[#allocation2 + $0xf0] sm:$0xff] }
 0x155   :  { %1685 = vst.msk [vmem:[%s2952_s4 + $0xd8] sm:$0xf] %vm1630_vm4, %v1925_v26  ;;  %v1365_v39 = vmax.f32 %v1301_v29, 0.0  ;;  %v1231_v41 = vmul.f32 %v2811_v37, %v1160_v31  ;;  %v824_v44 = vpop.f32.mrf.mxu0  ;;  %v952_v45 = vpop.f32.mrf.mxu1  ;;  %v213_v26 = vld [vmem:[#allocation2 + $0x1f0] sm:$0xff] }
 0x156   :  { %1063 = vst.msk [vmem:[#allocation2 + $0xd0] sm:$0xff] %vm22_vm3, %v998_v32  ;;  %1095 = vst.msk [vmem:[#allocation2 + $0x1d0] sm:$0xff] %vm22_vm3, %v1030_v33  ;;  %v1894_v46 = vpack.c.bf16 %v1333_v38, %v1333_v38  ;;  %v1270_v48 = vadd.f32 %v2820_v27, %v1199_v40  ;;  %v999_v50 = vadd.f32 %v824_v44, %v178_v42  ;;  %v182_v40 = vld [vmem:[#allocation2 + $0xf8] sm:$0xff] }
 0x157   :  { %v1926_v47 = vpack.c.bf16 %v1365_v39, %v1365_v39  ;;  %v1302_v49 = vadd.f32 %v2820_v27, %v1231_v41  ;;  %v1031_v51 = vadd.f32 %v952_v45, %v210_v43  ;;  %v826_v52 = vpop.f32.mrf.mxu0  ;;  %v954_v53 = vpop.f32.mrf.mxu1  ;;  %v1129_v58 = vld [vmem:[#allocation2 + $0xc8] sm:$0xff] }
 0x158   :  { %1654 = vst.msk [vmem:[%s2952_s4 + $0x5c] sm:$0xf] %vm1630_vm4, %v1894_v46  ;;  %v1334_v56 = vmax.f32 %v1270_v48, 0.0  ;;  %v1161_v59 = vld [vmem:[#allocation2 + $0x1c8] sm:$0xff]  ;;  %v1200_v60 = vmul.f32 %v2811_v37, %v1129_v58 }
 0x159   :  { %1686 = vst.msk [vmem:[%s2952_s4 + $0xdc] sm:$0xf] %vm1630_vm4, %v1926_v47  ;;  %v1366_v57 = vmax.f32 %v1302_v49, 0.0  ;;  %v1232_v61 = vmul.f32 %v2811_v37, %v1161_v59  ;;  %v829_v62 = vpop.f32.mrf.mxu0  ;;  %v957_v63 = vpop.f32.mrf.mxu1  ;;  %v214_v49 = vld [vmem:[#allocation2 + $0x1f8] sm:$0xff] }
 0x15a   :  { %1064 = vst.msk [vmem:[#allocation2 + $0xd8] sm:$0xff] %vm22_vm3, %v999_v50  ;;  %1096 = vst.msk [vmem:[#allocation2 + $0x1d8] sm:$0xff] %vm22_vm3, %v1031_v51  ;;  %v1895_v0 = vpack.c.bf16 %v1334_v56, %v1334_v56  ;;  %v1000_v2 = vadd.f32 %v829_v62, %v179_v54  ;;  %v1032_v3 = vadd.f32 %v957_v63, %v211_v55 }
 0x15b   :  { %v1927_v1 = vpack.c.bf16 %v1366_v57, %v1366_v57  ;;  %v1271_v4 = vadd.f32 %v2820_v27, %v1200_v60  ;;  %v1303_v5 = vadd.f32 %v2820_v27, %v1232_v61  ;;  %v831_v6 = vpop.f32.mrf.mxu0  ;;  %v959_v7 = vpop.f32.mrf.mxu1 }
 0x15c   :  { %1655 = vst.msk [vmem:[%s2952_s4 + $0x60] sm:$0xf] %vm1630_vm4, %v1895_v0 }
 0x15d   :  { %1687 = vst.msk [vmem:[%s2952_s4 + $0xe0] sm:$0xf] %vm1630_vm4, %v1927_v1  ;;  %v1130_v9 = vld [vmem:[#allocation2 + $0xd0] sm:$0xff]  ;;  %v1335_v11 = vmax.f32 %v1271_v4, 0.0  ;;  %v1367_v12 = vmax.f32 %v1303_v5, 0.0  ;;  %v832_v15 = vpop.f32.mrf.mxu0  ;;  %v960_v16 = vpop.f32.mrf.mxu1 }
 0x15e   :  { %v1162_v10 = vld [vmem:[#allocation2 + $0x1d0] sm:$0xff]  ;;  %1065 = vst.msk [vmem:[#allocation2 + $0xe0] sm:$0xff] %vm22_vm3, %v1000_v2  ;;  %1097 = vst.msk [vmem:[#allocation2 + $0x1e0] sm:$0xff] %vm22_vm3, %v1032_v3  ;;  %v1201_v13 = vmul.f32 %v2811_v37, %v1130_v9  ;;  %v1001_v17 = vadd.f32 %v832_v15, %v180_v8  ;;  %v1033_v18 = vadd.f32 %v960_v16, %v212_v34 }
 0x15f   :  { %v1233_v14 = vmul.f32 %v2811_v37, %v1162_v10  ;;  %v1896_v19 = vpack.c.bf16 %v1335_v11, %v1335_v11  ;;  %v1928_v20 = vpack.c.bf16 %v1367_v12, %v1367_v12  ;;  %v834_v23 = vpop.f32.mrf.mxu0  ;;  %v962_v24 = vpop.f32.mrf.mxu1 }
 0x160   :  { %v1272_v21 = vadd.f32 %v2820_v27, %v1201_v13  ;;  %1066 = vst.msk [vmem:[#allocation2 + $0xe8] sm:$0xff] %vm22_vm3, %v1001_v17  ;;  %1098 = vst.msk [vmem:[#allocation2 + $0x1e8] sm:$0xff] %vm22_vm3, %v1033_v18 }
 0x161   :  { %v1304_v22 = vadd.f32 %v2820_v27, %v1233_v14  ;;  %v1131_v28 = vld [vmem:[#allocation2 + $0xd8] sm:$0xff]  ;;  %1656 = vst.msk [vmem:[%s2952_s4 + $0x64] sm:$0xf] %vm1630_vm4, %v1896_v19  ;;  %1688 = vst.msk [vmem:[%s2952_s4 + $0xe4] sm:$0xf] %vm1630_vm4, %v1928_v20  ;;  %v837_v35 = vpop.f32.mrf.mxu0  ;;  %v965_v36 = vpop.f32.mrf.mxu1 }
 0x162   :  { %v1163_v29 = vld [vmem:[#allocation2 + $0x1d8] sm:$0xff]  ;;  %v1336_v30 = vmax.f32 %v1272_v21, 0.0  ;;  %v1202_v32 = vmul.f32 %v2811_v37, %v1131_v28  ;;  %v1002_v38 = vadd.f32 %v837_v35, %v181_v25  ;;  %v1034_v39 = vadd.f32 %v965_v36, %v213_v26 }
 0x163   :  { %v1368_v31 = vmax.f32 %v1304_v22, 0.0  ;;  %v1234_v33 = vmul.f32 %v2811_v37, %v1163_v29  ;;  %v839_v47 = vpop.f32.mrf.mxu0  ;;  %v967_v48 = vpop.f32.mrf.mxu1 }
 0x164   :  { %v1897_v41 = vpack.c.bf16 %v1336_v30, %v1336_v30  ;;  %v1273_v43 = vadd.f32 %v2820_v27, %v1202_v32  ;;  %1067 = vst.msk [vmem:[#allocation2 + $0xf0] sm:$0xff] %vm22_vm3, %v1002_v38  ;;  %1099 = vst.msk [vmem:[#allocation2 + $0x1f0] sm:$0xff] %vm22_vm3, %v1034_v39 }
 0x165   :  { %v1929_v42 = vpack.c.bf16 %v1368_v31, %v1368_v31  ;;  %v1305_v44 = vadd.f32 %v2820_v27, %v1234_v33  ;;  %v1132_v45 = vld [vmem:[#allocation2 + $0xe0] sm:$0xff]  ;;  %v840_v54 = vpop.f32.mrf.mxu0  ;;  %v968_v55 = vpop.f32.mrf.mxu1 }
 0x166   :  { %v1164_v46 = vld [vmem:[#allocation2 + $0x1e0] sm:$0xff]  ;;  %v1203_v50 = vmul.f32 %v2811_v37, %v1132_v45  ;;  %1657 = vst.msk [vmem:[%s2952_s4 + $0x68] sm:$0xf] %vm1630_vm4, %v1897_v41  ;;  %v1337_v52 = vmax.f32 %v1273_v43, 0.0  ;;  %v1003_v58 = vadd.f32 %v840_v54, %v182_v40  ;;  %v1035_v59 = vadd.f32 %v968_v55, %v214_v49 }
 0x167   :  { %v1235_v51 = vmul.f32 %v2811_v37, %v1164_v46  ;;  %1689 = vst.msk [vmem:[%s2952_s4 + $0xe8] sm:$0xf] %vm1630_vm4, %v1929_v42  ;;  %v1369_v53 = vmax.f32 %v1305_v44, 0.0  ;;  %v1133_v62 = vld [vmem:[#allocation2 + $0xe8] sm:$0xff]  ;;  %v842_v0 = vpop.f32.mrf.mxu0  ;;  %v970_v1 = vpop.f32.mrf.mxu1 }
 0x168   :  { %v1274_v56 = vadd.f32 %v2820_v27, %v1203_v50  ;;  %v1898_v60 = vpack.c.bf16 %v1337_v52, %v1337_v52  ;;  %v1165_v63 = vld [vmem:[#allocation2 + $0x1e8] sm:$0xff]  ;;  %v1204_v4 = vmul.f32 %v2811_v37, %v1133_v62  ;;  %1068 = vst.msk [vmem:[#allocation2 + $0xf8] sm:$0xff] %vm22_vm3, %v1003_v58  ;;  %1100 = vst.msk [vmem:[#allocation2 + $0x1f8] sm:$0xff] %vm22_vm3, %v1035_v59 }
 0x169   :  { %v1306_v57 = vadd.f32 %v2820_v27, %v1235_v51  ;;  %v1930_v61 = vpack.c.bf16 %v1369_v53, %v1369_v53  ;;  %v1236_v5 = vmul.f32 %v2811_v37, %v1165_v63 }
 0x16a   :  { %v1338_v2 = vmax.f32 %v1274_v56, 0.0  ;;  %1658 = vst.msk [vmem:[%s2952_s4 + $0x6c] sm:$0xf] %vm1630_vm4, %v1898_v60  ;;  %v1275_v8 = vadd.f32 %v2820_v27, %v1204_v4 }
 0x16b   :  { %v1370_v3 = vmax.f32 %v1306_v57, 0.0  ;;  %1690 = vst.msk [vmem:[%s2952_s4 + $0xec] sm:$0xf] %vm1630_vm4, %v1930_v61  ;;  %v1307_v34 = vadd.f32 %v2820_v27, %v1236_v5  ;;  %v1134_v9 = vld [vmem:[#allocation2 + $0xf0] sm:$0xff] }
 0x16c   :  { %v1899_v6 = vpack.c.bf16 %v1338_v2, %v1338_v2  ;;  %v1166_v10 = vld [vmem:[#allocation2 + $0x1f0] sm:$0xff]  ;;  %v1339_v11 = vmax.f32 %v1275_v8, 0.0  ;;  %v1205_v13 = vmul.f32 %v2811_v37, %v1134_v9 }
 0x16d   :  { %v1931_v7 = vpack.c.bf16 %v1370_v3, %v1370_v3  ;;  %v1371_v12 = vmax.f32 %v1307_v34, 0.0  ;;  %v1237_v14 = vmul.f32 %v2811_v37, %v1166_v10 }
 0x16e   :  { %1659 = vst.msk [vmem:[%s2952_s4 + $0x70] sm:$0xf] %vm1630_vm4, %v1899_v6  ;;  %v1900_v15 = vpack.c.bf16 %v1339_v11, %v1339_v11  ;;  %v1276_v17 = vadd.f32 %v2820_v27, %v1205_v13 }
 0x16f   :  { %1691 = vst.msk [vmem:[%s2952_s4 + $0xf0] sm:$0xf] %vm1630_vm4, %v1931_v7  ;;  %v1932_v16 = vpack.c.bf16 %v1371_v12, %v1371_v12  ;;  %v1308_v18 = vadd.f32 %v2820_v27, %v1237_v14  ;;  %v1135_v19 = vld [vmem:[#allocation2 + $0xf8] sm:$0xff] }
 0x170   :  { %v1167_v20 = vld [vmem:[#allocation2 + $0x1f8] sm:$0xff]  ;;  %1660 = vst.msk [vmem:[%s2952_s4 + $0x74] sm:$0xf] %vm1630_vm4, %v1900_v15  ;;  %v1340_v21 = vmax.f32 %v1276_v17, 0.0  ;;  %v1206_v23 = vmul.f32 %v2811_v37, %v1135_v19 }
 0x171   :  { %1692 = vst.msk [vmem:[%s2952_s4 + $0xf4] sm:$0xf] %vm1630_vm4, %v1932_v16  ;;  %v1372_v22 = vmax.f32 %v1308_v18, 0.0  ;;  %v1238_v24 = vmul.f32 %v2811_v37, %v1167_v20 }
 0x172   :  { %v1901_v25 = vpack.c.bf16 %v1340_v21, %v1340_v21  ;;  %v1277_v28 = vadd.f32 %v2820_v27, %v1206_v23 }
 0x173   :  { %v1933_v26 = vpack.c.bf16 %v1372_v22, %v1372_v22  ;;  %v1309_v29 = vadd.f32 %v2820_v27, %v1238_v24 }
 0x174   :  { %1661 = vst.msk [vmem:[%s2952_s4 + $0x78] sm:$0xf] %vm1630_vm4, %v1901_v25  ;;  %v1341_v30 = vmax.f32 %v1277_v28, 0.0 }
 0x175   :  { %1693 = vst.msk [vmem:[%s2952_s4 + $0xf8] sm:$0xf] %vm1630_vm4, %v1933_v26  ;;  %v1373_v31 = vmax.f32 %v1309_v29, 0.0 }
 0x176   :  { %v1902_v32 = vpack.c.bf16 %v1341_v30, %v1341_v30 }
 0x177   :  { %v1934_v37 = vpack.c.bf16 %v1373_v31, %v1373_v31 }
 0x178   :  { %1662 = vst.msk [vmem:[%s2952_s4 + $0x7c] sm:$0xf] %vm1630_vm4, %v1902_v32 }
 0x179   :  { %1694 = vst.msk [vmem:[%s2952_s4 + $0xfc] sm:$0xf] %vm1630_vm4, %v1934_v37 }

// kernel: densenet_forward.31
= control target key start
LH: loop header
LB: loop body
LE: loop exit
PB: predicated region body
PF: predicated region fallthrough
CT: control target
= control target key end

     0   :  { %vm345_vm0 = vcmask 261120   ;;  %vm16_vm1 = vcmask 64512   ;;  %v944_v42 = vmov 0.0   ;;  %vm680_vm2 = vcmask 60416   ;;  %s1214_s1 = inlined_call_operand.vmem [shape: bf16[288,8], index: 1, kind: input, shape index: {}]   ;;  %s1215_s0 = inlined_call_operand.vmem [shape: bf16[128,288], index: 0, kind: input, shape index: {}]   ;;  %s1216_s2 = inlined_call_operand.vmem [shape: bf16[128,8], index: 2, kind: output, shape index: {}]  }
   0x1   :  { %v894_v0 = vld [vmem:[%s1214_s1 + $0x78] sm:$0xff]   ;;  %v896_v2 = vld [vmem:[%s1214_s1 + $0x70] sm:$0xff]   ;;  %v898_v4 = vld [vmem:[%s1214_s1 + $0x68] sm:$0xff]   ;;  %19 = vst.msk [vmem:[#allocation2 + $0x10] sm:$0xff] %vm16_vm1, %v944_v42 }
   0x2   :  { %v895_v1 = vld [vmem:[%s1214_s1 + $0x38] sm:$0xff]   ;;  %783 = vmatprep.subr.bf16.mxu0 %v894_v0  ;;  %877 = vmatprep.subr.bf16.mxu1 %v894_v0  ;;  %v897_v3 = vld [vmem:[%s1214_s1 + $0x30] sm:$0xff]   ;;  %v899_v5 = vld [vmem:[%s1214_s1 + $0x28] sm:$0xff]   ;;  %17 = vst.msk [vmem:[#allocation2] sm:$0xff] %vm16_vm1, %v944_v42 }
   0x3   :  { %784 = vmatpush3.bf16.msra.mxu0 %v895_v1  ;;  %885 = vmatpush3.bf16.msra.mxu1 %v895_v1  ;;  %v900_v6 = vld [vmem:[%s1214_s1 + $0x60] sm:$0xff]   ;;  %v902_v8 = vld [vmem:[%s1214_s1 + $0x58] sm:$0xff]   ;;  %v904_v10 = vld [vmem:[%s1214_s1 + $0x50] sm:$0xff]   ;;  %18 = vst.msk [vmem:[#allocation2 + $0x8] sm:$0xff] %vm16_vm1, %v944_v42 }
   0x4   :  { %785 = vmatprep.subr.bf16.mxu0 %v896_v2  ;;  %878 = vmatprep.subr.bf16.mxu1 %v896_v2  ;;  %v901_v7 = vld [vmem:[%s1214_s1 + $0x20] sm:$0xff]   ;;  %v903_v9 = vld [vmem:[%s1214_s1 + $0x18] sm:$0xff]   ;;  %v905_v13 = vld [vmem:[%s1214_s1 + $0x10] sm:$0xff]   ;;  %20 = vst.msk [vmem:[#allocation2 + $0x18] sm:$0xff] %vm16_vm1, %v944_v42 }
   0x5   :  { %v912_v11 = vld [vmem:[%s1215_s0 + $0x4] ss:$12 sps:$4 sm:$0xff]   ;;  %v915_v12 = vld [vmem:[%s1215_s0 + $0x94] ss:$12 sps:$4 sm:$0xff]   ;;  %v906_v14 = vld [vmem:[%s1214_s1 + $0x48] sm:$0xff]   ;;  %21 = vst.msk [vmem:[#allocation2 + $0x20] sm:$0xff] %vm16_vm1, %v944_v42 }
   0x6   :  { %402 = vmatprep.mubr.bf16.mxu0 %v912_v11  ;;  %450 = vmatprep.mubr.bf16.mxu1 %v915_v12  ;;  %v907_v15 = vld [vmem:[%s1214_s1 + $0x8] sm:$0xff]   ;;  %v908_v16 = vld [vmem:[%s1214_s1 + $0x40] sm:$0xff]   ;;  %v913_v20 = vld [vmem:[%s1215_s0 + $0x90] ss:$12 sps:$4 sm:$0xff]   ;;  %22 = vst.msk [vmem:[#allocation2 + $0x28] sm:$0xff] %vm16_vm1, %v944_v42 }
   0x7   :  { %786 = vmatpush3.bf16.msra.mxu0 %v897_v3  ;;  %886 = vmatpush3.bf16.msra.mxu1 %v897_v3  ;;  %v909_v17 = vld [vmem:[%s1214_s1] sm:$0xff]   ;;  %v916_v19 = vld [vmem:[%s1214_s1 + $0x88] sm:$0xff]   ;;  %v927_v28 = vld [vmem:[%s1215_s0 + $0x30] ss:$12 sps:$4 sm:$0xff]   ;;  %23 = vst.msk [vmem:[#allocation2 + $0x30] sm:$0xff] %vm16_vm1, %v944_v42 }
   0x8   :  { %787 = vmatprep.subr.bf16.mxu0 %v898_v4  ;;  %879 = vmatprep.subr.bf16.mxu1 %v898_v4  ;;  %v910_v18 = vld [vmem:[%s1215_s0] ss:$12 sps:$4 sm:$0xff]   ;;  %v917_v21 = vld [vmem:[%s1215_s0 + $0x1c] ss:$12 sps:$4 sm:$0xff]   ;;  %v921_v24 = vld [vmem:[%s1215_s0 + $0x18] ss:$12 sps:$4 sm:$0xff]  }
   0x9   :  { %v919_v22 = vld [vmem:[%s1215_s0 + $0xac] ss:$12 sps:$4 sm:$0xff]   ;;  %v923_v23 = vld [vmem:[%s1214_s1 + $0x80] sm:$0xff]   ;;  %v922_v25 = vld [vmem:[%s1215_s0 + $0xa8] ss:$12 sps:$4 sm:$0xff]   ;;  %24 = vst.msk [vmem:[#allocation2 + $0x38] sm:$0xff] %vm16_vm1, %v944_v42 }
   0xa   :  { %v924_v26 = vld [vmem:[%s1215_s0 + $0x34] ss:$12 sps:$4 sm:$0xff]   ;;  %v929_v30 = vld [vmem:[%s1215_s0 + $0x4c] ss:$12 sps:$4 sm:$0xff]   ;;  %v933_v33 = vld [vmem:[%s1215_s0 + $0x50] ss:$12 sps:$4 sm:$0xff]  }
   0xb   :  { %788 = vmatpush3.bf16.msra.mxu0 %v899_v5  ;;  %887 = vmatpush3.bf16.msra.mxu1 %v899_v5  ;;  %v926_v27 = vld [vmem:[%s1215_s0 + $0x8] ss:$12 sps:$4 sm:$0xff]   ;;  %v928_v29 = vld [vmem:[%s1215_s0 + $0x20] ss:$12 sps:$4 sm:$0xff]   ;;  %v931_v31 = vld [vmem:[%s1215_s0 + $0x38] ss:$12 sps:$4 sm:$0xff]  }
   0xc   :  { %789 = vmatprep.subr.bf16.mxu0 %v900_v6  ;;  %880 = vmatprep.subr.bf16.mxu1 %v900_v6  ;;  %v932_v32 = vld [vmem:[%s1215_s0 + $0x48] ss:$12 sps:$4 sm:$0xff]   ;;  %v934_v34 = vld [vmem:[%s1215_s0 + $0x64] ss:$12 sps:$4 sm:$0xff]   ;;  %v937_v36 = vld [vmem:[%s1215_s0 + $0x60] ss:$12 sps:$4 sm:$0xff]  }
   0xd   :  { %v936_v35 = vld [vmem:[%s1215_s0 + $0x68] ss:$12 sps:$4 sm:$0xff]   ;;  %v938_v37 = vld [vmem:[%s1215_s0 + $0x80] ss:$12 sps:$4 sm:$0xff]   ;;  %v941_v39 = vld [vmem:[%s1215_s0 + $0x98] ss:$12 sps:$4 sm:$0xff]  }
   0xe   :  { %v939_v38 = vld [vmem:[%s1215_s0 + $0x7c] ss:$12 sps:$4 sm:$0xff]   ;;  %v942_v40 = vld [vmem:[%s1215_s0 + $0x78] ss:$12 sps:$4 sm:$0xff]   ;;  %25 = vst.msk [vmem:[#allocation2 + $0x40] sm:$0xff] %vm16_vm1, %v944_v42  ;;  %26 = vst.msk [vmem:[#allocation2 + $0x48] sm:$0xff] %vm16_vm1, %v944_v42 }
   0xf   :  { %790 = vmatpush3.bf16.msra.mxu0 %v901_v7  ;;  %888 = vmatpush3.bf16.msra.mxu1 %v901_v7  ;;  %v943_v41 = vld [vmem:[%s1215_s0 + $0xb0] ss:$12 sps:$4 sm:$0xff]   ;;  %27 = vst.msk [vmem:[#allocation2 + $0x50] sm:$0xff] %vm16_vm1, %v944_v42  ;;  %28 = vst.msk [vmem:[#allocation2 + $0x58] sm:$0xff] %vm16_vm1, %v944_v42  ;;  %v65_v2 = vld [vmem:[#allocation2] sm:$0xff] }
  0x10   :  { %791 = vmatprep.subr.bf16.mxu0 %v902_v8  ;;  %881 = vmatprep.subr.bf16.mxu1 %v902_v8  ;;  %29 = vst.msk [vmem:[#allocation2 + $0x60] sm:$0xff] %vm16_vm1, %v944_v42  ;;  %30 = vst.msk [vmem:[#allocation2 + $0x68] sm:$0xff] %vm16_vm1, %v944_v42  ;;  %v67_v61 = vld [vmem:[#allocation2 + $0x10] sm:$0xff]  ;;  %v68_v8 = vld [vmem:[#allocation2 + $0x18] sm:$0xff] }
  0x11   :  { %31 = vst.msk [vmem:[#allocation2 + $0x70] sm:$0xff] %vm16_vm1, %v944_v42  ;;  %32 = vst.msk [vmem:[#allocation2 + $0x78] sm:$0xff] %vm16_vm1, %v944_v42 }
  0x13   :  { %792 = vmatpush3.bf16.msra.mxu0 %v903_v9  ;;  %889 = vmatpush3.bf16.msra.mxu1 %v903_v9 }
  0x14   :  { %793 = vmatprep.subr.bf16.mxu0 %v904_v10  ;;  %882 = vmatprep.subr.bf16.mxu1 %v904_v10 }
  0x17   :  { %794 = vmatpush3.bf16.msra.mxu0 %v905_v13  ;;  %890 = vmatpush3.bf16.msra.mxu1 %v905_v13 }
  0x18   :  { %795 = vmatprep.subr.bf16.mxu0 %v906_v14  ;;  %883 = vmatprep.subr.bf16.mxu1 %v906_v14  ;;  %v66_v14 = vld [vmem:[#allocation2 + $0x8] sm:$0xff] }
  0x1b   :  { %796 = vmatpush3.bf16.msra.mxu0 %v907_v15  ;;  %891 = vmatpush3.bf16.msra.mxu1 %v907_v15 }
  0x1c   :  { %797 = vmatprep.subr.bf16.mxu0 %v908_v16  ;;  %884 = vmatprep.subr.bf16.mxu1 %v908_v16 }
  0x1f   :  { %798 = vmatpush3.bf16.msra.mxu0 %v909_v17  ;;  %892 = vmatpush3.bf16.msra.mxu1 %v909_v17 }
  0x20   :  { %857 = vmatprep.subr.bf16.mxu1 %v916_v19 }
  0x22   :  { %403 = vmatmul.mubr.bf16.vlgmr.msra.gmra.mxu0 %v910_v18  ;;  %451 = vmatmul.mubr.bf16.vlgmr.msra.gmra.mxu1 %v913_v20 }
  0x23   :  { %858 = vmatpush3.bf16.msra.mxu1 %v916_v19  ;;  %410 = vmatprep.mubr.bf16.mxu0 %v917_v21 }
  0x24   :  { %458 = vmatprep.mubr.bf16.mxu1 %v919_v22  ;;  %859 = vmatprep.subr.bf16.mxu1 %v923_v23 }
  0x27   :  { %860 = vmatpush3.bf16.msra.mxu1 %v923_v23  ;;  %v69_v23 = vld [vmem:[#allocation2 + $0x20] sm:$0xff] }
  0x2a   :  { %411 = vmatmul.mubr.bf16.gmra.mxu0 %v921_v24  ;;  %459 = vmatmul.mubr.bf16.gmra.mxu1 %v922_v25 }
  0x2b   :  { %418 = vmatprep.mubr.bf16.mxu0 %v924_v26  ;;  %861 = vmatprep.mubr.msk.bf16.mxu1 %vm345_vm0, %v926_v27 }
  0x32   :  { %419 = vmatmul.mubr.bf16.gmra.mxu0 %v927_v28  ;;  %862 = vmatmul.mubr.msk.bf16.vlgmr.msra.gmra.mxu1 %vm345_vm0, %v928_v29  ;;  %v71_v28 = vld [vmem:[#allocation2 + $0x30] sm:$0xff] }
  0x33   :  { %426 = vmatprep.mubr.bf16.mxu0 %v929_v30  ;;  %865 = vmatprep.mubr.msk.bf16.mxu1 %vm345_vm0, %v931_v31 }
  0x3a   :  { %427 = vmatmul.mubr.bf16.gmra.mxu0 %v932_v32  ;;  %866 = vmatmul.mubr.msk.bf16.gmra.mxu1 %vm345_vm0, %v933_v33 }
  0x3b   :  { %434 = vmatprep.mubr.bf16.mxu0 %v934_v34  ;;  %869 = vmatprep.mubr.msk.bf16.mxu1 %vm345_vm0, %v936_v35 }
  0x42   :  { %435 = vmatmul.mubr.bf16.gmra.mxu0 %v937_v36  ;;  %870 = vmatmul.mubr.msk.bf16.gmra.mxu1 %vm345_vm0, %v938_v37  ;;  %v70_v37 = vld [vmem:[#allocation2 + $0x28] sm:$0xff] }
  0x43   :  { %442 = vmatprep.mubr.bf16.mxu0 %v939_v38  ;;  %873 = vmatprep.mubr.msk.bf16.mxu1 %vm345_vm0, %v941_v39 }
  0x4a   :  { %443 = vmatmul.mubr.bf16.gmra.mxu0 %v942_v40  ;;  %874 = vmatmul.mubr.msk.bf16.gmra.mxu1 %vm345_vm0, %v943_v41 }
  0xe2   :  { %v799_v43 = vpop.f32.mrf.mxu0  ;;  %v1110_v44 = vpop.f32.mrf.mxu1 }
  0xe4   :  { %v800_v45 = vpop.f32.mrf.mxu0  ;;  %v1112_v46 = vpop.f32.mrf.mxu1 }
  0xe5   :  { %v801_v63 = vadd.f32 %v800_v45, %v799_v43  ;;  %v72_v45 = vld [vmem:[#allocation2 + $0x38] sm:$0xff] }
  0xe6   :  { %v802_v47 = vpop.f32.mrf.mxu0  ;;  %v1114_v48 = vpop.f32.mrf.mxu1 }
  0xe8   :  { %v803_v49 = vpop.f32.mrf.mxu0  ;;  %v1116_v50 = vpop.f32.mrf.mxu1 }
  0xe9   :  { %v804_v10 = vadd.f32 %v803_v49, %v802_v47 }
  0xea   :  { %v805_v51 = vpop.f32.mrf.mxu0  ;;  %v1118_v52 = vpop.f32.mrf.mxu1 }
  0xec   :  { %v806_v53 = vpop.f32.mrf.mxu0  ;;  %v1120_v54 = vpop.f32.mrf.mxu1 }
  0xed   :  { %v807_v59 = vadd.f32 %v806_v53, %v805_v51 }
  0xee   :  { %v808_v55 = vpop.f32.mrf.mxu0  ;;  %v1122_v56 = vpop.f32.mrf.mxu1 }
  0xf0   :  { %v809_v57 = vpop.f32.mrf.mxu0  ;;  %v1124_v58 = vpop.f32.mrf.mxu1 }
  0xf1   :  { %v810_v4 = vadd.f32 %v809_v57, %v808_v55 }
  0xf2   :  { %v811_v60 = vpop.f32.mrf.mxu0  ;;  %v863_v62 = vpop.f32.mrf.mxu1 }
  0xf3   :  { %v510_v0 = vadd.f32 %v863_v62, %v807_v59 }
  0xf4   :  { %v812_v1 = vpop.f32.mrf.mxu0  ;;  %v501_v3 = vpop.f32.mrf.mxu1 }
  0xf5   :  { %v566_v5 = vadd.f32 %v510_v0, %v67_v61  ;;  %v502_v6 = vadd.f32 %v801_v63, %v501_v3  ;;  %v813_v20 = vadd.f32 %v812_v1, %v811_v60  ;;  %v73_v0 = vld [vmem:[#allocation2 + $0x40] sm:$0xff] }
  0xf6   :  { %v814_v7 = vpop.f32.mrf.mxu0  ;;  %v864_v9 = vpop.f32.mrf.mxu1 }
  0xf7   :  { %583 = vst.msk [vmem:[#allocation2 + $0x10] sm:$0xff] %vm16_vm1, %v566_v5  ;;  %v564_v11 = vadd.f32 %v502_v6, %v65_v2  ;;  %v513_v12 = vadd.f32 %v864_v9, %v810_v4 }
  0xf8   :  { %v815_v13 = vpop.f32.mrf.mxu0  ;;  %v504_v15 = vpop.f32.mrf.mxu1 }
  0xf9   :  { %581 = vst.msk [vmem:[#allocation2] sm:$0xff] %vm16_vm1, %v564_v11  ;;  %v567_v16 = vadd.f32 %v513_v12, %v68_v8  ;;  %v505_v17 = vadd.f32 %v804_v10, %v504_v15  ;;  %v816_v32 = vadd.f32 %v815_v13, %v814_v7  ;;  %v843_v7 = vadd.f32 %v1120_v54, %v1118_v52  ;;  %v74_v12 = vld [vmem:[#allocation2 + $0x48] sm:$0xff] }
  0xfa   :  { %v817_v18 = vpop.f32.mrf.mxu0  ;;  %v867_v19 = vpop.f32.mrf.mxu1  ;;  %v837_v52 = vadd.f32 %v1112_v46, %v1110_v44  ;;  %v846_v54 = vadd.f32 %v1124_v58, %v1122_v56  ;;  %v80_v46 = vld [vmem:[#allocation2 + $0x78] sm:$0xff]  ;;  %v840_v56 = vadd.f32 %v1116_v50, %v1114_v48 }
  0xfb   :  { %584 = vst.msk [vmem:[#allocation2 + $0x18] sm:$0xff] %vm16_vm1, %v567_v16  ;;  %v565_v21 = vadd.f32 %v505_v17, %v66_v14  ;;  %v79_v14 = vld [vmem:[#allocation2 + $0x70] sm:$0xff] }
  0xfc   :  { %v818_v22 = vpop.f32.mrf.mxu0  ;;  %v517_v24 = vpop.f32.mrf.mxu1 }
  0xfd   :  { %582 = vst.msk [vmem:[#allocation2 + $0x8] sm:$0xff] %vm16_vm1, %v565_v21  ;;  %v819_v25 = vadd.f32 %v818_v22, %v817_v18  ;;  %v518_v26 = vadd.f32 %v813_v20, %v517_v24 }
  0xfe   :  { %v602_v27 = vld [vmem:[#allocation2 + $0x10] sm:$0xff]  ;;  %v820_v29 = vpop.f32.mrf.mxu0  ;;  %v868_v30 = vpop.f32.mrf.mxu1 }
  0xff   :  { %v769_v31 = vpack.c.bf16 %v602_v27, %v602_v27  ;;  %v526_v33 = vadd.f32 %v867_v19, %v819_v25  ;;  %v568_v34 = vadd.f32 %v518_v26, %v69_v23  ;;  %v77_v26 = vld [vmem:[#allocation2 + $0x60] sm:$0xff] }
 0x100   :  { %v600_v35 = vld [vmem:[#allocation2] sm:$0xff]  ;;  %v821_v36 = vpop.f32.mrf.mxu0  ;;  %v520_v38 = vpop.f32.mrf.mxu1 }
 0x101   :  { %683 = vst.msk [vmem:[%s1216_s2 + $0x8] sm:$0xf] %vm680_vm2, %v769_v31  ;;  %v767_v39 = vpack.c.bf16 %v600_v35, %v600_v35  ;;  %v570_v40 = vadd.f32 %v526_v33, %v71_v28  ;;  %v822_v41 = vadd.f32 %v821_v36, %v820_v29  ;;  %v521_v42 = vadd.f32 %v816_v32, %v520_v38  ;;  %v75_v28 = vld [vmem:[#allocation2 + $0x50] sm:$0xff]  ;;  %v78_v35 = vld [vmem:[#allocation2 + $0x68] sm:$0xff] }
 0x102   :  { %585 = vst.msk [vmem:[#allocation2 + $0x20] sm:$0xff] %vm16_vm1, %v568_v34  ;;  %v603_v43 = vld [vmem:[#allocation2 + $0x18] sm:$0xff]  ;;  %v823_v47 = vpop.f32.mrf.mxu0  ;;  %v871_v49 = vpop.f32.mrf.mxu1 }
 0x103   :  { %681 = vst.msk [vmem:[%s1216_s2] sm:$0xf] %vm680_vm2, %v767_v39  ;;  %v770_v51 = vpack.c.bf16 %v603_v43, %v603_v43  ;;  %v529_v53 = vadd.f32 %v868_v30, %v822_v41  ;;  %v569_v55 = vadd.f32 %v521_v42, %v70_v37 }
 0x104   :  { %587 = vst.msk [vmem:[#allocation2 + $0x30] sm:$0xff] %vm16_vm1, %v570_v40  ;;  %v601_v57 = vld [vmem:[#allocation2 + $0x8] sm:$0xff]  ;;  %v824_v59 = vpop.f32.mrf.mxu0  ;;  %v533_v60 = vpop.f32.mrf.mxu1  ;;  %v76_v40 = vld [vmem:[#allocation2 + $0x58] sm:$0xff] }
 0x105   :  { %684 = vst.msk [vmem:[%s1216_s2 + $0xc] sm:$0xf] %vm680_vm2, %v770_v51  ;;  %v768_v61 = vpack.c.bf16 %v601_v57, %v601_v57  ;;  %v571_v62 = vadd.f32 %v529_v53, %v72_v45  ;;  %v825_v63 = vadd.f32 %v824_v59, %v823_v47 }
 0x106   :  { %586 = vst.msk [vmem:[#allocation2 + $0x28] sm:$0xff] %vm16_vm1, %v569_v55  ;;  %v826_v1 = vpop.f32.mrf.mxu0  ;;  %v872_v2 = vpop.f32.mrf.mxu1 }
 0x107   :  { %682 = vst.msk [vmem:[%s1216_s2 + $0x4] sm:$0xf] %vm680_vm2, %v768_v61  ;;  %v534_v3 = vadd.f32 %v825_v63, %v533_v60 }
 0x108   :  { %588 = vst.msk [vmem:[#allocation2 + $0x38] sm:$0xff] %vm16_vm1, %v571_v62  ;;  %v827_v5 = vpop.f32.mrf.mxu0  ;;  %v536_v6 = vpop.f32.mrf.mxu1 }
 0x109   :  { %v604_v4 = vld [vmem:[#allocation2 + $0x20] sm:$0xff]  ;;  %v572_v9 = vadd.f32 %v534_v3, %v73_v0  ;;  %v828_v10 = vadd.f32 %v827_v5, %v826_v1 }
 0x10a   :  { %v771_v8 = vpack.c.bf16 %v604_v4, %v604_v4  ;;  %v829_v13 = vpop.f32.mrf.mxu0  ;;  %v875_v15 = vpop.f32.mrf.mxu1 }
 0x10b   :  { %v606_v11 = vld [vmem:[#allocation2 + $0x30] sm:$0xff]  ;;  %589 = vst.msk [vmem:[#allocation2 + $0x40] sm:$0xff] %vm16_vm1, %v572_v9  ;;  %v537_v17 = vadd.f32 %v828_v10, %v536_v6  ;;  %v558_v18 = vadd.f32 %v875_v15, %v843_v7 }
 0x10c   :  { %v773_v16 = vpack.c.bf16 %v606_v11, %v606_v11  ;;  %685 = vst.msk [vmem:[%s1216_s2 + $0x10] sm:$0xf] %vm680_vm2, %v771_v8  ;;  %v830_v20 = vpop.f32.mrf.mxu0  ;;  %v549_v21 = vpop.f32.mrf.mxu1 }
 0x10d   :  { %v605_v19 = vld [vmem:[#allocation2 + $0x28] sm:$0xff]  ;;  %v573_v23 = vadd.f32 %v537_v17, %v74_v12  ;;  %v578_v24 = vadd.f32 %v558_v18, %v79_v14  ;;  %v831_v25 = vadd.f32 %v830_v20, %v829_v13  ;;  %v550_v29 = vadd.f32 %v837_v52, %v549_v21 }
 0x10e   :  { %687 = vst.msk [vmem:[%s1216_s2 + $0x18] sm:$0xf] %vm680_vm2, %v773_v16  ;;  %v772_v22 = vpack.c.bf16 %v605_v19, %v605_v19  ;;  %v832_v44 = vpop.f32.mrf.mxu0  ;;  %v876_v30 = vpop.f32.mrf.mxu1 }
 0x10f   :  { %v607_v27 = vld [vmem:[#allocation2 + $0x38] sm:$0xff]  ;;  %590 = vst.msk [vmem:[#allocation2 + $0x48] sm:$0xff] %vm16_vm1, %v573_v23  ;;  %595 = vst.msk [vmem:[#allocation2 + $0x70] sm:$0xff] %vm16_vm1, %v578_v24  ;;  %v542_v31 = vadd.f32 %v871_v49, %v831_v25  ;;  %v561_v32 = vadd.f32 %v876_v30, %v846_v54  ;;  %v576_v33 = vadd.f32 %v550_v29, %v77_v26 }
 0x110   :  { %v774_v58 = vpack.c.bf16 %v607_v27, %v607_v27  ;;  %686 = vst.msk [vmem:[%s1216_s2 + $0x14] sm:$0xf] %vm680_vm2, %v772_v22  ;;  %v833_v34 = vpop.f32.mrf.mxu0  ;;  %v552_v36 = vpop.f32.mrf.mxu1 }
 0x111   :  { %v574_v48 = vadd.f32 %v542_v31, %v75_v28  ;;  %v579_v50 = vadd.f32 %v561_v32, %v80_v46  ;;  %v834_v37 = vadd.f32 %v833_v34, %v832_v44  ;;  %v553_v38 = vadd.f32 %v840_v56, %v552_v36  ;;  %593 = vst.msk [vmem:[#allocation2 + $0x60] sm:$0xff] %vm16_vm1, %v576_v33 }
 0x112   :  { %688 = vst.msk [vmem:[%s1216_s2 + $0x1c] sm:$0xf] %vm680_vm2, %v774_v58  ;;  %v608_v39 = vld [vmem:[#allocation2 + $0x40] sm:$0xff] }
 0x113   :  { %v775_v41 = vpack.c.bf16 %v608_v39, %v608_v39  ;;  %591 = vst.msk [vmem:[#allocation2 + $0x50] sm:$0xff] %vm16_vm1, %v574_v48  ;;  %596 = vst.msk [vmem:[#allocation2 + $0x78] sm:$0xff] %vm16_vm1, %v579_v50  ;;  %v545_v42 = vadd.f32 %v872_v2, %v834_v37  ;;  %v577_v43 = vadd.f32 %v553_v38, %v78_v35 }
 0x115   :  { %689 = vst.msk [vmem:[%s1216_s2 + $0x20] sm:$0xf] %vm680_vm2, %v775_v41  ;;  %v575_v45 = vadd.f32 %v545_v42, %v76_v40 }
 0x116   :  { %594 = vst.msk [vmem:[#allocation2 + $0x68] sm:$0xff] %vm16_vm1, %v577_v43  ;;  %v609_v47 = vld [vmem:[#allocation2 + $0x48] sm:$0xff]  ;;  %v614_v49 = vld [vmem:[#allocation2 + $0x70] sm:$0xff] }
 0x117   :  { %v776_v51 = vpack.c.bf16 %v609_v47, %v609_v47  ;;  %v781_v53 = vpack.c.bf16 %v614_v49, %v614_v49  ;;  %592 = vst.msk [vmem:[#allocation2 + $0x58] sm:$0xff] %vm16_vm1, %v575_v45 }
 0x118   :  { %v612_v55 = vld [vmem:[#allocation2 + $0x60] sm:$0xff] }
 0x119   :  { %690 = vst.msk [vmem:[%s1216_s2 + $0x24] sm:$0xf] %vm680_vm2, %v776_v51  ;;  %695 = vst.msk [vmem:[%s1216_s2 + $0x38] sm:$0xf] %vm680_vm2, %v781_v53  ;;  %v779_v59 = vpack.c.bf16 %v612_v55, %v612_v55 }
 0x11a   :  { %v610_v57 = vld [vmem:[#allocation2 + $0x50] sm:$0xff]  ;;  %v615_v60 = vld [vmem:[#allocation2 + $0x78] sm:$0xff] }
 0x11b   :  { %v777_v61 = vpack.c.bf16 %v610_v57, %v610_v57  ;;  %v782_v62 = vpack.c.bf16 %v615_v60, %v615_v60  ;;  %693 = vst.msk [vmem:[%s1216_s2 + $0x30] sm:$0xf] %vm680_vm2, %v779_v59 }
 0x11d   :  { %v613_v63 = vld [vmem:[#allocation2 + $0x68] sm:$0xff]  ;;  %691 = vst.msk [vmem:[%s1216_s2 + $0x28] sm:$0xf] %vm680_vm2, %v777_v61  ;;  %696 = vst.msk [vmem:[%s1216_s2 + $0x3c] sm:$0xf] %vm680_vm2, %v782_v62 }
 0x11e   :  { %v780_v0 = vpack.c.bf16 %v613_v63, %v613_v63  ;;  %v611_v1 = vld [vmem:[#allocation2 + $0x58] sm:$0xff] }
 0x11f   :  { %v778_v2 = vpack.c.bf16 %v611_v1, %v611_v1 }
 0x120   :  { %694 = vst.msk [vmem:[%s1216_s2 + $0x34] sm:$0xf] %vm680_vm2, %v780_v0 }
 0x121   :  { %692 = vst.msk [vmem:[%s1216_s2 + $0x2c] sm:$0xf] %vm680_vm2, %v778_v2 }

// kernel: densenet_forward.32
= control target key start
LH: loop header
LB: loop body
LE: loop exit
PB: predicated region body
PF: predicated region fallthrough
CT: control target
= control target key end

     0   :  { %vm200_vm0 = vcmask 1043456   ;;  %vm28_vm1 = vcmask 261120   ;;  %v624_v1 = vmov 0.0   ;;  %vm175_vm2 = vcmask 195584   ;;  %s881_s1 = inlined_call_operand.vmem [shape: bf16[24,32], index: 1, kind: input, shape index: {}]   ;;  %s882_s0 = inlined_call_operand.vmem [shape: bf16[128,24], index: 0, kind: input, shape index: {}]   ;;  %s883_s2 = inlined_call_operand.vmem [shape: f32[1,24], index: 2, kind: input, shape index: {}]   ;;  %s884_s3 = inlined_call_operand.vmem [shape: f32[1,24], index: 3, kind: input, shape index: {}]   ;;  %s885_s4 = inlined_call_operand.vmem [shape: f32[1,32], index: 4, kind: input, shape index: {}]   ;;  %s886_s5 = inlined_call_operand.vmem [shape: f32[1,32], index: 5, kind: input, shape index: {}]   ;;  %s887_s6 = inlined_call_operand.vmem [shape: bf16[128,32], index: 6, kind: output, shape index: {}]  }
   0x1   :  { %v622_v0 = vld [vmem:[%s881_s1 + $0x8] ss:$0 sps:$4 sm:$0xff]   ;;  %31 = vst.msk [vmem:[#allocation2 + $0x10] sm:$0xff] %vm28_vm1, %v624_v1  ;;  %29 = vst.msk [vmem:[#allocation2] sm:$0xff] %vm28_vm1, %v624_v1  ;;  %v623_v2 = vld [vmem:[%s881_s1] sm:$0xff]   ;;  %vm479_vm3 = vcmask 257024  }
   0x2   :  { %30 = vst.msk [vmem:[#allocation2 + $0x8] sm:$0xff] %vm28_vm1, %v624_v1  ;;  %32 = vst.msk [vmem:[#allocation2 + $0x18] sm:$0xff] %vm28_vm1, %v624_v1  ;;  %v547_v3 = vld [vmem:[%s882_s0] sm:$0xff]   ;;  %619 = vmatprep.subr.msk.bf16.mxu0 %vm200_vm0, %v622_v0  ;;  %620 = vmatprep.subr.msk.bf16.mxu1 %vm200_vm0, %v622_v0  ;;  %v202_v4 = vsel %vm200_vm0, %v622_v0, 0  ;;  %v578_v12 = vld [vmem:[%s882_s0 + $0x8] sm:$0xff]  }
   0x3   :  { %33 = vst.msk [vmem:[#allocation2 + $0x20] sm:$0xff] %vm28_vm1, %v624_v1  ;;  %34 = vst.msk [vmem:[#allocation2 + $0x28] sm:$0xff] %vm28_vm1, %v624_v1  ;;  %v548_v5 = vunpack.c.l.bf16 %v547_v3  ;;  %v549_v6 = vunpack.c.h.bf16 %v547_v3  ;;  %v691_v7 = vld [vmem:[%s883_s2] ss:$0 sm:$0xff]  ;;  %596 = vmatpush3.bf16.msra.mxu0 %v202_v4  ;;  %617 = vmatpush3.bf16.msra.mxu1 %v202_v4  ;;  %v582_v13 = vld [vmem:[%s882_s0 + $0x28] sm:$0xff]   ;;  %v552_v16 = vunpack.c.l.bf16 %v578_v12  ;;  %v553_v17 = vunpack.c.h.bf16 %v578_v12 }
   0x4   :  { %35 = vst.msk [vmem:[#allocation2 + $0x30] sm:$0xff] %vm28_vm1, %v624_v1  ;;  %36 = vst.msk [vmem:[#allocation2 + $0x38] sm:$0xff] %vm28_vm1, %v624_v1  ;;  %v581_v8 = vld [vmem:[%s882_s0 + $0x20] sm:$0xff]   ;;  %597 = vmatprep.subr.bf16.mxu0 %v623_v2  ;;  %616 = vmatprep.subr.bf16.mxu1 %v623_v2  ;;  %v579_v18 = vld [vmem:[%s882_s0 + $0x10] sm:$0xff]   ;;  %v568_v21 = vunpack.c.l.bf16 %v582_v13  ;;  %v569_v22 = vunpack.c.h.bf16 %v582_v13 }
   0x5   :  { %37 = vst.msk [vmem:[#allocation2 + $0x40] sm:$0xff] %vm28_vm1, %v624_v1  ;;  %38 = vst.msk [vmem:[#allocation2 + $0x48] sm:$0xff] %vm28_vm1, %v624_v1  ;;  %v699_v9 = vld [vmem:[%s884_s3] ss:$0 sm:$0xff]  ;;  %v564_v10 = vunpack.c.l.bf16 %v581_v8  ;;  %v565_v11 = vunpack.c.h.bf16 %v581_v8  ;;  %v84_v14 = vmul.f32 %v548_v5, %v691_v7  ;;  %v85_v15 = vmul.f32 %v549_v6, %v691_v7  ;;  %v583_v39 = vld [vmem:[%s882_s0 + $0x30] sm:$0xff]  }
   0x6   :  { %39 = vst.msk [vmem:[#allocation2 + $0x50] sm:$0xff] %vm28_vm1, %v624_v1  ;;  %40 = vst.msk [vmem:[#allocation2 + $0x58] sm:$0xff] %vm28_vm1, %v624_v1  ;;  %v86_v25 = vmul.f32 %v552_v16, %v691_v7  ;;  %v87_v26 = vmul.f32 %v553_v17, %v691_v7  ;;  %v94_v29 = vmul.f32 %v568_v21, %v691_v7  ;;  %v556_v30 = vunpack.c.l.bf16 %v579_v18  ;;  %v580_v44 = vld [vmem:[%s882_s0 + $0x18] sm:$0xff]  }
   0x7   :  { %41 = vst.msk [vmem:[#allocation2 + $0x60] sm:$0xff] %vm28_vm1, %v624_v1  ;;  %42 = vst.msk [vmem:[#allocation2 + $0x68] sm:$0xff] %vm28_vm1, %v624_v1  ;;  %v92_v19 = vmul.f32 %v564_v10, %v691_v7  ;;  %v93_v20 = vmul.f32 %v565_v11, %v691_v7  ;;  %v107_v23 = vadd.f32 %v699_v9, %v84_v14  ;;  %598 = vmatpush3.bf16.msra.mxu0 %v623_v2  ;;  %v584_v49 = vld [vmem:[%s882_s0 + $0x38] sm:$0xff]  }
   0x8   :  { %43 = vst.msk [vmem:[#allocation2 + $0x70] sm:$0xff] %vm28_vm1, %v624_v1  ;;  %44 = vst.msk [vmem:[#allocation2 + $0x78] sm:$0xff] %vm28_vm1, %v624_v1  ;;  %v108_v24 = vadd.f32 %v699_v9, %v85_v15  ;;  %618 = vmatpush3.bf16.msra.mxu1 %v623_v2  ;;  %v109_v33 = vadd.f32 %v699_v9, %v86_v25  ;;  %v110_v34 = vadd.f32 %v699_v9, %v87_v26  ;;  %v139_v25 = vld [vmem:[#allocation2] sm:$0xff] }
   0x9   :  { %v115_v27 = vadd.f32 %v699_v9, %v92_v19  ;;  %v116_v28 = vadd.f32 %v699_v9, %v93_v20  ;;  %v123_v31 = vmax.f32 %v107_v23, 0.0  ;;  %v95_v37 = vmul.f32 %v569_v22, %v691_v7 }
   0xa   :  { %v124_v32 = vmax.f32 %v108_v24, 0.0  ;;  %v117_v38 = vadd.f32 %v699_v9, %v94_v29  ;;  %v125_v41 = vmax.f32 %v109_v33, 0.0  ;;  %v126_v42 = vmax.f32 %v110_v34, 0.0  ;;  %v142_v29 = vld [vmem:[#allocation2 + $0x18] sm:$0xff]  ;;  %v140_v34 = vld [vmem:[#allocation2 + $0x8] sm:$0xff] }
   0xb   :  { %v131_v35 = vmax.f32 %v115_v27, 0.0  ;;  %v132_v36 = vmax.f32 %v116_v28, 0.0  ;;  %v557_v43 = vunpack.c.h.bf16 %v579_v18  ;;  %v118_v46 = vadd.f32 %v699_v9, %v95_v37 }
   0xc   :  { %v155_v40 = vpack.c.bf16 %v124_v32, %v123_v31  ;;  %v133_v47 = vmax.f32 %v117_v38, 0.0  ;;  %v88_v48 = vmul.f32 %v556_v30, %v691_v7  ;;  %v156_v50 = vpack.c.bf16 %v126_v42, %v125_v41  ;;  %v147_v31 = vld [vmem:[#allocation2 + $0x40] sm:$0xff]  ;;  %v148_v42 = vld [vmem:[#allocation2 + $0x48] sm:$0xff] }
   0xd   :  { %v159_v45 = vpack.c.bf16 %v132_v36, %v131_v35  ;;  %v89_v51 = vmul.f32 %v557_v43, %v691_v7  ;;  %v572_v52 = vunpack.c.l.bf16 %v583_v39  ;;  %v573_v53 = vunpack.c.h.bf16 %v583_v39  ;;  %v149_v27 = vld [vmem:[#allocation2 + $0x50] sm:$0xff]  ;;  %v150_v37 = vld [vmem:[#allocation2 + $0x58] sm:$0xff] }
   0xe   :  { %599 = vmatprep.mubr.msk.bf16.mxu0 %vm175_vm2, %v155_v40  ;;  %v134_v54 = vmax.f32 %v118_v46, 0.0  ;;  %v111_v55 = vadd.f32 %v699_v9, %v88_v48  ;;  %v560_v56 = vunpack.c.l.bf16 %v580_v44  ;;  %v561_v57 = vunpack.c.h.bf16 %v580_v44  ;;  %v145_v43 = vld [vmem:[#allocation2 + $0x30] sm:$0xff]  ;;  %v766_v44 = vld [vmem:[%s885_s4] ss:$0 sm:$0xff] }
   0xf   :  { %607 = vmatprep.mubr.msk.bf16.mxu1 %vm175_vm2, %v159_v45  ;;  %600 = vmatmul.mubr.msk.bf16.vlgmr.msra.gmra.mxu0 %vm175_vm2, %v156_v50  ;;  %v112_v58 = vadd.f32 %v699_v9, %v89_v51  ;;  %v96_v59 = vmul.f32 %v572_v52, %v691_v7  ;;  %v97_v60 = vmul.f32 %v573_v53, %v691_v7  ;;  %v576_v61 = vunpack.c.l.bf16 %v584_v49  ;;  %v143_v48 = vld [vmem:[#allocation2 + $0x20] sm:$0xff]  ;;  %v153_v53 = vld [vmem:[#allocation2 + $0x70] sm:$0xff] }
  0x10   :  { %v160_v62 = vpack.c.bf16 %v134_v54, %v133_v47  ;;  %v127_v63 = vmax.f32 %v111_v55, 0.0  ;;  %v90_v0 = vmul.f32 %v560_v56, %v691_v7  ;;  %v91_v1 = vmul.f32 %v561_v57, %v691_v7  ;;  %v773_v50 = vld [vmem:[%s886_s5] ss:$0 sm:$0xff]  ;;  %v146_v56 = vld [vmem:[#allocation2 + $0x38] sm:$0xff] }
  0x11   :  { %v128_v2 = vmax.f32 %v112_v58, 0.0  ;;  %v119_v3 = vadd.f32 %v699_v9, %v96_v59  ;;  %v120_v4 = vadd.f32 %v699_v9, %v97_v60  ;;  %v577_v5 = vunpack.c.h.bf16 %v584_v49  ;;  %v151_v60 = vld [vmem:[#allocation2 + $0x60] sm:$0xff] }
  0x12   :  { %608 = vmatmul.mubr.msk.bf16.vlgmr.msra.gmra.mxu1 %vm175_vm2, %v160_v62  ;;  %v113_v6 = vadd.f32 %v699_v9, %v90_v0  ;;  %v114_v8 = vadd.f32 %v699_v9, %v91_v1  ;;  %v98_v10 = vmul.f32 %v576_v61, %v691_v7 }
  0x13   :  { %v157_v11 = vpack.c.bf16 %v128_v2, %v127_v63  ;;  %v135_v12 = vmax.f32 %v119_v3, 0.0  ;;  %v136_v13 = vmax.f32 %v120_v4, 0.0  ;;  %v99_v14 = vmul.f32 %v577_v5, %v691_v7  ;;  %v141_v7 = vld [vmem:[#allocation2 + $0x10] sm:$0xff]  ;;  %v144_v2 = vld [vmem:[#allocation2 + $0x28] sm:$0xff] }
  0x14   :  { %v129_v15 = vmax.f32 %v113_v6, 0.0  ;;  %v130_v16 = vmax.f32 %v114_v8, 0.0  ;;  %v121_v17 = vadd.f32 %v699_v9, %v98_v10 }
  0x15   :  { %603 = vmatprep.mubr.msk.bf16.mxu0 %vm175_vm2, %v157_v11  ;;  %v161_v18 = vpack.c.bf16 %v136_v13, %v135_v12  ;;  %v122_v19 = vadd.f32 %v699_v9, %v99_v14  ;;  %v154_v14 = vld [vmem:[#allocation2 + $0x78] sm:$0xff] }
  0x16   :  { %v158_v20 = vpack.c.bf16 %v130_v16, %v129_v15  ;;  %v137_v21 = vmax.f32 %v121_v17, 0.0 }
  0x17   :  { %611 = vmatprep.mubr.msk.bf16.mxu1 %vm175_vm2, %v161_v18  ;;  %v138_v22 = vmax.f32 %v122_v19, 0.0 }
  0x18   :  { %604 = vmatmul.mubr.msk.bf16.gmra.mxu0 %vm175_vm2, %v158_v20 }
  0x19   :  { %v162_v23 = vpack.c.bf16 %v138_v22, %v137_v21  ;;  %v152_v21 = vld [vmem:[#allocation2 + $0x68] sm:$0xff] }
  0x1b   :  { %612 = vmatmul.mubr.msk.bf16.gmra.mxu1 %vm175_vm2, %v162_v23 }
  0xcf   :  { %v601_v24 = vpop.f32.mrf.mxu0 }
  0xd0   :  { %v303_v26 = vadd.f32 %v601_v24, %v141_v7 }
  0xd1   :  { %v238_v28 = vpop.f32.mrf.mxu0 }
  0xd2   :  { %320 = vst.msk [vmem:[#allocation2 + $0x10] sm:$0xff] %vm28_vm1, %v303_v26  ;;  %v609_v9 = vpop.f32.mrf.mxu1  ;;  %v301_v30 = vadd.f32 %v238_v28, %v139_v25 }
  0xd3   :  { %v311_v32 = vadd.f32 %v609_v9, %v149_v27  ;;  %v602_v33 = vpop.f32.mrf.mxu0 }
  0xd4   :  { %318 = vst.msk [vmem:[#allocation2] sm:$0xff] %vm28_vm1, %v301_v30  ;;  %v270_v35 = vpop.f32.mrf.mxu1  ;;  %v304_v36 = vadd.f32 %v602_v33, %v142_v29 }
  0xd5   :  { %328 = vst.msk [vmem:[#allocation2 + $0x50] sm:$0xff] %vm28_vm1, %v311_v32  ;;  %v309_v38 = vadd.f32 %v270_v35, %v147_v31  ;;  %v241_v39 = vpop.f32.mrf.mxu0 }
  0xd6   :  { %321 = vst.msk [vmem:[#allocation2 + $0x18] sm:$0xff] %vm28_vm1, %v304_v36  ;;  %v610_v40 = vpop.f32.mrf.mxu1  ;;  %v302_v41 = vadd.f32 %v241_v39, %v140_v34 }
  0xd7   :  { %326 = vst.msk [vmem:[#allocation2 + $0x40] sm:$0xff] %vm28_vm1, %v309_v38  ;;  %v312_v45 = vadd.f32 %v610_v40, %v150_v37 }
  0xd8   :  { %319 = vst.msk [vmem:[#allocation2 + $0x8] sm:$0xff] %vm28_vm1, %v302_v41  ;;  %v273_v46 = vpop.f32.mrf.mxu1  ;;  %v605_v47 = vpop.f32.mrf.mxu0 }
  0xd9   :  { %v339_v49 = vld [vmem:[#allocation2 + $0x10] sm:$0xff]  ;;  %329 = vst.msk [vmem:[#allocation2 + $0x58] sm:$0xff] %vm28_vm1, %v312_v45  ;;  %v310_v51 = vadd.f32 %v273_v46, %v148_v42  ;;  %v307_v52 = vadd.f32 %v605_v47, %v145_v43 }
  0xda   :  { %v362_v54 = vmul.f32 %v766_v44, %v339_v49  ;;  %v254_v55 = vpop.f32.mrf.mxu0 }
  0xdb   :  { %v337_v57 = vld [vmem:[#allocation2] sm:$0xff]  ;;  %327 = vst.msk [vmem:[#allocation2 + $0x48] sm:$0xff] %vm28_vm1, %v310_v51  ;;  %324 = vst.msk [vmem:[#allocation2 + $0x30] sm:$0xff] %vm28_vm1, %v307_v52  ;;  %v613_v58 = vpop.f32.mrf.mxu1  ;;  %v305_v59 = vadd.f32 %v254_v55, %v143_v48 }
  0xdc   :  { %v385_v61 = vadd.f32 %v773_v50, %v362_v54  ;;  %v347_v62 = vld [vmem:[#allocation2 + $0x50] sm:$0xff]  ;;  %v360_v63 = vmul.f32 %v766_v44, %v337_v57  ;;  %v315_v0 = vadd.f32 %v613_v58, %v153_v53  ;;  %v606_v1 = vpop.f32.mrf.mxu0 }
  0xdd   :  { %v370_v3 = vmul.f32 %v766_v44, %v347_v62  ;;  %v340_v4 = vld [vmem:[#allocation2 + $0x18] sm:$0xff]  ;;  %322 = vst.msk [vmem:[#allocation2 + $0x20] sm:$0xff] %vm28_vm1, %v305_v59  ;;  %v286_v5 = vpop.f32.mrf.mxu1  ;;  %v308_v6 = vadd.f32 %v606_v1, %v146_v56 }
  0xde   :  { %v401_v8 = vmax.f32 %v385_v61, 0.0  ;;  %v383_v10 = vadd.f32 %v773_v50, %v360_v63  ;;  %v345_v11 = vld [vmem:[#allocation2 + $0x40] sm:$0xff]  ;;  %v363_v12 = vmul.f32 %v766_v44, %v340_v4  ;;  %332 = vst.msk [vmem:[#allocation2 + $0x70] sm:$0xff] %vm28_vm1, %v315_v0  ;;  %v313_v13 = vadd.f32 %v286_v5, %v151_v60  ;;  %v257_v15 = vpop.f32.mrf.mxu0 }
  0xdf   :  { %v393_v16 = vadd.f32 %v773_v50, %v370_v3  ;;  %v368_v17 = vmul.f32 %v766_v44, %v345_v11  ;;  %v338_v18 = vld [vmem:[#allocation2 + $0x8] sm:$0xff]  ;;  %325 = vst.msk [vmem:[#allocation2 + $0x38] sm:$0xff] %vm28_vm1, %v308_v6  ;;  %v614_v19 = vpop.f32.mrf.mxu1  ;;  %v306_v20 = vadd.f32 %v257_v15, %v144_v2 }
  0xe0   :  { %v532_v22 = vpack.c.bf16 %v401_v8, %v401_v8  ;;  %v399_v23 = vmax.f32 %v383_v10, 0.0  ;;  %v386_v7 = vadd.f32 %v773_v50, %v363_v12  ;;  %v348_v24 = vld [vmem:[#allocation2 + $0x58] sm:$0xff]  ;;  %v361_v25 = vmul.f32 %v766_v44, %v338_v18  ;;  %330 = vst.msk [vmem:[#allocation2 + $0x60] sm:$0xff] %vm28_vm1, %v313_v13 }
  0xe1   :  { %v409_v26 = vmax.f32 %v393_v16, 0.0  ;;  %v391_v27 = vadd.f32 %v773_v50, %v368_v17  ;;  %v371_v28 = vmul.f32 %v766_v44, %v348_v24  ;;  %v316_v29 = vadd.f32 %v614_v19, %v154_v14  ;;  %323 = vst.msk [vmem:[#allocation2 + $0x28] sm:$0xff] %vm28_vm1, %v306_v20  ;;  %v289_v9 = vpop.f32.mrf.mxu1 }
  0xe2   :  { %482 = vst.msk [vmem:[%s887_s6 + $0x8] sm:$0xf] %vm479_vm3, %v532_v22  ;;  %v530_v30 = vpack.c.bf16 %v399_v23, %v399_v23  ;;  %v402_v31 = vmax.f32 %v386_v7, 0.0  ;;  %v384_v32 = vadd.f32 %v773_v50, %v361_v25  ;;  %v346_v33 = vld [vmem:[#allocation2 + $0x48] sm:$0xff]  ;;  %v343_v34 = vld [vmem:[#allocation2 + $0x30] sm:$0xff]  ;;  %v314_v35 = vadd.f32 %v289_v9, %v152_v21 }
  0xe3   :  { %v540_v36 = vpack.c.bf16 %v409_v26, %v409_v26  ;;  %v407_v37 = vmax.f32 %v391_v27, 0.0  ;;  %v394_v38 = vadd.f32 %v773_v50, %v371_v28  ;;  %v369_v39 = vmul.f32 %v766_v44, %v346_v33  ;;  %333 = vst.msk [vmem:[#allocation2 + $0x78] sm:$0xff] %vm28_vm1, %v316_v29 }
  0xe4   :  { %480 = vst.msk [vmem:[%s887_s6] sm:$0xf] %vm479_vm3, %v530_v30  ;;  %v533_v40 = vpack.c.bf16 %v402_v31, %v402_v31  ;;  %v400_v41 = vmax.f32 %v384_v32, 0.0  ;;  %v366_v42 = vmul.f32 %v766_v44, %v343_v34  ;;  %v341_v43 = vld [vmem:[#allocation2 + $0x20] sm:$0xff] }
  0xe5   :  { %331 = vst.msk [vmem:[#allocation2 + $0x68] sm:$0xff] %vm28_vm1, %v314_v35  ;;  %v538_v45 = vpack.c.bf16 %v407_v37, %v407_v37  ;;  %v410_v46 = vmax.f32 %v394_v38, 0.0  ;;  %v392_v47 = vadd.f32 %v773_v50, %v369_v39  ;;  %v351_v48 = vld [vmem:[#allocation2 + $0x70] sm:$0xff]  ;;  %v364_v49 = vmul.f32 %v766_v44, %v341_v43 }
  0xe6   :  { %490 = vst.msk [vmem:[%s887_s6 + $0x28] sm:$0xf] %vm479_vm3, %v540_v36  ;;  %483 = vst.msk [vmem:[%s887_s6 + $0xc] sm:$0xf] %vm479_vm3, %v533_v40  ;;  %v531_v51 = vpack.c.bf16 %v400_v41, %v400_v41  ;;  %v389_v52 = vadd.f32 %v773_v50, %v366_v42  ;;  %v374_v53 = vmul.f32 %v766_v44, %v351_v48  ;;  %v344_v54 = vld [vmem:[#allocation2 + $0x38] sm:$0xff] }
  0xe7   :  { %488 = vst.msk [vmem:[%s887_s6 + $0x20] sm:$0xf] %vm479_vm3, %v538_v45  ;;  %v541_v55 = vpack.c.bf16 %v410_v46, %v410_v46  ;;  %v408_v56 = vmax.f32 %v392_v47, 0.0  ;;  %v387_v57 = vadd.f32 %v773_v50, %v364_v49  ;;  %v349_v58 = vld [vmem:[#allocation2 + $0x60] sm:$0xff]  ;;  %v367_v59 = vmul.f32 %v766_v44, %v344_v54 }
  0xe8   :  { %481 = vst.msk [vmem:[%s887_s6 + $0x4] sm:$0xf] %vm479_vm3, %v531_v51  ;;  %v405_v60 = vmax.f32 %v389_v52, 0.0  ;;  %v397_v61 = vadd.f32 %v773_v50, %v374_v53  ;;  %v372_v62 = vmul.f32 %v766_v44, %v349_v58  ;;  %v342_v63 = vld [vmem:[#allocation2 + $0x28] sm:$0xff] }
  0xe9   :  { %491 = vst.msk [vmem:[%s887_s6 + $0x2c] sm:$0xf] %vm479_vm3, %v541_v55  ;;  %v539_v0 = vpack.c.bf16 %v408_v56, %v408_v56  ;;  %v403_v1 = vmax.f32 %v387_v57, 0.0  ;;  %v390_v2 = vadd.f32 %v773_v50, %v367_v59  ;;  %v365_v3 = vmul.f32 %v766_v44, %v342_v63 }
  0xea   :  { %v536_v4 = vpack.c.bf16 %v405_v60, %v405_v60  ;;  %v413_v5 = vmax.f32 %v397_v61, 0.0  ;;  %v395_v6 = vadd.f32 %v773_v50, %v372_v62  ;;  %v352_v8 = vld [vmem:[#allocation2 + $0x78] sm:$0xff] }
  0xeb   :  { %489 = vst.msk [vmem:[%s887_s6 + $0x24] sm:$0xf] %vm479_vm3, %v539_v0  ;;  %v534_v10 = vpack.c.bf16 %v403_v1, %v403_v1  ;;  %v406_v11 = vmax.f32 %v390_v2, 0.0  ;;  %v375_v12 = vmul.f32 %v766_v44, %v352_v8  ;;  %v388_v13 = vadd.f32 %v773_v50, %v365_v3 }
  0xec   :  { %v350_v14 = vld [vmem:[#allocation2 + $0x68] sm:$0xff]  ;;  %486 = vst.msk [vmem:[%s887_s6 + $0x18] sm:$0xf] %vm479_vm3, %v536_v4  ;;  %v544_v15 = vpack.c.bf16 %v413_v5, %v413_v5  ;;  %v411_v16 = vmax.f32 %v395_v6, 0.0 }
  0xed   :  { %v373_v17 = vmul.f32 %v766_v44, %v350_v14  ;;  %484 = vst.msk [vmem:[%s887_s6 + $0x10] sm:$0xf] %vm479_vm3, %v534_v10  ;;  %v537_v18 = vpack.c.bf16 %v406_v11, %v406_v11  ;;  %v398_v19 = vadd.f32 %v773_v50, %v375_v12  ;;  %v404_v20 = vmax.f32 %v388_v13, 0.0 }
  0xee   :  { %494 = vst.msk [vmem:[%s887_s6 + $0x38] sm:$0xf] %vm479_vm3, %v544_v15  ;;  %v542_v21 = vpack.c.bf16 %v411_v16, %v411_v16 }
  0xef   :  { %v396_v22 = vadd.f32 %v773_v50, %v373_v17  ;;  %487 = vst.msk [vmem:[%s887_s6 + $0x1c] sm:$0xf] %vm479_vm3, %v537_v18  ;;  %v414_v44 = vmax.f32 %v398_v19, 0.0  ;;  %v535_v23 = vpack.c.bf16 %v404_v20, %v404_v20 }
  0xf0   :  { %492 = vst.msk [vmem:[%s887_s6 + $0x30] sm:$0xf] %vm479_vm3, %v542_v21 }
  0xf1   :  { %v412_v7 = vmax.f32 %v396_v22, 0.0  ;;  %v545_v24 = vpack.c.bf16 %v414_v44, %v414_v44  ;;  %485 = vst.msk [vmem:[%s887_s6 + $0x14] sm:$0xf] %vm479_vm3, %v535_v23 }
  0xf3   :  { %v543_v50 = vpack.c.bf16 %v412_v7, %v412_v7  ;;  %495 = vst.msk [vmem:[%s887_s6 + $0x3c] sm:$0xf] %vm479_vm3, %v545_v24 }
  0xf5   :  { %493 = vst.msk [vmem:[%s887_s6 + $0x34] sm:$0xf] %vm479_vm3, %v543_v50 }

// kernel: densenet_forward.35
= control target key start
LH: loop header
LB: loop body
LE: loop exit
PB: predicated region body
PF: predicated region fallthrough
CT: control target
= control target key end

     0   :  { %vm81_vm0 = vcmask 125952   ;;  %s195_s0 = inlined_call_operand.vmem [shape: bf16[32,16], index: 0, kind: input, shape index: {}]   ;;  %s196_s1 = inlined_call_operand.vmem [shape: bf16[32,16], index: 1, kind: input, shape index: {}]   ;;  %s197_s2 = inlined_call_operand.vmem [shape: bf16[32,16], index: 2, kind: input, shape index: {}]   ;;  %s198_s3 = inlined_call_operand.vmem [shape: bf16[32,16], index: 3, kind: input, shape index: {}]   ;;  %s199_s4 = inlined_call_operand.vmem [shape: bf16[32,16], index: 4, kind: output, shape index: {}]  }
   0x1   :  { %v99_v0 = vld [vmem:[%s195_s0] sm:$0xff]   ;;  %v130_v8 = vld [vmem:[%s195_s0 + $0x8] sm:$0xff]  }
   0x2   :  { %v107_v1 = vld [vmem:[%s196_s1] sm:$0xff]   ;;  %v100_v3 = vunpack.c.l.bf16 %v99_v0  ;;  %v101_v7 = vunpack.c.h.bf16 %v99_v0  ;;  %v131_v9 = vld [vmem:[%s196_s1 + $0x8] sm:$0xff]   ;;  %v104_v16 = vunpack.c.l.bf16 %v130_v8  ;;  %v105_v21 = vunpack.c.h.bf16 %v130_v8 }
   0x3   :  { %v115_v2 = vld [vmem:[%s197_s2] sm:$0xff]   ;;  %v108_v4 = vunpack.c.l.bf16 %v107_v1  ;;  %v109_v11 = vunpack.c.h.bf16 %v107_v1  ;;  %v132_v13 = vld [vmem:[%s197_s2 + $0x8] sm:$0xff]   ;;  %v112_v17 = vunpack.c.l.bf16 %v131_v9  ;;  %v113_v22 = vunpack.c.h.bf16 %v131_v9 }
   0x4   :  { %v116_v5 = vunpack.c.l.bf16 %v115_v2  ;;  %v123_v6 = vld [vmem:[%s198_s3] sm:$0xff]   ;;  %v117_v12 = vunpack.c.h.bf16 %v115_v2  ;;  %v133_v14 = vld [vmem:[%s198_s3 + $0x8] sm:$0xff]   ;;  %v120_v18 = vunpack.c.l.bf16 %v132_v13  ;;  %v121_v26 = vunpack.c.h.bf16 %v132_v13 }
   0x5   :  { %v124_v10 = vunpack.c.l.bf16 %v123_v6  ;;  %v33_v15 = vadd.f32 %v108_v4, %v100_v3  ;;  %v34_v19 = vadd.f32 %v109_v11, %v101_v7  ;;  %v125_v20 = vunpack.c.h.bf16 %v123_v6 }
   0x6   :  { %v35_v24 = vadd.f32 %v112_v17, %v104_v16  ;;  %v128_v25 = vunpack.c.l.bf16 %v133_v14  ;;  %v36_v28 = vadd.f32 %v113_v22, %v105_v21  ;;  %v129_v29 = vunpack.c.h.bf16 %v133_v14 }
   0x7   :  { %v45_v23 = vadd.f32 %v116_v5, %v33_v15  ;;  %v46_v27 = vadd.f32 %v117_v12, %v34_v19 }
   0x8   :  { %v47_v31 = vadd.f32 %v120_v18, %v35_v24  ;;  %v48_v33 = vadd.f32 %v121_v26, %v36_v28 }
   0x9   :  { %v57_v30 = vadd.f32 %v124_v10, %v45_v23  ;;  %v58_v32 = vadd.f32 %v125_v20, %v46_v27 }
   0xa   :  { %v59_v35 = vadd.f32 %v128_v25, %v47_v31  ;;  %v60_v37 = vadd.f32 %v129_v29, %v48_v33 }
   0xb   :  { %v61_v34 = vmul.f32 0.25, %v57_v30  ;;  %v62_v36 = vmul.f32 0.25, %v58_v32 }
   0xc   :  { %v63_v39 = vmul.f32 0.25, %v59_v35  ;;  %v64_v41 = vmul.f32 0.25, %v60_v37 }
   0xd   :  { %v94_v38 = vpack.c.bf16 %v61_v34, %v61_v34  ;;  %v95_v40 = vpack.c.bf16 %v62_v36, %v62_v36 }
   0xe   :  { %v96_v42 = vpack.c.bf16 %v63_v39, %v63_v39  ;;  %v97_v43 = vpack.c.bf16 %v64_v41, %v64_v41 }
   0xf   :  { %82 = vst.msk [vmem:[%s199_s4] sm:$0xf] %vm81_vm0, %v94_v38  ;;  %83 = vst.msk [vmem:[%s199_s4 + $0x4] sm:$0xf] %vm81_vm0, %v95_v40 }
  0x10   :  { %84 = vst.msk [vmem:[%s199_s4 + $0x8] sm:$0xf] %vm81_vm0, %v96_v42  ;;  %85 = vst.msk [vmem:[%s199_s4 + $0xc] sm:$0xf] %vm81_vm0, %v97_v43 }

// kernel: densenet_forward.34
= control target key start
LH: loop header
LB: loop body
LE: loop exit
PB: predicated region body
PF: predicated region fallthrough
CT: control target
= control target key end

     0   :  { %vm22_vm0 = vcmask 130048   ;;  %v552_v1 = vmov 0.0   ;;  %vm173_vm1 = vcmask 261120   ;;  %vm411_vm2 = vcmask 125952   ;;  %s754_s1 = inlined_call_operand.vmem [shape: bf16[32,16], index: 1, kind: input, shape index: {}]   ;;  %s755_s0 = inlined_call_operand.vmem [shape: bf16[128,32], index: 0, kind: input, shape index: {}]   ;;  %s756_s2 = inlined_call_operand.vmem [shape: f32[1,32], index: 2, kind: input, shape index: {}]   ;;  %s757_s3 = inlined_call_operand.vmem [shape: f32[1,32], index: 3, kind: input, shape index: {}]   ;;  %s758_s4 = inlined_call_operand.vmem [shape: bf16[128,16], index: 4, kind: output, shape index: {}]  }
   0x1   :  { %v550_v0 = vld [vmem:[%s754_s1 + $0x8] sm:$0xff]   ;;  %25 = vst.msk [vmem:[#allocation2 + $0x10] sm:$0xff] %vm22_vm0, %v552_v1  ;;  %23 = vst.msk [vmem:[#allocation2] sm:$0xff] %vm22_vm0, %v552_v1  ;;  %v551_v2 = vld [vmem:[%s754_s1] sm:$0xff]  }
   0x2   :  { %24 = vst.msk [vmem:[#allocation2 + $0x8] sm:$0xff] %vm22_vm0, %v552_v1  ;;  %26 = vst.msk [vmem:[#allocation2 + $0x18] sm:$0xff] %vm22_vm0, %v552_v1  ;;  %525 = vmatprep.subr.bf16.mxu0 %v550_v0  ;;  %545 = vmatprep.subr.bf16.mxu1 %v550_v0  ;;  %v477_v3 = vld [vmem:[%s755_s0] sm:$0xff]   ;;  %v508_v8 = vld [vmem:[%s755_s0 + $0x8] sm:$0xff]  }
   0x3   :  { %27 = vst.msk [vmem:[#allocation2 + $0x20] sm:$0xff] %vm22_vm0, %v552_v1  ;;  %28 = vst.msk [vmem:[#allocation2 + $0x28] sm:$0xff] %vm22_vm0, %v552_v1  ;;  %v606_v4 = vld [vmem:[%s756_s2] ss:$0 sm:$0xff]  ;;  %526 = vmatpush3.bf16.msra.mxu0 %v550_v0  ;;  %547 = vmatpush3.bf16.msra.mxu1 %v550_v0  ;;  %v478_v5 = vunpack.c.l.bf16 %v477_v3  ;;  %v479_v6 = vunpack.c.h.bf16 %v477_v3  ;;  %v512_v9 = vld [vmem:[%s755_s0 + $0x28] sm:$0xff]   ;;  %v482_v13 = vunpack.c.l.bf16 %v508_v8  ;;  %v483_v14 = vunpack.c.h.bf16 %v508_v8 }
   0x4   :  { %29 = vst.msk [vmem:[#allocation2 + $0x30] sm:$0xff] %vm22_vm0, %v552_v1  ;;  %30 = vst.msk [vmem:[#allocation2 + $0x38] sm:$0xff] %vm22_vm0, %v552_v1  ;;  %v511_v7 = vld [vmem:[%s755_s0 + $0x20] sm:$0xff]   ;;  %527 = vmatprep.subr.bf16.mxu0 %v551_v2  ;;  %546 = vmatprep.subr.bf16.mxu1 %v551_v2  ;;  %v509_v15 = vld [vmem:[%s755_s0 + $0x10] sm:$0xff]   ;;  %v498_v18 = vunpack.c.l.bf16 %v512_v9  ;;  %v499_v19 = vunpack.c.h.bf16 %v512_v9 }
   0x5   :  { %31 = vst.msk [vmem:[#allocation2 + $0x40] sm:$0xff] %vm22_vm0, %v552_v1  ;;  %32 = vst.msk [vmem:[#allocation2 + $0x48] sm:$0xff] %vm22_vm0, %v552_v1  ;;  %v620_v10 = vld [vmem:[%s757_s3] ss:$0 sm:$0xff]  ;;  %v494_v11 = vunpack.c.l.bf16 %v511_v7  ;;  %v495_v12 = vunpack.c.h.bf16 %v511_v7  ;;  %v78_v16 = vmul.f32 %v478_v5, %v606_v4  ;;  %v79_v17 = vmul.f32 %v479_v6, %v606_v4  ;;  %v513_v36 = vld [vmem:[%s755_s0 + $0x30] sm:$0xff]  }
   0x6   :  { %33 = vst.msk [vmem:[#allocation2 + $0x50] sm:$0xff] %vm22_vm0, %v552_v1  ;;  %34 = vst.msk [vmem:[#allocation2 + $0x58] sm:$0xff] %vm22_vm0, %v552_v1  ;;  %v80_v22 = vmul.f32 %v482_v13, %v606_v4  ;;  %v81_v23 = vmul.f32 %v483_v14, %v606_v4  ;;  %v88_v26 = vmul.f32 %v498_v18, %v606_v4  ;;  %v486_v27 = vunpack.c.l.bf16 %v509_v15  ;;  %v510_v41 = vld [vmem:[%s755_s0 + $0x18] sm:$0xff]  }
   0x7   :  { %35 = vst.msk [vmem:[#allocation2 + $0x60] sm:$0xff] %vm22_vm0, %v552_v1  ;;  %36 = vst.msk [vmem:[#allocation2 + $0x68] sm:$0xff] %vm22_vm0, %v552_v1  ;;  %v86_v20 = vmul.f32 %v494_v11, %v606_v4  ;;  %v87_v21 = vmul.f32 %v495_v12, %v606_v4  ;;  %528 = vmatpush3.bf16.msra.mxu0 %v551_v2  ;;  %548 = vmatpush3.bf16.msra.mxu1 %v551_v2  ;;  %v487_v45 = vunpack.c.h.bf16 %v509_v15  ;;  %v514_v46 = vld [vmem:[%s755_s0 + $0x38] sm:$0xff]  }
   0x8   :  { %37 = vst.msk [vmem:[#allocation2 + $0x70] sm:$0xff] %vm22_vm0, %v552_v1  ;;  %38 = vst.msk [vmem:[#allocation2 + $0x78] sm:$0xff] %vm22_vm0, %v552_v1  ;;  %v101_v24 = vadd.f32 %v620_v10, %v78_v16  ;;  %v102_v25 = vadd.f32 %v620_v10, %v79_v17  ;;  %v103_v30 = vadd.f32 %v620_v10, %v80_v22  ;;  %v502_v50 = vunpack.c.l.bf16 %v513_v36 }
   0x9   :  { %v109_v28 = vadd.f32 %v620_v10, %v86_v20  ;;  %v110_v29 = vadd.f32 %v620_v10, %v87_v21  ;;  %v104_v31 = vadd.f32 %v620_v10, %v81_v23  ;;  %v89_v34 = vmul.f32 %v499_v19, %v606_v4 }
   0xa   :  { %v117_v32 = vmax.f32 %v101_v24, 0.0  ;;  %v118_v33 = vmax.f32 %v102_v25, 0.0  ;;  %v111_v35 = vadd.f32 %v620_v10, %v88_v26  ;;  %v119_v39 = vmax.f32 %v103_v30, 0.0  ;;  %v133_v24 = vld [vmem:[#allocation2] sm:$0xff] }
   0xb   :  { %v125_v37 = vmax.f32 %v109_v28, 0.0  ;;  %v126_v38 = vmax.f32 %v110_v29, 0.0  ;;  %v120_v40 = vmax.f32 %v104_v31, 0.0  ;;  %v112_v43 = vadd.f32 %v620_v10, %v89_v34 }
   0xc   :  { %v149_v42 = vpack.c.bf16 %v118_v33, %v117_v32  ;;  %v127_v44 = vmax.f32 %v111_v35, 0.0  ;;  %v82_v49 = vmul.f32 %v486_v27, %v606_v4  ;;  %v83_v52 = vmul.f32 %v487_v45, %v606_v4  ;;  %v141_v30 = vld [vmem:[#allocation2 + $0x40] sm:$0xff]  ;;  %v134_v33 = vld [vmem:[#allocation2 + $0x8] sm:$0xff] }
   0xd   :  { %v153_v47 = vpack.c.bf16 %v126_v38, %v125_v37  ;;  %v150_v48 = vpack.c.bf16 %v120_v40, %v119_v39  ;;  %v128_v51 = vmax.f32 %v112_v43, 0.0  ;;  %v503_v53 = vunpack.c.h.bf16 %v513_v36  ;;  %v143_v26 = vld [vmem:[#allocation2 + $0x50] sm:$0xff]  ;;  %v144_v36 = vld [vmem:[#allocation2 + $0x58] sm:$0xff] }
   0xe   :  { %529 = vmatprep.mubr.msk.bf16.mxu0 %vm173_vm1, %v149_v42  ;;  %v490_v54 = vunpack.c.l.bf16 %v510_v41  ;;  %v105_v55 = vadd.f32 %v620_v10, %v82_v49  ;;  %v90_v56 = vmul.f32 %v502_v50, %v606_v4  ;;  %v491_v57 = vunpack.c.h.bf16 %v510_v41  ;;  %v142_v41 = vld [vmem:[#allocation2 + $0x48] sm:$0xff]  ;;  %v139_v43 = vld [vmem:[#allocation2 + $0x30] sm:$0xff]  ;;  %v137_v49 = vld [vmem:[#allocation2 + $0x20] sm:$0xff] }
   0xf   :  { %537 = vmatprep.mubr.msk.bf16.mxu1 %vm173_vm1, %v153_v47  ;;  %530 = vmatmul.mubr.msk.bf16.vlgmr.msra.gmra.mxu0 %vm173_vm1, %v150_v48  ;;  %v506_v58 = vunpack.c.l.bf16 %v514_v46  ;;  %v154_v59 = vpack.c.bf16 %v128_v51, %v127_v44  ;;  %v106_v60 = vadd.f32 %v620_v10, %v83_v52  ;;  %v91_v61 = vmul.f32 %v503_v53, %v606_v4  ;;  %v147_v48 = vld [vmem:[#allocation2 + $0x70] sm:$0xff] }
  0x10   :  { %v84_v62 = vmul.f32 %v490_v54, %v606_v4  ;;  %v121_v63 = vmax.f32 %v105_v55, 0.0  ;;  %v113_v0 = vadd.f32 %v620_v10, %v90_v56  ;;  %v85_v1 = vmul.f32 %v491_v57, %v606_v4  ;;  %v145_v55 = vld [vmem:[#allocation2 + $0x60] sm:$0xff]  ;;  %v140_v56 = vld [vmem:[#allocation2 + $0x38] sm:$0xff] }
  0x11   :  { %v507_v2 = vunpack.c.h.bf16 %v514_v46  ;;  %538 = vmatmul.mubr.msk.bf16.vlgmr.msra.gmra.mxu1 %vm173_vm1, %v154_v59  ;;  %v122_v3 = vmax.f32 %v106_v60, 0.0  ;;  %v114_v5 = vadd.f32 %v620_v10, %v91_v61  ;;  %v92_v7 = vmul.f32 %v506_v58, %v606_v4 }
  0x12   :  { %v107_v6 = vadd.f32 %v620_v10, %v84_v62  ;;  %v129_v8 = vmax.f32 %v113_v0, 0.0  ;;  %v108_v9 = vadd.f32 %v620_v10, %v85_v1  ;;  %v148_v1 = vld [vmem:[#allocation2 + $0x78] sm:$0xff] }
  0x13   :  { %v93_v11 = vmul.f32 %v507_v2, %v606_v4  ;;  %v151_v12 = vpack.c.bf16 %v122_v3, %v121_v63  ;;  %v130_v13 = vmax.f32 %v114_v5, 0.0  ;;  %v115_v15 = vadd.f32 %v620_v10, %v92_v7  ;;  %v135_v4 = vld [vmem:[#allocation2 + $0x10] sm:$0xff]  ;;  %v138_v2 = vld [vmem:[#allocation2 + $0x28] sm:$0xff] }
  0x14   :  { %v123_v14 = vmax.f32 %v107_v6, 0.0  ;;  %v124_v16 = vmax.f32 %v108_v9, 0.0 }
  0x15   :  { %v116_v17 = vadd.f32 %v620_v10, %v93_v11  ;;  %533 = vmatprep.mubr.msk.bf16.mxu0 %vm173_vm1, %v151_v12  ;;  %v155_v18 = vpack.c.bf16 %v130_v13, %v129_v8  ;;  %v131_v19 = vmax.f32 %v115_v15, 0.0  ;;  %v136_v10 = vld [vmem:[#allocation2 + $0x18] sm:$0xff]  ;;  %v146_v13 = vld [vmem:[#allocation2 + $0x68] sm:$0xff] }
  0x16   :  { %v152_v20 = vpack.c.bf16 %v124_v16, %v123_v14 }
  0x17   :  { %v132_v21 = vmax.f32 %v116_v17, 0.0  ;;  %541 = vmatprep.mubr.msk.bf16.mxu1 %vm173_vm1, %v155_v18 }
  0x18   :  { %534 = vmatmul.mubr.msk.bf16.gmra.mxu0 %vm173_vm1, %v152_v20 }
  0x19   :  { %v156_v22 = vpack.c.bf16 %v132_v21, %v131_v19 }
  0x1b   :  { %542 = vmatmul.mubr.msk.bf16.gmra.mxu1 %vm173_vm1, %v156_v22 }
  0xcf   :  { %v531_v23 = vpop.f32.mrf.mxu0 }
  0xd0   :  { %v297_v25 = vadd.f32 %v531_v23, %v135_v4 }
  0xd1   :  { %v232_v27 = vpop.f32.mrf.mxu0  ;;  %v539_v28 = vpop.f32.mrf.mxu1 }
  0xd2   :  { %314 = vst.msk [vmem:[#allocation2 + $0x10] sm:$0xff] %vm22_vm0, %v297_v25  ;;  %v295_v29 = vadd.f32 %v232_v27, %v133_v24  ;;  %v305_v31 = vadd.f32 %v539_v28, %v143_v26 }
  0xd3   :  { %v532_v32 = vpop.f32.mrf.mxu0  ;;  %v264_v34 = vpop.f32.mrf.mxu1 }
  0xd4   :  { %312 = vst.msk [vmem:[#allocation2] sm:$0xff] %vm22_vm0, %v295_v29  ;;  %v298_v35 = vadd.f32 %v532_v32, %v136_v10  ;;  %322 = vst.msk [vmem:[#allocation2 + $0x50] sm:$0xff] %vm22_vm0, %v305_v31  ;;  %v303_v37 = vadd.f32 %v264_v34, %v141_v30 }
  0xd5   :  { %v235_v38 = vpop.f32.mrf.mxu0  ;;  %v540_v39 = vpop.f32.mrf.mxu1 }
  0xd6   :  { %315 = vst.msk [vmem:[#allocation2 + $0x18] sm:$0xff] %vm22_vm0, %v298_v35  ;;  %v296_v40 = vadd.f32 %v235_v38, %v134_v33  ;;  %320 = vst.msk [vmem:[#allocation2 + $0x40] sm:$0xff] %vm22_vm0, %v303_v37  ;;  %v306_v42 = vadd.f32 %v540_v39, %v144_v36 }
  0xd7   :  { %v267_v44 = vpop.f32.mrf.mxu1 }
  0xd8   :  { %313 = vst.msk [vmem:[#allocation2 + $0x8] sm:$0xff] %vm22_vm0, %v296_v40  ;;  %323 = vst.msk [vmem:[#allocation2 + $0x58] sm:$0xff] %vm22_vm0, %v306_v42  ;;  %v304_v46 = vadd.f32 %v267_v44, %v142_v41  ;;  %v535_v47 = vpop.f32.mrf.mxu0 }
  0xd9   :  { %v333_v45 = vld [vmem:[#allocation2 + $0x10] sm:$0xff]  ;;  %v301_v51 = vadd.f32 %v535_v47, %v139_v43 }
  0xda   :  { %v462_v50 = vpack.c.bf16 %v333_v45, %v333_v45  ;;  %321 = vst.msk [vmem:[#allocation2 + $0x48] sm:$0xff] %vm22_vm0, %v304_v46  ;;  %v248_v54 = vpop.f32.mrf.mxu0 }
  0xdb   :  { %v331_v52 = vld [vmem:[#allocation2] sm:$0xff]  ;;  %v543_v53 = vpop.f32.mrf.mxu1  ;;  %v341_v57 = vld [vmem:[#allocation2 + $0x50] sm:$0xff]  ;;  %318 = vst.msk [vmem:[#allocation2 + $0x30] sm:$0xff] %vm22_vm0, %v301_v51  ;;  %v299_v60 = vadd.f32 %v248_v54, %v137_v49 }
  0xdc   :  { %414 = vst.msk [vmem:[%s758_s4 + $0x8] sm:$0xf] %vm411_vm2, %v462_v50  ;;  %v460_v58 = vpack.c.bf16 %v331_v52, %v331_v52  ;;  %v309_v59 = vadd.f32 %v543_v53, %v147_v48  ;;  %v470_v61 = vpack.c.bf16 %v341_v57, %v341_v57  ;;  %v536_v0 = vpop.f32.mrf.mxu0 }
  0xdd   :  { %v334_v62 = vld [vmem:[#allocation2 + $0x18] sm:$0xff]  ;;  %v280_v63 = vpop.f32.mrf.mxu1  ;;  %v339_v3 = vld [vmem:[#allocation2 + $0x40] sm:$0xff]  ;;  %316 = vst.msk [vmem:[#allocation2 + $0x20] sm:$0xff] %vm22_vm0, %v299_v60  ;;  %v302_v7 = vadd.f32 %v536_v0, %v140_v56 }
  0xde   :  { %412 = vst.msk [vmem:[%s758_s4] sm:$0xf] %vm411_vm2, %v460_v58  ;;  %v463_v5 = vpack.c.bf16 %v334_v62, %v334_v62  ;;  %v307_v6 = vadd.f32 %v280_v63, %v145_v55  ;;  %422 = vst.msk [vmem:[%s758_s4 + $0x28] sm:$0xf] %vm411_vm2, %v470_v61  ;;  %v468_v8 = vpack.c.bf16 %v339_v3, %v339_v3  ;;  %v251_v12 = vpop.f32.mrf.mxu0 }
  0xdf   :  { %326 = vst.msk [vmem:[#allocation2 + $0x70] sm:$0xff] %vm22_vm0, %v309_v59  ;;  %v332_v9 = vld [vmem:[#allocation2 + $0x8] sm:$0xff]  ;;  %v544_v11 = vpop.f32.mrf.mxu1  ;;  %v342_v14 = vld [vmem:[#allocation2 + $0x58] sm:$0xff]  ;;  %319 = vst.msk [vmem:[#allocation2 + $0x38] sm:$0xff] %vm22_vm0, %v302_v7  ;;  %v300_v17 = vadd.f32 %v251_v12, %v138_v2 }
  0xe0   :  { %415 = vst.msk [vmem:[%s758_s4 + $0xc] sm:$0xf] %vm411_vm2, %v463_v5  ;;  %v461_v15 = vpack.c.bf16 %v332_v9, %v332_v9  ;;  %v310_v16 = vadd.f32 %v544_v11, %v148_v1  ;;  %420 = vst.msk [vmem:[%s758_s4 + $0x20] sm:$0xf] %vm411_vm2, %v468_v8  ;;  %v471_v18 = vpack.c.bf16 %v342_v14, %v342_v14 }
  0xe1   :  { %324 = vst.msk [vmem:[#allocation2 + $0x60] sm:$0xff] %vm22_vm0, %v307_v6  ;;  %v283_v19 = vpop.f32.mrf.mxu1  ;;  %v340_v20 = vld [vmem:[#allocation2 + $0x48] sm:$0xff]  ;;  %317 = vst.msk [vmem:[#allocation2 + $0x28] sm:$0xff] %vm22_vm0, %v300_v17 }
  0xe2   :  { %413 = vst.msk [vmem:[%s758_s4 + $0x4] sm:$0xf] %vm411_vm2, %v461_v15  ;;  %v308_v21 = vadd.f32 %v283_v19, %v146_v13  ;;  %423 = vst.msk [vmem:[%s758_s4 + $0x2c] sm:$0xf] %vm411_vm2, %v471_v18  ;;  %v469_v22 = vpack.c.bf16 %v340_v20, %v340_v20  ;;  %v337_v4 = vld [vmem:[#allocation2 + $0x30] sm:$0xff] }
  0xe3   :  { %327 = vst.msk [vmem:[#allocation2 + $0x78] sm:$0xff] %vm22_vm0, %v310_v16  ;;  %v466_v23 = vpack.c.bf16 %v337_v4, %v337_v4 }
  0xe4   :  { %325 = vst.msk [vmem:[#allocation2 + $0x68] sm:$0xff] %vm22_vm0, %v308_v21  ;;  %v335_v25 = vld [vmem:[#allocation2 + $0x20] sm:$0xff] }
  0xe5   :  { %421 = vst.msk [vmem:[%s758_s4 + $0x24] sm:$0xf] %vm411_vm2, %v469_v22  ;;  %418 = vst.msk [vmem:[%s758_s4 + $0x18] sm:$0xf] %vm411_vm2, %v466_v23  ;;  %v464_v27 = vpack.c.bf16 %v335_v25, %v335_v25 }
  0xe6   :  { %v345_v24 = vld [vmem:[#allocation2 + $0x70] sm:$0xff]  ;;  %v338_v28 = vld [vmem:[#allocation2 + $0x38] sm:$0xff] }
  0xe7   :  { %v474_v26 = vpack.c.bf16 %v345_v24, %v345_v24  ;;  %416 = vst.msk [vmem:[%s758_s4 + $0x10] sm:$0xf] %vm411_vm2, %v464_v27  ;;  %v467_v30 = vpack.c.bf16 %v338_v28, %v338_v28 }
  0xe8   :  { %v343_v10 = vld [vmem:[#allocation2 + $0x60] sm:$0xff]  ;;  %v336_v32 = vld [vmem:[#allocation2 + $0x28] sm:$0xff] }
  0xe9   :  { %426 = vst.msk [vmem:[%s758_s4 + $0x38] sm:$0xf] %vm411_vm2, %v474_v26  ;;  %v472_v29 = vpack.c.bf16 %v343_v10, %v343_v10  ;;  %419 = vst.msk [vmem:[%s758_s4 + $0x1c] sm:$0xf] %vm411_vm2, %v467_v30  ;;  %v465_v34 = vpack.c.bf16 %v336_v32, %v336_v32 }
  0xea   :  { %v346_v31 = vld [vmem:[#allocation2 + $0x78] sm:$0xff] }
  0xeb   :  { %424 = vst.msk [vmem:[%s758_s4 + $0x30] sm:$0xf] %vm411_vm2, %v472_v29  ;;  %v475_v33 = vpack.c.bf16 %v346_v31, %v346_v31  ;;  %v344_v35 = vld [vmem:[#allocation2 + $0x68] sm:$0xff]  ;;  %417 = vst.msk [vmem:[%s758_s4 + $0x14] sm:$0xf] %vm411_vm2, %v465_v34 }
  0xec   :  { %v473_v36 = vpack.c.bf16 %v344_v35, %v344_v35 }
  0xed   :  { %427 = vst.msk [vmem:[%s758_s4 + $0x3c] sm:$0xf] %vm411_vm2, %v475_v33 }
  0xee   :  { %425 = vst.msk [vmem:[%s758_s4 + $0x34] sm:$0xf] %vm411_vm2, %v473_v36 }

// kernel: densenet_forward.36
= control target key start
LH: loop header
LB: loop body
LE: loop exit
PB: predicated region body
PF: predicated region fallthrough
CT: control target
= control target key end

     0   :  { %vm28_vm0 = vcmask 261120   ;;  %v239_v1 = vmov 0.0   ;;  %vm81_vm1 = vcmask 130048   ;;  %vm195_vm2 = vcmask 257024   ;;  %s316_s1 = inlined_call_operand.vmem [shape: bf16[16,32], index: 1, kind: input, shape index: {}]   ;;  %s317_s0 = inlined_call_operand.vmem [shape: bf16[32,16], index: 0, kind: input, shape index: {}]   ;;  %s318_s2 = inlined_call_operand.vmem [shape: f32[1,16], index: 2, kind: input, shape index: {}]   ;;  %s319_s3 = inlined_call_operand.vmem [shape: f32[1,16], index: 3, kind: input, shape index: {}]   ;;  %s320_s4 = inlined_call_operand.vmem [shape: f32[1,32], index: 4, kind: input, shape index: {}]   ;;  %s321_s5 = inlined_call_operand.vmem [shape: f32[1,32], index: 5, kind: input, shape index: {}]   ;;  %s322_s6 = inlined_call_operand.vmem [shape: bf16[32,32], index: 6, kind: output, shape index: {}]  }
   0x1   :  { %v238_v0 = vld [vmem:[%s316_s1] sm:$0xff]   ;;  %31 = vst.msk [vmem:[#allocation2 + $0x10] sm:$0xff] %vm28_vm0, %v239_v1  ;;  %29 = vst.msk [vmem:[#allocation2] sm:$0xff] %vm28_vm0, %v239_v1  ;;  %v227_v3 = vld [vmem:[%s317_s0 + $0x8] sm:$0xff]  }
   0x2   :  { %30 = vst.msk [vmem:[#allocation2 + $0x8] sm:$0xff] %vm28_vm0, %v239_v1  ;;  %32 = vst.msk [vmem:[#allocation2 + $0x18] sm:$0xff] %vm28_vm0, %v239_v1  ;;  %v220_v2 = vld [vmem:[%s317_s0] sm:$0xff]   ;;  %231 = vmatprep.subr.bf16.mxu0 %v238_v0  ;;  %v225_v7 = vunpack.c.l.bf16 %v227_v3  ;;  %v226_v8 = vunpack.c.h.bf16 %v227_v3 }
   0x3   :  { %v204_v4 = vld [vmem:[%s318_s2] ss:$0 sm:$0xff]  ;;  %v221_v5 = vunpack.c.l.bf16 %v220_v2  ;;  %v222_v6 = vunpack.c.h.bf16 %v220_v2  ;;  %232 = vmatpush3.bf16.msra.mxu0 %v238_v0 }
   0x4   :  { %v205_v9 = vld [vmem:[%s319_s3] ss:$0 sm:$0xff]  ;;  %v50_v12 = vmul.f32 %v225_v7, %v204_v4  ;;  %v51_v13 = vmul.f32 %v226_v8, %v204_v4 }
   0x5   :  { %v48_v10 = vmul.f32 %v221_v5, %v204_v4  ;;  %v49_v11 = vmul.f32 %v222_v6, %v204_v4  ;;  %v209_v36 = vld [vmem:[%s320_s4] ss:$0 sm:$0xff] }
   0x6   :  { %v61_v16 = vadd.f32 %v205_v9, %v50_v12  ;;  %v62_v17 = vadd.f32 %v205_v9, %v51_v13  ;;  %v210_v38 = vld [vmem:[%s321_s5] ss:$0 sm:$0xff] }
   0x7   :  { %v59_v14 = vadd.f32 %v205_v9, %v48_v10  ;;  %v60_v15 = vadd.f32 %v205_v9, %v49_v11 }
   0x8   :  { %v65_v20 = vmax.f32 %v61_v16, 0.0  ;;  %v66_v21 = vmax.f32 %v62_v17, 0.0  ;;  %v69_v24 = vld [vmem:[#allocation2 + $0x10] sm:$0xff]  ;;  %v67_v26 = vld [vmem:[#allocation2] sm:$0xff] }
   0x9   :  { %v63_v18 = vmax.f32 %v59_v14, 0.0  ;;  %v64_v19 = vmax.f32 %v60_v15, 0.0  ;;  %v70_v29 = vld [vmem:[#allocation2 + $0x18] sm:$0xff]  ;;  %v68_v32 = vld [vmem:[#allocation2 + $0x8] sm:$0xff] }
   0xa   :  { %v72_v23 = vpack.c.bf16 %v66_v21, %v65_v20 }
   0xb   :  { %v71_v22 = vpack.c.bf16 %v64_v19, %v63_v18 }
   0xd   :  { %233 = vmatprep.mubr.msk.bf16.mxu0 %vm81_vm1, %v71_v22 }
   0xe   :  { %234 = vmatmul.mubr.msk.bf16.vlgmr.msra.gmra.mxu0 %vm81_vm1, %v72_v23 }
  0xce   :  { %v235_v25 = vpop.f32.mrf.mxu0 }
  0xcf   :  { %v139_v27 = vadd.f32 %v235_v25, %v69_v24 }
  0xd0   :  { %v122_v28 = vpop.f32.mrf.mxu0 }
  0xd1   :  { %144 = vst.msk [vmem:[#allocation2 + $0x10] sm:$0xff] %vm28_vm0, %v139_v27  ;;  %v137_v30 = vadd.f32 %v122_v28, %v67_v26 }
  0xd2   :  { %v236_v31 = vpop.f32.mrf.mxu0 }
  0xd3   :  { %142 = vst.msk [vmem:[#allocation2] sm:$0xff] %vm28_vm0, %v137_v30  ;;  %v140_v33 = vadd.f32 %v236_v31, %v70_v29 }
  0xd4   :  { %v125_v34 = vpop.f32.mrf.mxu0 }
  0xd5   :  { %145 = vst.msk [vmem:[#allocation2 + $0x18] sm:$0xff] %vm28_vm0, %v140_v33  ;;  %v138_v35 = vadd.f32 %v125_v34, %v68_v32 }
  0xd7   :  { %143 = vst.msk [vmem:[#allocation2 + $0x8] sm:$0xff] %vm28_vm0, %v138_v35 }
  0xd8   :  { %v151_v37 = vld [vmem:[#allocation2 + $0x10] sm:$0xff] }
  0xd9   :  { %v162_v39 = vmul.f32 %v209_v36, %v151_v37 }
  0xda   :  { %v149_v40 = vld [vmem:[#allocation2] sm:$0xff] }
  0xdb   :  { %v173_v41 = vadd.f32 %v210_v38, %v162_v39  ;;  %v160_v42 = vmul.f32 %v209_v36, %v149_v40 }
  0xdc   :  { %v152_v43 = vld [vmem:[#allocation2 + $0x18] sm:$0xff] }
  0xdd   :  { %v177_v44 = vmax.f32 %v173_v41, 0.0  ;;  %v171_v45 = vadd.f32 %v210_v38, %v160_v42  ;;  %v163_v46 = vmul.f32 %v209_v36, %v152_v43 }
  0xde   :  { %v150_v47 = vld [vmem:[#allocation2 + $0x8] sm:$0xff] }
  0xdf   :  { %v217_v48 = vpack.c.bf16 %v177_v44, %v177_v44  ;;  %v175_v49 = vmax.f32 %v171_v45, 0.0  ;;  %v174_v50 = vadd.f32 %v210_v38, %v163_v46  ;;  %v161_v51 = vmul.f32 %v209_v36, %v150_v47 }
  0xe1   :  { %198 = vst.msk [vmem:[%s322_s6 + $0x8] sm:$0xf] %vm195_vm2, %v217_v48  ;;  %v215_v52 = vpack.c.bf16 %v175_v49, %v175_v49  ;;  %v178_v53 = vmax.f32 %v174_v50, 0.0  ;;  %v172_v54 = vadd.f32 %v210_v38, %v161_v51 }
  0xe3   :  { %196 = vst.msk [vmem:[%s322_s6] sm:$0xf] %vm195_vm2, %v215_v52  ;;  %v218_v55 = vpack.c.bf16 %v178_v53, %v178_v53  ;;  %v176_v56 = vmax.f32 %v172_v54, 0.0 }
  0xe5   :  { %199 = vst.msk [vmem:[%s322_s6 + $0xc] sm:$0xf] %vm195_vm2, %v218_v55  ;;  %v216_v57 = vpack.c.bf16 %v176_v56, %v176_v56 }
  0xe7   :  { %197 = vst.msk [vmem:[%s322_s6 + $0x4] sm:$0xf] %vm195_vm2, %v216_v57 }

// kernel: densenet_forward.38
= control target key start
LH: loop header
LB: loop body
LE: loop exit
PB: predicated region body
PF: predicated region fallthrough
CT: control target
= control target key end

     0   :  { %vm92_vm0 = vcmask 1043456   ;;  %vm28_vm1 = vcmask 261120   ;;  %v253_v1 = vmov 0.0   ;;  %vm85_vm2 = vcmask 195584   ;;  %s333_s1 = inlined_call_operand.vmem [shape: bf16[24,32], index: 1, kind: input, shape index: {}]   ;;  %s334_s0 = inlined_call_operand.vmem [shape: bf16[32,24], index: 0, kind: input, shape index: {}]   ;;  %s335_s2 = inlined_call_operand.vmem [shape: f32[1,24], index: 2, kind: input, shape index: {}]   ;;  %s336_s3 = inlined_call_operand.vmem [shape: f32[1,24], index: 3, kind: input, shape index: {}]   ;;  %s337_s4 = inlined_call_operand.vmem [shape: f32[1,32], index: 4, kind: input, shape index: {}]   ;;  %s338_s5 = inlined_call_operand.vmem [shape: f32[1,32], index: 5, kind: input, shape index: {}]   ;;  %s339_s6 = inlined_call_operand.vmem [shape: bf16[32,32], index: 6, kind: output, shape index: {}]  }
   0x1   :  { %v251_v0 = vld [vmem:[%s333_s1 + $0x8] ss:$0 sps:$4 sm:$0xff]   ;;  %31 = vst.msk [vmem:[#allocation2 + $0x10] sm:$0xff] %vm28_vm1, %v253_v1  ;;  %29 = vst.msk [vmem:[#allocation2] sm:$0xff] %vm28_vm1, %v253_v1  ;;  %v252_v2 = vld [vmem:[%s333_s1] sm:$0xff]   ;;  %vm203_vm3 = vcmask 257024  }
   0x2   :  { %30 = vst.msk [vmem:[#allocation2 + $0x8] sm:$0xff] %vm28_vm1, %v253_v1  ;;  %32 = vst.msk [vmem:[#allocation2 + $0x18] sm:$0xff] %vm28_vm1, %v253_v1  ;;  %v229_v3 = vld [vmem:[%s334_s0] sm:$0xff]   ;;  %249 = vmatprep.subr.msk.bf16.mxu0 %vm92_vm0, %v251_v0  ;;  %v94_v4 = vsel %vm92_vm0, %v251_v0, 0  ;;  %v236_v7 = vld [vmem:[%s334_s0 + $0x8] sm:$0xff]  }
   0x3   :  { %v230_v5 = vunpack.c.l.bf16 %v229_v3  ;;  %v231_v6 = vunpack.c.h.bf16 %v229_v3  ;;  %v212_v8 = vld [vmem:[%s335_s2] ss:$0 sm:$0xff]  ;;  %242 = vmatpush3.bf16.msra.mxu0 %v94_v4  ;;  %v234_v9 = vunpack.c.l.bf16 %v236_v7  ;;  %v235_v10 = vunpack.c.h.bf16 %v236_v7 }
   0x4   :  { %v213_v11 = vld [vmem:[%s336_s3] ss:$0 sm:$0xff]  ;;  %243 = vmatprep.subr.bf16.mxu0 %v252_v2 }
   0x5   :  { %v48_v12 = vmul.f32 %v230_v5, %v212_v8  ;;  %v49_v13 = vmul.f32 %v231_v6, %v212_v8  ;;  %v50_v14 = vmul.f32 %v234_v9, %v212_v8  ;;  %v51_v15 = vmul.f32 %v235_v10, %v212_v8  ;;  %v218_v38 = vld [vmem:[%s337_s4] ss:$0 sm:$0xff] }
   0x6   :  { %v219_v40 = vld [vmem:[%s338_s5] ss:$0 sm:$0xff] }
   0x7   :  { %v59_v16 = vadd.f32 %v213_v11, %v48_v12  ;;  %v60_v17 = vadd.f32 %v213_v11, %v49_v13  ;;  %244 = vmatpush3.bf16.msra.mxu0 %v252_v2  ;;  %v61_v18 = vadd.f32 %v213_v11, %v50_v14  ;;  %v62_v19 = vadd.f32 %v213_v11, %v51_v15 }
   0x8   :  { %v69_v26 = vld [vmem:[#allocation2 + $0x10] sm:$0xff]  ;;  %v67_v28 = vld [vmem:[#allocation2] sm:$0xff] }
   0x9   :  { %v63_v20 = vmax.f32 %v59_v16, 0.0  ;;  %v64_v21 = vmax.f32 %v60_v17, 0.0  ;;  %v65_v22 = vmax.f32 %v61_v18, 0.0  ;;  %v66_v23 = vmax.f32 %v62_v19, 0.0  ;;  %v70_v31 = vld [vmem:[#allocation2 + $0x18] sm:$0xff]  ;;  %v68_v34 = vld [vmem:[#allocation2 + $0x8] sm:$0xff] }
   0xb   :  { %v71_v24 = vpack.c.bf16 %v64_v21, %v63_v20  ;;  %v72_v25 = vpack.c.bf16 %v66_v23, %v65_v22 }
   0xd   :  { %245 = vmatprep.mubr.msk.bf16.mxu0 %vm85_vm2, %v71_v24 }
   0xe   :  { %246 = vmatmul.mubr.msk.bf16.vlgmr.msra.gmra.mxu0 %vm85_vm2, %v72_v25 }
  0xce   :  { %v247_v27 = vpop.f32.mrf.mxu0 }
  0xcf   :  { %v147_v29 = vadd.f32 %v247_v27, %v69_v26 }
  0xd0   :  { %v130_v30 = vpop.f32.mrf.mxu0 }
  0xd1   :  { %152 = vst.msk [vmem:[#allocation2 + $0x10] sm:$0xff] %vm28_vm1, %v147_v29  ;;  %v145_v32 = vadd.f32 %v130_v30, %v67_v28 }
  0xd2   :  { %v248_v33 = vpop.f32.mrf.mxu0 }
  0xd3   :  { %150 = vst.msk [vmem:[#allocation2] sm:$0xff] %vm28_vm1, %v145_v32  ;;  %v148_v35 = vadd.f32 %v248_v33, %v70_v31 }
  0xd4   :  { %v133_v36 = vpop.f32.mrf.mxu0 }
  0xd5   :  { %153 = vst.msk [vmem:[#allocation2 + $0x18] sm:$0xff] %vm28_vm1, %v148_v35  ;;  %v146_v37 = vadd.f32 %v133_v36, %v68_v34 }
  0xd7   :  { %151 = vst.msk [vmem:[#allocation2 + $0x8] sm:$0xff] %vm28_vm1, %v146_v37 }
  0xd8   :  { %v159_v39 = vld [vmem:[#allocation2 + $0x10] sm:$0xff] }
  0xd9   :  { %v170_v41 = vmul.f32 %v218_v38, %v159_v39 }
  0xda   :  { %v157_v42 = vld [vmem:[#allocation2] sm:$0xff] }
  0xdb   :  { %v181_v43 = vadd.f32 %v219_v40, %v170_v41  ;;  %v168_v44 = vmul.f32 %v218_v38, %v157_v42 }
  0xdc   :  { %v160_v45 = vld [vmem:[#allocation2 + $0x18] sm:$0xff] }
  0xdd   :  { %v185_v46 = vmax.f32 %v181_v43, 0.0  ;;  %v179_v47 = vadd.f32 %v219_v40, %v168_v44  ;;  %v171_v48 = vmul.f32 %v218_v38, %v160_v45 }
  0xde   :  { %v158_v49 = vld [vmem:[#allocation2 + $0x8] sm:$0xff] }
  0xdf   :  { %v226_v50 = vpack.c.bf16 %v185_v46, %v185_v46  ;;  %v183_v51 = vmax.f32 %v179_v47, 0.0  ;;  %v182_v52 = vadd.f32 %v219_v40, %v171_v48  ;;  %v169_v53 = vmul.f32 %v218_v38, %v158_v49 }
  0xe1   :  { %206 = vst.msk [vmem:[%s339_s6 + $0x8] sm:$0xf] %vm203_vm3, %v226_v50  ;;  %v224_v54 = vpack.c.bf16 %v183_v51, %v183_v51  ;;  %v186_v55 = vmax.f32 %v182_v52, 0.0  ;;  %v180_v56 = vadd.f32 %v219_v40, %v169_v53 }
  0xe3   :  { %204 = vst.msk [vmem:[%s339_s6] sm:$0xf] %vm203_vm3, %v224_v54  ;;  %v227_v57 = vpack.c.bf16 %v186_v55, %v186_v55  ;;  %v184_v58 = vmax.f32 %v180_v56, 0.0 }
  0xe5   :  { %207 = vst.msk [vmem:[%s339_s6 + $0xc] sm:$0xf] %vm203_vm3, %v227_v57  ;;  %v225_v59 = vpack.c.bf16 %v184_v58, %v184_v58 }
  0xe7   :  { %205 = vst.msk [vmem:[%s339_s6 + $0x4] sm:$0xf] %vm203_vm3, %v225_v59 }

// kernel: densenet_forward.40
= control target key start
LH: loop header
LB: loop body
LE: loop exit
PB: predicated region body
PF: predicated region fallthrough
CT: control target
= control target key end

     0   :  { %vm22_vm0 = vcmask 130048   ;;  %v218_v1 = vmov 0.0   ;;  %vm83_vm1 = vcmask 261120   ;;  %vm171_vm2 = vcmask 125952   ;;  %s282_s1 = inlined_call_operand.vmem [shape: bf16[32,16], index: 1, kind: input, shape index: {}]   ;;  %s283_s0 = inlined_call_operand.vmem [shape: bf16[32,32], index: 0, kind: input, shape index: {}]   ;;  %s284_s2 = inlined_call_operand.vmem [shape: f32[1,32], index: 2, kind: input, shape index: {}]   ;;  %s285_s3 = inlined_call_operand.vmem [shape: f32[1,32], index: 3, kind: input, shape index: {}]   ;;  %s286_s4 = inlined_call_operand.vmem [shape: bf16[32,16], index: 4, kind: output, shape index: {}]  }
   0x1   :  { %v216_v0 = vld [vmem:[%s282_s1 + $0x8] sm:$0xff]   ;;  %25 = vst.msk [vmem:[#allocation2 + $0x10] sm:$0xff] %vm22_vm0, %v218_v1  ;;  %23 = vst.msk [vmem:[#allocation2] sm:$0xff] %vm22_vm0, %v218_v1  ;;  %v217_v2 = vld [vmem:[%s282_s1] sm:$0xff]  }
   0x2   :  { %24 = vst.msk [vmem:[#allocation2 + $0x8] sm:$0xff] %vm22_vm0, %v218_v1  ;;  %26 = vst.msk [vmem:[#allocation2 + $0x18] sm:$0xff] %vm22_vm0, %v218_v1  ;;  %207 = vmatprep.subr.bf16.mxu0 %v216_v0  ;;  %v195_v3 = vld [vmem:[%s283_s0] sm:$0xff]   ;;  %v202_v4 = vld [vmem:[%s283_s0 + $0x8] sm:$0xff]  }
   0x3   :  { %v180_v5 = vld [vmem:[%s284_s2] ss:$0 sm:$0xff]  ;;  %208 = vmatpush3.bf16.msra.mxu0 %v216_v0  ;;  %v196_v6 = vunpack.c.l.bf16 %v195_v3  ;;  %v197_v7 = vunpack.c.h.bf16 %v195_v3  ;;  %v200_v8 = vunpack.c.l.bf16 %v202_v4  ;;  %v201_v9 = vunpack.c.h.bf16 %v202_v4 }
   0x4   :  { %209 = vmatprep.subr.bf16.mxu0 %v217_v2  ;;  %v181_v10 = vld [vmem:[%s285_s3] ss:$0 sm:$0xff] }
   0x5   :  { %v42_v11 = vmul.f32 %v196_v6, %v180_v5  ;;  %v43_v12 = vmul.f32 %v197_v7, %v180_v5  ;;  %v44_v13 = vmul.f32 %v200_v8, %v180_v5  ;;  %v45_v14 = vmul.f32 %v201_v9, %v180_v5 }
   0x7   :  { %210 = vmatpush3.bf16.msra.mxu0 %v217_v2  ;;  %v53_v15 = vadd.f32 %v181_v10, %v42_v11  ;;  %v54_v16 = vadd.f32 %v181_v10, %v43_v12  ;;  %v55_v17 = vadd.f32 %v181_v10, %v44_v13  ;;  %v56_v18 = vadd.f32 %v181_v10, %v45_v14 }
   0x8   :  { %v63_v25 = vld [vmem:[#allocation2 + $0x10] sm:$0xff]  ;;  %v61_v27 = vld [vmem:[#allocation2] sm:$0xff] }
   0x9   :  { %v57_v19 = vmax.f32 %v53_v15, 0.0  ;;  %v58_v20 = vmax.f32 %v54_v16, 0.0  ;;  %v59_v21 = vmax.f32 %v55_v17, 0.0  ;;  %v60_v22 = vmax.f32 %v56_v18, 0.0  ;;  %v64_v30 = vld [vmem:[#allocation2 + $0x18] sm:$0xff]  ;;  %v62_v33 = vld [vmem:[#allocation2 + $0x8] sm:$0xff] }
   0xb   :  { %v65_v23 = vpack.c.bf16 %v58_v20, %v57_v19  ;;  %v66_v24 = vpack.c.bf16 %v60_v22, %v59_v21 }
   0xd   :  { %211 = vmatprep.mubr.msk.bf16.mxu0 %vm83_vm1, %v65_v23 }
   0xe   :  { %212 = vmatmul.mubr.msk.bf16.vlgmr.msra.gmra.mxu0 %vm83_vm1, %v66_v24 }
  0xce   :  { %v213_v26 = vpop.f32.mrf.mxu0 }
  0xcf   :  { %v141_v28 = vadd.f32 %v213_v26, %v63_v25 }
  0xd0   :  { %v124_v29 = vpop.f32.mrf.mxu0 }
  0xd1   :  { %146 = vst.msk [vmem:[#allocation2 + $0x10] sm:$0xff] %vm22_vm0, %v141_v28  ;;  %v139_v31 = vadd.f32 %v124_v29, %v61_v27 }
  0xd2   :  { %v214_v32 = vpop.f32.mrf.mxu0 }
  0xd3   :  { %144 = vst.msk [vmem:[#allocation2] sm:$0xff] %vm22_vm0, %v139_v31  ;;  %v142_v34 = vadd.f32 %v214_v32, %v64_v30 }
  0xd4   :  { %v127_v35 = vpop.f32.mrf.mxu0 }
  0xd5   :  { %147 = vst.msk [vmem:[#allocation2 + $0x18] sm:$0xff] %vm22_vm0, %v142_v34  ;;  %v140_v36 = vadd.f32 %v127_v35, %v62_v33 }
  0xd7   :  { %145 = vst.msk [vmem:[#allocation2 + $0x8] sm:$0xff] %vm22_vm0, %v140_v36 }
  0xd8   :  { %v153_v37 = vld [vmem:[#allocation2 + $0x10] sm:$0xff] }
  0xd9   :  { %v192_v38 = vpack.c.bf16 %v153_v37, %v153_v37 }
  0xda   :  { %v151_v39 = vld [vmem:[#allocation2] sm:$0xff] }
  0xdb   :  { %174 = vst.msk [vmem:[%s286_s4 + $0x8] sm:$0xf] %vm171_vm2, %v192_v38  ;;  %v190_v40 = vpack.c.bf16 %v151_v39, %v151_v39 }
  0xdc   :  { %v154_v41 = vld [vmem:[#allocation2 + $0x18] sm:$0xff] }
  0xdd   :  { %172 = vst.msk [vmem:[%s286_s4] sm:$0xf] %vm171_vm2, %v190_v40  ;;  %v193_v42 = vpack.c.bf16 %v154_v41, %v154_v41 }
  0xde   :  { %v152_v43 = vld [vmem:[#allocation2 + $0x8] sm:$0xff] }
  0xdf   :  { %175 = vst.msk [vmem:[%s286_s4 + $0xc] sm:$0xf] %vm171_vm2, %v193_v42  ;;  %v191_v44 = vpack.c.bf16 %v152_v43, %v152_v43 }
  0xe1   :  { %173 = vst.msk [vmem:[%s286_s4 + $0x4] sm:$0xf] %vm171_vm2, %v191_v44 }

// kernel: densenet_forward.37
= control target key start
LH: loop header
LB: loop body
LE: loop exit
PB: predicated region body
PF: predicated region fallthrough
CT: control target
= control target key end

     0   :  { %vm207_vm0 = vcmask 261120   ;;  %vm16_vm1 = vcmask 64512   ;;  %v454_v24 = vmov 0.0   ;;  %vm344_vm2 = vcmask 60416   ;;  %s566_s1 = inlined_call_operand.vmem [shape: bf16[288,8], index: 1, kind: input, shape index: {}]   ;;  %s567_s0 = inlined_call_operand.vmem [shape: bf16[32,288], index: 0, kind: input, shape index: {}]   ;;  %s568_s2 = inlined_call_operand.vmem [shape: bf16[32,8], index: 2, kind: output, shape index: {}]  }
   0x1   :  { %v428_v0 = vld [vmem:[%s566_s1 + $0x78] sm:$0xff]   ;;  %v430_v2 = vld [vmem:[%s566_s1 + $0x70] sm:$0xff]   ;;  %v432_v4 = vld [vmem:[%s566_s1 + $0x68] sm:$0xff]   ;;  %17 = vst.msk [vmem:[#allocation2] sm:$0xff] %vm16_vm1, %v454_v24 }
   0x2   :  { %v429_v1 = vld [vmem:[%s566_s1 + $0x38] sm:$0xff]   ;;  %387 = vmatprep.subr.bf16.mxu0 %v428_v0  ;;  %v431_v3 = vld [vmem:[%s566_s1 + $0x30] sm:$0xff]   ;;  %v433_v5 = vld [vmem:[%s566_s1 + $0x28] sm:$0xff]   ;;  %18 = vst.msk [vmem:[#allocation2 + $0x8] sm:$0xff] %vm16_vm1, %v454_v24 }
   0x3   :  { %388 = vmatpush3.bf16.msra.mxu0 %v429_v1  ;;  %v434_v6 = vld [vmem:[%s566_s1 + $0x60] sm:$0xff]   ;;  %v436_v8 = vld [vmem:[%s566_s1 + $0x58] sm:$0xff]   ;;  %v442_v9 = vld [vmem:[%s566_s1 + $0x88] sm:$0xff]   ;;  %19 = vst.msk [vmem:[#allocation2 + $0x10] sm:$0xff] %vm16_vm1, %v454_v24 }
   0x4   :  { %389 = vmatprep.subr.bf16.mxu0 %v430_v2  ;;  %v435_v7 = vld [vmem:[%s566_s1 + $0x20] sm:$0xff]   ;;  %v437_v10 = vld [vmem:[%s566_s1 + $0x18] sm:$0xff]   ;;  %v438_v11 = vld [vmem:[%s566_s1 + $0x50] sm:$0xff]   ;;  %419 = vmatprep.subr.bf16.mxu1 %v442_v9  ;;  %20 = vst.msk [vmem:[#allocation2 + $0x18] sm:$0xff] %vm16_vm1, %v454_v24 }
   0x5   :  { %v439_v12 = vld [vmem:[%s566_s1 + $0x10] sm:$0xff]   ;;  %420 = vmatpush3.bf16.msra.mxu1 %v442_v9  ;;  %v445_v13 = vld [vmem:[%s566_s1 + $0x80] sm:$0xff]   ;;  %v440_v14 = vld [vmem:[%s566_s1 + $0x48] sm:$0xff]  }
   0x6   :  { %421 = vmatprep.subr.bf16.mxu1 %v445_v13  ;;  %v448_v15 = vld [vmem:[%s567_s0 + $0x4] ss:$12 sps:$4 sm:$0xff]   ;;  %v449_v16 = vld [vmem:[%s567_s0 + $0x8] ss:$12 sps:$4 sm:$0xff]   ;;  %v450_v17 = vld [vmem:[%s567_s0 + $0x20] ss:$12 sps:$4 sm:$0xff]  }
   0x7   :  { %390 = vmatpush3.bf16.msra.mxu0 %v431_v3  ;;  %246 = vmatprep.mubr.bf16.mxu0 %v448_v15  ;;  %v441_v18 = vld [vmem:[%s566_s1 + $0x8] sm:$0xff]   ;;  %v443_v19 = vld [vmem:[%s566_s1 + $0x40] sm:$0xff]  }
   0x8   :  { %391 = vmatprep.subr.bf16.mxu0 %v432_v4  ;;  %423 = vmatprep.mubr.msk.bf16.mxu1 %vm207_vm0, %v449_v16  ;;  %v444_v20 = vld [vmem:[%s566_s1] sm:$0xff]   ;;  %v451_v22 = vld [vmem:[%s567_s0 + $0x1c] ss:$12 sps:$4 sm:$0xff]  }
   0x9   :  { %422 = vmatpush3.bf16.msra.mxu1 %v445_v13  ;;  %v446_v21 = vld [vmem:[%s567_s0] ss:$12 sps:$4 sm:$0xff]   ;;  %v453_v23 = vld [vmem:[%s567_s0 + $0x18] ss:$12 sps:$4 sm:$0xff]  }
   0xa   :  { %v29_v32 = vld [vmem:[#allocation2] sm:$0xff]  ;;  %v30_v39 = vld [vmem:[#allocation2 + $0x8] sm:$0xff]  ;;  %v31_v44 = vld [vmem:[#allocation2 + $0x10] sm:$0xff] }
   0xb   :  { %392 = vmatpush3.bf16.msra.mxu0 %v433_v5  ;;  %v32_v51 = vld [vmem:[#allocation2 + $0x18] sm:$0xff] }
   0xc   :  { %393 = vmatprep.subr.bf16.mxu0 %v434_v6  ;;  %424 = vmatmul.mubr.msk.bf16.vlgmr.msra.gmra.mxu1 %vm207_vm0, %v450_v17 }
   0xf   :  { %394 = vmatpush3.bf16.msra.mxu0 %v435_v7 }
  0x10   :  { %395 = vmatprep.subr.bf16.mxu0 %v436_v8 }
  0x13   :  { %396 = vmatpush3.bf16.msra.mxu0 %v437_v10 }
  0x14   :  { %397 = vmatprep.subr.bf16.mxu0 %v438_v11 }
  0x17   :  { %398 = vmatpush3.bf16.msra.mxu0 %v439_v12 }
  0x18   :  { %399 = vmatprep.subr.bf16.mxu0 %v440_v14 }
  0x1b   :  { %400 = vmatpush3.bf16.msra.mxu0 %v441_v18 }
  0x1c   :  { %401 = vmatprep.subr.bf16.mxu0 %v443_v19 }
  0x1f   :  { %402 = vmatpush3.bf16.msra.mxu0 %v444_v20 }
  0x22   :  { %247 = vmatmul.mubr.bf16.vlgmr.msra.gmra.mxu0 %v446_v21 }
  0x23   :  { %254 = vmatprep.mubr.bf16.mxu0 %v451_v22 }
  0x2a   :  { %255 = vmatmul.mubr.bf16.gmra.mxu0 %v453_v23 }
  0xcc   :  { %v425_v25 = vpop.f32.mrf.mxu1 }
  0xce   :  { %v297_v26 = vpop.f32.mrf.mxu1 }
  0xd0   :  { %v426_v29 = vpop.f32.mrf.mxu1 }
  0xd2   :  { %v300_v35 = vpop.f32.mrf.mxu1 }
  0xe2   :  { %v403_v27 = vpop.f32.mrf.mxu0 }
  0xe4   :  { %v404_v28 = vpop.f32.mrf.mxu0 }
  0xe5   :  { %v405_v30 = vadd.f32 %v404_v28, %v403_v27 }
  0xe6   :  { %v406_v31 = vpop.f32.mrf.mxu0 }
  0xe7   :  { %v298_v33 = vadd.f32 %v405_v30, %v297_v26 }
  0xe8   :  { %v407_v34 = vpop.f32.mrf.mxu0 }
  0xe9   :  { %v312_v36 = vadd.f32 %v298_v33, %v29_v32  ;;  %v408_v37 = vadd.f32 %v407_v34, %v406_v31 }
  0xea   :  { %v409_v38 = vpop.f32.mrf.mxu0 }
  0xeb   :  { %317 = vst.msk [vmem:[#allocation2] sm:$0xff] %vm16_vm1, %v312_v36  ;;  %v301_v40 = vadd.f32 %v408_v37, %v300_v35 }
  0xec   :  { %v410_v41 = vpop.f32.mrf.mxu0 }
  0xed   :  { %v313_v42 = vadd.f32 %v301_v40, %v30_v39  ;;  %v411_v43 = vadd.f32 %v410_v41, %v409_v38 }
  0xee   :  { %v412_v45 = vpop.f32.mrf.mxu0 }
  0xef   :  { %318 = vst.msk [vmem:[#allocation2 + $0x8] sm:$0xff] %vm16_vm1, %v313_v42  ;;  %v306_v46 = vadd.f32 %v425_v25, %v411_v43 }
  0xf0   :  { %v413_v47 = vpop.f32.mrf.mxu0 }
  0xf1   :  { %v314_v48 = vadd.f32 %v306_v46, %v31_v44  ;;  %v414_v49 = vadd.f32 %v413_v47, %v412_v45 }
  0xf2   :  { %v324_v50 = vld [vmem:[#allocation2] sm:$0xff] }
  0xf3   :  { %v383_v52 = vpack.c.bf16 %v324_v50, %v324_v50  ;;  %319 = vst.msk [vmem:[#allocation2 + $0x10] sm:$0xff] %vm16_vm1, %v314_v48  ;;  %v309_v53 = vadd.f32 %v426_v29, %v414_v49 }
  0xf5   :  { %345 = vst.msk [vmem:[%s568_s2] sm:$0xf] %vm344_vm2, %v383_v52  ;;  %v315_v54 = vadd.f32 %v309_v53, %v32_v51 }
  0xf6   :  { %v325_v55 = vld [vmem:[#allocation2 + $0x8] sm:$0xff] }
  0xf7   :  { %v384_v56 = vpack.c.bf16 %v325_v55, %v325_v55  ;;  %320 = vst.msk [vmem:[#allocation2 + $0x18] sm:$0xff] %vm16_vm1, %v315_v54 }
  0xf9   :  { %346 = vst.msk [vmem:[%s568_s2 + $0x4] sm:$0xf] %vm344_vm2, %v384_v56 }
  0xfa   :  { %v326_v57 = vld [vmem:[#allocation2 + $0x10] sm:$0xff] }
  0xfb   :  { %v385_v58 = vpack.c.bf16 %v326_v57, %v326_v57 }
  0xfd   :  { %347 = vst.msk [vmem:[%s568_s2 + $0x8] sm:$0xf] %vm344_vm2, %v385_v58 }
  0xfe   :  { %v327_v59 = vld [vmem:[#allocation2 + $0x18] sm:$0xff] }
  0xff   :  { %v386_v60 = vpack.c.bf16 %v327_v59, %v327_v59 }
 0x101   :  { %348 = vst.msk [vmem:[%s568_s2 + $0xc] sm:$0xf] %vm344_vm2, %v386_v60 }

// kernel: densenet_forward.41
= control target key start
LH: loop header
LB: loop body
LE: loop exit
PB: predicated region body
PF: predicated region fallthrough
CT: control target
= control target key end

     0   :  { %vm30_vm0 = vcmask 125952   ;;  %s76_s0 = inlined_call_operand.vmem [shape: bf16[8,16], index: 0, kind: input, shape index: {}]   ;;  %s77_s1 = inlined_call_operand.vmem [shape: bf16[8,16], index: 1, kind: input, shape index: {}]   ;;  %s78_s2 = inlined_call_operand.vmem [shape: bf16[8,16], index: 2, kind: input, shape index: {}]   ;;  %s79_s3 = inlined_call_operand.vmem [shape: bf16[8,16], index: 3, kind: input, shape index: {}]   ;;  %s80_s4 = inlined_call_operand.vmem [shape: bf16[8,16], index: 4, kind: output, shape index: {}]  }
   0x1   :  { %v17_v0 = vld [vmem:[%s76_s0] sm:$0xf] }
   0x2   :  { %v19_v1 = vld [vmem:[%s77_s1] sm:$0xf]  ;;  %v18_v3 = vunpack.c.l.bf16 %v17_v0 }
   0x3   :  { %v22_v2 = vld [vmem:[%s78_s2] sm:$0xf]  ;;  %v20_v4 = vunpack.c.l.bf16 %v19_v1 }
   0x4   :  { %v23_v5 = vunpack.c.l.bf16 %v22_v2  ;;  %v25_v6 = vld [vmem:[%s79_s3] sm:$0xf] }
   0x5   :  { %v21_v7 = vadd.f32 %v20_v4, %v18_v3  ;;  %v26_v8 = vunpack.c.l.bf16 %v25_v6 }
   0x7   :  { %v24_v9 = vadd.f32 %v23_v5, %v21_v7 }
   0x9   :  { %v27_v10 = vadd.f32 %v26_v8, %v24_v9 }
   0xb   :  { %v28_v11 = vmul.f32 0.25, %v27_v10 }
   0xd   :  { %v29_v12 = vpack.c.bf16 %v28_v11, %v28_v11 }
   0xf   :  { %31 = vst.msk [vmem:[%s80_s4] sm:$0xf] %vm30_vm0, %v29_v12 }

// kernel: densenet_forward.42
= control target key start
LH: loop header
LB: loop body
LE: loop exit
PB: predicated region body
PF: predicated region fallthrough
CT: control target
= control target key end

     0   :  { %vm28_vm0 = vcmask 261120   ;;  %v151_v0 = vmov 0.0   ;;  %vm152_vm1 = vmmov 0   ;;  %vm59_vm2 = vcmask 130048   ;;  %s211_s1 = inlined_call_operand.vmem [shape: bf16[16,32], index: 1, kind: input, shape index: {}]   ;;  %s212_s0 = inlined_call_operand.vmem [shape: bf16[8,16], index: 0, kind: input, shape index: {}]   ;;  %s213_s2 = inlined_call_operand.vmem [shape: f32[1,16], index: 2, kind: input, shape index: {}]   ;;  %s214_s3 = inlined_call_operand.vmem [shape: f32[1,16], index: 3, kind: input, shape index: {}]   ;;  %s215_s4 = inlined_call_operand.vmem [shape: f32[1,32], index: 4, kind: input, shape index: {}]   ;;  %s216_s5 = inlined_call_operand.vmem [shape: f32[1,32], index: 5, kind: input, shape index: {}]   ;;  %s217_s6 = inlined_call_operand.vmem [shape: bf16[8,32], index: 6, kind: output, shape index: {}]  }
   0x1   :  { %29 = vst.msk [vmem:[#allocation2] sm:$0xff] %vm28_vm0, %v151_v0  ;;  %142 = vmatprep.subr.bf16.mxu0 %v151_v0  ;;  %v150_v1 = vld [vmem:[%s211_s1] sm:$0xff]   ;;  %144 = vmatprep.mubr.msk.bf16.mxu0 %vm152_vm1, %v151_v0  ;;  %vm128_vm3 = vcmask 257024  }
   0x2   :  { %v30_v2 = vld [vmem:[%s212_s0] sm:$0xf]  ;;  %143 = vmatpush3.bf16.msra.mxu0 %v150_v1 }
   0x3   :  { %v134_v3 = vld [vmem:[%s213_s2] ss:$0 sm:$0xff]  ;;  %v31_v4 = vunpack.c.l.bf16 %v30_v2 }
   0x4   :  { %v135_v5 = vld [vmem:[%s214_s3] ss:$0 sm:$0xff] }
   0x5   :  { %v39_v6 = vmul.f32 %v134_v3, %v31_v4  ;;  %v138_v16 = vld [vmem:[%s215_s4] ss:$0 sm:$0xff] }
   0x6   :  { %v139_v18 = vld [vmem:[%s216_s5] ss:$0 sm:$0xff] }
   0x7   :  { %v47_v7 = vadd.f32 %v135_v5, %v39_v6 }
   0x8   :  { %v49_v10 = vld [vmem:[#allocation2] sm:$0xff] }
   0x9   :  { %v48_v8 = vmax.f32 %v47_v7, 0.0 }
   0xb   :  { %v50_v9 = vpack.c.bf16 %v48_v8, %v48_v8 }
   0xd   :  { %145 = vmatmul.mubr.msk.bf16.vlgmr.msra.gmra.mxu0 %vm59_vm2, %v50_v9 }
  0xcd   :  { %v97_v11 = vpop.f32.mrf.mxu0 }
  0xce   :  { %v103_v12 = vadd.f32 %v97_v11, %v49_v10 }
  0xcf   :  { %v146_v13 = vpop.f32.mrf.mxu0 }
  0xd0   :  { %105 = vst.msk [vmem:[#allocation2] sm:$0xff] %vm28_vm0, %v103_v12 }
  0xd1   :  { %v100_v14 = vpop.f32.mrf.mxu0 }
  0xd3   :  { %v147_v15 = vpop.f32.mrf.mxu0 }
  0xd7   :  { %v109_v17 = vld [vmem:[#allocation2] sm:$0xff] }
  0xd8   :  { %v117_v19 = vmul.f32 %v138_v16, %v109_v17 }
  0xda   :  { %v125_v20 = vadd.f32 %v139_v18, %v117_v19 }
  0xdc   :  { %v126_v21 = vmax.f32 %v125_v20, 0.0 }
  0xde   :  { %v127_v22 = vpack.c.bf16 %v126_v21, %v126_v21 }
  0xe0   :  { %129 = vst.msk [vmem:[%s217_s6] sm:$0xf] %vm128_vm3, %v127_v22 }

// kernel: densenet_forward.44
= control target key start
LH: loop header
LB: loop body
LE: loop exit
PB: predicated region body
PF: predicated region fallthrough
CT: control target
= control target key end

     0   :  { %vm28_vm0 = vcmask 261120   ;;  %vm67_vm1 = vcmask 1043456   ;;  %v164_v0 = vmov 0.0   ;;  %vm165_vm2 = vmmov 0   ;;  %s227_s1 = inlined_call_operand.vmem [shape: bf16[24,32], index: 1, kind: input, shape index: {}]   ;;  %s228_s0 = inlined_call_operand.vmem [shape: bf16[8,24], index: 0, kind: input, shape index: {}]   ;;  %s229_s2 = inlined_call_operand.vmem [shape: f32[1,24], index: 2, kind: input, shape index: {}]   ;;  %s230_s3 = inlined_call_operand.vmem [shape: f32[1,24], index: 3, kind: input, shape index: {}]   ;;  %s231_s4 = inlined_call_operand.vmem [shape: f32[1,32], index: 4, kind: input, shape index: {}]   ;;  %s232_s5 = inlined_call_operand.vmem [shape: f32[1,32], index: 5, kind: input, shape index: {}]   ;;  %s233_s6 = inlined_call_operand.vmem [shape: bf16[8,32], index: 6, kind: output, shape index: {}]  }
   0x1   :  { %29 = vst.msk [vmem:[#allocation2] sm:$0xff] %vm28_vm0, %v164_v0  ;;  %152 = vmatprep.subr.bf16.mxu0 %v164_v0  ;;  %v162_v1 = vld [vmem:[%s227_s1 + $0x8] ss:$0 sps:$4 sm:$0xff]   ;;  %156 = vmatprep.mubr.msk.bf16.mxu0 %vm165_vm2, %v164_v0  ;;  %v30_v2 = vld [vmem:[%s228_s0] sm:$0xf]  ;;  %vm63_vm3 = vcmask 195584  }
   0x2   :  { %v69_v3 = vsel %vm67_vm1, %v162_v1, 0  ;;  %v31_v4 = vunpack.c.l.bf16 %v30_v2  ;;  %v142_v5 = vld [vmem:[%s229_s2] ss:$0 sm:$0xff]  ;;  %vm136_vm4 = vcmask 257024  }
   0x3   :  { %153 = vmatpush3.bf16.msra.mxu0 %v69_v3  ;;  %v163_v6 = vld [vmem:[%s227_s1] sm:$0xff]  }
   0x4   :  { %v143_v7 = vld [vmem:[%s230_s3] ss:$0 sm:$0xff]  ;;  %154 = vmatprep.subr.bf16.mxu0 %v164_v0  ;;  %v39_v8 = vmul.f32 %v142_v5, %v31_v4 }
   0x5   :  { %v147_v18 = vld [vmem:[%s231_s4] ss:$0 sm:$0xff] }
   0x6   :  { %v47_v9 = vadd.f32 %v143_v7, %v39_v8  ;;  %v148_v20 = vld [vmem:[%s232_s5] ss:$0 sm:$0xff] }
   0x7   :  { %155 = vmatpush3.bf16.msra.mxu0 %v163_v6 }
   0x8   :  { %v48_v10 = vmax.f32 %v47_v9, 0.0  ;;  %v49_v12 = vld [vmem:[#allocation2] sm:$0xff] }
   0xa   :  { %v50_v11 = vpack.c.bf16 %v48_v10, %v48_v10 }
   0xc   :  { %157 = vmatmul.mubr.msk.bf16.vlgmr.msra.gmra.mxu0 %vm63_vm3, %v50_v11 }
  0xcc   :  { %v105_v13 = vpop.f32.mrf.mxu0 }
  0xcd   :  { %v111_v14 = vadd.f32 %v105_v13, %v49_v12 }
  0xce   :  { %v158_v15 = vpop.f32.mrf.mxu0 }
  0xcf   :  { %113 = vst.msk [vmem:[#allocation2] sm:$0xff] %vm28_vm0, %v111_v14 }
  0xd0   :  { %v108_v16 = vpop.f32.mrf.mxu0 }
  0xd2   :  { %v159_v17 = vpop.f32.mrf.mxu0 }
  0xd6   :  { %v117_v19 = vld [vmem:[#allocation2] sm:$0xff] }
  0xd7   :  { %v125_v21 = vmul.f32 %v147_v18, %v117_v19 }
  0xd9   :  { %v133_v22 = vadd.f32 %v148_v20, %v125_v21 }
  0xdb   :  { %v134_v23 = vmax.f32 %v133_v22, 0.0 }
  0xdd   :  { %v135_v24 = vpack.c.bf16 %v134_v23, %v134_v23 }
  0xdf   :  { %137 = vst.msk [vmem:[%s233_s6] sm:$0xf] %vm136_vm4, %v135_v24 }

// kernel: densenet_forward.43
= control target key start
LH: loop header
LB: loop body
LE: loop exit
PB: predicated region body
PF: predicated region fallthrough
CT: control target
= control target key end

     0   :  { %vm16_vm0 = vcmask 64512   ;;  %v351_v1 = vmov 0.0   ;;  %vm352_vm1 = vmmov 0   ;;  %vm175_vm2 = vcmask 261120   ;;  %s433_s1 = inlined_call_operand.vmem [shape: bf16[288,8], index: 1, kind: input, shape index: {}]   ;;  %s434_s0 = inlined_call_operand.vmem [shape: bf16[8,288], index: 0, kind: input, shape index: {}]   ;;  %s435_s2 = inlined_call_operand.vmem [shape: bf16[8,8], index: 2, kind: output, shape index: {}]  }
   0x1   :  { %v330_v0 = vld [vmem:[%s433_s1 + $0x78] sm:$0xff]   ;;  %17 = vst.msk [vmem:[#allocation2] sm:$0xff] %vm16_vm0, %v351_v1  ;;  %320 = vmatprep.subr.bf16.mxu1 %v351_v1  ;;  %324 = vmatprep.mubr.msk.bf16.mxu1 %vm352_vm1, %v351_v1  ;;  %v332_v3 = vld [vmem:[%s433_s1 + $0x70] sm:$0xff]   ;;  %v334_v5 = vld [vmem:[%s433_s1 + $0x68] sm:$0xff]   ;;  %vm267_vm3 = vcmask 60416  }
   0x2   :  { %v331_v2 = vld [vmem:[%s433_s1 + $0x38] sm:$0xff]   ;;  %295 = vmatprep.subr.bf16.mxu0 %v330_v0  ;;  %v333_v4 = vld [vmem:[%s433_s1 + $0x30] sm:$0xff]   ;;  %v335_v6 = vld [vmem:[%s433_s1 + $0x28] sm:$0xff]  }
   0x3   :  { %296 = vmatpush3.bf16.msra.mxu0 %v331_v2  ;;  %v336_v7 = vld [vmem:[%s433_s1 + $0x60] sm:$0xff]   ;;  %v338_v9 = vld [vmem:[%s433_s1 + $0x58] sm:$0xff]   ;;  %v342_v10 = vld [vmem:[%s433_s1 + $0x88] sm:$0xff]  }
   0x4   :  { %297 = vmatprep.subr.bf16.mxu0 %v332_v3  ;;  %v337_v8 = vld [vmem:[%s433_s1 + $0x20] sm:$0xff]   ;;  %v339_v11 = vld [vmem:[%s433_s1 + $0x18] sm:$0xff]   ;;  %321 = vmatpush3.bf16.msra.mxu1 %v342_v10  ;;  %v340_v13 = vld [vmem:[%s433_s1 + $0x50] sm:$0xff]  }
   0x5   :  { %322 = vmatprep.subr.bf16.mxu1 %v351_v1  ;;  %v345_v12 = vld [vmem:[%s433_s1 + $0x80] sm:$0xff]   ;;  %v348_v14 = vld [vmem:[%s434_s0 + $0x8] ss:$0 sps:$4 sm:$0xff]   ;;  %v341_v16 = vld [vmem:[%s433_s1 + $0x10] sm:$0xff]  }
   0x6   :  { %v18_v15 = vld [vmem:[%s434_s0] sm:$0xff]  ;;  %v343_v18 = vld [vmem:[%s433_s1 + $0x48] sm:$0xff]  }
   0x7   :  { %298 = vmatpush3.bf16.msra.mxu0 %v333_v4  ;;  %v274_v17 = vcombine.high %v18_v15, %v18_v15  ;;  %v344_v19 = vld [vmem:[%s433_s1 + $0x8] sm:$0xff]   ;;  %v346_v20 = vld [vmem:[%s433_s1 + $0x40] sm:$0xff]   ;;  %v273_v22 = vcombine.low %v18_v15, %v18_v15 }
   0x8   :  { %299 = vmatprep.subr.bf16.mxu0 %v334_v5  ;;  %323 = vmatpush3.bf16.msra.mxu1 %v345_v12  ;;  %v347_v21 = vld [vmem:[%s433_s1] sm:$0xff]  }
   0x9   :  { %211 = vmatprep.mubr.bf16.mxu0 %v274_v17  ;;  %v20_v30 = vld [vmem:[#allocation2] sm:$0xff] }
   0xb   :  { %300 = vmatpush3.bf16.msra.mxu0 %v335_v6  ;;  %325 = vmatmul.mubr.msk.bf16.vlgmr.msra.gmra.mxu1 %vm175_vm2, %v348_v14 }
   0xc   :  { %301 = vmatprep.subr.bf16.mxu0 %v336_v7 }
   0xf   :  { %302 = vmatpush3.bf16.msra.mxu0 %v337_v8 }
  0x10   :  { %303 = vmatprep.subr.bf16.mxu0 %v338_v9 }
  0x13   :  { %304 = vmatpush3.bf16.msra.mxu0 %v339_v11 }
  0x14   :  { %305 = vmatprep.subr.bf16.mxu0 %v340_v13 }
  0x17   :  { %306 = vmatpush3.bf16.msra.mxu0 %v341_v16 }
  0x18   :  { %307 = vmatprep.subr.bf16.mxu0 %v343_v18 }
  0x1b   :  { %308 = vmatpush3.bf16.msra.mxu0 %v344_v19 }
  0x1c   :  { %309 = vmatprep.subr.bf16.mxu0 %v346_v20 }
  0x1f   :  { %310 = vmatpush3.bf16.msra.mxu0 %v347_v21 }
  0x22   :  { %212 = vmatmul.mubr.bf16.vlgmr.msra.gmra.mxu0 %v273_v22 }
  0xcb   :  { %v253_v23 = vpop.f32.mrf.mxu1 }
  0xcd   :  { %v326_v24 = vpop.f32.mrf.mxu1 }
  0xcf   :  { %v256_v25 = vpop.f32.mrf.mxu1 }
  0xd1   :  { %v327_v26 = vpop.f32.mrf.mxu1 }
  0xe2   :  { %v311_v27 = vpop.f32.mrf.mxu0 }
  0xe4   :  { %v312_v28 = vpop.f32.mrf.mxu0 }
  0xe5   :  { %v313_v29 = vadd.f32 %v312_v28, %v311_v27 }
  0xe6   :  { %v314_v31 = vpop.f32.mrf.mxu0 }
  0xe7   :  { %v254_v32 = vadd.f32 %v313_v29, %v253_v23 }
  0xe8   :  { %v315_v33 = vpop.f32.mrf.mxu0 }
  0xe9   :  { %v259_v34 = vadd.f32 %v254_v32, %v20_v30 }
  0xeb   :  { %261 = vst.msk [vmem:[#allocation2] sm:$0xff] %vm16_vm0, %v259_v34 }
  0xf2   :  { %v265_v35 = vld [vmem:[#allocation2] sm:$0xff] }
  0xf3   :  { %v266_v36 = vpack.c.bf16 %v265_v35, %v265_v35 }
  0xf5   :  { %268 = vst.msk [vmem:[%s435_s2] sm:$0xf] %vm267_vm3, %v266_v36 }

// kernel: densenet_forward.46
= control target key start
LH: loop header
LB: loop body
LE: loop exit
PB: predicated region body
PF: predicated region fallthrough
CT: control target
= control target key end

     0   :  { %vm22_vm0 = vcmask 130048   ;;  %v139_v0 = vmov 0.0   ;;  %vm140_vm1 = vmmov 0   ;;  %vm61_vm2 = vcmask 261120   ;;  %s186_s1 = inlined_call_operand.vmem [shape: bf16[32,16], index: 1, kind: input, shape index: {}]   ;;  %s187_s0 = inlined_call_operand.vmem [shape: bf16[8,32], index: 0, kind: input, shape index: {}]   ;;  %s188_s2 = inlined_call_operand.vmem [shape: f32[1,32], index: 2, kind: input, shape index: {}]   ;;  %s189_s3 = inlined_call_operand.vmem [shape: f32[1,32], index: 3, kind: input, shape index: {}]   ;;  %s190_s4 = inlined_call_operand.vmem [shape: bf16[8,16], index: 4, kind: output, shape index: {}]  }
   0x1   :  { %23 = vst.msk [vmem:[#allocation2] sm:$0xff] %vm22_vm0, %v139_v0  ;;  %127 = vmatprep.subr.bf16.mxu0 %v139_v0  ;;  %v137_v1 = vld [vmem:[%s186_s1 + $0x8] sm:$0xff]   ;;  %131 = vmatprep.mubr.msk.bf16.mxu0 %vm140_vm1, %v139_v0  ;;  %v138_v2 = vld [vmem:[%s186_s1] sm:$0xff]   ;;  %vm113_vm3 = vcmask 125952  }
   0x2   :  { %128 = vmatpush3.bf16.msra.mxu0 %v137_v1  ;;  %v24_v3 = vld [vmem:[%s187_s0] sm:$0xf] }
   0x3   :  { %v119_v4 = vld [vmem:[%s188_s2] ss:$0 sm:$0xff]  ;;  %129 = vmatprep.subr.bf16.mxu0 %v139_v0  ;;  %v25_v5 = vunpack.c.l.bf16 %v24_v3 }
   0x4   :  { %v120_v6 = vld [vmem:[%s189_s3] ss:$0 sm:$0xff] }
   0x5   :  { %v33_v7 = vmul.f32 %v119_v4, %v25_v5 }
   0x6   :  { %130 = vmatpush3.bf16.msra.mxu0 %v138_v2 }
   0x7   :  { %v41_v8 = vadd.f32 %v120_v6, %v33_v7 }
   0x8   :  { %v43_v11 = vld [vmem:[#allocation2] sm:$0xff] }
   0x9   :  { %v42_v9 = vmax.f32 %v41_v8, 0.0 }
   0xb   :  { %v44_v10 = vpack.c.bf16 %v42_v9, %v42_v9 }
   0xd   :  { %132 = vmatmul.mubr.msk.bf16.vlgmr.msra.gmra.mxu0 %vm61_vm2, %v44_v10 }
  0xcd   :  { %v99_v12 = vpop.f32.mrf.mxu0 }
  0xce   :  { %v105_v13 = vadd.f32 %v99_v12, %v43_v11 }
  0xcf   :  { %v133_v14 = vpop.f32.mrf.mxu0 }
  0xd0   :  { %107 = vst.msk [vmem:[#allocation2] sm:$0xff] %vm22_vm0, %v105_v13 }
  0xd1   :  { %v102_v15 = vpop.f32.mrf.mxu0 }
  0xd3   :  { %v134_v16 = vpop.f32.mrf.mxu0 }
  0xd7   :  { %v111_v17 = vld [vmem:[#allocation2] sm:$0xff] }
  0xd8   :  { %v112_v18 = vpack.c.bf16 %v111_v17, %v111_v17 }
  0xda   :  { %114 = vst.msk [vmem:[%s190_s4] sm:$0xf] %vm113_vm3, %v112_v18 }

// kernel: densenet_forward.48
= control target key start
LH: loop header
LB: loop body
LE: loop exit
PB: predicated region body
PF: predicated region fallthrough
CT: control target
= control target key end

     0   :  { %vm28_vm0 = vcmask 261120   ;;  %v151_v0 = vmov 0.0   ;;  %vm152_vm1 = vmmov 0   ;;  %vm59_vm2 = vcmask 130048   ;;  %s211_s1 = inlined_call_operand.vmem [shape: bf16[16,32], index: 1, kind: input, shape index: {}]   ;;  %s212_s0 = inlined_call_operand.vmem [shape: bf16[8,16], index: 0, kind: input, shape index: {}]   ;;  %s213_s2 = inlined_call_operand.vmem [shape: f32[1,16], index: 2, kind: input, shape index: {}]   ;;  %s214_s3 = inlined_call_operand.vmem [shape: f32[1,16], index: 3, kind: input, shape index: {}]   ;;  %s215_s4 = inlined_call_operand.vmem [shape: f32[1,32], index: 4, kind: input, shape index: {}]   ;;  %s216_s5 = inlined_call_operand.vmem [shape: f32[1,32], index: 5, kind: input, shape index: {}]   ;;  %s217_s6 = inlined_call_operand.vmem [shape: bf16[8,32], index: 6, kind: output, shape index: {}]  }
   0x1   :  { %29 = vst.msk [vmem:[#allocation2] sm:$0xff] %vm28_vm0, %v151_v0  ;;  %142 = vmatprep.subr.bf16.mxu0 %v151_v0  ;;  %v150_v1 = vld [vmem:[%s211_s1] sm:$0xff]   ;;  %144 = vmatprep.mubr.msk.bf16.mxu0 %vm152_vm1, %v151_v0  ;;  %vm128_vm3 = vcmask 257024  }
   0x2   :  { %v30_v2 = vld [vmem:[%s212_s0] sm:$0xf]  ;;  %143 = vmatpush3.bf16.msra.mxu0 %v150_v1 }
   0x3   :  { %v134_v3 = vld [vmem:[%s213_s2] ss:$0 sm:$0xff]  ;;  %v31_v4 = vunpack.c.l.bf16 %v30_v2 }
   0x4   :  { %v135_v5 = vld [vmem:[%s214_s3] ss:$0 sm:$0xff] }
   0x5   :  { %v39_v6 = vmul.f32 %v134_v3, %v31_v4  ;;  %v138_v16 = vld [vmem:[%s215_s4] ss:$0 sm:$0xff] }
   0x6   :  { %v139_v18 = vld [vmem:[%s216_s5] ss:$0 sm:$0xff] }
   0x7   :  { %v47_v7 = vadd.f32 %v135_v5, %v39_v6 }
   0x8   :  { %v49_v10 = vld [vmem:[#allocation2] sm:$0xff] }
   0x9   :  { %v48_v8 = vmax.f32 %v47_v7, 0.0 }
   0xb   :  { %v50_v9 = vpack.c.bf16 %v48_v8, %v48_v8 }
   0xd   :  { %145 = vmatmul.mubr.msk.bf16.vlgmr.msra.gmra.mxu0 %vm59_vm2, %v50_v9 }
  0xcd   :  { %v97_v11 = vpop.f32.mrf.mxu0 }
  0xce   :  { %v103_v12 = vadd.f32 %v97_v11, %v49_v10 }
  0xcf   :  { %v146_v13 = vpop.f32.mrf.mxu0 }
  0xd0   :  { %105 = vst.msk [vmem:[#allocation2] sm:$0xff] %vm28_vm0, %v103_v12 }
  0xd1   :  { %v100_v14 = vpop.f32.mrf.mxu0 }
  0xd3   :  { %v147_v15 = vpop.f32.mrf.mxu0 }
  0xd7   :  { %v109_v17 = vld [vmem:[#allocation2] sm:$0xff] }
  0xd8   :  { %v117_v19 = vmul.f32 %v138_v16, %v109_v17 }
  0xda   :  { %v125_v20 = vadd.f32 %v139_v18, %v117_v19 }
  0xdc   :  { %v126_v21 = vmax.f32 %v125_v20, 0.0 }
  0xde   :  { %v127_v22 = vpack.c.bf16 %v126_v21, %v126_v21 }
  0xe0   :  { %129 = vst.msk [vmem:[%s217_s6] sm:$0xf] %vm128_vm3, %v127_v22 }

// kernel: densenet_forward.49
= control target key start
LH: loop header
LB: loop body
LE: loop exit
PB: predicated region body
PF: predicated region fallthrough
CT: control target
= control target key end

     0   :  { %vm16_vm0 = vcmask 64512   ;;  %v351_v1 = vmov 0.0   ;;  %vm352_vm1 = vmmov 0   ;;  %vm175_vm2 = vcmask 261120   ;;  %s433_s1 = inlined_call_operand.vmem [shape: bf16[288,8], index: 1, kind: input, shape index: {}]   ;;  %s434_s0 = inlined_call_operand.vmem [shape: bf16[8,288], index: 0, kind: input, shape index: {}]   ;;  %s435_s2 = inlined_call_operand.vmem [shape: bf16[8,8], index: 2, kind: output, shape index: {}]  }
   0x1   :  { %v330_v0 = vld [vmem:[%s433_s1 + $0x78] sm:$0xff]   ;;  %17 = vst.msk [vmem:[#allocation2] sm:$0xff] %vm16_vm0, %v351_v1  ;;  %320 = vmatprep.subr.bf16.mxu1 %v351_v1  ;;  %324 = vmatprep.mubr.msk.bf16.mxu1 %vm352_vm1, %v351_v1  ;;  %v332_v3 = vld [vmem:[%s433_s1 + $0x70] sm:$0xff]   ;;  %v334_v5 = vld [vmem:[%s433_s1 + $0x68] sm:$0xff]   ;;  %vm267_vm3 = vcmask 60416  }
   0x2   :  { %v331_v2 = vld [vmem:[%s433_s1 + $0x38] sm:$0xff]   ;;  %295 = vmatprep.subr.bf16.mxu0 %v330_v0  ;;  %v333_v4 = vld [vmem:[%s433_s1 + $0x30] sm:$0xff]   ;;  %v335_v6 = vld [vmem:[%s433_s1 + $0x28] sm:$0xff]  }
   0x3   :  { %296 = vmatpush3.bf16.msra.mxu0 %v331_v2  ;;  %v336_v7 = vld [vmem:[%s433_s1 + $0x60] sm:$0xff]   ;;  %v338_v9 = vld [vmem:[%s433_s1 + $0x58] sm:$0xff]   ;;  %v342_v10 = vld [vmem:[%s433_s1 + $0x88] sm:$0xff]  }
   0x4   :  { %297 = vmatprep.subr.bf16.mxu0 %v332_v3  ;;  %v337_v8 = vld [vmem:[%s433_s1 + $0x20] sm:$0xff]   ;;  %v339_v11 = vld [vmem:[%s433_s1 + $0x18] sm:$0xff]   ;;  %321 = vmatpush3.bf16.msra.mxu1 %v342_v10  ;;  %v340_v13 = vld [vmem:[%s433_s1 + $0x50] sm:$0xff]  }
   0x5   :  { %322 = vmatprep.subr.bf16.mxu1 %v351_v1  ;;  %v345_v12 = vld [vmem:[%s433_s1 + $0x80] sm:$0xff]   ;;  %v348_v14 = vld [vmem:[%s434_s0 + $0x8] ss:$0 sps:$4 sm:$0xff]   ;;  %v341_v16 = vld [vmem:[%s433_s1 + $0x10] sm:$0xff]  }
   0x6   :  { %v18_v15 = vld [vmem:[%s434_s0] sm:$0xff]  ;;  %v343_v18 = vld [vmem:[%s433_s1 + $0x48] sm:$0xff]  }
   0x7   :  { %298 = vmatpush3.bf16.msra.mxu0 %v333_v4  ;;  %v274_v17 = vcombine.high %v18_v15, %v18_v15  ;;  %v344_v19 = vld [vmem:[%s433_s1 + $0x8] sm:$0xff]   ;;  %v346_v20 = vld [vmem:[%s433_s1 + $0x40] sm:$0xff]   ;;  %v273_v22 = vcombine.low %v18_v15, %v18_v15 }
   0x8   :  { %299 = vmatprep.subr.bf16.mxu0 %v334_v5  ;;  %323 = vmatpush3.bf16.msra.mxu1 %v345_v12  ;;  %v347_v21 = vld [vmem:[%s433_s1] sm:$0xff]  }
   0x9   :  { %211 = vmatprep.mubr.bf16.mxu0 %v274_v17  ;;  %v20_v30 = vld [vmem:[#allocation2] sm:$0xff] }
   0xb   :  { %300 = vmatpush3.bf16.msra.mxu0 %v335_v6  ;;  %325 = vmatmul.mubr.msk.bf16.vlgmr.msra.gmra.mxu1 %vm175_vm2, %v348_v14 }
   0xc   :  { %301 = vmatprep.subr.bf16.mxu0 %v336_v7 }
   0xf   :  { %302 = vmatpush3.bf16.msra.mxu0 %v337_v8 }
  0x10   :  { %303 = vmatprep.subr.bf16.mxu0 %v338_v9 }
  0x13   :  { %304 = vmatpush3.bf16.msra.mxu0 %v339_v11 }
  0x14   :  { %305 = vmatprep.subr.bf16.mxu0 %v340_v13 }
  0x17   :  { %306 = vmatpush3.bf16.msra.mxu0 %v341_v16 }
  0x18   :  { %307 = vmatprep.subr.bf16.mxu0 %v343_v18 }
  0x1b   :  { %308 = vmatpush3.bf16.msra.mxu0 %v344_v19 }
  0x1c   :  { %309 = vmatprep.subr.bf16.mxu0 %v346_v20 }
  0x1f   :  { %310 = vmatpush3.bf16.msra.mxu0 %v347_v21 }
  0x22   :  { %212 = vmatmul.mubr.bf16.vlgmr.msra.gmra.mxu0 %v273_v22 }
  0xcb   :  { %v253_v23 = vpop.f32.mrf.mxu1 }
  0xcd   :  { %v326_v24 = vpop.f32.mrf.mxu1 }
  0xcf   :  { %v256_v25 = vpop.f32.mrf.mxu1 }
  0xd1   :  { %v327_v26 = vpop.f32.mrf.mxu1 }
  0xe2   :  { %v311_v27 = vpop.f32.mrf.mxu0 }
  0xe4   :  { %v312_v28 = vpop.f32.mrf.mxu0 }
  0xe5   :  { %v313_v29 = vadd.f32 %v312_v28, %v311_v27 }
  0xe6   :  { %v314_v31 = vpop.f32.mrf.mxu0 }
  0xe7   :  { %v254_v32 = vadd.f32 %v313_v29, %v253_v23 }
  0xe8   :  { %v315_v33 = vpop.f32.mrf.mxu0 }
  0xe9   :  { %v259_v34 = vadd.f32 %v254_v32, %v20_v30 }
  0xeb   :  { %261 = vst.msk [vmem:[#allocation2] sm:$0xff] %vm16_vm0, %v259_v34 }
  0xf2   :  { %v265_v35 = vld [vmem:[#allocation2] sm:$0xff] }
  0xf3   :  { %v266_v36 = vpack.c.bf16 %v265_v35, %v265_v35 }
  0xf5   :  { %268 = vst.msk [vmem:[%s435_s2] sm:$0xf] %vm267_vm3, %v266_v36 }

// kernel: densenet_forward.52
= control target key start
LH: loop header
LB: loop body
LE: loop exit
PB: predicated region body
PF: predicated region fallthrough
CT: control target
= control target key end

     0   :  { %v30_v0 = vlaneseq  ;;  %vm38_vm0 = vcmask 1041409   ;;  %vm41_vm1 = vcmask 254976   ;;  %s82_s0 = inlined_call_operand.vmem [shape: bf16[2,1,32], index: 0, kind: input, shape index: {}]   ;;  %s83_s1 = inlined_call_operand.vmem [shape: f32[1,1,32], index: 1, kind: input, shape index: {}]   ;;  %s84_s2 = inlined_call_operand.vmem [shape: f32[1,1,32], index: 2, kind: input, shape index: {}]   ;;  %s85_s3 = inlined_call_operand.vmem [shape: f32[2,32], index: 3, kind: output, shape index: {}]  }
   0x1   :  { %v14_v1 = vld [vmem:[%s82_s0] sm:$0x1]  ;;  %v15_v2 = vld [vmem:[%s82_s0 + $0x1] sm:$0x1] }
   0x2   :  { %v18_v3 = vld [vmem:[%s83_s1] sm:$0x1]  ;;  %v16_v4 = vunpack.c.l.bf16 %v14_v1  ;;  %v17_v5 = vunpack.c.l.bf16 %v15_v2  ;;  %v31_v6 = vshrl.u32 %v30_v0, 7 }
   0x3   :  { %v21_v7 = vld [vmem:[%s84_s2] sm:$0x1] }
   0x4   :  { %v19_v8 = vmul.f32 %v18_v3, %v16_v4  ;;  %v20_v9 = vmul.f32 %v18_v3, %v17_v5  ;;  %v32_v12 = vsub.s32 0, %v31_v6 }
   0x6   :  { %v22_v10 = vadd.f32 %v21_v7, %v19_v8  ;;  %v23_v11 = vadd.f32 %v21_v7, %v20_v9 }
   0x8   :  { %v24_v13 = vmax.f32 %v22_v10, 0.0  ;;  %v25_v14 = vmax.f32 %v23_v11, 0.0 }
   0xa   :  { %v33_v15 = vrot.slane %v24_v13, %v32_v12  ;;  %v37_v16 = vrot.slane %v25_v14, %v32_v12 }
   0xc   :  { %v39_v17 = vsel %vm38_vm0, %v37_v16, %v33_v15 }
   0xd   :  { %42 = vst.msk [vmem:[%s85_s3] sm:$0x3] %vm41_vm1, %v39_v17 }

// kernel: densenet_forward.50
= control target key start
LH: loop header
LB: loop body
LE: loop exit
PB: predicated region body
PF: predicated region fallthrough
CT: control target
= control target key end

     0   :  { %vm28_vm0 = vcmask 261120   ;;  %vm67_vm1 = vcmask 1043456   ;;  %v164_v0 = vmov 0.0   ;;  %vm165_vm2 = vmmov 0   ;;  %s227_s1 = inlined_call_operand.vmem [shape: bf16[24,32], index: 1, kind: input, shape index: {}]   ;;  %s228_s0 = inlined_call_operand.vmem [shape: bf16[8,24], index: 0, kind: input, shape index: {}]   ;;  %s229_s2 = inlined_call_operand.vmem [shape: f32[1,24], index: 2, kind: input, shape index: {}]   ;;  %s230_s3 = inlined_call_operand.vmem [shape: f32[1,24], index: 3, kind: input, shape index: {}]   ;;  %s231_s4 = inlined_call_operand.vmem [shape: f32[1,32], index: 4, kind: input, shape index: {}]   ;;  %s232_s5 = inlined_call_operand.vmem [shape: f32[1,32], index: 5, kind: input, shape index: {}]   ;;  %s233_s6 = inlined_call_operand.vmem [shape: bf16[8,32], index: 6, kind: output, shape index: {}]  }
   0x1   :  { %29 = vst.msk [vmem:[#allocation2] sm:$0xff] %vm28_vm0, %v164_v0  ;;  %152 = vmatprep.subr.bf16.mxu0 %v164_v0  ;;  %v162_v1 = vld [vmem:[%s227_s1 + $0x8] ss:$0 sps:$4 sm:$0xff]   ;;  %156 = vmatprep.mubr.msk.bf16.mxu0 %vm165_vm2, %v164_v0  ;;  %v30_v2 = vld [vmem:[%s228_s0] sm:$0xf]  ;;  %vm63_vm3 = vcmask 195584  }
   0x2   :  { %v69_v3 = vsel %vm67_vm1, %v162_v1, 0  ;;  %v31_v4 = vunpack.c.l.bf16 %v30_v2  ;;  %v142_v5 = vld [vmem:[%s229_s2] ss:$0 sm:$0xff]  ;;  %vm136_vm4 = vcmask 257024  }
   0x3   :  { %153 = vmatpush3.bf16.msra.mxu0 %v69_v3  ;;  %v163_v6 = vld [vmem:[%s227_s1] sm:$0xff]  }
   0x4   :  { %v143_v7 = vld [vmem:[%s230_s3] ss:$0 sm:$0xff]  ;;  %154 = vmatprep.subr.bf16.mxu0 %v164_v0  ;;  %v39_v8 = vmul.f32 %v142_v5, %v31_v4 }
   0x5   :  { %v147_v18 = vld [vmem:[%s231_s4] ss:$0 sm:$0xff] }
   0x6   :  { %v47_v9 = vadd.f32 %v143_v7, %v39_v8  ;;  %v148_v20 = vld [vmem:[%s232_s5] ss:$0 sm:$0xff] }
   0x7   :  { %155 = vmatpush3.bf16.msra.mxu0 %v163_v6 }
   0x8   :  { %v48_v10 = vmax.f32 %v47_v9, 0.0  ;;  %v49_v12 = vld [vmem:[#allocation2] sm:$0xff] }
   0xa   :  { %v50_v11 = vpack.c.bf16 %v48_v10, %v48_v10 }
   0xc   :  { %157 = vmatmul.mubr.msk.bf16.vlgmr.msra.gmra.mxu0 %vm63_vm3, %v50_v11 }
  0xcc   :  { %v105_v13 = vpop.f32.mrf.mxu0 }
  0xcd   :  { %v111_v14 = vadd.f32 %v105_v13, %v49_v12 }
  0xce   :  { %v158_v15 = vpop.f32.mrf.mxu0 }
  0xcf   :  { %113 = vst.msk [vmem:[#allocation2] sm:$0xff] %vm28_vm0, %v111_v14 }
  0xd0   :  { %v108_v16 = vpop.f32.mrf.mxu0 }
  0xd2   :  { %v159_v17 = vpop.f32.mrf.mxu0 }
  0xd6   :  { %v117_v19 = vld [vmem:[#allocation2] sm:$0xff] }
  0xd7   :  { %v125_v21 = vmul.f32 %v147_v18, %v117_v19 }
  0xd9   :  { %v133_v22 = vadd.f32 %v148_v20, %v125_v21 }
  0xdb   :  { %v134_v23 = vmax.f32 %v133_v22, 0.0 }
  0xdd   :  { %v135_v24 = vpack.c.bf16 %v134_v23, %v134_v23 }
  0xdf   :  { %137 = vst.msk [vmem:[%s233_s6] sm:$0xf] %vm136_vm4, %v135_v24 }

// kernel: densenet_forward.53
= control target key start
LH: loop header
LB: loop body
LE: loop exit
PB: predicated region body
PF: predicated region fallthrough
CT: control target
= control target key end

     0   :  { %vm22_vm0 = vcmask 15360   ;;  %v135_v0 = vmov 0.0   ;;  %vm136_vm1 = vmmov 0   ;;  %vm43_vm2 = vcmask 261120   ;;  %s183_s1 = inlined_call_operand.vmem [shape: bf16[32,2], index: 1, kind: input, shape index: {}]   ;;  %s184_s0 = inlined_call_operand.vmem [shape: f32[8,32], index: 0, kind: input, shape index: {}]   ;;  %s185_s2 = inlined_call_operand.vmem [shape: f32[1,2], index: 2, kind: input, shape index: {}]   ;;  %s186_s3 = inlined_call_operand.vmem [shape: f32[1,2], index: 3, kind: input, shape index: {}]   ;;  %s187_s4 = inlined_call_operand.vmem [shape: f32[8,2], index: 4, kind: output, shape index: {}]  }
   0x1   :  { %23 = vst.msk [vmem:[#allocation2] sm:$0xff] %vm22_vm0, %v135_v0  ;;  %123 = vmatprep.subr.bf16.mxu0 %v135_v0  ;;  %v133_v1 = vld [vmem:[%s183_s1 + $0x8] sm:$0xff]   ;;  %127 = vmatprep.mubr.msk.bf16.mxu0 %vm136_vm1, %v135_v0  ;;  %v134_v2 = vld [vmem:[%s183_s1] sm:$0xff]  }
   0x2   :  { %124 = vmatpush3.bf16.msra.mxu0 %v133_v1  ;;  %v24_v3 = vld [vmem:[%s184_s0] sm:$0xff] }
   0x3   :  { %125 = vmatprep.subr.bf16.mxu0 %v135_v0  ;;  %v26_v4 = vpack.c.bf16 %v24_v3, %v24_v3  ;;  %v118_v11 = vld [vmem:[%s185_s2] ss:$0 sm:$0xff] }
   0x4   :  { %v119_v13 = vld [vmem:[%s186_s3] ss:$0 sm:$0xff] }
   0x6   :  { %126 = vmatpush3.bf16.msra.mxu0 %v134_v2 }
   0x8   :  { %v25_v5 = vld [vmem:[#allocation2] sm:$0xff] }
   0x9   :  { %128 = vmatmul.mubr.msk.bf16.vlgmr.msra.gmra.mxu0 %vm43_vm2, %v26_v4 }
  0xc9   :  { %v81_v6 = vpop.f32.mrf.mxu0 }
  0xca   :  { %v87_v7 = vadd.f32 %v81_v6, %v25_v5 }
  0xcb   :  { %v129_v8 = vpop.f32.mrf.mxu0 }
  0xcc   :  { %89 = vst.msk [vmem:[#allocation2] sm:$0xff] %vm22_vm0, %v87_v7 }
  0xcd   :  { %v84_v9 = vpop.f32.mrf.mxu0 }
  0xcf   :  { %v130_v10 = vpop.f32.mrf.mxu0 }
  0xd3   :  { %v93_v12 = vld [vmem:[#allocation2] sm:$0xff] }
  0xd4   :  { %v101_v14 = vmul.f32 %v118_v11, %v93_v12 }
  0xd6   :  { %v109_v15 = vadd.f32 %v119_v13, %v101_v14 }
  0xd8   :  { %110 = vst.msk [vmem:[%s187_s4] sm:$0xff] %vm22_vm0, %v109_v15 }

</bundles_post_ra>
